<compile_context>
chip_gen: v7x
topology: tpu7x:2x2x1
jax: 0.10.0
libtpu: 0.0.40
codegen_flags: <defaults>
</compile_context>

<pallas_src>
import functools

import jax
import jax.numpy as jnp
from jax.experimental import pallas as pl
from jax.experimental.pallas import tpu as pltpu

LANE = 128


def _round_up(n, m):
    return ((n + m - 1) // m) * m


def _leaky_relu(x, slope=0.2):
    return jnp.where(x > 0, x, slope * x)


def _vae_kernel(x_ref, eps_ref,
                ew1, eb1, ew2, eb2, ewh, ebh,
                dw1, db1, dw2, db2, dwo, dbo,
                xhat_ref, mean_ref, logvar_ref, *, lp):
    f32 = jnp.float32
    bf16 = jnp.bfloat16

    x = x_ref[...]

    # ---- Encoder (bf16 MXU operands, f32 accumulation; f32 VPU elementwise) ----
    h = jnp.dot(x.astype(bf16), ew1[...], preferred_element_type=f32) + eb1[...]
    h = _leaky_relu(h)
    h = jnp.dot(h.astype(bf16), ew2[...], preferred_element_type=f32) + eb2[...]
    h = _leaky_relu(h)

    # Fused mean || log_var head: single (H, 2*Lp) matmul, lane-aligned split.
    head = jnp.dot(h.astype(bf16), ewh[...], preferred_element_type=f32) + ebh[...]
    mean = head[:, :lp]
    log_var = head[:, lp:]

    # ---- Reparameterization: z = mean + exp(0.5*log_var) * eps ----
    z = mean + jnp.exp(0.5 * log_var) * eps_ref[...]

    # ---- Decoder ----
    d = jnp.dot(z.astype(bf16), dw1[...], preferred_element_type=f32) + db1[...]
    d = _leaky_relu(d)
    d = jnp.dot(d.astype(bf16), dw2[...], preferred_element_type=f32) + db2[...]
    d = _leaky_relu(d)
    logits = jnp.dot(d.astype(bf16), dwo[...], preferred_element_type=f32) + dbo[...]
    x_hat = jax.nn.sigmoid(logits)  # exp + reciprocal on the EUP

    xhat_ref[...] = x_hat.astype(xhat_ref.dtype)
    mean_ref[...] = mean.astype(mean_ref.dtype)
    logvar_ref[...] = log_var.astype(logvar_ref.dtype)


def _pad2(a, rows, cols):
    r, c = a.shape
    return jnp.pad(a, ((0, rows - r), (0, cols - c)))


@functools.partial(jax.jit, static_argnames=("tb",))
def vae_forward(x, eps, params, *, tb=128):
    """params: 16 f32 arrays (encoder w1,b1,w2,b2,wm,bm,wv,bv; decoder w1,b1,w2,b2,wo,bo)."""
    (ew1, eb1, ew2, eb2, ewm, ebm, ewv, ebv,
     dw1, db1, dw2, db2, dwo, dbo) = params

    B, D = x.shape
    L = eps.shape[1]
    H = ew1.shape[1]

    # Lane-dense padded dims (multiples of 128) + batch padded to a multiple of tb.
    Dp = _round_up(D, LANE)
    Hp = _round_up(H, LANE)
    Lp = _round_up(L, LANE)
    Bp = _round_up(B, tb)

    # Zero-pad inputs: padded feature columns / batch rows contribute nothing and
    # are sliced away after the call.
    xp = jnp.pad(x, ((0, Bp - B), (0, Dp - D)))
    epsp = jnp.pad(eps, ((0, Bp - B), (0, Lp - L)))

    bf16 = jnp.bfloat16
    # Pad + cast weights to bf16 (MXU-native); biases stay f32.
    ew1p = _pad2(ew1, Dp, Hp).astype(bf16); eb1p = _pad2(eb1, 1, Hp)
    ew2p = _pad2(ew2, Hp, Hp).astype(bf16); eb2p = _pad2(eb2, 1, Hp)
    # Fused mean/log_var head: (Hp, 2*Lp) weight, (1, 2*Lp) bias.
    ewhp = jnp.concatenate([_pad2(ewm, Hp, Lp), _pad2(ewv, Hp, Lp)], axis=1).astype(bf16)
    ebhp = jnp.concatenate([_pad2(ebm, 1, Lp), _pad2(ebv, 1, Lp)], axis=1)
    dw1p = _pad2(dw1, Lp, Hp).astype(bf16); db1p = _pad2(db1, 1, Hp)
    dw2p = _pad2(dw2, Hp, Hp).astype(bf16); db2p = _pad2(db2, 1, Hp)
    dwop = _pad2(dwo, Hp, Dp).astype(bf16); dbop = _pad2(dbo, 1, Dp)

    pparams = (ew1p, eb1p, ew2p, eb2p, ewhp, ebhp,
               dw1p, db1p, dw2p, db2p, dwop, dbop)

    io_spec = lambda f: pl.BlockSpec((tb, f), lambda i: (i, 0))
    par_spec = lambda p: pl.BlockSpec(p.shape, lambda i: (0, 0))  # broadcast across grid

    in_specs = [io_spec(Dp), io_spec(Lp)] + [par_spec(p) for p in pparams]
    out_specs = (io_spec(Dp), io_spec(Lp), io_spec(Lp))
    out_shape = (
        jax.ShapeDtypeStruct((Bp, Dp), jnp.float32),  # x_hat (padded)
        jax.ShapeDtypeStruct((Bp, Lp), jnp.float32),  # mean  (padded)
        jax.ShapeDtypeStruct((Bp, Lp), jnp.float32),  # log_var (padded)
    )

    xhat_p, mean_p, logvar_p = pl.pallas_call(
        functools.partial(_vae_kernel, lp=Lp),
        grid=(Bp // tb,),
        in_specs=in_specs,
        out_specs=out_specs,
        out_shape=out_shape,
        compiler_params=pltpu.CompilerParams(dimension_semantics=("parallel",)),
    )(xp, epsp, *pparams)

    return xhat_p[:B, :D], mean_p[:B, :L], logvar_p[:B, :L]


def init_params(key, input_dim, hidden_dim, latent_dim):
    """Deterministic synthetic parameters (weights stored (in, out), biases (1, out))."""
    def linear(k, fan_in, fan_out):
        kw, kb = jax.random.split(k)
        bound = 1.0 / jnp.sqrt(fan_in)
        w = jax.random.uniform(kw, (fan_in, fan_out), jnp.float32, -bound, bound)
        b = jax.random.uniform(kb, (1, fan_out), jnp.float32, -bound, bound)
        return w, b

    keys = jax.random.split(key, 7)
    ew1, eb1 = linear(keys[0], input_dim, hidden_dim)   # FC_input
    ew2, eb2 = linear(keys[1], hidden_dim, hidden_dim)  # FC_input2
    ewm, ebm = linear(keys[2], hidden_dim, latent_dim)  # FC_mean
    ewv, ebv = linear(keys[3], hidden_dim, latent_dim)  # FC_var
    dw1, db1 = linear(keys[4], latent_dim, hidden_dim)  # FC_hidden
    dw2, db2 = linear(keys[5], hidden_dim, hidden_dim)  # FC_hidden2
    dwo, dbo = linear(keys[6], hidden_dim, input_dim)   # FC_output
    return (ew1, eb1, ew2, eb2, ewm, ebm, ewv, ebv,
            dw1, db1, dw2, db2, dwo, dbo)


def reference_forward(x, eps, params):
    """Pure-JAX reference using the same bf16-weight / f32-accumulate math."""
    (ew1, eb1, ew2, eb2, ewm, ebm, ewv, ebv,
     dw1, db1, dw2, db2, dwo, dbo) = params
    bf16, f32 = jnp.bfloat16, jnp.float32

    def lin(a, w, b):
        return jnp.dot(a.astype(bf16), w.astype(bf16), preferred_element_type=f32) + b

    h = _leaky_relu(lin(x, ew1, eb1))
    h = _leaky_relu(lin(h, ew2, eb2))
    mean = lin(h, ewm, ebm)
    log_var = lin(h, ewv, ebv)
    z = mean + jnp.exp(0.5 * log_var) * eps
    d = _leaky_relu(lin(z, dw1, db1))
    d = _leaky_relu(lin(d, dw2, db2))
    x_hat = jax.nn.sigmoid(lin(d, dwo, dbo))
    return x_hat, mean, log_var


if __name__ == "__main__":
    # MNIST-style MLP VAE dims (padded to lane-dense multiples of 128 inside the wrapper).
    B, D, H, L = 256, 784, 400, 20
    tb = 128  # -> 2 "parallel" grid steps (keeps both v7x TensorCores busy)

    root = jax.random.PRNGKey(0)
    k_x, k_eps, k_par = jax.random.split(root, 3)

    x = jax.random.uniform(k_x, (B, D), jnp.float32)      # pixel-like input in [0,1)
    eps = jax.random.normal(k_eps, (B, L), jnp.float32)   # reparameterization noise
    params = init_params(k_par, D, H, L)

    x_hat, mean, log_var = jax.block_until_ready(vae_forward(x, eps, params, tb=tb))

    # Sanity check against pure-JAX reference (bf16 weights -> loosened tolerance).
    r_xhat, r_mean, r_logvar = reference_forward(x, eps, params)
    assert x_hat.shape == (B, D) and mean.shape == (B, L) and log_var.shape == (B, L)
    assert jnp.allclose(x_hat, r_xhat, atol=1e-2, rtol=1e-2)
    assert jnp.allclose(mean, r_mean, atol=1e-2, rtol=1e-2)
    assert jnp.allclose(log_var, r_logvar, atol=1e-2, rtol=1e-2)

    print("KERNEL_OK")
</pallas_src>

<mosaic_0001>
module attributes {stable_mosaic.version = 11 : i64} {
  func.func @_vae_kernel(%arg0: i32, %arg1: memref<128x896xf32, #tpu.memory_space<vmem>>, %arg2: memref<128x128xf32, #tpu.memory_space<vmem>>, %arg3: memref<896x512xbf16, #tpu.memory_space<vmem>>, %arg4: memref<1x512xf32, #tpu.memory_space<vmem>>, %arg5: memref<512x512xbf16, #tpu.memory_space<vmem>>, %arg6: memref<1x512xf32, #tpu.memory_space<vmem>>, %arg7: memref<512x256xbf16, #tpu.memory_space<vmem>>, %arg8: memref<1x256xf32, #tpu.memory_space<vmem>>, %arg9: memref<128x512xbf16, #tpu.memory_space<vmem>>, %arg10: memref<1x512xf32, #tpu.memory_space<vmem>>, %arg11: memref<512x512xbf16, #tpu.memory_space<vmem>>, %arg12: memref<1x512xf32, #tpu.memory_space<vmem>>, %arg13: memref<512x896xbf16, #tpu.memory_space<vmem>>, %arg14: memref<1x896xf32, #tpu.memory_space<vmem>>, %arg15: memref<128x896xf32, #tpu.memory_space<vmem>>, %arg16: memref<128x128xf32, #tpu.memory_space<vmem>>, %arg17: memref<128x128xf32, #tpu.memory_space<vmem>>) attributes {dimension_semantics = [#tpu.dimension_semantics<parallel>], iteration_bounds = array<i64: 2>, scalar_prefetch = 0 : i64, scratch_operands = 0 : i64, tpu.core_type = #tpu.core_type<tc>, window_params = [{transform_indices = @transform_0, window_bounds = array<i64: 128, 896>}, {transform_indices = @transform_1, window_bounds = array<i64: 128, 128>}, {pipeline_mode = #tpu.pipeline_mode<synchronous>, transform_indices = @transform_2, window_bounds = array<i64: 896, 512>}, {pipeline_mode = #tpu.pipeline_mode<synchronous>, transform_indices = @transform_3, window_bounds = array<i64: 1, 512>}, {pipeline_mode = #tpu.pipeline_mode<synchronous>, transform_indices = @transform_4, window_bounds = array<i64: 512, 512>}, {pipeline_mode = #tpu.pipeline_mode<synchronous>, transform_indices = @transform_5, window_bounds = array<i64: 1, 512>}, {pipeline_mode = #tpu.pipeline_mode<synchronous>, transform_indices = @transform_6, window_bounds = array<i64: 512, 256>}, {pipeline_mode = #tpu.pipeline_mode<synchronous>, transform_indices = @transform_7, window_bounds = array<i64: 1, 256>}, {pipeline_mode = #tpu.pipeline_mode<synchronous>, transform_indices = @transform_8, window_bounds = array<i64: 128, 512>}, {pipeline_mode = #tpu.pipeline_mode<synchronous>, transform_indices = @transform_9, window_bounds = array<i64: 1, 512>}, {pipeline_mode = #tpu.pipeline_mode<synchronous>, transform_indices = @transform_10, window_bounds = array<i64: 512, 512>}, {pipeline_mode = #tpu.pipeline_mode<synchronous>, transform_indices = @transform_11, window_bounds = array<i64: 1, 512>}, {pipeline_mode = #tpu.pipeline_mode<synchronous>, transform_indices = @transform_12, window_bounds = array<i64: 512, 896>}, {pipeline_mode = #tpu.pipeline_mode<synchronous>, transform_indices = @transform_13, window_bounds = array<i64: 1, 896>}, {transform_indices = @transform_14, window_bounds = array<i64: 128, 896>}, {transform_indices = @transform_15, window_bounds = array<i64: 128, 128>}, {transform_indices = @transform_16, window_bounds = array<i64: 128, 128>}]} {
    %c0 = arith.constant 0 : index
    %c0_0 = arith.constant 0 : index
    %0 = vector.load %arg1[%c0, %c0_0] : memref<128x896xf32, #tpu.memory_space<vmem>>, vector<128x896xf32>
    %1 = arith.truncf %0 : vector<128x896xf32> to vector<128x896xbf16>
    %c0_1 = arith.constant 0 : index
    %c0_2 = arith.constant 0 : index
    %2 = vector.load %arg3[%c0_1, %c0_2] : memref<896x512xbf16, #tpu.memory_space<vmem>>, vector<896x512xbf16>
    %cst = arith.constant dense<0.000000e+00> : vector<128x512xf32>
    %3 = tpu.matmul %1, %2, %cst {dimension_numbers = #tpu.dot_dimension_numbers<[1], [0], [0], [1], [0, 0, 1, 1], [], []>} : vector<128x896xbf16>, vector<896x512xbf16>, vector<128x512xf32> -> vector<128x512xf32>
    %c0_3 = arith.constant 0 : index
    %c0_4 = arith.constant 0 : index
    %4 = vector.load %arg4[%c0_3, %c0_4] : memref<1x512xf32, #tpu.memory_space<vmem>>, vector<1x512xf32>
    %5 = vector.broadcast %4 : vector<1x512xf32> to vector<128x512xf32>
    %6 = arith.addf %3, %5 : vector<128x512xf32>
    %cst_5 = arith.constant 0.000000e+00 : f32
    %7 = vector.broadcast %cst_5 : f32 to vector<128x512xf32>
    %8 = arith.cmpf ogt, %6, %7 : vector<128x512xf32>
    %cst_6 = arith.constant 2.000000e-01 : f32
    %9 = vector.broadcast %cst_6 : f32 to vector<128x512xf32>
    %10 = arith.mulf %9, %6 : vector<128x512xf32>
    %11 = arith.select %8, %6, %10 : vector<128x512xi1>, vector<128x512xf32>
    %12 = arith.truncf %11 : vector<128x512xf32> to vector<128x512xbf16>
    %c0_7 = arith.constant 0 : index
    %c0_8 = arith.constant 0 : index
    %13 = vector.load %arg5[%c0_7, %c0_8] : memref<512x512xbf16, #tpu.memory_space<vmem>>, vector<512x512xbf16>
    %cst_9 = arith.constant dense<0.000000e+00> : vector<128x512xf32>
    %14 = tpu.matmul %12, %13, %cst_9 {dimension_numbers = #tpu.dot_dimension_numbers<[1], [0], [0], [1], [0, 0, 1, 1], [], []>} : vector<128x512xbf16>, vector<512x512xbf16>, vector<128x512xf32> -> vector<128x512xf32>
    %c0_10 = arith.constant 0 : index
    %c0_11 = arith.constant 0 : index
    %15 = vector.load %arg6[%c0_10, %c0_11] : memref<1x512xf32, #tpu.memory_space<vmem>>, vector<1x512xf32>
    %16 = vector.broadcast %15 : vector<1x512xf32> to vector<128x512xf32>
    %17 = arith.addf %14, %16 : vector<128x512xf32>
    %cst_12 = arith.constant 0.000000e+00 : f32
    %18 = vector.broadcast %cst_12 : f32 to vector<128x512xf32>
    %19 = arith.cmpf ogt, %17, %18 : vector<128x512xf32>
    %cst_13 = arith.constant 2.000000e-01 : f32
    %20 = vector.broadcast %cst_13 : f32 to vector<128x512xf32>
    %21 = arith.mulf %20, %17 : vector<128x512xf32>
    %22 = arith.select %19, %17, %21 : vector<128x512xi1>, vector<128x512xf32>
    %23 = arith.truncf %22 : vector<128x512xf32> to vector<128x512xbf16>
    %c0_14 = arith.constant 0 : index
    %c0_15 = arith.constant 0 : index
    %24 = vector.load %arg7[%c0_14, %c0_15] : memref<512x256xbf16, #tpu.memory_space<vmem>>, vector<512x256xbf16>
    %cst_16 = arith.constant dense<0.000000e+00> : vector<128x256xf32>
    %25 = tpu.matmul %23, %24, %cst_16 {dimension_numbers = #tpu.dot_dimension_numbers<[1], [0], [0], [1], [0, 0, 1, 1], [], []>} : vector<128x512xbf16>, vector<512x256xbf16>, vector<128x256xf32> -> vector<128x256xf32>
    %c0_17 = arith.constant 0 : index
    %c0_18 = arith.constant 0 : index
    %26 = vector.load %arg8[%c0_17, %c0_18] : memref<1x256xf32, #tpu.memory_space<vmem>>, vector<1x256xf32>
    %27 = vector.broadcast %26 : vector<1x256xf32> to vector<128x256xf32>
    %28 = arith.addf %25, %27 : vector<128x256xf32>
    %29 = vector.extract_strided_slice %28 {offsets = [0, 0], sizes = [128, 128], strides = [1, 1]} : vector<128x256xf32> to vector<128x128xf32>
    %30 = vector.extract_strided_slice %28 {offsets = [0, 128], sizes = [128, 128], strides = [1, 1]} : vector<128x256xf32> to vector<128x128xf32>
    %cst_19 = arith.constant 5.000000e-01 : f32
    %31 = vector.broadcast %cst_19 : f32 to vector<128x128xf32>
    %32 = arith.mulf %31, %30 : vector<128x128xf32>
    %33 = math.exp %32 : vector<128x128xf32>
    %c0_20 = arith.constant 0 : index
    %c0_21 = arith.constant 0 : index
    %34 = vector.load %arg2[%c0_20, %c0_21] : memref<128x128xf32, #tpu.memory_space<vmem>>, vector<128x128xf32>
    %35 = arith.mulf %33, %34 : vector<128x128xf32>
    %36 = arith.addf %29, %35 : vector<128x128xf32>
    %37 = arith.truncf %36 : vector<128x128xf32> to vector<128x128xbf16>
    %c0_22 = arith.constant 0 : index
    %c0_23 = arith.constant 0 : index
    %38 = vector.load %arg9[%c0_22, %c0_23] : memref<128x512xbf16, #tpu.memory_space<vmem>>, vector<128x512xbf16>
    %cst_24 = arith.constant dense<0.000000e+00> : vector<128x512xf32>
    %39 = tpu.matmul %37, %38, %cst_24 {dimension_numbers = #tpu.dot_dimension_numbers<[1], [0], [0], [1], [0, 0, 1, 1], [], []>} : vector<128x128xbf16>, vector<128x512xbf16>, vector<128x512xf32> -> vector<128x512xf32>
    %c0_25 = arith.constant 0 : index
    %c0_26 = arith.constant 0 : index
    %40 = vector.load %arg10[%c0_25, %c0_26] : memref<1x512xf32, #tpu.memory_space<vmem>>, vector<1x512xf32>
    %41 = vector.broadcast %40 : vector<1x512xf32> to vector<128x512xf32>
    %42 = arith.addf %39, %41 : vector<128x512xf32>
    %cst_27 = arith.constant 0.000000e+00 : f32
    %43 = vector.broadcast %cst_27 : f32 to vector<128x512xf32>
    %44 = arith.cmpf ogt, %42, %43 : vector<128x512xf32>
    %cst_28 = arith.constant 2.000000e-01 : f32
    %45 = vector.broadcast %cst_28 : f32 to vector<128x512xf32>
    %46 = arith.mulf %45, %42 : vector<128x512xf32>
    %47 = arith.select %44, %42, %46 : vector<128x512xi1>, vector<128x512xf32>
    %48 = arith.truncf %47 : vector<128x512xf32> to vector<128x512xbf16>
    %c0_29 = arith.constant 0 : index
    %c0_30 = arith.constant 0 : index
    %49 = vector.load %arg11[%c0_29, %c0_30] : memref<512x512xbf16, #tpu.memory_space<vmem>>, vector<512x512xbf16>
    %cst_31 = arith.constant dense<0.000000e+00> : vector<128x512xf32>
    %50 = tpu.matmul %48, %49, %cst_31 {dimension_numbers = #tpu.dot_dimension_numbers<[1], [0], [0], [1], [0, 0, 1, 1], [], []>} : vector<128x512xbf16>, vector<512x512xbf16>, vector<128x512xf32> -> vector<128x512xf32>
    %c0_32 = arith.constant 0 : index
    %c0_33 = arith.constant 0 : index
    %51 = vector.load %arg12[%c0_32, %c0_33] : memref<1x512xf32, #tpu.memory_space<vmem>>, vector<1x512xf32>
    %52 = vector.broadcast %51 : vector<1x512xf32> to vector<128x512xf32>
    %53 = arith.addf %50, %52 : vector<128x512xf32>
    %cst_34 = arith.constant 0.000000e+00 : f32
    %54 = vector.broadcast %cst_34 : f32 to vector<128x512xf32>
    %55 = arith.cmpf ogt, %53, %54 : vector<128x512xf32>
    %cst_35 = arith.constant 2.000000e-01 : f32
    %56 = vector.broadcast %cst_35 : f32 to vector<128x512xf32>
    %57 = arith.mulf %56, %53 : vector<128x512xf32>
    %58 = arith.select %55, %53, %57 : vector<128x512xi1>, vector<128x512xf32>
    %59 = arith.truncf %58 : vector<128x512xf32> to vector<128x512xbf16>
    %c0_36 = arith.constant 0 : index
    %c0_37 = arith.constant 0 : index
    %60 = vector.load %arg13[%c0_36, %c0_37] : memref<512x896xbf16, #tpu.memory_space<vmem>>, vector<512x896xbf16>
    %cst_38 = arith.constant dense<0.000000e+00> : vector<128x896xf32>
    %61 = tpu.matmul %59, %60, %cst_38 {dimension_numbers = #tpu.dot_dimension_numbers<[1], [0], [0], [1], [0, 0, 1, 1], [], []>} : vector<128x512xbf16>, vector<512x896xbf16>, vector<128x896xf32> -> vector<128x896xf32>
    %c0_39 = arith.constant 0 : index
    %c0_40 = arith.constant 0 : index
    %62 = vector.load %arg14[%c0_39, %c0_40] : memref<1x896xf32, #tpu.memory_space<vmem>>, vector<1x896xf32>
    %63 = vector.broadcast %62 : vector<1x896xf32> to vector<128x896xf32>
    %64 = arith.addf %61, %63 : vector<128x896xf32>
    %65 = arith.negf %64 : vector<128x896xf32>
    %66 = math.exp %65 : vector<128x896xf32>
    %cst_41 = arith.constant 1.000000e+00 : f32
    %67 = vector.broadcast %cst_41 : f32 to vector<128x896xf32>
    %68 = arith.addf %67, %66 : vector<128x896xf32>
    %69 = arith.divf %67, %68 : vector<128x896xf32>
    %c0_42 = arith.constant 0 : index
    %c0_43 = arith.constant 0 : index
    %70 = vector.load %arg15[%c0_42, %c0_43] : memref<128x896xf32, #tpu.memory_space<vmem>>, vector<128x896xf32>
    tpu.vector_store %arg15[%c0_42, %c0_43], %69 {strides = array<i32>} : memref<128x896xf32, #tpu.memory_space<vmem>>, vector<128x896xf32>,
    %c0_44 = arith.constant 0 : index
    %c0_45 = arith.constant 0 : index
    %71 = vector.load %arg16[%c0_44, %c0_45] : memref<128x128xf32, #tpu.memory_space<vmem>>, vector<128x128xf32>
    tpu.vector_store %arg16[%c0_44, %c0_45], %29 {strides = array<i32>} : memref<128x128xf32, #tpu.memory_space<vmem>>, vector<128x128xf32>,
    %c0_46 = arith.constant 0 : index
    %c0_47 = arith.constant 0 : index
    %72 = vector.load %arg17[%c0_46, %c0_47] : memref<128x128xf32, #tpu.memory_space<vmem>>, vector<128x128xf32>
    tpu.vector_store %arg17[%c0_46, %c0_47], %30 {strides = array<i32>} : memref<128x128xf32, #tpu.memory_space<vmem>>, vector<128x128xf32>,
    return
  }
  func.func @transform_0(%arg0: i32) -> (i32, i32) {
    %c0_i32 = arith.constant 0 : i32
    %c0_i32_0 = arith.constant 0 : i32
    return %arg0, %c0_i32 : i32, i32
  }
  func.func @transform_1(%arg0: i32) -> (i32, i32) {
    %c0_i32 = arith.constant 0 : i32
    %c0_i32_0 = arith.constant 0 : i32
    return %arg0, %c0_i32 : i32, i32
  }
  func.func @transform_2(%arg0: i32) -> (i32, i32) {
    %c0_i32 = arith.constant 0 : i32
    %c0_i32_0 = arith.constant 0 : i32
    %c0_i32_1 = arith.constant 0 : i32
    return %c0_i32, %c0_i32_0 : i32, i32
  }
  func.func @transform_3(%arg0: i32) -> (i32, i32) {
    %c0_i32 = arith.constant 0 : i32
    %c0_i32_0 = arith.constant 0 : i32
    %c0_i32_1 = arith.constant 0 : i32
    return %c0_i32, %c0_i32_0 : i32, i32
  }
  func.func @transform_4(%arg0: i32) -> (i32, i32) {
    %c0_i32 = arith.constant 0 : i32
    %c0_i32_0 = arith.constant 0 : i32
    %c0_i32_1 = arith.constant 0 : i32
    return %c0_i32, %c0_i32_0 : i32, i32
  }
  func.func @transform_5(%arg0: i32) -> (i32, i32) {
    %c0_i32 = arith.constant 0 : i32
    %c0_i32_0 = arith.constant 0 : i32
    %c0_i32_1 = arith.constant 0 : i32
    return %c0_i32, %c0_i32_0 : i32, i32
  }
  func.func @transform_6(%arg0: i32) -> (i32, i32) {
    %c0_i32 = arith.constant 0 : i32
    %c0_i32_0 = arith.constant 0 : i32
    %c0_i32_1 = arith.constant 0 : i32
    return %c0_i32, %c0_i32_0 : i32, i32
  }
  func.func @transform_7(%arg0: i32) -> (i32, i32) {
    %c0_i32 = arith.constant 0 : i32
    %c0_i32_0 = arith.constant 0 : i32
    %c0_i32_1 = arith.constant 0 : i32
    return %c0_i32, %c0_i32_0 : i32, i32
  }
  func.func @transform_8(%arg0: i32) -> (i32, i32) {
    %c0_i32 = arith.constant 0 : i32
    %c0_i32_0 = arith.constant 0 : i32
    %c0_i32_1 = arith.constant 0 : i32
    return %c0_i32, %c0_i32_0 : i32, i32
  }
  func.func @transform_9(%arg0: i32) -> (i32, i32) {
    %c0_i32 = arith.constant 0 : i32
    %c0_i32_0 = arith.constant 0 : i32
    %c0_i32_1 = arith.constant 0 : i32
    return %c0_i32, %c0_i32_0 : i32, i32
  }
  func.func @transform_10(%arg0: i32) -> (i32, i32) {
    %c0_i32 = arith.constant 0 : i32
    %c0_i32_0 = arith.constant 0 : i32
    %c0_i32_1 = arith.constant 0 : i32
    return %c0_i32, %c0_i32_0 : i32, i32
  }
  func.func @transform_11(%arg0: i32) -> (i32, i32) {
    %c0_i32 = arith.constant 0 : i32
    %c0_i32_0 = arith.constant 0 : i32
    %c0_i32_1 = arith.constant 0 : i32
    return %c0_i32, %c0_i32_0 : i32, i32
  }
  func.func @transform_12(%arg0: i32) -> (i32, i32) {
    %c0_i32 = arith.constant 0 : i32
    %c0_i32_0 = arith.constant 0 : i32
    %c0_i32_1 = arith.constant 0 : i32
    return %c0_i32, %c0_i32_0 : i32, i32
  }
  func.func @transform_13(%arg0: i32) -> (i32, i32) {
    %c0_i32 = arith.constant 0 : i32
    %c0_i32_0 = arith.constant 0 : i32
    %c0_i32_1 = arith.constant 0 : i32
    return %c0_i32, %c0_i32_0 : i32, i32
  }
  func.func @transform_14(%arg0: i32) -> (i32, i32) {
    %c0_i32 = arith.constant 0 : i32
    %c0_i32_0 = arith.constant 0 : i32
    return %arg0, %c0_i32 : i32, i32
  }
  func.func @transform_15(%arg0: i32) -> (i32, i32) {
    %c0_i32 = arith.constant 0 : i32
    %c0_i32_0 = arith.constant 0 : i32
    return %arg0, %c0_i32 : i32, i32
  }
  func.func @transform_16(%arg0: i32) -> (i32, i32) {
    %c0_i32 = arith.constant 0 : i32
    %c0_i32_0 = arith.constant 0 : i32
    return %arg0, %c0_i32 : i32, i32
  }
}

</mosaic_0001>

<bundles_post_ra>
// kernel: vae_forward.1
= control target key start
LH: loop header
LB: loop body
LE: loop exit
PB: predicated region body
PF: predicated region fallthrough
CT: control target
= control target key end

     0   :  { %s14429_s21 = smov 0   ;;  %s19055_s0 = inlined_call_operand.vmem [shape: f32[256,896], index: 0, kind: input, shape index: {}]   ;;  %s19056_s1 = inlined_call_operand.vmem [shape: f32[256,128], index: 1, kind: input, shape index: {}]   ;;  %s19057_s2 = inlined_call_operand.vmem [shape: bf16[896,512], index: 2, kind: input, shape index: {}]   ;;  %s19058_s3 = inlined_call_operand.vmem [shape: f32[1,512], index: 3, kind: input, shape index: {}]   ;;  %s19059_s4 = inlined_call_operand.vmem [shape: bf16[512,512], index: 4, kind: input, shape index: {}]   ;;  %s19060_s5 = inlined_call_operand.vmem [shape: f32[1,512], index: 5, kind: input, shape index: {}]   ;;  %s19061_s6 = inlined_call_operand.vmem [shape: bf16[512,256], index: 6, kind: input, shape index: {}]   ;;  %s19062_s7 = inlined_call_operand.vmem [shape: f32[1,256], index: 7, kind: input, shape index: {}]   ;;  %s19063_s8 = inlined_call_operand.vmem [shape: bf16[128,512], index: 8, kind: input, shape index: {}]   ;;  %s19064_s9 = inlined_call_operand.vmem [shape: f32[1,512], index: 9, kind: input, shape index: {}]   ;;  %s19065_s10 = inlined_call_operand.vmem [shape: bf16[512,512], index: 10, kind: input, shape index: {}]   ;;  %s19066_s11 = inlined_call_operand.vmem [shape: f32[1,512], index: 11, kind: input, shape index: {}]   ;;  %s19067_s12 = inlined_call_operand.vmem [shape: bf16[512,896], index: 12, kind: input, shape index: {}]   ;;  %s19068_s13 = inlined_call_operand.vmem [shape: f32[1,896], index: 13, kind: input, shape index: {}]   ;;  %s19069_s14 = inlined_call_operand.vmem [shape: f32[256,896], index: 14, kind: output, shape index: {0}]   ;;  %s19070_s15 = inlined_call_operand.vmem [shape: f32[256,128], index: 15, kind: output, shape index: {1}]   ;;  %s19071_s16 = inlined_call_operand.vmem [shape: f32[256,128], index: 16, kind: output, shape index: {2}]  }
   0x1   :  { %19100 = sst [smem:[#allocation21_spill]] %s19055_s0 }
   0x2 LB: > { %s10835_s22 = sadd.s32 4294967295, %s14341_s21   ;;  %p10839_p0 = scmp.ge.s32.totalorder %s14341_s21, 1  ;;  %s14341_s21 = sphi %s14429_s21, %s27_s21  }
   0x3   : > { %p480_p1 = scmp.lt.s32.totalorder %s14341_s21, 3 }
   0x5   : > { %p481_p2 = pnand %p10839_p0, %p480_p1 }
   0x7   : > { %484 = sbr.rel (%p481_p2) target bundleno = 2136 (0x858), region = 76 }
   0xe   : > { %v12670_v0 = vld [vmem:[%s19057_s2 + $0x4] ss:$16 sps:$4 sm:$0xff]   ;;  %v12672_v1 = vld [vmem:[%s19057_s2 + $0xc] ss:$16 sps:$4 sm:$0xff]   ;;  %v12674_v2 = vld [vmem:[%s19057_s2] ss:$16 sps:$4 sm:$0xff]  }
   0xf   : > { %2114 = vmatprep.subr.bf16.mxu0 %v12670_v0  ;;  %v12675_v3 = vld [vmem:[%s19057_s2 + $0x8] ss:$16 sps:$4 sm:$0xff]   ;;  %2566 = vmatprep.subr.bf16.mxu1 %v12672_v1  ;;  %v12676_v4 = vld [vmem:[%s19057_s2 + $0x24] ss:$16 sps:$4 sm:$0xff]   ;;  %v12678_v5 = vld [vmem:[%s19057_s2 + $0x2c] ss:$16 sps:$4 sm:$0xff]  }
  0x10   : > { %2115 = vmatpush1.bf16.msra.mxu0 %v12674_v2  ;;  %2567 = vmatpush1.bf16.msra.mxu1 %v12675_v3  ;;  %v12680_v6 = vld [vmem:[%s19057_s2 + $0x20] ss:$16 sps:$4 sm:$0xff]   ;;  %v12681_v7 = vld [vmem:[%s19057_s2 + $0x28] ss:$16 sps:$4 sm:$0xff]   ;;  %v12682_v8 = vld [vmem:[%s19057_s2 + $0x44] ss:$16 sps:$4 sm:$0xff]  }
  0x11   : > { %2116 = vmatprep.subr.bf16.mxu0 %v12676_v4  ;;  %2568 = vmatprep.subr.bf16.mxu1 %v12678_v5  ;;  %v12684_v9 = vld [vmem:[%s19057_s2 + $0x4c] ss:$16 sps:$4 sm:$0xff]   ;;  %v12686_v10 = vld [vmem:[%s19057_s2 + $0x40] ss:$16 sps:$4 sm:$0xff]   ;;  %v12687_v11 = vld [vmem:[%s19057_s2 + $0x48] ss:$16 sps:$4 sm:$0xff]  }
  0x12   : > { %v12688_v12 = vld [vmem:[%s19057_s2 + $0x64] ss:$16 sps:$4 sm:$0xff]   ;;  %v12690_v13 = vld [vmem:[%s19057_s2 + $0x6c] ss:$16 sps:$4 sm:$0xff]   ;;  %v12692_v14 = vld [vmem:[%s19057_s2 + $0x60] ss:$16 sps:$4 sm:$0xff]  }
  0x13   : > { %v12693_v15 = vld [vmem:[%s19057_s2 + $0x68] ss:$16 sps:$4 sm:$0xff]   ;;  %v12694_v16 = vld [vmem:[%s19057_s2 + $0x84] ss:$16 sps:$4 sm:$0xff]   ;;  %v12696_v17 = vld [vmem:[%s19057_s2 + $0x8c] ss:$16 sps:$4 sm:$0xff]  }
  0x14   : > { %2117 = vmatpush1.bf16.msra.mxu0 %v12680_v6  ;;  %2569 = vmatpush1.bf16.msra.mxu1 %v12681_v7  ;;  %v12698_v18 = vld [vmem:[%s19057_s2 + $0x80] ss:$16 sps:$4 sm:$0xff]   ;;  %v12699_v19 = vld [vmem:[%s19057_s2 + $0x88] ss:$16 sps:$4 sm:$0xff]   ;;  %v12700_v20 = vld [vmem:[%s19057_s2 + $0xa4] ss:$16 sps:$4 sm:$0xff]  }
  0x15   : > { %2118 = vmatprep.subr.bf16.mxu0 %v12682_v8  ;;  %2570 = vmatprep.subr.bf16.mxu1 %v12684_v9  ;;  %v12702_v21 = vld [vmem:[%s19057_s2 + $0xac] ss:$16 sps:$4 sm:$0xff]   ;;  %v12704_v22 = vld [vmem:[%s19057_s2 + $0xa0] ss:$16 sps:$4 sm:$0xff]   ;;  %v12705_v23 = vld [vmem:[%s19057_s2 + $0xa8] ss:$16 sps:$4 sm:$0xff]  }
  0x16   : > { %v12706_v24 = vld [vmem:[%s19057_s2 + $0xc4] ss:$16 sps:$4 sm:$0xff]   ;;  %v12708_v25 = vld [vmem:[%s19057_s2 + $0xcc] ss:$16 sps:$4 sm:$0xff]   ;;  %v12710_v26 = vld [vmem:[%s19057_s2 + $0xc0] ss:$16 sps:$4 sm:$0xff]  }
  0x17   : > { %v12711_v27 = vld [vmem:[%s19057_s2 + $0xc8] ss:$16 sps:$4 sm:$0xff]   ;;  %v12712_v28 = vld [vmem:[%s19057_s2 + $0xe4] ss:$16 sps:$4 sm:$0xff]   ;;  %s10840_s29 = sshll.u32 %s10835_s22, 4  ;;  %s19101_s22 = sld [smem:[#allocation21_spill]] }
  0x18   : > { %2119 = vmatpush1.bf16.msra.mxu0 %v12686_v10  ;;  %2571 = vmatpush1.bf16.msra.mxu1 %v12687_v11  ;;  %v12714_v29 = vld [vmem:[%s19057_s2 + $0xec] ss:$16 sps:$4 sm:$0xff]   ;;  %v12716_v30 = vld [vmem:[%s19057_s2 + $0xe0] ss:$16 sps:$4 sm:$0xff]   ;;  %p548_p3 = scmp.lt.s32.totalorder %s10840_s29, 31 }
  0x19   : > { %2120 = vmatprep.subr.bf16.mxu0 %v12688_v12  ;;  %2572 = vmatprep.subr.bf16.mxu1 %v12690_v13  ;;  %v12717_v31 = vld [vmem:[%s19057_s2 + $0xe8] ss:$16 sps:$4 sm:$0xff]   ;;  %v12718_v32 = vld [vmem:[%s19057_s2 + $0x104] ss:$16 sps:$4 sm:$0xff]   ;;  %v12720_v33 = vld [vmem:[%s19057_s2 + $0x10c] ss:$16 sps:$4 sm:$0xff]  }
  0x1a   : > { %v12722_v34 = vld [vmem:[%s19057_s2 + $0x100] ss:$16 sps:$4 sm:$0xff]   ;;  %v12723_v35 = vld [vmem:[%s19057_s2 + $0x108] ss:$16 sps:$4 sm:$0xff]   ;;  %s19185_s29 = smov (!%p548_p3, %s10840_s29), 31 }
  0x1b   : > { %v12724_v36 = vld [vmem:[%s19057_s2 + $0x124] ss:$16 sps:$4 sm:$0xff]   ;;  %v12726_v37 = vld [vmem:[%s19057_s2 + $0x12c] ss:$16 sps:$4 sm:$0xff]   ;;  %v12728_v38 = vld [vmem:[%s19057_s2 + $0x120] ss:$16 sps:$4 sm:$0xff]  }
  0x1c   : > { %2121 = vmatpush1.bf16.msra.mxu0 %v12692_v14  ;;  %2573 = vmatpush1.bf16.msra.mxu1 %v12693_v15  ;;  %s12660_s24 = smul.u32 56, %s19185_s29  ;;  %v12729_v39 = vld [vmem:[%s19057_s2 + $0x128] ss:$16 sps:$4 sm:$0xff]   ;;  %v12730_v40 = vld [vmem:[%s19057_s2 + $0x144] ss:$16 sps:$4 sm:$0xff]   ;;  %s16863_s23 = sshll.u32 %s19185_s29, 3 }
  0x1d   : > { %2122 = vmatprep.subr.bf16.mxu0 %v12694_v16  ;;  %2574 = vmatprep.subr.bf16.mxu1 %v12696_v17  ;;  %v12732_v41 = vld [vmem:[%s19057_s2 + $0x14c] ss:$16 sps:$4 sm:$0xff]   ;;  %v12734_v42 = vld [vmem:[%s19057_s2 + $0x140] ss:$16 sps:$4 sm:$0xff]   ;;  %v12735_v43 = vld [vmem:[%s19057_s2 + $0x148] ss:$16 sps:$4 sm:$0xff]   ;;  %s16875_s27 = scalar_lea.vmem %s19070_s15, %s16863_s23  ;;  %s16882_s0 = scalar_lea.vmem %s19071_s16, %s16863_s23 }
  0x1e   : > { %s14579_s25 = scalar_lea.vmem %s19101_s22, %s12660_s24  ;;  %v12736_v44 = vld [vmem:[%s19057_s2 + $0x164] ss:$16 sps:$4 sm:$0xff]   ;;  %v12738_v45 = vld [vmem:[%s19057_s2 + $0x16c] ss:$16 sps:$4 sm:$0xff]   ;;  %v12740_v47 = vld [vmem:[%s19057_s2 + $0x160] ss:$16 sps:$4 sm:$0xff]   ;;  %s16906_s18 = scalar_lea.vmem %s19056_s1, %s16863_s23 }
  0x1f   : > { %v581_v46 = vld [vmem:[%s14579_s25 + $0x8] sm:$0xff]  ;;  %v588_v49 = vld [vmem:[%s14579_s25 + $0x40] sm:$0xff]  ;;  %v587_v4 = vld [vmem:[%s14579_s25 + $0x38] sm:$0xff] }
  0x20   : > { %2123 = vmatpush1.bf16.msra.mxu0 %v12698_v18  ;;  %2575 = vmatpush1.bf16.msra.mxu1 %v12699_v19  ;;  %v12741_v48 = vld [vmem:[%s19057_s2 + $0x168] ss:$16 sps:$4 sm:$0xff]   ;;  %v12742_v50 = vld [vmem:[%s19057_s2 + $0x184] ss:$16 sps:$4 sm:$0xff]   ;;  %v693_v51 = vpack.c.bf16 %v588_v49, %v581_v46  ;;  %v12744_v52 = vld [vmem:[%s19057_s2 + $0x18c] ss:$16 sps:$4 sm:$0xff]  }
  0x21   : > { %2124 = vmatprep.subr.bf16.mxu0 %v12700_v20  ;;  %2576 = vmatprep.subr.bf16.mxu1 %v12702_v21  ;;  %v12746_v53 = vld [vmem:[%s19057_s2 + $0x180] ss:$16 sps:$4 sm:$0xff]   ;;  %v12747_v54 = vld [vmem:[%s19057_s2 + $0x188] ss:$16 sps:$4 sm:$0xff]   ;;  %v12748_v55 = vld [vmem:[%s19057_s2 + $0x1a4] ss:$16 sps:$4 sm:$0xff]  }
  0x22   : > { %2146 = vmatprep.mubr.bf16.mxu0 %v693_v51  ;;  %2598 = vmatprep.mubr.bf16.mxu1 %v693_v51  ;;  %v12750_v56 = vld [vmem:[%s19057_s2 + $0x1ac] ss:$16 sps:$4 sm:$0xff]   ;;  %v12752_v57 = vld [vmem:[%s19057_s2 + $0x1a0] ss:$16 sps:$4 sm:$0xff]   ;;  %v12753_v58 = vld [vmem:[%s19057_s2 + $0x1a8] ss:$16 sps:$4 sm:$0xff]  }
  0x23   : > { %v12754_v59 = vld [vmem:[%s19057_s2 + $0x1c4] ss:$16 sps:$4 sm:$0xff]   ;;  %v12756_v60 = vld [vmem:[%s19057_s2 + $0x1cc] ss:$16 sps:$4 sm:$0xff]   ;;  %v12758_v61 = vld [vmem:[%s19057_s2 + $0x1c0] ss:$16 sps:$4 sm:$0xff]  }
  0x24   : > { %2125 = vmatpush1.bf16.msra.mxu0 %v12704_v22  ;;  %2577 = vmatpush1.bf16.msra.mxu1 %v12705_v23  ;;  %v12759_v62 = vld [vmem:[%s19057_s2 + $0x1c8] ss:$16 sps:$4 sm:$0xff]   ;;  %v12760_v63 = vld [vmem:[%s19057_s2 + $0x1e4] ss:$16 sps:$4 sm:$0xff]   ;;  %v12762_v0 = vld [vmem:[%s19057_s2 + $0x1ec] ss:$16 sps:$4 sm:$0xff]  }
  0x25   : > { %2126 = vmatprep.subr.bf16.mxu0 %v12706_v24  ;;  %2578 = vmatprep.subr.bf16.mxu1 %v12708_v25  ;;  %v12764_v1 = vld [vmem:[%s19057_s2 + $0x1e0] ss:$16 sps:$4 sm:$0xff]   ;;  %v12765_v2 = vld [vmem:[%s19057_s2 + $0x1e8] ss:$16 sps:$4 sm:$0xff]   ;;  %v12768_v5 = vld [vmem:[%s19057_s2 + $0x204] ss:$16 sps:$4 sm:$0xff]  }
  0x26   : > { %v580_v3 = vld [vmem:[%s14579_s25] sm:$0xff]  ;;  %v12771_v6 = vld [vmem:[%s19057_s2 + $0x20c] ss:$16 sps:$4 sm:$0xff]   ;;  %v12769_v9 = vld [vmem:[%s19057_s2 + $0x208] ss:$16 sps:$4 sm:$0xff]  }
  0x27   : > { %v12766_v7 = vld [vmem:[%s19057_s2 + $0x200] ss:$16 sps:$4 sm:$0xff]   ;;  %v692_v8 = vpack.c.bf16 %v587_v4, %v580_v3  ;;  %v595_v10 = vld [vmem:[%s14579_s25 + $0x78] sm:$0xff]  ;;  %v12774_v12 = vld [vmem:[%s19057_s2 + $0x224] ss:$16 sps:$4 sm:$0xff]  }
  0x28   : > { %2127 = vmatpush1.bf16.msra.mxu0 %v12710_v26  ;;  %2579 = vmatpush1.bf16.msra.mxu1 %v12711_v27  ;;  %v602_v11 = vld [vmem:[%s14579_s25 + $0xb0] sm:$0xff]  ;;  %v12777_v13 = vld [vmem:[%s19057_s2 + $0x22c] ss:$16 sps:$4 sm:$0xff]   ;;  %v12775_v16 = vld [vmem:[%s19057_s2 + $0x228] ss:$16 sps:$4 sm:$0xff]  }
  0x29   : > { %2128 = vmatprep.subr.bf16.mxu0 %v12712_v28  ;;  %2580 = vmatprep.subr.bf16.mxu1 %v12714_v29  ;;  %v12772_v14 = vld [vmem:[%s19057_s2 + $0x220] ss:$16 sps:$4 sm:$0xff]   ;;  %v700_v15 = vpack.c.bf16 %v602_v11, %v595_v10  ;;  %v601_v18 = vld [vmem:[%s14579_s25 + $0xa8] sm:$0xff]  ;;  %v12780_v19 = vld [vmem:[%s19057_s2 + $0x244] ss:$16 sps:$4 sm:$0xff]  }
  0x2a   : > { %v594_v17 = vld [vmem:[%s14579_s25 + $0x70] sm:$0xff]  ;;  %v12783_v20 = vld [vmem:[%s19057_s2 + $0x24c] ss:$16 sps:$4 sm:$0xff]   ;;  %v12781_v22 = vld [vmem:[%s19057_s2 + $0x248] ss:$16 sps:$4 sm:$0xff]  }
  0x2b   : > { %v12778_v21 = vld [vmem:[%s19057_s2 + $0x240] ss:$16 sps:$4 sm:$0xff]   ;;  %v699_v23 = vpack.c.bf16 %v601_v18, %v594_v17  ;;  %v609_v24 = vld [vmem:[%s14579_s25 + $0xe8] sm:$0xff]  ;;  %v12786_v26 = vld [vmem:[%s19057_s2 + $0x264] ss:$16 sps:$4 sm:$0xff]  }
  0x2c   : > { %2129 = vmatpush1.bf16.msra.mxu0 %v12716_v30  ;;  %2581 = vmatpush1.bf16.msra.mxu1 %v12717_v31  ;;  %v616_v25 = vld [vmem:[%s14579_s25 + $0x120] sm:$0xff]  ;;  %v12789_v27 = vld [vmem:[%s19057_s2 + $0x26c] ss:$16 sps:$4 sm:$0xff]   ;;  %v12787_v30 = vld [vmem:[%s19057_s2 + $0x268] ss:$16 sps:$4 sm:$0xff]  }
  0x2d   : > { %2130 = vmatprep.subr.bf16.mxu0 %v12718_v32  ;;  %2582 = vmatprep.subr.bf16.mxu1 %v12720_v33  ;;  %v707_v28 = vpack.c.bf16 %v616_v25, %v609_v24  ;;  %v12784_v29 = vld [vmem:[%s19057_s2 + $0x260] ss:$16 sps:$4 sm:$0xff]   ;;  %v615_v32 = vld [vmem:[%s14579_s25 + $0x118] sm:$0xff]  ;;  %v12792_v33 = vld [vmem:[%s19057_s2 + $0x284] ss:$16 sps:$4 sm:$0xff]  }
  0x2e   : > { %v608_v31 = vld [vmem:[%s14579_s25 + $0xe0] sm:$0xff]  ;;  %v629_v46 = vld [vmem:[%s14579_s25 + $0x188] sm:$0xff]  ;;  %v671_v24 = vld [vmem:[%s14579_s25 + $0x2d8] sm:$0xff] }
  0x2f   : > { %v12802_v49 = vld [vmem:[%s19057_s2 + $0x2c0] ss:$16 sps:$4 sm:$0xff]   ;;  %v637_v51 = vld [vmem:[%s14579_s25 + $0x1c8] sm:$0xff]  ;;  %v12822_v4 = vld [vmem:[%s19057_s2 + $0x324] ss:$16 sps:$4 sm:$0xff]  }
  0x30   : > { %2131 = vmatpush1.bf16.msra.mxu0 %v12722_v34  ;;  %2583 = vmatpush1.bf16.msra.mxu1 %v12723_v35  ;;  %v12795_v34 = vld [vmem:[%s19057_s2 + $0x28c] ss:$16 sps:$4 sm:$0xff]   ;;  %v12790_v35 = vld [vmem:[%s19057_s2 + $0x280] ss:$16 sps:$4 sm:$0xff]   ;;  %v12817_v3 = vld [vmem:[%s19057_s2 + $0x308] ss:$16 sps:$4 sm:$0xff]  }
  0x31   : > { %2132 = vmatprep.subr.bf16.mxu0 %v12724_v36  ;;  %2584 = vmatprep.subr.bf16.mxu1 %v12726_v37  ;;  %v12793_v36 = vld [vmem:[%s19057_s2 + $0x288] ss:$16 sps:$4 sm:$0xff]   ;;  %v706_v37 = vpack.c.bf16 %v615_v32, %v608_v31  ;;  %v12828_v11 = vld [vmem:[%s19057_s2 + $0x344] ss:$16 sps:$4 sm:$0xff]  }
  0x32   : > { %v657_v10 = vld [vmem:[%s14579_s25 + $0x268] sm:$0xff]  ;;  %v672_v17 = vld [vmem:[%s14579_s25 + $0x2e0] sm:$0xff]  ;;  %v686_v31 = vld [vmem:[%s14579_s25 + $0x350] sm:$0xff] }
  0x33   : > { %v12834_v18 = vld [vmem:[%s19057_s2 + $0x364] ss:$16 sps:$4 sm:$0xff]  }
  0x34   : > { %2133 = vmatpush1.bf16.msra.mxu0 %v12728_v38  ;;  %2585 = vmatpush1.bf16.msra.mxu1 %v12729_v39  ;;  %v623_v38 = vld [vmem:[%s14579_s25 + $0x158] sm:$0xff]  ;;  %v630_v39 = vld [vmem:[%s14579_s25 + $0x190] sm:$0xff] }
  0x35   : > { %2134 = vmatprep.subr.bf16.mxu0 %v12730_v40  ;;  %2586 = vmatprep.subr.bf16.mxu1 %v12732_v41  ;;  %v12798_v40 = vld [vmem:[%s19057_s2 + $0x2a4] ss:$16 sps:$4 sm:$0xff]   ;;  %v12801_v41 = vld [vmem:[%s19057_s2 + $0x2ac] ss:$16 sps:$4 sm:$0xff]  }
  0x36   : > { %v12840_v25 = vld [vmem:[%s19057_s2 + $0x384] ss:$16 sps:$4 sm:$0xff]  }
  0x37   : > { %v12846_v32 = vld [vmem:[%s19057_s2 + $0x3a4] ss:$16 sps:$4 sm:$0xff]  }
  0x38   : > { %2135 = vmatpush1.bf16.msra.mxu0 %v12734_v42  ;;  %2587 = vmatpush1.bf16.msra.mxu1 %v12735_v43  ;;  %v12796_v42 = vld [vmem:[%s19057_s2 + $0x2a0] ss:$16 sps:$4 sm:$0xff]   ;;  %v714_v43 = vpack.c.bf16 %v630_v39, %v623_v38  ;;  %v685_v38 = vld [vmem:[%s14579_s25 + $0x348] sm:$0xff]  ;;  %v12852_v39 = vld [vmem:[%s19057_s2 + $0x3c4] ss:$16 sps:$4 sm:$0xff]  }
  0x39   : > { %2136 = vmatprep.subr.bf16.mxu0 %v12736_v44  ;;  %2588 = vmatprep.subr.bf16.mxu1 %v12738_v45  ;;  %v12799_v44 = vld [vmem:[%s19057_s2 + $0x2a8] ss:$16 sps:$4 sm:$0xff]   ;;  %v622_v45 = vld [vmem:[%s14579_s25 + $0x150] sm:$0xff] }
  0x3c   : > { %2137 = vmatpush1.bf16.msra.mxu0 %v12740_v47  ;;  %2589 = vmatpush1.bf16.msra.mxu1 %v12741_v48  ;;  %v12804_v47 = vld [vmem:[%s19057_s2 + $0x2c4] ss:$16 sps:$4 sm:$0xff]   ;;  %v12807_v48 = vld [vmem:[%s19057_s2 + $0x2cc] ss:$16 sps:$4 sm:$0xff]  }
  0x3d   : > { %2138 = vmatprep.subr.bf16.mxu0 %v12742_v50  ;;  %2590 = vmatprep.subr.bf16.mxu1 %v12744_v52  ;;  %v713_v50 = vpack.c.bf16 %v629_v46, %v622_v45  ;;  %v644_v52 = vld [vmem:[%s14579_s25 + $0x200] sm:$0xff]  ;;  %v590_v45 = vld [vmem:[%s14579_s25 + $0x50] sm:$0xff] }
  0x3e   : > { %v12858_v46 = vld [vmem:[%s19057_s2 + $0x3e4] ss:$16 sps:$4 sm:$0xff]  }
  0x40   : > { %2139 = vmatpush1.bf16.msra.mxu0 %v12746_v53  ;;  %2591 = vmatpush1.bf16.msra.mxu1 %v12747_v54  ;;  %v12805_v53 = vld [vmem:[%s19057_s2 + $0x2c8] ss:$16 sps:$4 sm:$0xff]   ;;  %v12810_v54 = vld [vmem:[%s19057_s2 + $0x2e4] ss:$16 sps:$4 sm:$0xff]  }
  0x41   : > { %2140 = vmatprep.subr.bf16.mxu0 %v12748_v55  ;;  %2592 = vmatprep.subr.bf16.mxu1 %v12750_v56  ;;  %v12813_v55 = vld [vmem:[%s19057_s2 + $0x2ec] ss:$16 sps:$4 sm:$0xff]   ;;  %v12808_v56 = vld [vmem:[%s19057_s2 + $0x2e0] ss:$16 sps:$4 sm:$0xff]  }
  0x44   : > { %2141 = vmatpush1.bf16.msra.mxu0 %v12752_v57  ;;  %2593 = vmatpush1.bf16.msra.mxu1 %v12753_v58  ;;  %v12811_v57 = vld [vmem:[%s19057_s2 + $0x2e8] ss:$16 sps:$4 sm:$0xff]   ;;  %v721_v58 = vpack.c.bf16 %v644_v52, %v637_v51  ;;  %v582_v51 = vld [vmem:[%s14579_s25 + $0x10] sm:$0xff] }
  0x45   : > { %2142 = vmatprep.subr.bf16.mxu0 %v12754_v59  ;;  %2594 = vmatprep.subr.bf16.mxu1 %v12756_v60  ;;  %v636_v59 = vld [vmem:[%s14579_s25 + $0x1c0] sm:$0xff]  ;;  %v643_v60 = vld [vmem:[%s14579_s25 + $0x1f8] sm:$0xff]  ;;  %v589_v52 = vld [vmem:[%s14579_s25 + $0x48] sm:$0xff] }
  0x48   : > { %2143 = vmatpush1.bf16.msra.mxu0 %v12758_v61  ;;  %2595 = vmatpush1.bf16.msra.mxu1 %v12759_v62  ;;  %v12816_v61 = vld [vmem:[%s19057_s2 + $0x304] ss:$16 sps:$4 sm:$0xff]   ;;  %v12819_v62 = vld [vmem:[%s19057_s2 + $0x30c] ss:$16 sps:$4 sm:$0xff]  }
  0x49   : > { %2144 = vmatprep.subr.bf16.mxu0 %v12760_v63  ;;  %2596 = vmatprep.subr.bf16.mxu1 %v12762_v0  ;;  %v720_v63 = vpack.c.bf16 %v643_v60, %v636_v59  ;;  %v651_v0 = vld [vmem:[%s14579_s25 + $0x238] sm:$0xff]  ;;  %v12870_v60 = vld [vmem:[%s19057_s2 + $0x424] ss:$16 sps:$4 sm:$0xff]  }
  0x4a   : > { %v12865_v59 = vld [vmem:[%s19057_s2 + $0x408] ss:$16 sps:$4 sm:$0xff]  }
  0x4c   : > { %2145 = vmatpush1.bf16.msra.mxu0 %v12764_v1  ;;  %2597 = vmatpush1.bf16.msra.mxu1 %v12765_v2  ;;  %v658_v1 = vld [vmem:[%s14579_s25 + $0x270] sm:$0xff] }
  0x4d   : > { %2227 = vmatprep.subr.bf16.mxu0 %v12768_v5  ;;  %2679 = vmatprep.subr.bf16.mxu1 %v12771_v6  ;;  %v12814_v2 = vld [vmem:[%s19057_s2 + $0x300] ss:$16 sps:$4 sm:$0xff]   ;;  %v12825_v5 = vld [vmem:[%s19057_s2 + $0x32c] ss:$16 sps:$4 sm:$0xff]  }
  0x4e   : > { %v12820_v6 = vld [vmem:[%s19057_s2 + $0x320] ss:$16 sps:$4 sm:$0xff]  }
  0x4f   : > { %2147 = vmatmul.mubr.bf16.vlgmr.msra.gmra.mrb[0].mxu0 %v692_v8  ;;  %2599 = vmatmul.mubr.bf16.vlgmr.msra.gmra.mrb[0].mxu1 %v692_v8  ;;  %v728_v8 = vpack.c.bf16 %v658_v1, %v651_v0  ;;  %v596_v1 = vld [vmem:[%s14579_s25 + $0x80] sm:$0xff] }
  0x50   : > { %2228 = vmatpush1.bf16.msra.mxu0 %v12766_v7  ;;  %2680 = vmatpush1.bf16.msra.mxu1 %v12769_v9  ;;  %v12823_v7 = vld [vmem:[%s19057_s2 + $0x328] ss:$16 sps:$4 sm:$0xff]   ;;  %v650_v9 = vld [vmem:[%s14579_s25 + $0x230] sm:$0xff] }
  0x51   : > { %2229 = vmatprep.subr.bf16.mxu0 %v12774_v12  ;;  %2681 = vmatprep.subr.bf16.mxu1 %v12777_v13  ;;  %v12831_v12 = vld [vmem:[%s19057_s2 + $0x34c] ss:$16 sps:$4 sm:$0xff]   ;;  %v12826_v13 = vld [vmem:[%s19057_s2 + $0x340] ss:$16 sps:$4 sm:$0xff]  }
  0x52   : > { %2156 = vmatprep.mubr.bf16.mxu0 %v700_v15  ;;  %2608 = vmatprep.mubr.bf16.mxu1 %v700_v15  ;;  %v12829_v15 = vld [vmem:[%s19057_s2 + $0x348] ss:$16 sps:$4 sm:$0xff]  }
  0x54   : > { %2230 = vmatpush1.bf16.msra.mxu0 %v12772_v14  ;;  %2682 = vmatpush1.bf16.msra.mxu1 %v12775_v16  ;;  %v727_v14 = vpack.c.bf16 %v657_v10, %v650_v9  ;;  %v665_v16 = vld [vmem:[%s14579_s25 + $0x2a8] sm:$0xff]  ;;  %v12882_v10 = vld [vmem:[%s19057_s2 + $0x464] ss:$16 sps:$4 sm:$0xff]  }
  0x55   : > { %2231 = vmatprep.subr.bf16.mxu0 %v12780_v19  ;;  %2683 = vmatprep.subr.bf16.mxu1 %v12783_v20  ;;  %v12837_v19 = vld [vmem:[%s19057_s2 + $0x36c] ss:$16 sps:$4 sm:$0xff]   ;;  %v12832_v20 = vld [vmem:[%s19057_s2 + $0x360] ss:$16 sps:$4 sm:$0xff]   ;;  %v12877_v9 = vld [vmem:[%s19057_s2 + $0x448] ss:$16 sps:$4 sm:$0xff]  }
  0x57   : > { %2157 = vmatmul.mubr.bf16.gmra.mrb[4].mxu0 %v699_v23  ;;  %2609 = vmatmul.mubr.bf16.gmra.mrb[4].mxu1 %v699_v23  ;;  %v664_v23 = vld [vmem:[%s14579_s25 + $0x2a0] sm:$0xff] }
  0x58   : > { %2232 = vmatpush1.bf16.msra.mxu0 %v12778_v21  ;;  %2684 = vmatpush1.bf16.msra.mxu1 %v12781_v22  ;;  %v735_v21 = vpack.c.bf16 %v672_v17, %v665_v16  ;;  %v12835_v22 = vld [vmem:[%s19057_s2 + $0x368] ss:$16 sps:$4 sm:$0xff]   ;;  %v12888_v17 = vld [vmem:[%s19057_s2 + $0x484] ss:$16 sps:$4 sm:$0xff]  }
  0x59   : > { %2233 = vmatprep.subr.bf16.mxu0 %v12786_v26  ;;  %2685 = vmatprep.subr.bf16.mxu1 %v12789_v27  ;;  %v12843_v26 = vld [vmem:[%s19057_s2 + $0x38c] ss:$16 sps:$4 sm:$0xff]   ;;  %v12838_v27 = vld [vmem:[%s19057_s2 + $0x380] ss:$16 sps:$4 sm:$0xff]  }
  0x5a   : > { %2166 = vmatprep.mubr.bf16.mxu0 %v707_v28  ;;  %2618 = vmatprep.mubr.bf16.mxu1 %v707_v28  ;;  %v12841_v28 = vld [vmem:[%s19057_s2 + $0x388] ss:$16 sps:$4 sm:$0xff]  }
  0x5b   : > { %v617_v16 = vld [vmem:[%s14579_s25 + $0x128] sm:$0xff] }
  0x5c   : > { %2234 = vmatpush1.bf16.msra.mxu0 %v12784_v29  ;;  %2686 = vmatpush1.bf16.msra.mxu1 %v12787_v30  ;;  %v734_v29 = vpack.c.bf16 %v671_v24, %v664_v23  ;;  %v679_v30 = vld [vmem:[%s14579_s25 + $0x318] sm:$0xff]  ;;  %v632_v23 = vld [vmem:[%s14579_s25 + $0x1a0] sm:$0xff] }
  0x5d   : > { %2235 = vmatprep.subr.bf16.mxu0 %v12792_v33  ;;  %2687 = vmatprep.subr.bf16.mxu1 %v12795_v34  ;;  %v12849_v33 = vld [vmem:[%s19057_s2 + $0x3ac] ss:$16 sps:$4 sm:$0xff]   ;;  %v742_v34 = vpack.c.bf16 %v686_v31, %v679_v30  ;;  %v12894_v24 = vld [vmem:[%s19057_s2 + $0x4a4] ss:$16 sps:$4 sm:$0xff]  }
  0x5e   : > { %v631_v30 = vld [vmem:[%s14579_s25 + $0x198] sm:$0xff]  ;;  %v12900_v31 = vld [vmem:[%s19057_s2 + $0x4c4] ss:$16 sps:$4 sm:$0xff]  }
  0x5f   : > { %2167 = vmatmul.mubr.bf16.gmra.mrb[8].mxu0 %v706_v37  ;;  %2619 = vmatmul.mubr.bf16.gmra.mrb[8].mxu1 %v706_v37  ;;  %v678_v37 = vld [vmem:[%s14579_s25 + $0x310] sm:$0xff] }
  0x60   : > { %2236 = vmatpush1.bf16.msra.mxu0 %v12790_v35  ;;  %2688 = vmatpush1.bf16.msra.mxu1 %v12793_v36  ;;  %v12844_v35 = vld [vmem:[%s19057_s2 + $0x3a0] ss:$16 sps:$4 sm:$0xff]   ;;  %v12847_v36 = vld [vmem:[%s19057_s2 + $0x3a8] ss:$16 sps:$4 sm:$0xff]  }
  0x61   : > { %2237 = vmatprep.subr.bf16.mxu0 %v12798_v40  ;;  %2689 = vmatprep.subr.bf16.mxu1 %v12801_v41  ;;  %v12855_v40 = vld [vmem:[%s19057_s2 + $0x3cc] ss:$16 sps:$4 sm:$0xff]   ;;  %v12850_v41 = vld [vmem:[%s19057_s2 + $0x3c0] ss:$16 sps:$4 sm:$0xff]  }
  0x62   : > { %2176 = vmatprep.mubr.bf16.mxu0 %v714_v43  ;;  %2628 = vmatprep.mubr.bf16.mxu1 %v714_v43  ;;  %v741_v43 = vpack.c.bf16 %v685_v38, %v678_v37  ;;  %v12901_v37 = vld [vmem:[%s19057_s2 + $0x4c8] ss:$16 sps:$4 sm:$0xff]   ;;  %v12906_v38 = vld [vmem:[%s19057_s2 + $0x4e4] ss:$16 sps:$4 sm:$0xff]  }
  0x64   : > { %2238 = vmatpush1.bf16.msra.mxu0 %v12796_v42  ;;  %2690 = vmatpush1.bf16.msra.mxu1 %v12799_v44  ;;  %v12853_v42 = vld [vmem:[%s19057_s2 + $0x3c8] ss:$16 sps:$4 sm:$0xff]  }
  0x65   : > { %2239 = vmatprep.subr.bf16.mxu0 %v12804_v47  ;;  %2691 = vmatprep.subr.bf16.mxu1 %v12807_v48  ;;  %v583_v44 = vld [vmem:[%s14579_s25 + $0x18] sm:$0xff]  ;;  %v12856_v48 = vld [vmem:[%s19057_s2 + $0x3e0] ss:$16 sps:$4 sm:$0xff]  }
  0x66   : > { %v12861_v47 = vld [vmem:[%s19057_s2 + $0x3ec] ss:$16 sps:$4 sm:$0xff]  }
  0x67   : > { %2177 = vmatmul.mubr.bf16.gmra.mrb[12].mxu0 %v713_v50  ;;  %2629 = vmatmul.mubr.bf16.gmra.mrb[12].mxu1 %v713_v50  ;;  %v12859_v50 = vld [vmem:[%s19057_s2 + $0x3e8] ss:$16 sps:$4 sm:$0xff]  }
  0x68   : > { %2240 = vmatpush1.bf16.msra.mxu0 %v12802_v49  ;;  %2692 = vmatpush1.bf16.msra.mxu1 %v12805_v53  ;;  %v695_v49 = vpack.c.bf16 %v590_v45, %v583_v44  ;;  %v12864_v53 = vld [vmem:[%s19057_s2 + $0x404] ss:$16 sps:$4 sm:$0xff]   ;;  %v645_v44 = vld [vmem:[%s14579_s25 + $0x208] sm:$0xff] }
  0x69   : > { %2241 = vmatprep.subr.bf16.mxu0 %v12810_v54  ;;  %2693 = vmatprep.subr.bf16.mxu1 %v12813_v55  ;;  %v12867_v54 = vld [vmem:[%s19057_s2 + $0x40c] ss:$16 sps:$4 sm:$0xff]   ;;  %v12862_v55 = vld [vmem:[%s19057_s2 + $0x400] ss:$16 sps:$4 sm:$0xff]   ;;  %v12912_v45 = vld [vmem:[%s19057_s2 + $0x504] ss:$16 sps:$4 sm:$0xff]  }
  0x6a   : > { %2186 = vmatprep.mubr.bf16.mxu0 %v721_v58  ;;  %2638 = vmatprep.mubr.bf16.mxu1 %v721_v58  ;;  %v604_v58 = vld [vmem:[%s14579_s25 + $0xc0] sm:$0xff] }
  0x6c   : > { %2242 = vmatpush1.bf16.msra.mxu0 %v12808_v56  ;;  %2694 = vmatpush1.bf16.msra.mxu1 %v12811_v57  ;;  %v694_v56 = vpack.c.bf16 %v589_v52, %v582_v51  ;;  %v597_v57 = vld [vmem:[%s14579_s25 + $0x88] sm:$0xff]  ;;  %v12918_v52 = vld [vmem:[%s19057_s2 + $0x524] ss:$16 sps:$4 sm:$0xff]  }
  0x6d   : > { %2243 = vmatprep.subr.bf16.mxu0 %v12816_v61  ;;  %2695 = vmatprep.subr.bf16.mxu1 %v12819_v62  ;;  %v12873_v61 = vld [vmem:[%s19057_s2 + $0x42c] ss:$16 sps:$4 sm:$0xff]   ;;  %v12868_v62 = vld [vmem:[%s19057_s2 + $0x420] ss:$16 sps:$4 sm:$0xff]   ;;  %v702_v0 = vpack.c.bf16 %v604_v58, %v597_v57  ;;  %v12913_v51 = vld [vmem:[%s19057_s2 + $0x508] ss:$16 sps:$4 sm:$0xff]  }
  0x6e   : > { %v652_v57 = vld [vmem:[%s14579_s25 + $0x240] sm:$0xff]  ;;  %v659_v58 = vld [vmem:[%s14579_s25 + $0x278] sm:$0xff] }
  0x6f   : > { %2187 = vmatmul.mubr.bf16.gmra.mrb[16].mxu0 %v720_v63  ;;  %2639 = vmatmul.mubr.bf16.gmra.mrb[16].mxu1 %v720_v63  ;;  %v12871_v63 = vld [vmem:[%s19057_s2 + $0x428] ss:$16 sps:$4 sm:$0xff]  }
  0x70   : > { %2244 = vmatpush1.bf16.msra.mxu0 %v12814_v2  ;;  %2696 = vmatpush1.bf16.msra.mxu1 %v12817_v3  ;;  %v603_v2 = vld [vmem:[%s14579_s25 + $0xb8] sm:$0xff]  ;;  %v12876_v3 = vld [vmem:[%s19057_s2 + $0x444] ss:$16 sps:$4 sm:$0xff]  }
  0x71   : > { %2245 = vmatprep.subr.bf16.mxu0 %v12822_v4  ;;  %2697 = vmatprep.subr.bf16.mxu1 %v12825_v5  ;;  %v12879_v4 = vld [vmem:[%s19057_s2 + $0x44c] ss:$16 sps:$4 sm:$0xff]   ;;  %v701_v5 = vpack.c.bf16 %v603_v2, %v596_v1  ;;  %v674_v1 = vld [vmem:[%s14579_s25 + $0x2f0] sm:$0xff] }
  0x72   : > { %2196 = vmatprep.mubr.bf16.mxu0 %v728_v8  ;;  %2648 = vmatprep.mubr.bf16.mxu1 %v728_v8  ;;  %v12874_v8 = vld [vmem:[%s19057_s2 + $0x440] ss:$16 sps:$4 sm:$0xff]   ;;  %v12930_v2 = vld [vmem:[%s19057_s2 + $0x564] ss:$16 sps:$4 sm:$0xff]  }
  0x74   : > { %2246 = vmatpush1.bf16.msra.mxu0 %v12820_v6  ;;  %2698 = vmatpush1.bf16.msra.mxu1 %v12823_v7  ;;  %v611_v6 = vld [vmem:[%s14579_s25 + $0xf8] sm:$0xff]  ;;  %v618_v7 = vld [vmem:[%s14579_s25 + $0x130] sm:$0xff] }
  0x75   : > { %2247 = vmatprep.subr.bf16.mxu0 %v12828_v11  ;;  %2699 = vmatprep.subr.bf16.mxu1 %v12831_v12  ;;  %v12885_v11 = vld [vmem:[%s19057_s2 + $0x46c] ss:$16 sps:$4 sm:$0xff]   ;;  %v12880_v12 = vld [vmem:[%s19057_s2 + $0x460] ss:$16 sps:$4 sm:$0xff]  }
  0x77   : > { %2197 = vmatmul.mubr.bf16.gmra.mrb[20].mxu0 %v727_v14  ;;  %2649 = vmatmul.mubr.bf16.gmra.mrb[20].mxu1 %v727_v14  ;;  %v709_v14 = vpack.c.bf16 %v618_v7, %v611_v6  ;;  %v12931_v6 = vld [vmem:[%s19057_s2 + $0x568] ss:$16 sps:$4 sm:$0xff]   ;;  %v666_v7 = vld [vmem:[%s14579_s25 + $0x2b0] sm:$0xff] }
  0x78   : > { %2248 = vmatpush1.bf16.msra.mxu0 %v12826_v13  ;;  %2700 = vmatpush1.bf16.msra.mxu1 %v12829_v15  ;;  %v12883_v13 = vld [vmem:[%s19057_s2 + $0x468] ss:$16 sps:$4 sm:$0xff]   ;;  %v610_v15 = vld [vmem:[%s14579_s25 + $0xf0] sm:$0xff] }
  0x79   : > { %2249 = vmatprep.subr.bf16.mxu0 %v12834_v18  ;;  %2701 = vmatprep.subr.bf16.mxu1 %v12837_v19  ;;  %v12891_v18 = vld [vmem:[%s19057_s2 + $0x48c] ss:$16 sps:$4 sm:$0xff]   ;;  %v12886_v19 = vld [vmem:[%s19057_s2 + $0x480] ss:$16 sps:$4 sm:$0xff]  }
  0x7a   : > { %2206 = vmatprep.mubr.bf16.mxu0 %v735_v21  ;;  %2658 = vmatprep.mubr.bf16.mxu1 %v735_v21  ;;  %v12889_v21 = vld [vmem:[%s19057_s2 + $0x488] ss:$16 sps:$4 sm:$0xff]  }
  0x7c   : > { %2250 = vmatpush1.bf16.msra.mxu0 %v12832_v20  ;;  %2702 = vmatpush1.bf16.msra.mxu1 %v12835_v22  ;;  %v708_v20 = vpack.c.bf16 %v617_v16, %v610_v15  ;;  %v625_v22 = vld [vmem:[%s14579_s25 + $0x168] sm:$0xff]  ;;  %v12942_v16 = vld [vmem:[%s19057_s2 + $0x5a4] ss:$16 sps:$4 sm:$0xff]  }
  0x7d   : > { %2251 = vmatprep.subr.bf16.mxu0 %v12840_v25  ;;  %2703 = vmatprep.subr.bf16.mxu1 %v12843_v26  ;;  %v12897_v25 = vld [vmem:[%s19057_s2 + $0x4ac] ss:$16 sps:$4 sm:$0xff]   ;;  %v12892_v26 = vld [vmem:[%s19057_s2 + $0x4a0] ss:$16 sps:$4 sm:$0xff]   ;;  %v12937_v15 = vld [vmem:[%s19057_s2 + $0x588] ss:$16 sps:$4 sm:$0xff]  }
  0x7f   : > { %2207 = vmatmul.mubr.bf16.gmra.mrb[24].mxu0 %v734_v29  ;;  %2659 = vmatmul.mubr.bf16.gmra.mrb[24].mxu1 %v734_v29  ;;  %v624_v29 = vld [vmem:[%s14579_s25 + $0x160] sm:$0xff] }
  0x80   : > { %2252 = vmatpush1.bf16.msra.mxu0 %v12838_v27  ;;  %2704 = vmatpush1.bf16.msra.mxu1 %v12841_v28  ;;  %v716_v27 = vpack.c.bf16 %v632_v23, %v625_v22  ;;  %v12895_v28 = vld [vmem:[%s19057_s2 + $0x4a8] ss:$16 sps:$4 sm:$0xff]   ;;  %v12948_v23 = vld [vmem:[%s19057_s2 + $0x5c4] ss:$16 sps:$4 sm:$0xff]  }
  0x81   : > { %2253 = vmatprep.subr.bf16.mxu0 %v12846_v32  ;;  %2705 = vmatprep.subr.bf16.mxu1 %v12849_v33  ;;  %v12903_v32 = vld [vmem:[%s19057_s2 + $0x4cc] ss:$16 sps:$4 sm:$0xff]   ;;  %v715_v33 = vpack.c.bf16 %v631_v30, %v624_v29  ;;  %v12949_v29 = vld [vmem:[%s19057_s2 + $0x5c8] ss:$16 sps:$4 sm:$0xff]   ;;  %v12954_v30 = vld [vmem:[%s19057_s2 + $0x5e4] ss:$16 sps:$4 sm:$0xff]  }
  0x82   : > { %2216 = vmatprep.mubr.bf16.mxu0 %v742_v34  ;;  %2668 = vmatprep.mubr.bf16.mxu1 %v742_v34  ;;  %v639_v34 = vld [vmem:[%s14579_s25 + $0x1d8] sm:$0xff] }
  0x83   : > { %v687_v22 = vld [vmem:[%s14579_s25 + $0x358] sm:$0xff] }
  0x84   : > { %2254 = vmatpush1.bf16.msra.mxu0 %v12844_v35  ;;  %2706 = vmatpush1.bf16.msra.mxu1 %v12847_v36  ;;  %v646_v35 = vld [vmem:[%s14579_s25 + $0x210] sm:$0xff] }
  0x85   : > { %2255 = vmatprep.subr.bf16.mxu0 %v12852_v39  ;;  %2707 = vmatprep.subr.bf16.mxu1 %v12855_v40  ;;  %v12898_v36 = vld [vmem:[%s19057_s2 + $0x4c0] ss:$16 sps:$4 sm:$0xff]   ;;  %v12909_v39 = vld [vmem:[%s19057_s2 + $0x4ec] ss:$16 sps:$4 sm:$0xff]   ;;  %v723_v40 = vpack.c.bf16 %v646_v35, %v639_v34 }
  0x86   : > { %v584_v35 = vld [vmem:[%s14579_s25 + $0x20] sm:$0xff] }
  0x87   : > { %2217 = vmatmul.mubr.bf16.gmra.mrb[28].mxu0 %v741_v43  ;;  %2669 = vmatmul.mubr.bf16.gmra.mrb[28].mxu1 %v741_v43  ;;  %v638_v43 = vld [vmem:[%s14579_s25 + $0x1d0] sm:$0xff] }
  0x88   : > { %2256 = vmatpush1.bf16.msra.mxu0 %v12850_v41  ;;  %2708 = vmatpush1.bf16.msra.mxu1 %v12853_v42  ;;  %v12904_v41 = vld [vmem:[%s19057_s2 + $0x4e0] ss:$16 sps:$4 sm:$0xff]   ;;  %v12907_v42 = vld [vmem:[%s19057_s2 + $0x4e8] ss:$16 sps:$4 sm:$0xff]  }
  0x89   : > { %2257 = vmatprep.subr.bf16.mxu0 %v12858_v46  ;;  %2709 = vmatprep.subr.bf16.mxu1 %v12861_v47  ;;  %v12915_v46 = vld [vmem:[%s19057_s2 + $0x50c] ss:$16 sps:$4 sm:$0xff]   ;;  %v722_v47 = vpack.c.bf16 %v645_v44, %v638_v43  ;;  %v12963_v44 = vld [vmem:[%s19057_s2 + $0x624] ss:$16 sps:$4 sm:$0xff]  }
  0x8a   : > { %2259 = vmatprep.mubr.bf16.mxu0 %v695_v49  ;;  %2711 = vmatprep.mubr.bf16.mxu1 %v695_v49  ;;  %v660_v49 = vld [vmem:[%s14579_s25 + $0x280] sm:$0xff] }
  0x8c   : > { %2258 = vmatpush1.bf16.msra.mxu0 %v12856_v48  ;;  %2710 = vmatpush1.bf16.msra.mxu1 %v12859_v50  ;;  %v653_v48 = vld [vmem:[%s14579_s25 + $0x248] sm:$0xff]  ;;  %v12910_v50 = vld [vmem:[%s19057_s2 + $0x500] ss:$16 sps:$4 sm:$0xff]  }
  0x8d   : > { %2340 = vmatprep.subr.bf16.mxu0 %v12864_v53  ;;  %2792 = vmatprep.subr.bf16.mxu1 %v12867_v54  ;;  %v12921_v53 = vld [vmem:[%s19057_s2 + $0x52c] ss:$16 sps:$4 sm:$0xff]   ;;  %v12916_v54 = vld [vmem:[%s19057_s2 + $0x520] ss:$16 sps:$4 sm:$0xff]  }
  0x8f   : > { %2260 = vmatmul.mubr.bf16.vlgmr.msra.gmra.mrb[0].mxu0 %v694_v56  ;;  %2712 = vmatmul.mubr.bf16.vlgmr.msra.gmra.mrb[0].mxu1 %v694_v56  ;;  %v12919_v56 = vld [vmem:[%s19057_s2 + $0x528] ss:$16 sps:$4 sm:$0xff]  }
  0x90   : > { %2341 = vmatpush1.bf16.msra.mxu0 %v12862_v55  ;;  %2793 = vmatpush1.bf16.msra.mxu1 %v12865_v59  ;;  %v730_v55 = vpack.c.bf16 %v660_v49, %v653_v48  ;;  %v12924_v59 = vld [vmem:[%s19057_s2 + $0x544] ss:$16 sps:$4 sm:$0xff]   ;;  %v12973_v48 = vld [vmem:[%s19057_s2 + $0x608] ss:$16 sps:$4 sm:$0xff]  }
  0x91   : > { %2342 = vmatprep.subr.bf16.mxu0 %v12870_v60  ;;  %2794 = vmatprep.subr.bf16.mxu1 %v12873_v61  ;;  %v12927_v60 = vld [vmem:[%s19057_s2 + $0x54c] ss:$16 sps:$4 sm:$0xff]   ;;  %v12922_v61 = vld [vmem:[%s19057_s2 + $0x540] ss:$16 sps:$4 sm:$0xff]  }
  0x92   : > { %2269 = vmatprep.mubr.bf16.mxu0 %v702_v0  ;;  %2721 = vmatprep.mubr.bf16.mxu1 %v702_v0  ;;  %v667_v0 = vld [vmem:[%s14579_s25 + $0x2b8] sm:$0xff]  ;;  %v613_v49 = vld [vmem:[%s14579_s25 + $0x108] sm:$0xff] }
  0x94   : > { %2343 = vmatpush1.bf16.msra.mxu0 %v12868_v62  ;;  %2795 = vmatpush1.bf16.msra.mxu1 %v12871_v63  ;;  %v12925_v62 = vld [vmem:[%s19057_s2 + $0x548] ss:$16 sps:$4 sm:$0xff]   ;;  %v729_v63 = vpack.c.bf16 %v659_v58, %v652_v57  ;;  %v12984_v57 = vld [vmem:[%s19057_s2 + $0x64c] ss:$16 sps:$4 sm:$0xff]   ;;  %v612_v58 = vld [vmem:[%s14579_s25 + $0x100] sm:$0xff] }
  0x95   : > { %2344 = vmatprep.subr.bf16.mxu0 %v12876_v3  ;;  %2796 = vmatprep.subr.bf16.mxu1 %v12879_v4  ;;  %v12933_v3 = vld [vmem:[%s19057_s2 + $0x56c] ss:$16 sps:$4 sm:$0xff]   ;;  %v12928_v4 = vld [vmem:[%s19057_s2 + $0x560] ss:$16 sps:$4 sm:$0xff]  }
  0x97   : > { %2270 = vmatmul.mubr.bf16.gmra.mrb[4].mxu0 %v701_v5  ;;  %2722 = vmatmul.mubr.bf16.gmra.mrb[4].mxu1 %v701_v5  ;;  %v737_v5 = vpack.c.bf16 %v674_v1, %v667_v0  ;;  %v634_v0 = vld [vmem:[%s14579_s25 + $0x1b0] sm:$0xff] }
  0x98   : > { %2345 = vmatpush1.bf16.msra.mxu0 %v12874_v8  ;;  %2797 = vmatpush1.bf16.msra.mxu1 %v12877_v9  ;;  %v673_v8 = vld [vmem:[%s14579_s25 + $0x2e8] sm:$0xff]  ;;  %v12936_v9 = vld [vmem:[%s19057_s2 + $0x584] ss:$16 sps:$4 sm:$0xff]   ;;  %v12967_v1 = vld [vmem:[%s19057_s2 + $0x660] ss:$16 sps:$4 sm:$0xff]  }
  0x99   : > { %2346 = vmatprep.subr.bf16.mxu0 %v12882_v10  ;;  %2798 = vmatprep.subr.bf16.mxu1 %v12885_v11  ;;  %v12939_v10 = vld [vmem:[%s19057_s2 + $0x58c] ss:$16 sps:$4 sm:$0xff]   ;;  %v736_v11 = vpack.c.bf16 %v673_v8, %v666_v7  ;;  %v626_v8 = vld [vmem:[%s14579_s25 + $0x170] sm:$0xff] }
  0x9a   : > { %2279 = vmatprep.mubr.bf16.mxu0 %v709_v14  ;;  %2731 = vmatprep.mubr.bf16.mxu1 %v709_v14  ;;  %v12934_v14 = vld [vmem:[%s19057_s2 + $0x580] ss:$16 sps:$4 sm:$0xff]   ;;  %v12993_v7 = vld [vmem:[%s19057_s2 + $0x68c] ss:$16 sps:$4 sm:$0xff]  }
  0x9c   : > { %2347 = vmatpush1.bf16.msra.mxu0 %v12880_v12  ;;  %2799 = vmatpush1.bf16.msra.mxu1 %v12883_v13  ;;  %v681_v12 = vld [vmem:[%s14579_s25 + $0x328] sm:$0xff]  ;;  %v688_v13 = vld [vmem:[%s14579_s25 + $0x360] sm:$0xff] }
  0x9d   : > { %2348 = vmatprep.subr.bf16.mxu0 %v12888_v17  ;;  %2800 = vmatprep.subr.bf16.mxu1 %v12891_v18  ;;  %v12945_v17 = vld [vmem:[%s19057_s2 + $0x5ac] ss:$16 sps:$4 sm:$0xff]   ;;  %v12940_v18 = vld [vmem:[%s19057_s2 + $0x5a0] ss:$16 sps:$4 sm:$0xff]  }
  0x9f   : > { %2280 = vmatmul.mubr.bf16.gmra.mrb[8].mxu0 %v708_v20  ;;  %2732 = vmatmul.mubr.bf16.gmra.mrb[8].mxu1 %v708_v20  ;;  %v12943_v20 = vld [vmem:[%s19057_s2 + $0x5a8] ss:$16 sps:$4 sm:$0xff]  }
  0xa0   : > { %2349 = vmatpush1.bf16.msra.mxu0 %v12886_v19  ;;  %2801 = vmatpush1.bf16.msra.mxu1 %v12889_v21  ;;  %v744_v19 = vpack.c.bf16 %v688_v13, %v681_v12  ;;  %v680_v21 = vld [vmem:[%s14579_s25 + $0x320] sm:$0xff]  ;;  %v641_v12 = vld [vmem:[%s14579_s25 + $0x1e8] sm:$0xff] }
  0xa1   : > { %2350 = vmatprep.subr.bf16.mxu0 %v12894_v24  ;;  %2802 = vmatprep.subr.bf16.mxu1 %v12897_v25  ;;  %v12951_v24 = vld [vmem:[%s19057_s2 + $0x5cc] ss:$16 sps:$4 sm:$0xff]   ;;  %v743_v25 = vpack.c.bf16 %v687_v22, %v680_v21  ;;  %v640_v22 = vld [vmem:[%s14579_s25 + $0x1e0] sm:$0xff] }
  0xa2   : > { %2289 = vmatprep.mubr.bf16.mxu0 %v716_v27  ;;  %2741 = vmatprep.mubr.bf16.mxu1 %v716_v27  ;;  %v592_v27 = vld [vmem:[%s14579_s25 + $0x60] sm:$0xff]  ;;  %v12996_v13 = vld [vmem:[%s19057_s2 + $0x6ac] ss:$16 sps:$4 sm:$0xff]  }
  0xa3   : > { %v13002_v21 = vld [vmem:[%s19057_s2 + $0x6cc] ss:$16 sps:$4 sm:$0xff]  }
  0xa4   : > { %2351 = vmatpush1.bf16.msra.mxu0 %v12892_v26  ;;  %2803 = vmatpush1.bf16.msra.mxu1 %v12895_v28  ;;  %v585_v26 = vld [vmem:[%s14579_s25 + $0x28] sm:$0xff]  ;;  %v12946_v28 = vld [vmem:[%s19057_s2 + $0x5c0] ss:$16 sps:$4 sm:$0xff]  }
  0xa5   : > { %2352 = vmatprep.subr.bf16.mxu0 %v12900_v31  ;;  %2804 = vmatprep.subr.bf16.mxu1 %v12903_v32  ;;  %v12957_v31 = vld [vmem:[%s19057_s2 + $0x5ec] ss:$16 sps:$4 sm:$0xff]   ;;  %v12952_v32 = vld [vmem:[%s19057_s2 + $0x5e0] ss:$16 sps:$4 sm:$0xff]   ;;  %v697_v34 = vpack.c.bf16 %v592_v27, %v585_v26 }
  0xa6   : > { %v655_v26 = vld [vmem:[%s14579_s25 + $0x258] sm:$0xff]  ;;  %v662_v27 = vld [vmem:[%s14579_s25 + $0x290] sm:$0xff] }
  0xa7   : > { %2290 = vmatmul.mubr.bf16.gmra.mrb[12].mxu0 %v715_v33  ;;  %2742 = vmatmul.mubr.bf16.gmra.mrb[12].mxu1 %v715_v33  ;;  %v12955_v33 = vld [vmem:[%s19057_s2 + $0x5e8] ss:$16 sps:$4 sm:$0xff]  }
  0xa8   : > { %2353 = vmatpush1.bf16.msra.mxu0 %v12898_v36  ;;  %2805 = vmatpush1.bf16.msra.mxu1 %v12901_v37  ;;  %v591_v36 = vld [vmem:[%s14579_s25 + $0x58] sm:$0xff]  ;;  %v12960_v37 = vld [vmem:[%s19057_s2 + $0x604] ss:$16 sps:$4 sm:$0xff]  }
  0xa9   : > { %2354 = vmatprep.subr.bf16.mxu0 %v12906_v38  ;;  %2806 = vmatprep.subr.bf16.mxu1 %v12909_v39  ;;  %v599_v38 = vld [vmem:[%s14579_s25 + $0x98] sm:$0xff]  ;;  %v606_v39 = vld [vmem:[%s14579_s25 + $0xd0] sm:$0xff] }
  0xaa   : > { %2299 = vmatprep.mubr.bf16.mxu0 %v723_v40  ;;  %2751 = vmatprep.mubr.bf16.mxu1 %v723_v40  ;;  %v12975_v40 = vld [vmem:[%s19057_s2 + $0x60c] ss:$16 sps:$4 sm:$0xff]   ;;  %v704_v43 = vpack.c.bf16 %v606_v39, %v599_v38  ;;  %v676_v38 = vld [vmem:[%s14579_s25 + $0x300] sm:$0xff] }
  0xac   : > { %2355 = vmatpush1.bf16.msra.mxu0 %v12904_v41  ;;  %2807 = vmatpush1.bf16.msra.mxu1 %v12907_v42  ;;  %v696_v41 = vpack.c.bf16 %v591_v36, %v584_v35  ;;  %v12958_v42 = vld [vmem:[%s19057_s2 + $0x600] ss:$16 sps:$4 sm:$0xff]   ;;  %v661_v36 = vld [vmem:[%s14579_s25 + $0x288] sm:$0xff] }
  0xad   : > { %2356 = vmatprep.subr.bf16.mxu0 %v12912_v45  ;;  %2808 = vmatprep.subr.bf16.mxu1 %v12915_v46  ;;  %v598_v45 = vld [vmem:[%s14579_s25 + $0x90] sm:$0xff]  ;;  %v605_v46 = vld [vmem:[%s14579_s25 + $0xc8] sm:$0xff] }
  0xae   : > { %v654_v35 = vld [vmem:[%s14579_s25 + $0x250] sm:$0xff] }
  0xaf   : > { %2300 = vmatmul.mubr.bf16.gmra.mrb[16].mxu0 %v722_v47  ;;  %2752 = vmatmul.mubr.bf16.gmra.mrb[16].mxu1 %v722_v47  ;;  %v12961_v47 = vld [vmem:[%s19057_s2 + $0x620] ss:$16 sps:$4 sm:$0xff]   ;;  %v731_v39 = vpack.c.bf16 %v661_v36, %v654_v35  ;;  %v13057_v35 = vld [vmem:[%s19059_s4 + $0x108] ss:$16 sps:$4 sm:$0xff]   ;;  %v13062_v36 = vld [vmem:[%s19059_s4 + $0x124] ss:$16 sps:$4 sm:$0xff]  }
  0xb0   : > { %2357 = vmatpush1.bf16.msra.mxu0 %v12910_v50  ;;  %2809 = vmatpush1.bf16.msra.mxu1 %v12913_v51  ;;  %v12978_v50 = vld [vmem:[%s19057_s2 + $0x62c] ss:$16 sps:$4 sm:$0xff]   ;;  %v620_v51 = vld [vmem:[%s14579_s25 + $0x140] sm:$0xff] }
  0xb1   : > { %2358 = vmatprep.subr.bf16.mxu0 %v12918_v52  ;;  %2810 = vmatprep.subr.bf16.mxu1 %v12921_v53  ;;  %v12966_v52 = vld [vmem:[%s19057_s2 + $0x644] ss:$16 sps:$4 sm:$0xff]   ;;  %v12976_v53 = vld [vmem:[%s19057_s2 + $0x628] ss:$16 sps:$4 sm:$0xff]  }
  0xb2   : > { %2309 = vmatprep.mubr.bf16.mxu0 %v730_v55  ;;  %2761 = vmatprep.mubr.bf16.mxu1 %v730_v55  ;;  %v711_v55 = vpack.c.bf16 %v620_v51, %v613_v49  ;;  %v593_v51 = vld [vmem:[%s14579_s25 + $0x68] sm:$0xff] }
  0xb4   : > { %2359 = vmatpush1.bf16.msra.mxu0 %v12916_v54  ;;  %2811 = vmatpush1.bf16.msra.mxu1 %v12919_v56  ;;  %v703_v54 = vpack.c.bf16 %v605_v46, %v598_v45  ;;  %v12964_v56 = vld [vmem:[%s19057_s2 + $0x640] ss:$16 sps:$4 sm:$0xff]  }
  0xb5   : > { %2360 = vmatprep.subr.bf16.mxu0 %v12924_v59  ;;  %2812 = vmatprep.subr.bf16.mxu1 %v12927_v60  ;;  %v619_v59 = vld [vmem:[%s14579_s25 + $0x138] sm:$0xff]  ;;  %v12969_v60 = vld [vmem:[%s19057_s2 + $0x664] ss:$16 sps:$4 sm:$0xff]  }
  0xb7   : > { %2310 = vmatmul.mubr.bf16.gmra.mrb[20].mxu0 %v729_v63  ;;  %2762 = vmatmul.mubr.bf16.gmra.mrb[20].mxu1 %v729_v63  ;;  %v12987_v63 = vld [vmem:[%s19057_s2 + $0x66c] ss:$16 sps:$4 sm:$0xff]  }
  0xb8   : > { %2361 = vmatpush1.bf16.msra.mxu0 %v12922_v61  ;;  %2813 = vmatpush1.bf16.msra.mxu1 %v12925_v62  ;;  %v12982_v61 = vld [vmem:[%s19057_s2 + $0x648] ss:$16 sps:$4 sm:$0xff]  }
  0xb9   : > { %2362 = vmatprep.subr.bf16.mxu0 %v12930_v2  ;;  %2814 = vmatprep.subr.bf16.mxu1 %v12933_v3  ;;  %v627_v62 = vld [vmem:[%s14579_s25 + $0x178] sm:$0xff]  ;;  %v12972_v2 = vld [vmem:[%s19057_s2 + $0x684] ss:$16 sps:$4 sm:$0xff]  }
  0xba   : > { %2319 = vmatprep.mubr.bf16.mxu0 %v737_v5  ;;  %2771 = vmatprep.mubr.bf16.mxu1 %v737_v5  ;;  %v12985_v3 = vld [vmem:[%s19057_s2 + $0x668] ss:$16 sps:$4 sm:$0xff]   ;;  %v718_v5 = vpack.c.bf16 %v634_v0, %v627_v62  ;;  %v13020_v62 = vld [vmem:[%s19059_s4 + $0x44] ss:$16 sps:$4 sm:$0xff]  }
  0xbc   : > { %2363 = vmatpush1.bf16.msra.mxu0 %v12928_v4  ;;  %2815 = vmatpush1.bf16.msra.mxu1 %v12931_v6  ;;  %v710_v4 = vpack.c.bf16 %v619_v59, %v612_v58  ;;  %v12970_v6 = vld [vmem:[%s19057_s2 + $0x680] ss:$16 sps:$4 sm:$0xff]   ;;  %v607_v59 = vld [vmem:[%s14579_s25 + $0xd8] sm:$0xff] }
  0xbd   : > { %2364 = vmatprep.subr.bf16.mxu0 %v12936_v9  ;;  %2816 = vmatprep.subr.bf16.mxu1 %v12939_v10  ;;  %v633_v9 = vld [vmem:[%s14579_s25 + $0x1a8] sm:$0xff]  ;;  %v12981_v10 = vld [vmem:[%s19057_s2 + $0x6a4] ss:$16 sps:$4 sm:$0xff]  }
  0xbe   : > { %v600_v58 = vld [vmem:[%s14579_s25 + $0xa0] sm:$0xff] }
  0xbf   : > { %2320 = vmatmul.mubr.bf16.gmra.mrb[24].mxu0 %v736_v11  ;;  %2772 = vmatmul.mubr.bf16.gmra.mrb[24].mxu1 %v736_v11  ;;  %v12991_v11 = vld [vmem:[%s19057_s2 + $0x688] ss:$16 sps:$4 sm:$0xff]   ;;  %v705_v0 = vpack.c.bf16 %v607_v59, %v600_v58  ;;  %v684_v59 = vld [vmem:[%s14579_s25 + $0x340] sm:$0xff] }
  0xc0   : > { %2365 = vmatpush1.bf16.msra.mxu0 %v12934_v14  ;;  %2817 = vmatpush1.bf16.msra.mxu1 %v12937_v15  ;;  %v648_v14 = vld [vmem:[%s14579_s25 + $0x220] sm:$0xff]  ;;  %v13081_v58 = vld [vmem:[%s19059_s4 + $0x188] ss:$16 sps:$4 sm:$0xff]  }
  0xc1   : > { %2366 = vmatprep.subr.bf16.mxu0 %v12942_v16  ;;  %2818 = vmatprep.subr.bf16.mxu1 %v12945_v17  ;;  %v12979_v15 = vld [vmem:[%s19057_s2 + $0x6a0] ss:$16 sps:$4 sm:$0xff]   ;;  %v12990_v16 = vld [vmem:[%s19057_s2 + $0x6c4] ss:$16 sps:$4 sm:$0xff]   ;;  %v12994_v17 = vld [vmem:[%s19057_s2 + $0x6a8] ss:$16 sps:$4 sm:$0xff]  }
  0xc2   : > { %2329 = vmatprep.mubr.bf16.mxu0 %v744_v19  ;;  %2781 = vmatprep.mubr.bf16.mxu1 %v744_v19  ;;  %v725_v19 = vpack.c.bf16 %v648_v14, %v641_v12  ;;  %v13030_v12 = vld [vmem:[%s19059_s4 + $0x80] ss:$16 sps:$4 sm:$0xff]   ;;  %v13038_v14 = vld [vmem:[%s19059_s4 + $0xa4] ss:$16 sps:$4 sm:$0xff]  }
  0xc4   : > { %2367 = vmatpush1.bf16.msra.mxu0 %v12940_v18  ;;  %2819 = vmatpush1.bf16.msra.mxu1 %v12943_v20  ;;  %v717_v18 = vpack.c.bf16 %v633_v9, %v626_v8  ;;  %v12988_v20 = vld [vmem:[%s19057_s2 + $0x6c0] ss:$16 sps:$4 sm:$0xff]   ;;  %v13027_v8 = vld [vmem:[%s19059_s4 + $0x68] ss:$16 sps:$4 sm:$0xff]   ;;  %v13032_v9 = vld [vmem:[%s19059_s4 + $0x84] ss:$16 sps:$4 sm:$0xff]  }
  0xc5   : > { %2368 = vmatprep.subr.bf16.mxu0 %v12948_v23  ;;  %2820 = vmatprep.subr.bf16.mxu1 %v12951_v24  ;;  %v647_v23 = vld [vmem:[%s14579_s25 + $0x218] sm:$0xff]  ;;  %v12999_v24 = vld [vmem:[%s19057_s2 + $0x6e4] ss:$16 sps:$4 sm:$0xff]  }
  0xc7   : > { %2330 = vmatmul.mubr.bf16.gmra.mrb[28].mxu0 %v743_v25  ;;  %2782 = vmatmul.mubr.bf16.gmra.mrb[28].mxu1 %v743_v25  ;;  %v13000_v25 = vld [vmem:[%s19057_s2 + $0x6c8] ss:$16 sps:$4 sm:$0xff]  }
  0xc8   : > { %2369 = vmatpush1.bf16.msra.mxu0 %v12946_v28  ;;  %2821 = vmatpush1.bf16.msra.mxu1 %v12949_v29  ;;  %v13005_v28 = vld [vmem:[%s19057_s2 + $0x6ec] ss:$16 sps:$4 sm:$0xff]   ;;  %v12997_v29 = vld [vmem:[%s19057_s2 + $0x6e0] ss:$16 sps:$4 sm:$0xff]  }
  0xc9   : > { %2370 = vmatprep.subr.bf16.mxu0 %v12954_v30  ;;  %2822 = vmatprep.subr.bf16.mxu1 %v12957_v31  ;;  %v13003_v30 = vld [vmem:[%s19057_s2 + $0x6e8] ss:$16 sps:$4 sm:$0xff]   ;;  %v13008_v31 = vld [vmem:[%s19059_s4 + $0x4] ss:$16 sps:$4 sm:$0xff]  }
  0xca   : > { %2372 = vmatprep.mubr.bf16.mxu0 %v697_v34  ;;  %2824 = vmatprep.mubr.bf16.mxu1 %v697_v34  ;;  %v732_v34 = vpack.c.bf16 %v662_v27, %v655_v26  ;;  %v13053_v26 = vld [vmem:[%s19059_s4 + $0xec] ss:$16 sps:$4 sm:$0xff]   ;;  %v642_v27 = vld [vmem:[%s14579_s25 + $0x1f0] sm:$0xff] }
  0xcc   : > { %2371 = vmatpush1.bf16.msra.mxu0 %v12952_v32  ;;  %2823 = vmatpush1.bf16.msra.mxu1 %v12955_v33  ;;  %v724_v32 = vpack.c.bf16 %v647_v23, %v640_v22  ;;  %v13011_v33 = vld [vmem:[%s19059_s4 + $0xc] ss:$16 sps:$4 sm:$0xff]   ;;  %v13042_v23 = vld [vmem:[%s19059_s4 + $0xc0] ss:$16 sps:$4 sm:$0xff]  }
  0xcd   : > { %2453 = vmatprep.subr.bf16.mxu0 %v12960_v37  ;;  %2905 = vmatprep.subr.bf16.mxu1 %v12975_v40  ;;  %v669_v37 = vld [vmem:[%s14579_s25 + $0x2c8] sm:$0xff] }
  0xce   : > { %v739_v40 = vpack.c.bf16 %v676_v38, %v669_v37  ;;  %v13065_v37 = vld [vmem:[%s19059_s4 + $0x12c] ss:$16 sps:$4 sm:$0xff]   ;;  %v656_v38 = vld [vmem:[%s14579_s25 + $0x260] sm:$0xff] }
  0xcf   : > { %2373 = vmatmul.mubr.bf16.vlgmr.msra.gmra.mrb[0].mxu0 %v696_v41  ;;  %2825 = vmatmul.mubr.bf16.vlgmr.msra.gmra.mrb[0].mxu1 %v696_v41  ;;  %v668_v41 = vld [vmem:[%s14579_s25 + $0x2c0] sm:$0xff] }
  0xd0   : > { %2454 = vmatpush1.bf16.msra.mxu0 %v12958_v42  ;;  %2382 = vmatprep.mubr.bf16.mxu0 %v704_v43  ;;  %v675_v42 = vld [vmem:[%s14579_s25 + $0x2f8] sm:$0xff] }
  0xd1   : > { %2834 = vmatprep.mubr.bf16.mxu1 %v704_v43  ;;  %2455 = vmatprep.subr.bf16.mxu0 %v12963_v44  ;;  %v683_v43 = vld [vmem:[%s14579_s25 + $0x338] sm:$0xff]  ;;  %v690_v44 = vld [vmem:[%s14579_s25 + $0x370] sm:$0xff]  ;;  %v738_v45 = vpack.c.bf16 %v675_v42, %v668_v41 }
  0xd2   : > { %2906 = vmatpush1.bf16.msra.mxu1 %v12973_v48  ;;  %v746_v46 = vpack.c.bf16 %v690_v44, %v683_v43  ;;  %v689_v48 = vld [vmem:[%s14579_s25 + $0x368] sm:$0xff]  ;;  %v13068_v42 = vld [vmem:[%s19059_s4 + $0x144] ss:$16 sps:$4 sm:$0xff]  }
  0xd3   : > { %2907 = vmatprep.subr.bf16.mxu1 %v12978_v50  ;;  %v586_v50 = vld [vmem:[%s14579_s25 + $0x30] sm:$0xff]  ;;  %v13063_v41 = vld [vmem:[%s19059_s4 + $0x128] ss:$16 sps:$4 sm:$0xff]   ;;  %v13071_v43 = vld [vmem:[%s19059_s4 + $0x14c] ss:$16 sps:$4 sm:$0xff]  }
  0xd4   : > { %2456 = vmatpush1.bf16.msra.mxu0 %v12961_v47  ;;  %v682_v47 = vld [vmem:[%s14579_s25 + $0x330] sm:$0xff] }
  0xd5   : > { %2457 = vmatprep.subr.bf16.mxu0 %v12966_v52  ;;  %v745_v49 = vpack.c.bf16 %v689_v48, %v682_v47  ;;  %v19072_v52 = vmov 0   ;;  %v13074_v47 = vld [vmem:[%s19059_s4 + $0x164] ss:$16 sps:$4 sm:$0xff]   ;;  %v13077_v48 = vld [vmem:[%s19059_s4 + $0x16c] ss:$16 sps:$4 sm:$0xff]  }
  0xd6   : > { %2908 = vmatpush1.bf16.msra.mxu1 %v12976_v53  ;;  %v698_v53 = vpack.c.bf16 %v593_v51, %v586_v50  ;;  %v677_v50 = vld [vmem:[%s14579_s25 + $0x308] sm:$0xff]  ;;  %v13072_v51 = vld [vmem:[%s19059_s4 + $0x160] ss:$16 sps:$4 sm:$0xff]  }
  0xd7   : > { %2383 = vmatmul.mubr.bf16.gmra.mrb[4].mxu0 %v703_v54  ;;  %2835 = vmatmul.mubr.bf16.gmra.mrb[4].mxu1 %v703_v54  ;;  %v13006_v54 = vld [vmem:[%s19059_s4] ss:$16 sps:$4 sm:$0xff]  }
  0xd8   : > { %2392 = vmatprep.mubr.bf16.mxu0 %v711_v55  ;;  %2844 = vmatprep.mubr.bf16.mxu1 %v711_v55  ;;  %v13009_v55 = vld [vmem:[%s19059_s4 + $0x8] ss:$16 sps:$4 sm:$0xff]  }
  0xd9   : > { %2458 = vmatpush1.bf16.msra.mxu0 %v12964_v56  ;;  %2909 = vmatprep.subr.bf16.mxu1 %v12984_v57  ;;  %v13014_v56 = vld [vmem:[%s19059_s4 + $0x24] ss:$16 sps:$4 sm:$0xff]   ;;  %v13017_v57 = vld [vmem:[%s19059_s4 + $0x2c] ss:$16 sps:$4 sm:$0xff]  }
  0xda   : > { %2459 = vmatprep.subr.bf16.mxu0 %v12969_v60  ;;  %2910 = vmatpush1.bf16.msra.mxu1 %v12982_v61  ;;  %v13012_v60 = vld [vmem:[%s19059_s4 + $0x20] ss:$16 sps:$4 sm:$0xff]   ;;  %v13015_v61 = vld [vmem:[%s19059_s4 + $0x28] ss:$16 sps:$4 sm:$0xff]  }
  0xdb   : > { %2911 = vmatprep.subr.bf16.mxu1 %v12987_v63  ;;  %v13023_v63 = vld [vmem:[%s19059_s4 + $0x4c] ss:$16 sps:$4 sm:$0xff]  }
  0xdd   : > { %2460 = vmatpush1.bf16.msra.mxu0 %v12967_v1  ;;  %v13018_v1 = vld [vmem:[%s19059_s4 + $0x40] ss:$16 sps:$4 sm:$0xff]  }
  0xde   : > { %2461 = vmatprep.subr.bf16.mxu0 %v12972_v2  ;;  %2912 = vmatpush1.bf16.msra.mxu1 %v12985_v3  ;;  %v13021_v2 = vld [vmem:[%s19059_s4 + $0x48] ss:$16 sps:$4 sm:$0xff]   ;;  %v13026_v3 = vld [vmem:[%s19059_s4 + $0x64] ss:$16 sps:$4 sm:$0xff]  }
  0xdf   : > { %2393 = vmatmul.mubr.bf16.gmra.mrb[8].mxu0 %v710_v4  ;;  %2845 = vmatmul.mubr.bf16.gmra.mrb[8].mxu1 %v710_v4  ;;  %v13029_v4 = vld [vmem:[%s19059_s4 + $0x6c] ss:$16 sps:$4 sm:$0xff]  }
  0xe0   : > { %2402 = vmatprep.mubr.bf16.mxu0 %v718_v5  ;;  %2854 = vmatprep.mubr.bf16.mxu1 %v718_v5  ;;  %v614_v5 = vld [vmem:[%s14579_s25 + $0x110] sm:$0xff] }
  0xe1   : > { %2462 = vmatpush1.bf16.msra.mxu0 %v12970_v6  ;;  %2913 = vmatprep.subr.bf16.mxu1 %v12993_v7  ;;  %v621_v6 = vld [vmem:[%s14579_s25 + $0x148] sm:$0xff]  ;;  %v13024_v7 = vld [vmem:[%s19059_s4 + $0x60] ss:$16 sps:$4 sm:$0xff]  }
  0xe2   : > { %2463 = vmatprep.subr.bf16.mxu0 %v12981_v10  ;;  %2914 = vmatpush1.bf16.msra.mxu1 %v12991_v11  ;;  %v13035_v10 = vld [vmem:[%s19059_s4 + $0x8c] ss:$16 sps:$4 sm:$0xff]   ;;  %v712_v11 = vpack.c.bf16 %v621_v6, %v614_v5  ;;  %v13093_v5 = vld [vmem:[%s19059_s4 + $0x1c8] ss:$16 sps:$4 sm:$0xff]   ;;  %v13098_v6 = vld [vmem:[%s19059_s4 + $0x1e4] ss:$16 sps:$4 sm:$0xff]  }
  0xe3   : > { %2915 = vmatprep.subr.bf16.mxu1 %v12996_v13  ;;  %v13033_v13 = vld [vmem:[%s19059_s4 + $0x88] ss:$16 sps:$4 sm:$0xff]  }
  0xe5   : > { %2464 = vmatpush1.bf16.msra.mxu0 %v12979_v15  ;;  %v13041_v15 = vld [vmem:[%s19059_s4 + $0xac] ss:$16 sps:$4 sm:$0xff]  }
  0xe6   : > { %2465 = vmatprep.subr.bf16.mxu0 %v12990_v16  ;;  %2916 = vmatpush1.bf16.msra.mxu1 %v12994_v17  ;;  %v628_v16 = vld [vmem:[%s14579_s25 + $0x180] sm:$0xff]  ;;  %v635_v17 = vld [vmem:[%s14579_s25 + $0x1b8] sm:$0xff] }
  0xe7   : > { %2403 = vmatmul.mubr.bf16.gmra.mrb[12].mxu0 %v717_v18  ;;  %2855 = vmatmul.mubr.bf16.gmra.mrb[12].mxu1 %v717_v18  ;;  %v13036_v18 = vld [vmem:[%s19059_s4 + $0xa0] ss:$16 sps:$4 sm:$0xff]   ;;  %v719_v22 = vpack.c.bf16 %v635_v17, %v628_v16 }
  0xe8   : > { %2412 = vmatprep.mubr.bf16.mxu0 %v725_v19  ;;  %2864 = vmatprep.mubr.bf16.mxu1 %v725_v19  ;;  %v13039_v19 = vld [vmem:[%s19059_s4 + $0xa8] ss:$16 sps:$4 sm:$0xff]   ;;  %v972_v16 = vld [vmem:[%s19058_s3] sm:$0xf] }
  0xe9   : > { %2466 = vmatpush1.bf16.msra.mxu0 %v12988_v20  ;;  %2917 = vmatprep.subr.bf16.mxu1 %v13002_v21  ;;  %v13044_v20 = vld [vmem:[%s19059_s4 + $0xc4] ss:$16 sps:$4 sm:$0xff]   ;;  %v13047_v21 = vld [vmem:[%s19059_s4 + $0xcc] ss:$16 sps:$4 sm:$0xff]  }
  0xea   : > { %2467 = vmatprep.subr.bf16.mxu0 %v12999_v24  ;;  %2918 = vmatpush1.bf16.msra.mxu1 %v13000_v25  ;;  %v13045_v24 = vld [vmem:[%s19059_s4 + $0xc8] ss:$16 sps:$4 sm:$0xff]   ;;  %v13050_v25 = vld [vmem:[%s19059_s4 + $0xe4] ss:$16 sps:$4 sm:$0xff]  }
  0xeb   : > { %2919 = vmatprep.subr.bf16.mxu1 %v13005_v28  ;;  %v649_v28 = vld [vmem:[%s14579_s25 + $0x228] sm:$0xff] }
  0xed   : > { %2468 = vmatpush1.bf16.msra.mxu0 %v12997_v29  ;;  %v13048_v29 = vld [vmem:[%s19059_s4 + $0xe0] ss:$16 sps:$4 sm:$0xff]  }
  0xee   : > { %2920 = vmatpush1.bf16.msra.mxu1 %v13003_v30  ;;  %4032 = vmatprep.subr.bf16.mxu0 %v13008_v31  ;;  %v13051_v30 = vld [vmem:[%s19059_s4 + $0xe8] ss:$16 sps:$4 sm:$0xff]   ;;  %v13056_v31 = vld [vmem:[%s19059_s4 + $0x104] ss:$16 sps:$4 sm:$0xff]  }
  0xef   : > { %2413 = vmatmul.mubr.bf16.gmra.mrb[16].mxu0 %v724_v32  ;;  %2865 = vmatmul.mubr.bf16.gmra.mrb[16].mxu1 %v724_v32  ;;  %v13059_v32 = vld [vmem:[%s19059_s4 + $0x10c] ss:$16 sps:$4 sm:$0xff]  }
  0xf0   : > { %2422 = vmatprep.mubr.bf16.mxu0 %v732_v34  ;;  %2874 = vmatprep.mubr.bf16.mxu1 %v732_v34  ;;  %v13054_v34 = vld [vmem:[%s19059_s4 + $0x100] ss:$16 sps:$4 sm:$0xff]  }
  0xf1   : > { %4258 = vmatprep.subr.bf16.mxu1 %v13011_v33  ;;  %v726_v33 = vpack.c.bf16 %v649_v28, %v642_v27 }
  0xf7   : > { %2423 = vmatmul.mubr.bf16.gmra.mrb[20].mxu0 %v731_v39  ;;  %2875 = vmatmul.mubr.bf16.gmra.mrb[20].mxu1 %v731_v39  ;;  %v663_v39 = vld [vmem:[%s14579_s25 + $0x298] sm:$0xff] }
  0xf8   : > { %2432 = vmatprep.mubr.bf16.mxu0 %v739_v40  ;;  %2884 = vmatprep.mubr.bf16.mxu1 %v739_v40  ;;  %v13060_v40 = vld [vmem:[%s19059_s4 + $0x120] ss:$16 sps:$4 sm:$0xff]   ;;  %v733_v44 = vpack.c.bf16 %v663_v39, %v656_v38 }
  0xff   : > { %2433 = vmatmul.mubr.bf16.gmra.mrb[24].mxu0 %v738_v45  ;;  %2885 = vmatmul.mubr.bf16.gmra.mrb[24].mxu1 %v738_v45  ;;  %v13066_v45 = vld [vmem:[%s19059_s4 + $0x140] ss:$16 sps:$4 sm:$0xff]  }
 0x100   : > { %2442 = vmatprep.mubr.bf16.mxu0 %v746_v46  ;;  %2894 = vmatprep.mubr.bf16.mxu1 %v746_v46  ;;  %v13069_v46 = vld [vmem:[%s19059_s4 + $0x148] ss:$16 sps:$4 sm:$0xff]  }
 0x107   : > { %2443 = vmatmul.mubr.bf16.gmra.mrb[28].mxu0 %v745_v49  ;;  %2895 = vmatmul.mubr.bf16.gmra.mrb[28].mxu1 %v745_v49  ;;  %v670_v49 = vld [vmem:[%s14579_s25 + $0x2d0] sm:$0xff] }
 0x108   : > { %2485 = vmatprep.mubr.bf16.mxu0 %v19072_v52  ;;  %2937 = vmatprep.mubr.bf16.mxu1 %v19072_v52 }
 0x10f   : > { %2486 = vmatmul.mubr.bf16.vlgmr.msra.gmra.mrb[0].mxu0 %v698_v53  ;;  %2938 = vmatmul.mubr.bf16.vlgmr.msra.gmra.mrb[0].mxu1 %v698_v53  ;;  %v13075_v53 = vld [vmem:[%s19059_s4 + $0x168] ss:$16 sps:$4 sm:$0xff]  }
 0x110   : > { %2495 = vmatprep.mubr.bf16.mxu0 %v19072_v52  ;;  %2947 = vmatprep.mubr.bf16.mxu1 %v19072_v52 }
 0x111   : > { %4033 = vmatpush1.bf16.msra.mxu0 %v13006_v54  ;;  %4259 = vmatpush1.bf16.msra.mxu1 %v13009_v55  ;;  %v13080_v54 = vld [vmem:[%s19059_s4 + $0x184] ss:$16 sps:$4 sm:$0xff]   ;;  %v13083_v55 = vld [vmem:[%s19059_s4 + $0x18c] ss:$16 sps:$4 sm:$0xff]  }
 0x112   : > { %4034 = vmatprep.subr.bf16.mxu0 %v13014_v56  ;;  %4260 = vmatprep.subr.bf16.mxu1 %v13017_v57  ;;  %v740_v56 = vpack.c.bf16 %v677_v50, %v670_v49  ;;  %v13078_v57 = vld [vmem:[%s19059_s4 + $0x180] ss:$16 sps:$4 sm:$0xff]  }
 0x115   : > { %4035 = vmatpush1.bf16.msra.mxu0 %v13012_v60  ;;  %4261 = vmatpush1.bf16.msra.mxu1 %v13015_v61  ;;  %v691_v60 = vld [vmem:[%s14579_s25 + $0x378] sm:$0xff] }
 0x116   : > { %4036 = vmatprep.subr.bf16.mxu0 %v13020_v62  ;;  %4262 = vmatprep.subr.bf16.mxu1 %v13023_v63  ;;  %v747_v61 = vpack.c.bf16 %v691_v60, %v684_v59  ;;  %v13086_v62 = vld [vmem:[%s19059_s4 + $0x1a4] ss:$16 sps:$4 sm:$0xff]   ;;  %v13089_v63 = vld [vmem:[%s19059_s4 + $0x1ac] ss:$16 sps:$4 sm:$0xff]  }
 0x117   : > { %2496 = vmatmul.mubr.bf16.gmra.mrb[4].mxu0 %v705_v0  ;;  %2948 = vmatmul.mubr.bf16.gmra.mrb[4].mxu1 %v705_v0  ;;  %v13084_v0 = vld [vmem:[%s19059_s4 + $0x1a0] ss:$16 sps:$4 sm:$0xff]  }
 0x118   : > { %2505 = vmatprep.mubr.bf16.mxu0 %v19072_v52  ;;  %2957 = vmatprep.mubr.bf16.mxu1 %v19072_v52 }
 0x119   : > { %4037 = vmatpush1.bf16.msra.mxu0 %v13018_v1  ;;  %4263 = vmatpush1.bf16.msra.mxu1 %v13021_v2  ;;  %v13087_v1 = vld [vmem:[%s19059_s4 + $0x1a8] ss:$16 sps:$4 sm:$0xff]   ;;  %v13092_v2 = vld [vmem:[%s19059_s4 + $0x1c4] ss:$16 sps:$4 sm:$0xff]  }
 0x11a   : > { %4038 = vmatprep.subr.bf16.mxu0 %v13026_v3  ;;  %4264 = vmatprep.subr.bf16.mxu1 %v13029_v4  ;;  %v13095_v3 = vld [vmem:[%s19059_s4 + $0x1cc] ss:$16 sps:$4 sm:$0xff]   ;;  %v13090_v4 = vld [vmem:[%s19059_s4 + $0x1c0] ss:$16 sps:$4 sm:$0xff]  }
 0x11d   : > { %4039 = vmatpush1.bf16.msra.mxu0 %v13024_v7  ;;  %4265 = vmatpush1.bf16.msra.mxu1 %v13027_v8  ;;  %v13101_v7 = vld [vmem:[%s19059_s4 + $0x1ec] ss:$16 sps:$4 sm:$0xff]   ;;  %v13096_v8 = vld [vmem:[%s19059_s4 + $0x1e0] ss:$16 sps:$4 sm:$0xff]  }
 0x11e   : > { %4040 = vmatprep.subr.bf16.mxu0 %v13032_v9  ;;  %4266 = vmatprep.subr.bf16.mxu1 %v13035_v10  ;;  %v13099_v9 = vld [vmem:[%s19059_s4 + $0x1e8] ss:$16 sps:$4 sm:$0xff]   ;;  %v13104_v10 = vld [vmem:[%s19059_s4 + $0x204] ss:$16 sps:$4 sm:$0xff]  }
 0x11f   : > { %2506 = vmatmul.mubr.bf16.gmra.mrb[8].mxu0 %v712_v11  ;;  %2958 = vmatmul.mubr.bf16.gmra.mrb[8].mxu1 %v712_v11  ;;  %v13107_v11 = vld [vmem:[%s19059_s4 + $0x20c] ss:$16 sps:$4 sm:$0xff]  }
 0x120   : > { %2515 = vmatprep.mubr.bf16.mxu0 %v19072_v52  ;;  %2967 = vmatprep.mubr.bf16.mxu1 %v19072_v52 }
 0x121   : > { %4041 = vmatpush1.bf16.msra.mxu0 %v13030_v12  ;;  %4267 = vmatpush1.bf16.msra.mxu1 %v13033_v13  ;;  %v974_v12 = vlaneseq }
 0x122   : > { %4042 = vmatprep.subr.bf16.mxu0 %v13038_v14  ;;  %4268 = vmatprep.subr.bf16.mxu1 %v13041_v15 }
 0x123   : > { %v15447_v13 = vshrl.u32 %v974_v12, 7  ;;  %v13113_v12 = vld [vmem:[%s19059_s4 + $0x22c] ss:$16 sps:$4 sm:$0xff]  }
 0x125   : > { %4043 = vmatpush1.bf16.msra.mxu0 %v13036_v18  ;;  %4269 = vmatpush1.bf16.msra.mxu1 %v13039_v19  ;;  %19102 = vst [vmem:[#allocation2_spill] sm:$0xff] %v15447_v13  ;;  %v15450_v14 = vsub.s32 0, %v15447_v13  ;;  %v15453_v15 = vsub.s32 2, %v15447_v13  ;;  %v15459_v17 = vsub.s32 1, %v15447_v13  ;;  %v15462_v18 = vsub.s32 3, %v15447_v13 }
 0x126   : > { %4044 = vmatprep.subr.bf16.mxu0 %v13044_v20  ;;  %4270 = vmatprep.subr.bf16.mxu1 %v13047_v21 }
 0x127   : > { %2516 = vmatmul.mubr.bf16.gmra.mrb[12].mxu0 %v719_v22  ;;  %2968 = vmatmul.mubr.bf16.gmra.mrb[12].mxu1 %v719_v22  ;;  %19103 = vst [vmem:[#allocation3_spill] sm:$0xff] %v15450_v14  ;;  %19104 = vst [vmem:[#allocation4_spill] sm:$0xff] %v15453_v15  ;;  %v15465_v19 = vrot.slane %v972_v16, %v15450_v14  ;;  %v15468_v20 = vrot.slane %v972_v16, %v15453_v15 }
 0x128   : > { %2525 = vmatprep.mubr.bf16.mxu0 %v19072_v52  ;;  %2977 = vmatprep.mubr.bf16.mxu1 %v19072_v52  ;;  %19105 = vst [vmem:[#allocation5_spill] sm:$0xff] %v15459_v17  ;;  %19106 = vst [vmem:[#allocation6_spill] sm:$0xff] %v15462_v18  ;;  %v15471_v21 = vrot.slane %v972_v16, %v15459_v17 }
 0x129   : > { %4045 = vmatpush1.bf16.msra.mxu0 %v13042_v23  ;;  %4271 = vmatpush1.bf16.msra.mxu1 %v13045_v24  ;;  %v15474_v24 = vrot.slane %v972_v16, %v15462_v18 }
 0x12a   : > { %4046 = vmatprep.subr.bf16.mxu0 %v13050_v25  ;;  %4272 = vmatprep.subr.bf16.mxu1 %v13053_v26 }
 0x12d   : > { %4047 = vmatpush1.bf16.msra.mxu0 %v13048_v29  ;;  %4273 = vmatpush1.bf16.msra.mxu1 %v13051_v30 }
 0x12e   : > { %4048 = vmatprep.subr.bf16.mxu0 %v13056_v31  ;;  %4274 = vmatprep.subr.bf16.mxu1 %v13059_v32 }
 0x12f   : > { %2526 = vmatmul.mubr.bf16.gmra.mrb[16].mxu0 %v726_v33  ;;  %2978 = vmatmul.mubr.bf16.gmra.mrb[16].mxu1 %v726_v33 }
 0x130   : > { %2535 = vmatprep.mubr.bf16.mxu0 %v19072_v52  ;;  %2987 = vmatprep.mubr.bf16.mxu1 %v19072_v52 }
 0x131   : > { %4049 = vmatpush1.bf16.msra.mxu0 %v13054_v34  ;;  %4275 = vmatpush1.bf16.msra.mxu1 %v13057_v35 }
 0x132   : > { %4050 = vmatprep.subr.bf16.mxu0 %v13062_v36  ;;  %4276 = vmatprep.subr.bf16.mxu1 %v13065_v37 }
 0x135   : > { %4051 = vmatpush1.bf16.msra.mxu0 %v13060_v40  ;;  %4277 = vmatpush1.bf16.msra.mxu1 %v13063_v41 }
 0x136   : > { %4052 = vmatprep.subr.bf16.mxu0 %v13068_v42  ;;  %4278 = vmatprep.subr.bf16.mxu1 %v13071_v43 }
 0x137   : > { %2536 = vmatmul.mubr.bf16.gmra.mrb[20].mxu0 %v733_v44  ;;  %2988 = vmatmul.mubr.bf16.gmra.mrb[20].mxu1 %v733_v44 }
 0x138   : > { %2545 = vmatprep.mubr.bf16.mxu0 %v19072_v52  ;;  %2997 = vmatprep.mubr.bf16.mxu1 %v19072_v52 }
 0x139   : > { %4053 = vmatpush1.bf16.msra.mxu0 %v13066_v45  ;;  %4279 = vmatpush1.bf16.msra.mxu1 %v13069_v46 }
 0x13a   : > { %4054 = vmatprep.subr.bf16.mxu0 %v13074_v47  ;;  %4280 = vmatprep.subr.bf16.mxu1 %v13077_v48 }
 0x13d   : > { %4055 = vmatpush1.bf16.msra.mxu0 %v13072_v51  ;;  %4281 = vmatpush1.bf16.msra.mxu1 %v13075_v53 }
 0x13e   : > { %4056 = vmatprep.subr.bf16.mxu0 %v13080_v54  ;;  %4282 = vmatprep.subr.bf16.mxu1 %v13083_v55 }
 0x13f   : > { %2546 = vmatmul.mubr.bf16.gmra.mrb[24].mxu0 %v740_v56  ;;  %2998 = vmatmul.mubr.bf16.gmra.mrb[24].mxu1 %v740_v56 }
 0x140   : > { %2555 = vmatprep.mubr.bf16.mxu0 %v19072_v52  ;;  %3007 = vmatprep.mubr.bf16.mxu1 %v19072_v52 }
 0x141   : > { %4057 = vmatpush1.bf16.msra.mxu0 %v13078_v57  ;;  %4283 = vmatpush1.bf16.msra.mxu1 %v13081_v58 }
 0x142   : > { %4058 = vmatprep.subr.bf16.mxu0 %v13086_v62  ;;  %4284 = vmatprep.subr.bf16.mxu1 %v13089_v63 }
 0x145   : > { %4059 = vmatpush1.bf16.msra.mxu0 %v13084_v0  ;;  %4285 = vmatpush1.bf16.msra.mxu1 %v13087_v1  ;;  %v13102_v1 = vld [vmem:[%s19059_s4 + $0x200] ss:$16 sps:$4 sm:$0xff]  }
 0x146   : > { %4060 = vmatprep.subr.bf16.mxu0 %v13092_v2  ;;  %4286 = vmatprep.subr.bf16.mxu1 %v13095_v3  ;;  %v13105_v2 = vld [vmem:[%s19059_s4 + $0x208] ss:$16 sps:$4 sm:$0xff]  }
 0x147   : > { %2556 = vmatmul.mubr.bf16.gmra.mrb[28].mxu0 %v747_v61  ;;  %3008 = vmatmul.mubr.bf16.gmra.mrb[28].mxu1 %v747_v61 }
 0x149   : > { %4061 = vmatpush1.bf16.msra.mxu0 %v13090_v4  ;;  %4287 = vmatpush1.bf16.msra.mxu1 %v13093_v5 }
 0x14a   : > { %4062 = vmatprep.subr.bf16.mxu0 %v13098_v6  ;;  %4288 = vmatprep.subr.bf16.mxu1 %v13101_v7 }
 0x14d   : > { %4063 = vmatpush1.bf16.msra.mxu0 %v13096_v8  ;;  %4289 = vmatpush1.bf16.msra.mxu1 %v13099_v9  ;;  %v13110_v8 = vld [vmem:[%s19059_s4 + $0x224] ss:$16 sps:$4 sm:$0xff]  }
 0x14e   : > { %4145 = vmatprep.subr.bf16.mxu0 %v13104_v10  ;;  %4371 = vmatprep.subr.bf16.mxu1 %v13107_v11 }
 0x1e2   : > { %v2487_v22 = vpop.f32.mrb[0].mxu0  ;;  %v2939_v23 = vpop.f32.mrb[0].mxu1 }
 0x1e3   : > { %v11892_v25 = vadd.f32 %v2487_v22, %v15465_v19  ;;  %v11924_v26 = vadd.f32 %v2939_v23, %v15468_v20  ;;  %v2489_v27 = vpop.f32.mrb[1].mxu0  ;;  %v2941_v28 = vpop.f32.mrb[1].mxu1 }
 0x1e4   : > { %v11893_v29 = vadd.f32 %v2489_v27, %v15471_v21  ;;  %v2491_v30 = vpop.f32.mrb[2].mxu0  ;;  %v2943_v31 = vpop.f32.mrb[2].mxu1  ;;  %v11925_v33 = vadd.f32 %v2941_v28, %v15474_v24  ;;  %v13108_v27 = vld [vmem:[%s19059_s4 + $0x220] ss:$16 sps:$4 sm:$0xff]   ;;  %v13111_v28 = vld [vmem:[%s19059_s4 + $0x228] ss:$16 sps:$4 sm:$0xff]  }
 0x1e5   : > { %vm3018_vm0 = vcmp.gt.f32.partialorder %v11892_v25, 0.0  ;;  %v3082_v32 = vmul.f32 0.2, %v11892_v25  ;;  %vm3020_vm1 = vcmp.gt.f32.partialorder %v11924_v26, 0.0  ;;  %v3084_v34 = vmul.f32 0.2, %v11924_v26 }
 0x1e6   : > { %v11894_v35 = vadd.f32 %v2491_v30, %v15465_v19  ;;  %v11926_v36 = vadd.f32 %v2943_v31, %v15468_v20  ;;  %v2493_v37 = vpop.f32.mrb[3].mxu0  ;;  %v2945_v38 = vpop.f32.mrb[3].mxu1  ;;  %vm3019_vm2 = vcmp.gt.f32.partialorder %v11893_v29, 0.0  ;;  %v3083_v39 = vmul.f32 0.2, %v11893_v29 }
 0x1e7   : > { %v11895_v40 = vadd.f32 %v2493_v37, %v15471_v21  ;;  %v11927_v41 = vadd.f32 %v2945_v38, %v15474_v24  ;;  %v3146_v44 = vsel %vm3018_vm0, %v11892_v25, %v3082_v32  ;;  %v3148_v47 = vsel %vm3020_vm1, %v11924_v26, %v3084_v34 }
 0x1e8   : > { %vm3022_vm3 = vcmp.gt.f32.partialorder %v11894_v35, 0.0  ;;  %v3086_v42 = vmul.f32 0.2, %v11894_v35  ;;  %vm3024_vm4 = vcmp.gt.f32.partialorder %v11926_v36, 0.0  ;;  %v3088_v43 = vmul.f32 0.2, %v11926_v36 }
 0x1e9   : > { %vm3023_vm5 = vcmp.gt.f32.partialorder %v11895_v40, 0.0  ;;  %v3087_v45 = vmul.f32 0.2, %v11895_v40  ;;  %v3089_v46 = vmul.f32 0.2, %v11927_v41  ;;  %vm3025_vm6 = vcmp.gt.f32.partialorder %v11927_v41, 0.0 }
 0x1ea   : > { %v3150_v48 = vsel %vm3022_vm3, %v11894_v35, %v3086_v42  ;;  %v3152_v49 = vsel %vm3024_vm4, %v11926_v36, %v3088_v43  ;;  %v2497_v50 = vpop.f32.mrb[4].mxu0  ;;  %v15486_v51 = vpop.f32.mrb[4].mxu1  ;;  %v3085_v53 = vmul.f32 0.2, %v11925_v33  ;;  %vm3021_vm7 = vcmp.gt.f32.partialorder %v11925_v33, 0.0 }
 0x1eb   : > { %v3210_v54 = vpack.c.bf16 %v3150_v48, %v3146_v44  ;;  %v15488_v55 = vpack.c.bf16 %v3152_v49, %v3148_v47  ;;  %v11896_v56 = vadd.f32 %v2497_v50, %v15465_v19  ;;  %v2499_v57 = vpop.f32.mrb[5].mxu0  ;;  %v15491_v58 = vpop.f32.mrb[5].mxu1  ;;  %v3151_v62 = vsel %vm3023_vm5, %v11895_v40, %v3087_v45  ;;  %v13116_v40 = vld [vmem:[%s19059_s4 + $0x244] ss:$16 sps:$4 sm:$0xff]   ;;  %v13114_v43 = vld [vmem:[%s19059_s4 + $0x240] ss:$16 sps:$4 sm:$0xff]  }
 0x1ec   : > { %v11897_v59 = vadd.f32 %v2499_v57, %v15471_v21  ;;  %v2501_v60 = vpop.f32.mrb[6].mxu0  ;;  %v15494_v61 = vpop.f32.mrb[6].mxu1  ;;  %v3153_v63 = vsel %vm3025_vm6, %v11927_v41, %v3089_v46  ;;  %v3147_v0 = vsel %vm3019_vm2, %v11893_v29, %v3083_v39  ;;  %v3149_v9 = vsel %vm3021_vm7, %v11925_v33, %v3085_v53  ;;  %v13119_v41 = vld [vmem:[%s19059_s4 + $0x24c] ss:$16 sps:$4 sm:$0xff]   ;;  %v13117_v44 = vld [vmem:[%s19059_s4 + $0x248] ss:$16 sps:$4 sm:$0xff]  }
 0x1ed   : > { %19107 = vst [vmem:[#allocation7_spill] sm:$0xff] %v15488_v55  ;;  %v3090_v3 = vmul.f32 0.2, %v11896_v56  ;;  %v11898_v4 = vadd.f32 %v2501_v60, %v15465_v19  ;;  %v2503_v5 = vpop.f32.mrb[7].mxu0  ;;  %v15505_v6 = vpop.f32.mrb[7].mxu1  ;;  %v3211_v7 = vpack.c.bf16 %v3151_v62, %v3147_v0  ;;  %vm3026_vm8 = vcmp.gt.f32.partialorder %v11896_v56, 0.0 }
 0x1ee   : > { %v3091_v10 = vmul.f32 0.2, %v11897_v59  ;;  %v11899_v11 = vadd.f32 %v2503_v5, %v15471_v21  ;;  %v15514_v16 = vpack.c.bf16 %v3153_v63, %v3149_v9  ;;  %vm3027_vm9 = vcmp.gt.f32.partialorder %v11897_v59, 0.0  ;;  %v13122_v45 = vld [vmem:[%s19059_s4 + $0x264] ss:$16 sps:$4 sm:$0xff]  }
 0x1ef   : > { %vm3030_vm10 = vcmp.gt.f32.partialorder %v11898_v4, 0.0  ;;  %v3094_v22 = vmul.f32 0.2, %v11898_v4  ;;  %4064 = vmatprep.mubr.bf16.mxu0 %v3211_v7  ;;  %4290 = vmatprep.mubr.bf16.mxu1 %v3211_v7  ;;  %v3154_v29 = vsel %vm3026_vm8, %v11896_v56, %v3090_v3  ;;  %v13125_v50 = vld [vmem:[%s19059_s4 + $0x26c] ss:$16 sps:$4 sm:$0xff]  }
 0x1f0   : > { %19108 = vst [vmem:[#allocation8_spill] sm:$0xff] %v15514_v16  ;;  %vm3031_vm11 = vcmp.gt.f32.partialorder %v11899_v11, 0.0  ;;  %v3095_v23 = vmul.f32 0.2, %v11899_v11  ;;  %4065 = vmatmul.mubr.bf16.vlgmr.msra.gmra.mrb[32].mxu0 %v3210_v54  ;;  %4291 = vmatmul.mubr.bf16.vlgmr.msra.gmra.mrb[32].mxu1 %v3210_v54  ;;  %v3155_v34 = vsel %vm3027_vm9, %v11897_v59, %v3091_v10  ;;  %v13120_v57 = vld [vmem:[%s19059_s4 + $0x260] ss:$16 sps:$4 sm:$0xff]  }
 0x1f1   : > { %4146 = vmatpush1.bf16.msra.mxu0 %v13102_v1  ;;  %4372 = vmatpush1.bf16.msra.mxu1 %v13105_v2  ;;  %v3158_v30 = vsel %vm3030_vm10, %v11898_v4, %v3094_v22  ;;  %v13123_v59 = vld [vmem:[%s19059_s4 + $0x268] ss:$16 sps:$4 sm:$0xff]   ;;  %v13128_v62 = vld [vmem:[%s19059_s4 + $0x284] ss:$16 sps:$4 sm:$0xff]   ;;  %v13131_v5 = vld [vmem:[%s19059_s4 + $0x28c] ss:$16 sps:$4 sm:$0xff]  }
 0x1f2   : > { %v2507_v25 = vpop.f32.mrb[8].mxu0  ;;  %v15516_v26 = vpop.f32.mrb[8].mxu1  ;;  %4147 = vmatprep.subr.bf16.mxu0 %v13110_v8  ;;  %4373 = vmatprep.subr.bf16.mxu1 %v13113_v12  ;;  %v3159_v35 = vsel %vm3031_vm11, %v11899_v11, %v3095_v23  ;;  %v3214_v39 = vpack.c.bf16 %v3158_v30, %v3154_v29  ;;  %v13126_v29 = vld [vmem:[%s19059_s4 + $0x280] ss:$16 sps:$4 sm:$0xff]   ;;  %v13129_v30 = vld [vmem:[%s19059_s4 + $0x288] ss:$16 sps:$4 sm:$0xff]  }
 0x1f3   : > { %v11900_v31 = vadd.f32 %v2507_v25, %v15465_v19  ;;  %v2509_v32 = vpop.f32.mrb[9].mxu0  ;;  %v15526_v33 = vpop.f32.mrb[9].mxu1  ;;  %v3215_v38 = vpack.c.bf16 %v3159_v35, %v3155_v34  ;;  %v13134_v35 = vld [vmem:[%s19059_s4 + $0x2a4] ss:$16 sps:$4 sm:$0xff]  }
 0x1f4   : > { %v2511_v36 = vpop.f32.mrb[10].mxu0  ;;  %v15530_v37 = vpop.f32.mrb[10].mxu1  ;;  %v11901_v42 = vadd.f32 %v2509_v32, %v15471_v21  ;;  %v13170_v16 = vld [vmem:[%s19059_s4 + $0x364] ss:$16 sps:$4 sm:$0xff]  }
 0x1f5   : > { %4148 = vmatpush1.bf16.msra.mxu0 %v13108_v27  ;;  %4374 = vmatpush1.bf16.msra.mxu1 %v13111_v28  ;;  %v3098_v46 = vmul.f32 0.2, %v11900_v31  ;;  %v11902_v47 = vadd.f32 %v2511_v36, %v15465_v19  ;;  %v2513_v48 = vpop.f32.mrb[11].mxu0  ;;  %v15549_v49 = vpop.f32.mrb[11].mxu1  ;;  %vm3034_vm12 = vcmp.gt.f32.partialorder %v11900_v31, 0.0 }
 0x1f6   : > { %4074 = vmatprep.mubr.bf16.mxu0 %v3215_v38  ;;  %4300 = vmatprep.mubr.bf16.mxu1 %v3215_v38  ;;  %v11903_v53 = vadd.f32 %v2513_v48, %v15471_v21  ;;  %v3099_v63 = vmul.f32 0.2, %v11901_v42  ;;  %vm3035_vm15 = vcmp.gt.f32.partialorder %v11901_v42, 0.0  ;;  %v13137_v36 = vld [vmem:[%s19059_s4 + $0x2ac] ss:$16 sps:$4 sm:$0xff]   ;;  %v15599_v38 = vadd.f32 %v15486_v51, %v15468_v20 }
 0x1f7   : > { %4149 = vmatprep.subr.bf16.mxu0 %v13116_v40  ;;  %4375 = vmatprep.subr.bf16.mxu1 %v13119_v41  ;;  %vm3038_vm13 = vcmp.gt.f32.partialorder %v11902_v47, 0.0  ;;  %v3102_v60 = vmul.f32 0.2, %v11902_v47  ;;  %v3162_v3 = vsel %vm3034_vm12, %v11900_v31, %v3098_v46  ;;  %v13132_v40 = vld [vmem:[%s19059_s4 + $0x2a0] ss:$16 sps:$4 sm:$0xff]  }
 0x1f8   : > { %4075 = vmatmul.mubr.bf16.gmra.mrb[36].mxu0 %v3214_v39  ;;  %4301 = vmatmul.mubr.bf16.gmra.mrb[36].mxu1 %v3214_v39  ;;  %vm3039_vm14 = vcmp.gt.f32.partialorder %v11903_v53, 0.0  ;;  %v3103_v0 = vmul.f32 0.2, %v11903_v53  ;;  %v3163_v12 = vsel %vm3035_vm15, %v11901_v42, %v3099_v63  ;;  %v13135_v41 = vld [vmem:[%s19059_s4 + $0x2a8] ss:$16 sps:$4 sm:$0xff]   ;;  %v15640_v63 = vadd.f32 %v15526_v33, %v15474_v24 }
 0x1f9   : > { %4150 = vmatpush1.bf16.msra.mxu0 %v13114_v43  ;;  %4376 = vmatpush1.bf16.msra.mxu1 %v13117_v44  ;;  %v3166_v4 = vsel %vm3038_vm13, %v11902_v47, %v3102_v60  ;;  %v13140_v51 = vld [vmem:[%s19059_s4 + $0x2c4] ss:$16 sps:$4 sm:$0xff]   ;;  %v15612_v44 = vadd.f32 %v15491_v58, %v15474_v24  ;;  %v13143_v58 = vld [vmem:[%s19059_s4 + $0x2cc] ss:$16 sps:$4 sm:$0xff]   ;;  %vm3028_vm5 = vcmp.gt.f32.partialorder %v15599_v38, 0.0 }
 0x1fa   : > { %v2517_v54 = vpop.f32.mrb[12].mxu0  ;;  %v15555_v56 = vpop.f32.mrb[12].mxu1  ;;  %4151 = vmatprep.subr.bf16.mxu0 %v13122_v45  ;;  %4377 = vmatprep.subr.bf16.mxu1 %v13125_v50  ;;  %v3167_v9 = vsel %vm3039_vm14, %v11903_v53, %v3103_v0  ;;  %v3218_v10 = vpack.c.bf16 %v3166_v4, %v3162_v3  ;;  %v15655_v3 = vadd.f32 %v15530_v37, %v15468_v20 }
 0x1fb   : > { %v2519_v1 = vpop.f32.mrb[13].mxu0  ;;  %v15566_v2 = vpop.f32.mrb[13].mxu1  ;;  %v11904_v22 = vadd.f32 %v2517_v54, %v15465_v19  ;;  %v3219_v28 = vpack.c.bf16 %v3167_v9, %v3163_v12  ;;  %v15624_v54 = vadd.f32 %v15494_v61, %v15468_v20  ;;  %v13146_v9 = vld [vmem:[%s19059_s4 + $0x2e4] ss:$16 sps:$4 sm:$0xff]   ;;  %vm3029_vm4 = vcmp.gt.f32.partialorder %v15612_v44, 0.0 }
 0x1fc   : > { %v2521_v7 = vpop.f32.mrb[14].mxu0  ;;  %v15573_v8 = vpop.f32.mrb[14].mxu1  ;;  %v11905_v11 = vadd.f32 %v2519_v1, %v15471_v21  ;;  %v3093_v1 = vmul.f32 0.2, %v15612_v44 }
 0x1fd   : > { %4152 = vmatpush1.bf16.msra.mxu0 %v13120_v57  ;;  %4378 = vmatpush1.bf16.msra.mxu1 %v13123_v59  ;;  %v11906_v23 = vadd.f32 %v2521_v7, %v15465_v19  ;;  %v2523_v25 = vpop.f32.mrb[15].mxu0  ;;  %v15578_v27 = vpop.f32.mrb[15].mxu1  ;;  %v3106_v45 = vmul.f32 0.2, %v11904_v22  ;;  %vm3042_vm3 = vcmp.gt.f32.partialorder %v11904_v22, 0.0  ;;  %v15628_v57 = vadd.f32 %v15505_v6, %v15474_v24 }
 0x1fe   : > { %4153 = vmatprep.subr.bf16.mxu0 %v13128_v62  ;;  %4379 = vmatprep.subr.bf16.mxu1 %v13131_v5  ;;  %v11907_v31 = vadd.f32 %v2523_v25, %v15471_v21  ;;  %v3107_v42 = vmul.f32 0.2, %v11905_v11  ;;  %vm3043_vm2 = vcmp.gt.f32.partialorder %v11905_v11, 0.0  ;;  %v15632_v59 = vadd.f32 %v15516_v26, %v15468_v20  ;;  %v13138_v6 = vld [vmem:[%s19059_s4 + $0x2c0] ss:$16 sps:$4 sm:$0xff]  }
 0x1ff   : > { %v3110_v39 = vmul.f32 0.2, %v11906_v23  ;;  %4084 = vmatprep.mubr.bf16.mxu0 %v3219_v28  ;;  %4310 = vmatprep.mubr.bf16.mxu1 %v3219_v28  ;;  %vm3046_vm0 = vcmp.gt.f32.partialorder %v11906_v23, 0.0  ;;  %v15636_v62 = vmul.f32 0.2, %v15599_v38  ;;  %v3170_v7 = vsel %vm3042_vm3, %v11904_v22, %v3106_v45 }
 0x200   : > { %vm3047_vm1 = vcmp.gt.f32.partialorder %v11907_v31, 0.0  ;;  %v3111_v43 = vmul.f32 0.2, %v11907_v31  ;;  %4085 = vmatmul.mubr.bf16.gmra.mrb[40].mxu0 %v3218_v10  ;;  %4311 = vmatmul.mubr.bf16.gmra.mrb[40].mxu1 %v3218_v10  ;;  %v3171_v0 = vsel %vm3043_vm2, %v11905_v11, %v3107_v42  ;;  %v13141_v26 = vld [vmem:[%s19059_s4 + $0x2c8] ss:$16 sps:$4 sm:$0xff]   ;;  %v15704_v42 = vadd.f32 %v15549_v49, %v15474_v24 }
 0x201   : > { %4154 = vmatpush1.bf16.msra.mxu0 %v13126_v29  ;;  %4380 = vmatpush1.bf16.msra.mxu1 %v13129_v30  ;;  %v3174_v60 = vsel %vm3046_vm0, %v11906_v23, %v3110_v39  ;;  %v13149_v22 = vld [vmem:[%s19059_s4 + $0x2ec] ss:$16 sps:$4 sm:$0xff]   ;;  %v15677_v25 = vmul.f32 0.2, %v15624_v54  ;;  %v15680_v28 = vmul.f32 0.2, %v15628_v57 }
 0x202   : > { %v15587_v32 = vpop.f32.mrb[16].mxu0  ;;  %v15589_v34 = vpop.f32.mrb[16].mxu1  ;;  %4155 = vmatprep.subr.bf16.mxu0 %v13134_v35  ;;  %4381 = vmatprep.subr.bf16.mxu1 %v13137_v36  ;;  %v3175_v53 = vsel %vm3047_vm1, %v11907_v31, %v3111_v43  ;;  %v3222_v11 = vpack.c.bf16 %v3174_v60, %v3170_v7  ;;  %v15683_v29 = vmul.f32 0.2, %v15632_v59  ;;  %v13144_v30 = vld [vmem:[%s19059_s4 + $0x2e0] ss:$16 sps:$4 sm:$0xff]   ;;  %v15731_v60 = vadd.f32 %v15573_v8, %v15468_v20 }
 0x203   : > { %v2529_v46 = vpop.f32.mrb[17].mxu0  ;;  %v15614_v47 = vpop.f32.mrb[17].mxu1  ;;  %v3223_v5 = vpack.c.bf16 %v3175_v53, %v3171_v0  ;;  %v13147_v31 = vld [vmem:[%s19059_s4 + $0x2e8] ss:$16 sps:$4 sm:$0xff]   ;;  %v15693_v35 = vadd.f32 %v15587_v32, %v15465_v19  ;;  %v15715_v45 = vmul.f32 0.2, %v15655_v3  ;;  %v15747_v8 = vadd.f32 %v15589_v34, %v15468_v20 }
 0x204   : > { %v2531_v48 = vpop.f32.mrb[18].mxu0  ;;  %v15616_v50 = vpop.f32.mrb[18].mxu1  ;;  %v15643_v61 = vadd.f32 %v2529_v46, %v15471_v21  ;;  %v15719_v46 = vadd.f32 %v15555_v56, %v15468_v20  ;;  %19109 = vst [vmem:[#allocation9_spill] sm:$0xff] %v15731_v60  ;;  %v15735_v56 = vadd.f32 %v15578_v27, %v15474_v24  ;;  %v13150_v0 = vld [vmem:[%s19059_s4 + $0x300] ss:$16 sps:$4 sm:$0xff]   ;;  %v15751_v27 = vadd.f32 %v15614_v47, %v15474_v24 }
 0x205   : > { %4156 = vmatpush1.bf16.msra.mxu0 %v13132_v40  ;;  %4382 = vmatpush1.bf16.msra.mxu1 %v13135_v41  ;;  %v2533_v33 = vpop.f32.mrb[19].mxu0  ;;  %v15657_v4 = vpop.f32.mrb[19].mxu1  ;;  %v15665_v10 = vadd.f32 %v2531_v48, %v15465_v19  ;;  %v13152_v40 = vld [vmem:[%s19059_s4 + $0x304] ss:$16 sps:$4 sm:$0xff]   ;;  %v15700_v41 = vmul.f32 0.2, %v15640_v63 }
 0x206   : > { %v11911_v37 = vadd.f32 %v2533_v33, %v15471_v21  ;;  %4157 = vmatprep.subr.bf16.mxu0 %v13140_v51  ;;  %4383 = vmatprep.subr.bf16.mxu1 %v13143_v58  ;;  %v3115_v36 = vmul.f32 0.2, %v15643_v61  ;;  %vm3051_vm7 = vcmp.gt.f32.partialorder %v15643_v61, 0.0  ;;  %v15712_v51 = vsel %vm3029_vm4, %v15612_v44, %v3093_v1  ;;  %19110 = vst [vmem:[#allocation10_spill] sm:$0xff] %v15751_v27  ;;  %v13155_v1 = vld [vmem:[%s19059_s4 + $0x30c] ss:$16 sps:$4 sm:$0xff]  }
 0x207   : > { %4094 = vmatprep.mubr.bf16.mxu0 %v3223_v5  ;;  %4320 = vmatprep.mubr.bf16.mxu1 %v3223_v5  ;;  %v3118_v49 = vmul.f32 0.2, %v15665_v10  ;;  %v15727_v44 = vadd.f32 %v15566_v2, %v15474_v24  ;;  %vm3054_vm8 = vcmp.gt.f32.partialorder %v15665_v10, 0.0  ;;  %v3114_v2 = vmul.f32 0.2, %v15693_v35 }
 0x208   : > { %vm3055_vm6 = vcmp.gt.f32.partialorder %v11911_v37, 0.0  ;;  %v3119_v39 = vmul.f32 0.2, %v11911_v37  ;;  %4095 = vmatmul.mubr.bf16.gmra.mrb[44].mxu0 %v3222_v11  ;;  %4321 = vmatmul.mubr.bf16.gmra.mrb[44].mxu1 %v3222_v11  ;;  %v13158_v33 = vld [vmem:[%s19059_s4 + $0x324] ss:$16 sps:$4 sm:$0xff]   ;;  %vm3050_vm9 = vcmp.gt.f32.partialorder %v15693_v35, 0.0 }
 0x209   : > { %4158 = vmatpush1.bf16.msra.mxu0 %v13138_v6  ;;  %4384 = vmatpush1.bf16.msra.mxu1 %v13141_v26  ;;  %v13153_v6 = vld [vmem:[%s19059_s4 + $0x308] ss:$16 sps:$4 sm:$0xff]   ;;  %v3179_v26 = vsel %vm3051_vm7, %v15643_v61, %v3115_v36  ;;  %v15763_v5 = vmul.f32 0.2, %v15704_v42  ;;  %vm3033_vm14 = vcmp.gt.f32.partialorder %v15628_v57, 0.0  ;;  %vm3032_vm0 = vcmp.gt.f32.partialorder %v15624_v54, 0.0 }
 0x20a   : > { %v15668_v12 = vpop.f32.mrb[20].mxu0  ;;  %v15670_v23 = vpop.f32.mrb[20].mxu1  ;;  %4159 = vmatprep.subr.bf16.mxu0 %v13146_v9  ;;  %4385 = vmatprep.subr.bf16.mxu1 %v13149_v22  ;;  %v3183_v58 = vsel %vm3055_vm6, %v11911_v37, %v3119_v39  ;;  %v15770_v9 = vmul.f32 0.2, %v15719_v46  ;;  %v15774_v37 = vadd.f32 %v15616_v50, %v15468_v20  ;;  %v3182_v22 = vsel %vm3054_vm8, %v15665_v10, %v3118_v49  ;;  %v13156_v10 = vld [vmem:[%s19059_s4 + $0x320] ss:$16 sps:$4 sm:$0xff]  }
 0x20b   : > { %v2539_v32 = vpop.f32.mrb[21].mxu0  ;;  %v15707_v43 = vpop.f32.mrb[21].mxu1  ;;  %v3227_v7 = vpack.c.bf16 %v3183_v58, %v3179_v26  ;;  %v15784_v39 = vmul.f32 0.2, %v15727_v44  ;;  %v15790_v50 = vmul.f32 0.2, %v15735_v56  ;;  %v15794_v58 = vadd.f32 %v15657_v4, %v15474_v24 }
 0x20c   : > { %v2541_v48 = vpop.f32.mrb[22].mxu0  ;;  %v15722_v53 = vpop.f32.mrb[22].mxu1  ;;  %v15767_v34 = vadd.f32 %v2539_v32, %v15471_v21  ;;  %v15787_v32 = vmul.f32 0.2, %v15731_v60  ;;  %v15803_v49 = vmul.f32 0.2, %v15747_v8  ;;  %v15810_v4 = vadd.f32 %v15668_v12, %v15465_v19 }
 0x20d   : > { %4160 = vmatpush1.bf16.msra.mxu0 %v13144_v30  ;;  %4386 = vmatpush1.bf16.msra.mxu1 %v13147_v31  ;;  %v2543_v47 = vpop.f32.mrb[23].mxu0  ;;  %v2995_v61 = vpop.f32.mrb[23].mxu1  ;;  %v13161_v31 = vld [vmem:[%s19059_s4 + $0x32c] ss:$16 sps:$4 sm:$0xff]   ;;  %v15806_v26 = vmul.f32 0.2, %v15751_v27  ;;  %v15820_v13 = vadd.f32 %v2541_v48, %v15465_v19  ;;  %v15832_v48 = vsel %vm3028_vm5, %v15599_v38, %v15636_v62 }
 0x20e   : > { %v11915_v11 = vadd.f32 %v2543_v47, %v15471_v21  ;;  %4161 = vmatprep.subr.bf16.mxu0 %v13152_v40  ;;  %4104 = vmatprep.mubr.bf16.mxu0 %v3227_v7  ;;  %v13159_v40 = vld [vmem:[%s19059_s4 + $0x328] ss:$16 sps:$4 sm:$0xff]   ;;  %19111 = vst [vmem:[#allocation11_spill] sm:$0xff] %v15803_v49  ;;  %v3178_v47 = vsel %vm3050_vm9, %v15693_v35, %v3114_v2  ;;  %v3123_v52 = vmul.f32 0.2, %v15767_v34  ;;  %vm3059_vm10 = vcmp.gt.f32.partialorder %v15767_v34, 0.0 }
 0x20f   : > { %4330 = vmatprep.mubr.bf16.mxu1 %v3227_v7  ;;  %19112 = vst [vmem:[#allocation12_spill] sm:$0xff] %v15806_v26  ;;  %4387 = vmatprep.subr.bf16.mxu1 %v13155_v1  ;;  %v13164_v7 = vld [vmem:[%s19059_s4 + $0x344] ss:$16 sps:$4 sm:$0xff]   ;;  %v3226_v17 = vpack.c.bf16 %v3182_v22, %v3178_v47  ;;  %v15823_v14 = vmul.f32 0.2, %v15774_v37  ;;  %v15843_v1 = vadd.f32 %v15707_v43, %v15474_v24  ;;  %vm3058_vm12 = vcmp.gt.f32.partialorder %v15810_v4, 0.0 }
 0x210   : > { %v3127_v18 = vmul.f32 0.2, %v11915_v11  ;;  %vm3063_vm11 = vcmp.gt.f32.partialorder %v11915_v11, 0.0  ;;  %v13162_v38 = vld [vmem:[%s19059_s4 + $0x340] ss:$16 sps:$4 sm:$0xff]   ;;  %v15858_v43 = vadd.f32 %v2995_v61, %v15474_v24  ;;  %v3187_v61 = vsel %vm3059_vm10, %v15767_v34, %v3123_v52 }
 0x211   : > { %4162 = vmatpush1.bf16.msra.mxu0 %v13150_v0  ;;  %4388 = vmatpush1.bf16.msra.mxu1 %v13153_v6  ;;  %19113 = vst [vmem:[#allocation13_spill] sm:$0xff] %v15823_v14  ;;  %v15835_v0 = vmul.f32 0.2, %v15794_v58  ;;  %v15839_v6 = vadd.f32 %v15670_v23, %v15468_v20  ;;  %v13167_v62 = vld [vmem:[%s19059_s4 + $0x34c] ss:$16 sps:$4 sm:$0xff]   ;;  %vm3062_vm13 = vcmp.gt.f32.partialorder %v15820_v13, 0.0 }
 0x212   : > { %v2547_v36 = vpop.f32.mrb[24].mxu0  ;;  %v2999_v30 = vpop.f32.mrb[24].mxu1  ;;  %4163 = vmatprep.subr.bf16.mxu0 %v13158_v33  ;;  %4389 = vmatprep.subr.bf16.mxu1 %v13161_v31  ;;  %v15847_v33 = vadd.f32 %v15722_v53, %v15468_v20  ;;  %v3122_v23 = vmul.f32 0.2, %v15810_v4  ;;  %v3126_v22 = vmul.f32 0.2, %v15820_v13 }
 0x213   : > { %v2549_v12 = vpop.f32.mrb[25].mxu0  ;;  %v3001_v15 = vpop.f32.mrb[25].mxu1  ;;  %19114 = vst [vmem:[#allocation14_spill] sm:$0xff] %v15835_v0  ;;  %4105 = vmatmul.mubr.bf16.gmra.mrb[48].mxu0 %v3226_v17  ;;  %4331 = vmatmul.mubr.bf16.gmra.mrb[48].mxu1 %v3226_v17  ;;  %v15861_v53 = vadd.f32 %v2547_v36, %v15465_v19  ;;  %v13165_v17 = vld [vmem:[%s19059_s4 + $0x348] ss:$16 sps:$4 sm:$0xff]   ;;  %v15868_v31 = vadd.f32 %v2999_v30, %v15468_v20  ;;  %vm3037_vm1 = vcmp.gt.f32.partialorder %v15640_v63, 0.0 }
 0x214   : > { %v2551_v35 = vpop.f32.mrb[26].mxu0  ;;  %v15826_v2 = vpop.f32.mrb[26].mxu1  ;;  %v3191_v36 = vsel %vm3063_vm11, %v11915_v11, %v3127_v18  ;;  %v15879_v14 = vadd.f32 %v2549_v12, %v15471_v21  ;;  %v13173_v52 = vld [vmem:[%s19059_s4 + $0x36c] ss:$16 sps:$4 sm:$0xff]   ;;  %v15888_v18 = vmul.f32 0.2, %v15839_v6  ;;  %v15897_v12 = vadd.f32 %v3001_v15, %v15474_v24 }
 0x215   : > { %4164 = vmatpush1.bf16.msra.mxu0 %v13156_v10  ;;  %4390 = vmatpush1.bf16.msra.mxu1 %v13159_v40  ;;  %v2553_v47 = vpop.f32.mrb[27].mxu0  ;;  %v3005_v55 = vpop.f32.mrb[27].mxu1  ;;  %v3231_v10 = vpack.c.bf16 %v3191_v36, %v3187_v61  ;;  %v15891_v34 = vmul.f32 0.2, %v15843_v1  ;;  %v15894_v11 = vmul.f32 0.2, %v15847_v33  ;;  %v15914_v15 = vadd.f32 %v2551_v35, %v15465_v19 }
 0x216   : > { %v15882_v30 = vadd.f32 %v2553_v47, %v15471_v21  ;;  %4165 = vmatprep.subr.bf16.mxu0 %v13164_v7  ;;  %19115 = vst [vmem:[#allocation15_spill] sm:$0xff] %v15888_v18  ;;  %4391 = vmatprep.subr.bf16.mxu1 %v13167_v62  ;;  %v13168_v7 = vld [vmem:[%s19059_s4 + $0x360] ss:$16 sps:$4 sm:$0xff]   ;;  %v13171_v47 = vld [vmem:[%s19059_s4 + $0x368] ss:$16 sps:$4 sm:$0xff]   ;;  %vm3066_vm15 = vcmp.gt.f32.partialorder %v15861_v53, 0.0  ;;  %v3186_v18 = vsel %vm3058_vm12, %v15810_v4, %v3122_v23 }
 0x217   : > { %19116 = vst [vmem:[#allocation16_spill] sm:$0xff] %v15891_v34  ;;  %19117 = vst [vmem:[#allocation17_spill] sm:$0xff] %v15894_v11  ;;  %v15907_v61 = vmul.f32 0.2, %v15858_v43  ;;  %v15911_v36 = vmul.f32 0.2, %v15861_v53  ;;  %4114 = vmatprep.mubr.bf16.mxu0 %v3231_v10  ;;  %4340 = vmatprep.mubr.bf16.mxu1 %v3231_v10  ;;  %v3190_v35 = vsel %vm3062_vm13, %v15820_v13, %v3126_v22 }
 0x218   : > { %v13176_v62 = vld [vmem:[%s19059_s4 + $0x384] ss:$16 sps:$4 sm:$0xff]   ;;  %v15921_v11 = vmul.f32 0.2, %v15868_v31  ;;  %v13179_v0 = vld [vmem:[%s19059_s4 + $0x38c] ss:$16 sps:$4 sm:$0xff]   ;;  %v3230_v13 = vpack.c.bf16 %v3190_v35, %v3186_v18 }
 0x219   : > { %19118 = vst [vmem:[#allocation18_spill] sm:$0xff] %v15907_v61  ;;  %4166 = vmatpush1.bf16.msra.mxu0 %v13162_v38  ;;  %4392 = vmatpush1.bf16.msra.mxu1 %v13165_v17  ;;  %vm3041_vm2 = vcmp.gt.f32.partialorder %v15704_v42, 0.0  ;;  %vm3067_vm3 = vcmp.gt.f32.partialorder %v15879_v14, 0.0  ;;  %v3135_v4 = vmul.f32 0.2, %v15882_v30  ;;  %vm3036_vm4 = vcmp.gt.f32.partialorder %v15632_v59, 0.0 }
 0x21a   : > { %v2557_v40 = vpop.f32.mrb[28].mxu0  ;;  %v3009_v49 = vpop.f32.mrb[28].mxu1  ;;  %19119 = vst [vmem:[#allocation19_spill] sm:$0xff] %v15921_v11  ;;  %4167 = vmatprep.subr.bf16.mxu0 %v13170_v16  ;;  %4393 = vmatprep.subr.bf16.mxu1 %v13173_v52  ;;  %v3131_v22 = vmul.f32 0.2, %v15879_v14  ;;  %v15948_v11 = vadd.f32 %v15826_v2, %v15468_v20  ;;  %vm3071_vm6 = vcmp.gt.f32.partialorder %v15882_v30, 0.0  ;;  %v15962_v2 = vadd.f32 %v3005_v55, %v15474_v24 }
 0x21b   : > { %v15930_v10 = vadd.f32 %v2557_v40, %v15465_v19  ;;  %v2559_v61 = vpop.f32.mrb[29].mxu0  ;;  %v3011_v34 = vpop.f32.mrb[29].mxu1  ;;  %v15944_v40 = vmul.f32 0.2, %v15897_v12  ;;  %v13174_v16 = vld [vmem:[%s19059_s4 + $0x380] ss:$16 sps:$4 sm:$0xff]   ;;  %4115 = vmatmul.mubr.bf16.gmra.mrb[52].mxu0 %v3230_v13  ;;  %4341 = vmatmul.mubr.bf16.gmra.mrb[52].mxu1 %v3230_v13 }
 0x21c   : > { %v11921_v38 = vadd.f32 %v2559_v61, %v15471_v21  ;;  %v2561_v23 = vpop.f32.mrb[30].mxu0  ;;  %v3013_v17 = vpop.f32.mrb[30].mxu1  ;;  %v13177_v52 = vld [vmem:[%s19059_s4 + $0x388] ss:$16 sps:$4 sm:$0xff]   ;;  %vm3070_vm9 = vcmp.gt.f32.partialorder %v15914_v15, 0.0  ;;  %v15965_v61 = vadd.f32 %v3009_v49, %v15468_v20  ;;  %v15975_v55 = vadd.f32 %v3011_v34, %v15474_v24 }
 0x21d   : > { %19120 = vst [vmem:[#allocation20_spill] sm:$0xff] %v15944_v40  ;;  %v3134_v18 = vmul.f32 0.2, %v15914_v15  ;;  %v13182_v35 = vld [vmem:[%s19059_s4 + $0x3a4] ss:$16 sps:$4 sm:$0xff]   ;;  %vm3074_vm13 = vcmp.gt.f32.partialorder %v15930_v10, 0.0  ;;  %4168 = vmatpush1.bf16.msra.mxu0 %v13168_v7  ;;  %4394 = vmatpush1.bf16.msra.mxu1 %v13171_v47  ;;  %v11922_v49 = vadd.f32 %v2561_v23, %v15465_v19  ;;  %v3199_v34 = vsel %vm3071_vm6, %v15882_v30, %v3135_v4 }
 0x21e   : > { %v3139_v40 = vmul.f32 0.2, %v11921_v38  ;;  %v2563_v13 = vpop.f32.mrb[31].mxu0  ;;  %v3015_v26 = vpop.f32.mrb[31].mxu1  ;;  %v3138_v60 = vmul.f32 0.2, %v15930_v10  ;;  %4169 = vmatprep.subr.bf16.mxu0 %v13176_v62  ;;  %v15991_v47 = vadd.f32 %v3013_v17, %v15468_v20  ;;  %4395 = vmatprep.subr.bf16.mxu1 %v13179_v0  ;;  %v3194_v20 = vsel %vm3066_vm15, %v15861_v53, %v15911_v36 }
 0x21f   : > { %vm3075_vm11 = vcmp.gt.f32.partialorder %v11921_v38, 0.0  ;;  %v11923_v27 = vadd.f32 %v2563_v13, %v15471_v21  ;;  %v13185_v19 = vld [vmem:[%s19059_s4 + $0x3ac] ss:$16 sps:$4 sm:$0xff]   ;;  %v3142_v7 = vmul.f32 0.2, %v11922_v49  ;;  %v15994_v23 = vadd.f32 %v3015_v26, %v15474_v24 }
 0x220   : > { %v3195_v21 = vsel %vm3067_vm3, %v15879_v14, %v3131_v22  ;;  %vm3060_vm6 = vcmp.gt.f32.partialorder %v15839_v6, 0.0  ;;  %vm3064_vm10 = vcmp.gt.f32.partialorder %v15847_v33, 0.0  ;;  %vm3065_vm12 = vcmp.gt.f32.partialorder %v15858_v43, 0.0  ;;  %v13180_v0 = vld [vmem:[%s19059_s4 + $0x3a0] ss:$16 sps:$4 sm:$0xff]  }
 0x221   : > { %vm3078_vm7 = vcmp.gt.f32.partialorder %v11922_v49, 0.0  ;;  %vm3079_vm8 = vcmp.gt.f32.partialorder %v11923_v27, 0.0  ;;  %v3143_v30 = vmul.f32 0.2, %v11923_v27  ;;  %v16008_v24 = vmul.f32 0.2, %v15948_v11  ;;  %4170 = vmatpush1.bf16.msra.mxu0 %v13174_v16  ;;  %4396 = vmatpush1.bf16.msra.mxu1 %v13177_v52 }
 0x222   : > { %v3235_v14 = vpack.c.bf16 %v3199_v34, %v3195_v21  ;;  %v3198_v26 = vsel %vm3070_vm9, %v15914_v15, %v3134_v18  ;;  %v13183_v53 = vld [vmem:[%s19059_s4 + $0x3a8] ss:$16 sps:$4 sm:$0xff]   ;;  %v3203_v36 = vsel %vm3075_vm11, %v11921_v38, %v3139_v40  ;;  %vm3068_vm15 = vcmp.gt.f32.partialorder %v15868_v31, 0.0  ;;  %4171 = vmatprep.subr.bf16.mxu0 %v13182_v35  ;;  %4397 = vmatprep.subr.bf16.mxu1 %v13185_v19  ;;  %v13188_v40 = vld [vmem:[%s19059_s4 + $0x3c4] ss:$16 sps:$4 sm:$0xff]  }
 0x223   : > { %vm3072_vm3 = vcmp.gt.f32.partialorder %v15948_v11, 0.0  ;;  %vm3073_vm5 = vcmp.gt.f32.partialorder %v15962_v2, 0.0  ;;  %v3234_v62 = vpack.c.bf16 %v3198_v26, %v3194_v20  ;;  %v3207_v15 = vsel %vm3079_vm8, %v11923_v27, %v3143_v30  ;;  %v13191_v27 = vld [vmem:[%s19059_s4 + $0x3cc] ss:$16 sps:$4 sm:$0xff]   ;;  %v19127_v19 = vld [vmem:[#allocation12_spill] sm:$0xff] }
 0x224   : > { %v3202_v4 = vsel %vm3074_vm13, %v15930_v10, %v3138_v60  ;;  %v16028_v17 = vmul.f32 0.2, %v15962_v2  ;;  %4124 = vmatprep.mubr.bf16.mxu0 %v3235_v14  ;;  %4350 = vmatprep.mubr.bf16.mxu1 %v3235_v14  ;;  %v3239_v38 = vpack.c.bf16 %v3207_v15, %v3203_v36  ;;  %v3206_v22 = vsel %vm3078_vm7, %v11922_v49, %v3142_v7  ;;  %v13194_v49 = vld [vmem:[%s19059_s4 + $0x3e4] ss:$16 sps:$4 sm:$0xff]   ;;  %v13192_v30 = vld [vmem:[%s19059_s4 + $0x3e0] ss:$16 sps:$4 sm:$0xff]  }
 0x225   : > { %v3161_v60 = vsel %vm3033_vm14, %v15628_v57, %v15680_v28  ;;  %vm3076_vm8 = vcmp.gt.f32.partialorder %v15965_v61, 0.0  ;;  %v16043_v10 = vmul.f32 0.2, %v15965_v61  ;;  %4125 = vmatmul.mubr.bf16.gmra.mrb[56].mxu0 %v3234_v62  ;;  %4351 = vmatmul.mubr.bf16.gmra.mrb[56].mxu1 %v3234_v62  ;;  %v3238_v16 = vpack.c.bf16 %v3206_v22, %v3202_v4  ;;  %v13186_v57 = vld [vmem:[%s19059_s4 + $0x3c0] ss:$16 sps:$4 sm:$0xff]   ;;  %v19139_v15 = vld [vmem:[#allocation15_spill] sm:$0xff] }
 0x226   : > { %v16046_v52 = vpack.c.bf16 %v3161_v60, %v15712_v51  ;;  %v3160_v18 = vsel %vm3032_vm0, %v15624_v54, %v15677_v25  ;;  %vm3077_vm7 = vcmp.gt.f32.partialorder %v15975_v55, 0.0  ;;  %4172 = vmatpush1.bf16.msra.mxu0 %v13180_v0  ;;  %4398 = vmatpush1.bf16.msra.mxu1 %v13183_v53  ;;  %v13189_v28 = vld [vmem:[%s19059_s4 + $0x3c8] ss:$16 sps:$4 sm:$0xff]   ;;  %v3165_v54 = vsel %vm3037_vm1, %v15640_v63, %v15700_v41  ;;  %v19128_v7 = vld [vmem:[#allocation10_spill] sm:$0xff] }
 0x227   : > { %v16060_v51 = vpack.c.bf16 %v3160_v18, %v15832_v48  ;;  %v3169_v25 = vsel %vm3041_vm2, %v15704_v42, %v15763_v5  ;;  %v3141_v35 = vmul.f32 0.2, %v15975_v55  ;;  %4134 = vmatprep.mubr.bf16.mxu0 %v3239_v38  ;;  %4360 = vmatprep.mubr.bf16.mxu1 %v3239_v38  ;;  %v13197_v48 = vld [vmem:[%s19059_s4 + $0x3ec] ss:$16 sps:$4 sm:$0xff]   ;;  %v3164_v63 = vsel %vm3036_vm4, %v15632_v59, %v15683_v29  ;;  %v13195_v20 = vld [vmem:[%s19059_s4 + $0x3e8] ss:$16 sps:$4 sm:$0xff]  }
 0x228   : > { %v16077_v13 = vpack.c.bf16 %v3169_v25, %v3165_v54  ;;  %vm19121_vm14 = vcmp.gt.f32.partialorder %v15655_v3, 0.0  ;;  %vm3080_vm0 = vcmp.gt.f32.partialorder %v15991_v47, 0.0  ;;  %4173 = vmatprep.subr.bf16.mxu0 %v13188_v40  ;;  %4399 = vmatprep.subr.bf16.mxu1 %v13191_v27  ;;  %vm19122_vm1 = vcmp.gt.f32.partialorder %v15727_v44, 0.0  ;;  %v19138_v36 = vld [vmem:[#allocation18_spill] sm:$0xff]  ;;  %v19140_v38 = vld [vmem:[#allocation17_spill] sm:$0xff]  ;;  %v19141_v40 = vld [vmem:[#allocation20_spill] sm:$0xff] }
 0x229   : > { %v3168_v41 = vsel %vm19121_vm14, %v15655_v3, %v15715_v45  ;;  %v3173_v5 = vsel %vm19122_vm1, %v15727_v44, %v15784_v39  ;;  %vm19123_vm2 = vcmp.gt.f32.partialorder %v15735_v56, 0.0  ;;  %vm19124_vm4 = vcmp.gt.f32.partialorder %v15719_v46, 0.0  ;;  %v19125_v45 = vld [vmem:[#allocation9_spill] sm:$0xff]  ;;  %v19143_v27 = vld [vmem:[#allocation8_spill] sm:$0xff]  ;;  %v19144_v60 = vld [vmem:[#allocation19_spill] sm:$0xff] }
 0x22a   : > { %v16088_v42 = vpack.c.bf16 %v3168_v41, %v3164_v63  ;;  %v3177_v59 = vsel %vm19123_vm2, %v15735_v56, %v15790_v50  ;;  %v3172_v3 = vsel %vm19124_vm4, %v15719_v46, %v15770_v9  ;;  %vm19126_vm9 = vcmp.gt.f32.partialorder %v19125_v45, 0.0  ;;  %4174 = vmatpush1.bf16.msra.mxu0 %v13186_v57  ;;  %4400 = vmatpush1.bf16.msra.mxu1 %v13189_v28  ;;  %v19130_v50 = vld [vmem:[#allocation14_spill] sm:$0xff]  ;;  %v19132_v9 = vld [vmem:[#allocation11_spill] sm:$0xff]  ;;  %v13207_v25 = vld [vmem:[%s19061_s6 + $0x30] ss:$8 sps:$4 sm:$0xff]  }
 0x22b   : > { %v16098_v29 = vpack.c.bf16 %v3177_v59, %v3173_v5  ;;  %v3176_v34 = vsel %vm19126_vm9, %v19125_v45, %v15787_v32  ;;  %vm19129_vm11 = vcmp.gt.f32.partialorder %v19128_v7, 0.0  ;;  %v3144_v39 = vmul.f32 0.2, %v15991_v47  ;;  %4175 = vmatprep.subr.bf16.mxu0 %v13194_v49  ;;  %4401 = vmatprep.subr.bf16.mxu1 %v13197_v48  ;;  %v19145_v54 = vld [vmem:[#allocation7_spill] sm:$0xff]  ;;  %v13213_v48 = vld [vmem:[%s19061_s6 + $0x50] ss:$8 sps:$4 sm:$0xff]  }
 0x22c   : > { %v3181_v44 = vsel %vm19129_vm11, %v19128_v7, %v19127_v19  ;;  %v16113_v56 = vpack.c.bf16 %v3176_v34, %v3172_v3  ;;  %vm19131_vm13 = vcmp.gt.f32.partialorder %v15794_v58, 0.0  ;;  %vm19133_vm14 = vcmp.gt.f32.partialorder %v15747_v8, 0.0  ;;  %v13210_v49 = vld [vmem:[%s19061_s6 + $0x40] ss:$8 sps:$4 sm:$0xff]   ;;  %v13221_v41 = vld [vmem:[%s19061_s6 + $0x74] ss:$8 sps:$4 sm:$0xff]  }
 0x22d   : > { %v3185_v46 = vsel %vm19131_vm13, %v15794_v58, %v19130_v50  ;;  %v3180_v32 = vsel %vm19133_vm14, %v15747_v8, %v19132_v9  ;;  %v3145_v21 = vmul.f32 0.2, %v15994_v23  ;;  %v19134_v58 = vld [vmem:[#allocation13_spill] sm:$0xff]  ;;  %vm19135_vm1 = vcmp.gt.f32.partialorder %v15774_v37, 0.0  ;;  %v19136_v8 = vld [vmem:[#allocation16_spill] sm:$0xff]  ;;  %4135 = vmatmul.mubr.bf16.gmra.mrb[60].mxu0 %v3238_v16  ;;  %4361 = vmatmul.mubr.bf16.gmra.mrb[60].mxu1 %v3238_v16 }
 0x22e   : > { %v16130_v14 = vpack.c.bf16 %v3185_v46, %v3181_v44  ;;  %v3184_v26 = vsel %vm19135_vm1, %v15774_v37, %v19134_v58  ;;  %vm19137_vm2 = vcmp.gt.f32.partialorder %v15843_v1, 0.0  ;;  %v3193_v62 = vsel %vm3065_vm12, %v15858_v43, %v19138_v36  ;;  %4177 = vmatprep.mubr.bf16.mxu0 %v19143_v27  ;;  %4403 = vmatprep.mubr.bf16.mxu1 %v19143_v27  ;;  %v13216_v63 = vld [vmem:[%s19061_s6 + $0x60] ss:$8 sps:$4 sm:$0xff]   ;;  %v13224_v5 = vld [vmem:[%s19061_s6 + $0x84] ss:$8 sps:$4 sm:$0xff]  }
 0x22f   : > { %v3189_v0 = vsel %vm19137_vm2, %v15843_v1, %v19136_v8  ;;  %v16140_v53 = vpack.c.bf16 %v3184_v26, %v3180_v32  ;;  %v3188_v4 = vsel %vm3060_vm6, %v15839_v6, %v19139_v15  ;;  %v3192_v37 = vsel %vm3064_vm10, %v15847_v33, %v19140_v38  ;;  %v13200_v1 = vld [vmem:[%s19061_s6 + $0x4] ss:$8 sps:$4 sm:$0xff]   ;;  %4176 = vmatpush1.bf16.msra.mxu0 %v13192_v30  ;;  %v13222_v59 = vld [vmem:[%s19061_s6 + $0x80] ss:$8 sps:$4 sm:$0xff]   ;;  %v13225_v3 = vld [vmem:[%s19061_s6 + $0x90] ss:$8 sps:$4 sm:$0xff]  }
 0x230   : > { %vm3081_vm4 = vcmp.gt.f32.partialorder %v15994_v23, 0.0  ;;  %v16158_v22 = vpack.c.bf16 %v3193_v62, %v3189_v0  ;;  %v16160_v43 = vpack.c.bf16 %v3192_v37, %v3188_v4  ;;  %vm19142_vm12 = vcmp.gt.f32.partialorder %v15897_v12, 0.0  ;;  %4402 = vmatpush1.bf16.msra.mxu1 %v13195_v20  ;;  %5104 = vmatprep.subr.bf16.mxu0 %v13200_v1  ;;  %v13230_v45 = vld [vmem:[%s19061_s6 + $0xa4] ss:$8 sps:$4 sm:$0xff]   ;;  %v13228_v34 = vld [vmem:[%s19061_s6 + $0xa0] ss:$8 sps:$4 sm:$0xff]  }
 0x231   : > { %v3197_v6 = vsel %vm19142_vm12, %v15897_v12, %v19141_v40  ;;  %v3201_v33 = vsel %vm3073_vm5, %v15962_v2, %v16028_v17  ;;  %v3196_v16 = vsel %vm3068_vm15, %v15868_v31, %v19144_v60  ;;  %v3200_v18 = vsel %vm3072_vm3, %v15948_v11, %v16008_v24  ;;  %v13233_v19 = vld [vmem:[%s19061_s6 + $0xb4] ss:$8 sps:$4 sm:$0xff]   ;;  %v13231_v7 = vld [vmem:[%s19061_s6 + $0xb0] ss:$8 sps:$4 sm:$0xff]   ;;  %v13236_v44 = vld [vmem:[%s19061_s6 + $0xc4] ss:$8 sps:$4 sm:$0xff]  }
 0x232   : > { %v16180_v12 = vpack.c.bf16 %v3201_v33, %v3197_v6  ;;  %v16182_v57 = vpack.c.bf16 %v3200_v18, %v3196_v16  ;;  %v3205_v2 = vsel %vm3077_vm7, %v15975_v55, %v3141_v35  ;;  %v3209_v17 = vsel %vm3081_vm4, %v15994_v23, %v3145_v21  ;;  %v13198_v55 = vld [vmem:[%s19061_s6] ss:$8 sps:$4 sm:$0xff]   ;;  %v13203_v23 = vld [vmem:[%s19061_s6 + $0x14] ss:$8 sps:$4 sm:$0xff]   ;;  %v13212_v35 = vld [vmem:[%s19061_s6 + $0x44] ss:$8 sps:$4 sm:$0xff]  }
 0x233   : > { %v3204_v31 = vsel %vm3076_vm8, %v15965_v61, %v16043_v10  ;;  %v3208_v11 = vsel %vm3080_vm0, %v15991_v47, %v3144_v39  ;;  %v16197_v24 = vpack.c.bf16 %v3209_v17, %v3205_v2  ;;  %v13201_v61 = vld [vmem:[%s19061_s6 + $0x10] ss:$8 sps:$4 sm:$0xff]   ;;  %v13206_v47 = vld [vmem:[%s19061_s6 + $0x24] ss:$8 sps:$4 sm:$0xff]   ;;  %v13204_v10 = vld [vmem:[%s19061_s6 + $0x20] ss:$8 sps:$4 sm:$0xff]  }
 0x234   : > { %v16199_v28 = vpack.c.bf16 %v3208_v11, %v3204_v31  ;;  %v13234_v39 = vld [vmem:[%s19061_s6 + $0xc0] ss:$8 sps:$4 sm:$0xff]   ;;  %v13237_v50 = vld [vmem:[%s19061_s6 + $0xd0] ss:$8 sps:$4 sm:$0xff]   ;;  %v13239_v46 = vld [vmem:[%s19061_s6 + $0xd4] ss:$8 sps:$4 sm:$0xff]  }
 0x235   : > { %4178 = vmatmul.mubr.bf16.vlgmr.msra.gmra.mrb[32].mxu0 %v19145_v54  ;;  %4404 = vmatmul.mubr.bf16.vlgmr.msra.gmra.mrb[32].mxu1 %v19145_v54  ;;  %v13240_v9 = vld [vmem:[%s19061_s6 + $0xe0] ss:$8 sps:$4 sm:$0xff]   ;;  %v13242_v32 = vld [vmem:[%s19061_s6 + $0xe4] ss:$8 sps:$4 sm:$0xff]   ;;  %v13245_v21 = vld [vmem:[%s19061_s6 + $0xf4] ss:$8 sps:$4 sm:$0xff]  }
 0x236   : > { %4187 = vmatprep.mubr.bf16.mxu0 %v16046_v52  ;;  %4413 = vmatprep.mubr.bf16.mxu1 %v16046_v52  ;;  %v13209_v52 = vld [vmem:[%s19061_s6 + $0x34] ss:$8 sps:$4 sm:$0xff]   ;;  %v13243_v30 = vld [vmem:[%s19061_s6 + $0xf0] ss:$8 sps:$4 sm:$0xff]   ;;  %v13248_v20 = vld [vmem:[%s19061_s6 + $0x104] ss:$8 sps:$4 sm:$0xff]  }
 0x237   : > { %5105 = vmatpush1.bf16.msra.mxu0 %v13198_v55  ;;  %v19147_v58 = vld [vmem:[#allocation3_spill] sm:$0xff]  ;;  %v19148_v8 = vld [vmem:[#allocation4_spill] sm:$0xff]  ;;  %v19150_v62 = vld [vmem:[#allocation6_spill] sm:$0xff] }
 0x238   : > { %5106 = vmatprep.subr.bf16.mxu0 %v13203_v23 }
 0x23b   : > { %5107 = vmatpush1.bf16.msra.mxu0 %v13201_v61 }
 0x23c   : > { %5108 = vmatprep.subr.bf16.mxu0 %v13206_v47 }
 0x23d   : > { %4188 = vmatmul.mubr.bf16.gmra.mrb[36].mxu0 %v16060_v51  ;;  %4414 = vmatmul.mubr.bf16.gmra.mrb[36].mxu1 %v16060_v51  ;;  %v13215_v51 = vld [vmem:[%s19061_s6 + $0x54] ss:$8 sps:$4 sm:$0xff]  }
 0x23e   : > { %4197 = vmatprep.mubr.bf16.mxu0 %v16077_v13  ;;  %4423 = vmatprep.mubr.bf16.mxu1 %v16077_v13  ;;  %v13218_v13 = vld [vmem:[%s19061_s6 + $0x64] ss:$8 sps:$4 sm:$0xff]  }
 0x23f   : > { %5109 = vmatpush1.bf16.msra.mxu0 %v13204_v10 }
 0x240   : > { %5110 = vmatprep.subr.bf16.mxu0 %v13209_v52 }
 0x243   : > { %5111 = vmatpush1.bf16.msra.mxu0 %v13207_v25 }
 0x244   : > { %5112 = vmatprep.subr.bf16.mxu0 %v13212_v35 }
 0x245   : > { %4198 = vmatmul.mubr.bf16.gmra.mrb[40].mxu0 %v16088_v42  ;;  %4424 = vmatmul.mubr.bf16.gmra.mrb[40].mxu1 %v16088_v42  ;;  %v13219_v42 = vld [vmem:[%s19061_s6 + $0x70] ss:$8 sps:$4 sm:$0xff]  }
 0x246   : > { %4207 = vmatprep.mubr.bf16.mxu0 %v16098_v29  ;;  %4433 = vmatprep.mubr.bf16.mxu1 %v16098_v29  ;;  %v13227_v29 = vld [vmem:[%s19061_s6 + $0x94] ss:$8 sps:$4 sm:$0xff]  }
 0x247   : > { %5113 = vmatpush1.bf16.msra.mxu0 %v13210_v49 }
 0x248   : > { %5114 = vmatprep.subr.bf16.mxu0 %v13215_v51 }
 0x24b   : > { %5115 = vmatpush1.bf16.msra.mxu0 %v13213_v48 }
 0x24c   : > { %5116 = vmatprep.subr.bf16.mxu0 %v13218_v13 }
 0x24d   : > { %4208 = vmatmul.mubr.bf16.gmra.mrb[44].mxu0 %v16113_v56  ;;  %4434 = vmatmul.mubr.bf16.gmra.mrb[44].mxu1 %v16113_v56  ;;  %v19146_v56 = vmov 0  }
 0x24e   : > { %4217 = vmatprep.mubr.bf16.mxu0 %v16130_v14  ;;  %4443 = vmatprep.mubr.bf16.mxu1 %v16130_v14  ;;  %v3370_v14 = vld [vmem:[%s19060_s5] sm:$0xf] }
 0x24f   : > { %5117 = vmatpush1.bf16.msra.mxu0 %v13216_v63  ;;  %v16332_v26 = vrot.slane %v3370_v14, %v19147_v58  ;;  %v16335_v0 = vrot.slane %v3370_v14, %v19148_v8  ;;  %v16341_v15 = vrot.slane %v3370_v14, %v19150_v62  ;;  %v13278_v62 = vld [vmem:[%s19061_s6 + $0x1a4] ss:$8 sps:$4 sm:$0xff]  }
 0x250   : > { %5118 = vmatprep.subr.bf16.mxu0 %v13221_v41 }
 0x253   : > { %5119 = vmatpush1.bf16.msra.mxu0 %v13219_v42  ;;  %v13294_v42 = vld [vmem:[%s19063_s8] ss:$16 sps:$4 sm:$0xff]  }
 0x254   : > { %5120 = vmatprep.subr.bf16.mxu0 %v13224_v5  ;;  %v13296_v5 = vld [vmem:[%s19063_s8 + $0x4] ss:$16 sps:$4 sm:$0xff]  }
 0x255   : > { %4218 = vmatmul.mubr.bf16.gmra.mrb[48].mxu0 %v16140_v53  ;;  %4444 = vmatmul.mubr.bf16.gmra.mrb[48].mxu1 %v16140_v53  ;;  %v19149_v53 = vld [vmem:[#allocation5_spill] sm:$0xff] }
 0x256   : > { %4227 = vmatprep.mubr.bf16.mxu0 %v16158_v22  ;;  %4453 = vmatprep.mubr.bf16.mxu1 %v16158_v22  ;;  %v16338_v36 = vrot.slane %v3370_v14, %v19149_v53 }
 0x257   : > { %5121 = vmatpush1.bf16.msra.mxu0 %v13222_v59  ;;  %5648 = vmatprep.subr.bf16.mxu1 %v13296_v5  ;;  %v13252_v5 = vld [vmem:[%s19061_s6 + $0x120] ss:$8 sps:$4 sm:$0xff]  }
 0x258   : > { %5122 = vmatprep.subr.bf16.mxu0 %v13227_v29  ;;  %5649 = vmatpush1.bf16.msra.mxu1 %v13294_v42 }
 0x25b   : > { %5123 = vmatpush1.bf16.msra.mxu0 %v13225_v3 }
 0x25c   : > { %5124 = vmatprep.subr.bf16.mxu0 %v13230_v45 }
 0x25d   : > { %4228 = vmatmul.mubr.bf16.gmra.mrb[52].mxu0 %v16160_v43  ;;  %4454 = vmatmul.mubr.bf16.gmra.mrb[52].mxu1 %v16160_v43 }
 0x25e   : > { %4237 = vmatprep.mubr.bf16.mxu0 %v16180_v12  ;;  %4463 = vmatprep.mubr.bf16.mxu1 %v16180_v12 }
 0x25f   : > { %5125 = vmatpush1.bf16.msra.mxu0 %v13228_v34  ;;  %v13299_v34 = vld [vmem:[%s19063_s8 + $0x24] ss:$16 sps:$4 sm:$0xff]  }
 0x260   : > { %5126 = vmatprep.subr.bf16.mxu0 %v13233_v19  ;;  %5650 = vmatprep.subr.bf16.mxu1 %v13299_v34 }
 0x263   : > { %5127 = vmatpush1.bf16.msra.mxu0 %v13231_v7 }
 0x264   : > { %5128 = vmatprep.subr.bf16.mxu0 %v13236_v44  ;;  %v13246_v44 = vld [vmem:[%s19061_s6 + $0x100] ss:$8 sps:$4 sm:$0xff]  }
 0x265   : > { %4238 = vmatmul.mubr.bf16.gmra.mrb[56].mxu0 %v16182_v57  ;;  %4464 = vmatmul.mubr.bf16.gmra.mrb[56].mxu1 %v16182_v57 }
 0x266   : > { %4247 = vmatprep.mubr.bf16.mxu0 %v16197_v24  ;;  %4473 = vmatprep.mubr.bf16.mxu1 %v16197_v24 }
 0x267   : > { %5129 = vmatpush1.bf16.msra.mxu0 %v13234_v39 }
 0x268   : > { %5130 = vmatprep.subr.bf16.mxu0 %v13239_v46 }
 0x26b   : > { %5131 = vmatpush1.bf16.msra.mxu0 %v13237_v50  ;;  %v13297_v50 = vld [vmem:[%s19063_s8 + $0x20] ss:$16 sps:$4 sm:$0xff]  }
 0x26c   : > { %5132 = vmatprep.subr.bf16.mxu0 %v13242_v32  ;;  %5651 = vmatpush1.bf16.msra.mxu1 %v13297_v50 }
 0x26d   : > { %4248 = vmatmul.mubr.bf16.gmra.mrb[60].mxu0 %v16199_v28  ;;  %4474 = vmatmul.mubr.bf16.gmra.mrb[60].mxu1 %v16199_v28 }
 0x26e   : > { %5680 = vmatprep.mubr.bf16.mxu1 %v19146_v56 }
 0x26f   : > { %5133 = vmatpush1.bf16.msra.mxu0 %v13240_v9 }
 0x270   : > { %5134 = vmatprep.subr.bf16.mxu0 %v13245_v21 }
 0x273   : > { %5135 = vmatpush1.bf16.msra.mxu0 %v13243_v30 }
 0x274   : > { %5217 = vmatprep.subr.bf16.mxu0 %v13248_v20 }
 0x308   : > { %v4179_v4 = vpop.f32.mrb[32].mxu0  ;;  %v4405_v38 = vpop.f32.mrb[32].mxu1 }
 0x309   : > { %v11956_v37 = vadd.f32 %v4179_v4, %v16332_v26  ;;  %v11988_v1 = vadd.f32 %v4405_v38, %v16335_v0  ;;  %v4181_v22 = vpop.f32.mrb[33].mxu0  ;;  %v4407_v43 = vpop.f32.mrb[33].mxu1  ;;  %v13251_v38 = vld [vmem:[%s19061_s6 + $0x114] ss:$8 sps:$4 sm:$0xff]  }
 0x30a   : > { %v11957_v40 = vadd.f32 %v4181_v22, %v16338_v36  ;;  %v11989_v6 = vadd.f32 %v4407_v43, %v16341_v15  ;;  %v4183_v27 = vpop.f32.mrb[34].mxu0  ;;  %v4409_v33 = vpop.f32.mrb[34].mxu1 }
 0x30b   : > { %vm4484_vm5 = vcmp.gt.f32.partialorder %v11956_v37, 0.0  ;;  %v4548_v60 = vmul.f32 0.2, %v11956_v37  ;;  %vm4486_vm10 = vcmp.gt.f32.partialorder %v11988_v1, 0.0  ;;  %v4550_v16 = vmul.f32 0.2, %v11988_v1 }
 0x30c   : > { %vm4485_vm6 = vcmp.gt.f32.partialorder %v11957_v40, 0.0  ;;  %v4549_v18 = vmul.f32 0.2, %v11957_v40  ;;  %v11958_v12 = vadd.f32 %v4183_v27, %v16332_v26  ;;  %v11990_v57 = vadd.f32 %v4409_v33, %v16335_v0  ;;  %v4185_v2 = vpop.f32.mrb[35].mxu0  ;;  %v4411_v17 = vpop.f32.mrb[35].mxu1 }
 0x30d   : > { %vm4487_vm15 = vcmp.gt.f32.partialorder %v11989_v6, 0.0  ;;  %v4551_v31 = vmul.f32 0.2, %v11989_v6  ;;  %v11959_v11 = vadd.f32 %v4185_v2, %v16338_v36  ;;  %v11991_v24 = vadd.f32 %v4411_v17, %v16341_v15 }
 0x30e   : > { %vm4488_vm3 = vcmp.gt.f32.partialorder %v11958_v12, 0.0  ;;  %v4552_v28 = vmul.f32 0.2, %v11958_v12  ;;  %vm4490_vm8 = vcmp.gt.f32.partialorder %v11990_v57, 0.0  ;;  %v4554_v55 = vmul.f32 0.2, %v11990_v57 }
 0x30f   : > { %v4612_v23 = vsel %vm4484_vm5, %v11956_v37, %v4548_v60  ;;  %vm4489_vm7 = vcmp.gt.f32.partialorder %v11959_v11, 0.0  ;;  %v4553_v54 = vmul.f32 0.2, %v11959_v11  ;;  %v4555_v61 = vmul.f32 0.2, %v11991_v24 }
 0x310   : > { %v16353_v47 = vsel %vm4486_vm10, %v11988_v1, %v4550_v16  ;;  %v4616_v10 = vsel %vm4488_vm3, %v11958_v12, %v4552_v28  ;;  %v16355_v52 = vsel %vm4490_vm8, %v11990_v57, %v4554_v55  ;;  %vm4491_vm0 = vcmp.gt.f32.partialorder %v11991_v24, 0.0  ;;  %v4189_v25 = vpop.f32.mrb[36].mxu0  ;;  %v4415_v35 = vpop.f32.mrb[36].mxu1  ;;  %v13249_v60 = vld [vmem:[%s19061_s6 + $0x110] ss:$8 sps:$4 sm:$0xff]  }
 0x311   : > { %v4676_v49 = vpack.c.bf16 %v4616_v10, %v4612_v23  ;;  %v11960_v48 = vadd.f32 %v4189_v25, %v16332_v26  ;;  %v16361_v13 = vadd.f32 %v4415_v35, %v16335_v0  ;;  %v4191_v63 = vpop.f32.mrb[37].mxu0  ;;  %v4417_v41 = vpop.f32.mrb[37].mxu1  ;;  %v4617_v45 = vsel %vm4489_vm7, %v11959_v11, %v4553_v54 }
 0x312   : > { %v11961_v59 = vadd.f32 %v4191_v63, %v16338_v36  ;;  %v4193_v29 = vpop.f32.mrb[38].mxu0  ;;  %v4419_v3 = vpop.f32.mrb[38].mxu1  ;;  %v16375_v19 = vadd.f32 %v4417_v41, %v16341_v15  ;;  %v4613_v7 = vsel %vm4485_vm6, %v11957_v40, %v4549_v18  ;;  %v16382_v39 = vsel %vm4491_vm0, %v11991_v24, %v4555_v61  ;;  %v13300_v40 = vld [vmem:[%s19063_s8 + $0x40] ss:$16 sps:$4 sm:$0xff]   ;;  %v13254_v61 = vld [vmem:[%s19061_s6 + $0x124] ss:$8 sps:$4 sm:$0xff]  }
 0x313   : > { %vm4492_vm9 = vcmp.gt.f32.partialorder %v11960_v48, 0.0  ;;  %v4556_v46 = vmul.f32 0.2, %v11960_v48  ;;  %v16388_v9 = vmul.f32 0.2, %v16361_v13  ;;  %v16391_v32 = vsel %vm4487_vm15, %v11989_v6, %v4551_v31  ;;  %v4195_v20 = vpop.f32.mrb[39].mxu0 }
 0x314   : > { %vm4493_vm11 = vcmp.gt.f32.partialorder %v11961_v59, 0.0  ;;  %v11962_v21 = vadd.f32 %v4193_v29, %v16332_v26  ;;  %v11994_v30 = vadd.f32 %v4419_v3, %v16335_v0  ;;  %v4421_v14 = vpop.f32.mrb[39].mxu1  ;;  %v4677_v4 = vpack.c.bf16 %v4617_v45, %v4613_v7  ;;  %v13302_v6 = vld [vmem:[%s19063_s8 + $0x44] ss:$16 sps:$4 sm:$0xff]   ;;  %v13303_v41 = vld [vmem:[%s19063_s8 + $0x60] ss:$16 sps:$4 sm:$0xff]  }
 0x315   : > { %v4557_v37 = vmul.f32 0.2, %v11961_v59  ;;  %v11963_v1 = vadd.f32 %v4195_v20, %v16338_v36  ;;  %v11995_v22 = vadd.f32 %v4421_v14, %v16341_v15  ;;  %vm4495_vm13 = vcmp.gt.f32.partialorder %v16375_v19, 0.0  ;;  %5652 = vmatprep.subr.bf16.mxu1 %v13302_v6  ;;  %v13308_v29 = vld [vmem:[%s19063_s8 + $0x84] ss:$16 sps:$4 sm:$0xff]  }
 0x316   : > { %vm4496_vm14 = vcmp.gt.f32.partialorder %v11962_v21, 0.0  ;;  %v4560_v27 = vmul.f32 0.2, %v11962_v21  ;;  %v4562_v33 = vmul.f32 0.2, %v11994_v30  ;;  %5136 = vmatprep.mubr.bf16.mxu0 %v4677_v4  ;;  %vm4498_vm4 = vcmp.gt.f32.partialorder %v11994_v30, 0.0  ;;  %5653 = vmatpush1.bf16.msra.mxu1 %v13300_v40 }
 0x317   : > { %vm4497_vm1 = vcmp.gt.f32.partialorder %v11963_v1, 0.0  ;;  %v4561_v16 = vmul.f32 0.2, %v11963_v1  ;;  %vm4499_vm2 = vcmp.gt.f32.partialorder %v11995_v22, 0.0  ;;  %v4563_v18 = vmul.f32 0.2, %v11995_v22  ;;  %5137 = vmatmul.mubr.bf16.vlgmr.msra.gmra.mrb[64].mxu0 %v4676_v49 }
 0x318   : > { %v4559_v12 = vmul.f32 0.2, %v16375_v19  ;;  %5218 = vmatpush1.bf16.msra.mxu0 %v13246_v44  ;;  %v4199_v57 = vpop.f32.mrb[40].mxu0  ;;  %v16413_v2 = vpop.f32.mrb[40].mxu1  ;;  %v4620_v17 = vsel %vm4492_vm9, %v11960_v48, %v4556_v46  ;;  %v4624_v31 = vsel %vm4496_vm14, %v11962_v21, %v4560_v27  ;;  %v4621_v55 = vsel %vm4493_vm11, %v11961_v59, %v4557_v37  ;;  %v13305_v48 = vld [vmem:[%s19063_s8 + $0x64] ss:$16 sps:$4 sm:$0xff]  }
 0x319   : > { %v11964_v11 = vadd.f32 %v4199_v57, %v16332_v26  ;;  %5219 = vmatprep.subr.bf16.mxu0 %v13251_v38  ;;  %v4201_v24 = vpop.f32.mrb[41].mxu0  ;;  %v4427_v28 = vpop.f32.mrb[41].mxu1  ;;  %v4625_v23 = vsel %vm4497_vm1, %v11963_v1, %v4561_v16  ;;  %v4680_v54 = vpack.c.bf16 %v4624_v31, %v4620_v17  ;;  %vm4494_vm12 = vcmp.gt.f32.partialorder %v16361_v13, 0.0  ;;  %v13257_v44 = vld [vmem:[%s19061_s6 + $0x134] ss:$8 sps:$4 sm:$0xff]   ;;  %5654 = vmatprep.subr.bf16.mxu1 %v13305_v48 }
 0x31a   : > { %v4203_v10 = vpop.f32.mrb[42].mxu0  ;;  %v16424_v25 = vpop.f32.mrb[42].mxu1  ;;  %v4681_v35 = vpack.c.bf16 %v4625_v23, %v4621_v55  ;;  %v16427_v49 = vsel %vm4499_vm2, %v11995_v22, %v4563_v18  ;;  %v16433_v63 = vsel %vm4498_vm4, %v11994_v30, %v4562_v33  ;;  %v11965_v42 = vadd.f32 %v4201_v24, %v16338_v36  ;;  %v13255_v14 = vld [vmem:[%s19061_s6 + $0x130] ss:$8 sps:$4 sm:$0xff]   ;;  %5655 = vmatpush1.bf16.msra.mxu1 %v13303_v41 }
 0x31b   : > { %v16445_v59 = vsel %vm4495_vm13, %v16375_v19, %v4559_v12  ;;  %v4564_v3 = vmul.f32 0.2, %v11964_v11  ;;  %v11966_v45 = vadd.f32 %v4203_v10, %v16332_v26  ;;  %v4205_v34 = vpop.f32.mrb[43].mxu0  ;;  %v4431_v7 = vpop.f32.mrb[43].mxu1  ;;  %v16460_v19 = vsel %vm4494_vm12, %v16361_v13, %v16388_v9  ;;  %v13306_v9 = vld [vmem:[%s19063_s8 + $0x80] ss:$16 sps:$4 sm:$0xff]   ;;  %5656 = vmatprep.subr.bf16.mxu1 %v13308_v29 }
 0x31c   : > { %5220 = vmatpush1.bf16.msra.mxu0 %v13249_v60  ;;  %5146 = vmatprep.mubr.bf16.mxu0 %v4681_v35  ;;  %vm4500_vm5 = vcmp.gt.f32.partialorder %v11964_v11, 0.0  ;;  %v11967_v46 = vadd.f32 %v4205_v34, %v16338_v36  ;;  %v11999_v21 = vadd.f32 %v4431_v7, %v16341_v15  ;;  %v11997_v38 = vadd.f32 %v4427_v28, %v16341_v15  ;;  %v13260_v60 = vld [vmem:[%s19061_s6 + $0x144] ss:$8 sps:$4 sm:$0xff]  }
 0x31d   : > { %5221 = vmatprep.subr.bf16.mxu0 %v13254_v61  ;;  %vm4504_vm10 = vcmp.gt.f32.partialorder %v11966_v45, 0.0  ;;  %v4568_v13 = vmul.f32 0.2, %v11966_v45  ;;  %v4565_v37 = vmul.f32 0.2, %v11965_v42  ;;  %vm4501_vm15 = vcmp.gt.f32.partialorder %v11965_v42, 0.0 }
 0x31e   : > { %vm4505_vm6 = vcmp.gt.f32.partialorder %v11967_v46, 0.0  ;;  %v4569_v1 = vmul.f32 0.2, %v11967_v46  ;;  %v4628_v27 = vsel %vm4500_vm5, %v11964_v11, %v4564_v3  ;;  %v4571_v16 = vmul.f32 0.2, %v11999_v21  ;;  %5657 = vmatpush1.bf16.msra.mxu1 %v13306_v9 }
 0x31f   : > { %5147 = vmatmul.mubr.bf16.gmra.mrb[68].mxu0 %v4680_v54  ;;  %v4632_v33 = vsel %vm4504_vm10, %v11966_v45, %v4568_v13  ;;  %v4567_v31 = vmul.f32 0.2, %v11997_v38  ;;  %vm4507_vm3 = vcmp.gt.f32.partialorder %v11999_v21, 0.0  ;;  %v16481_v24 = vadd.f32 %v16413_v2, %v16335_v0  ;;  %v13258_v2 = vld [vmem:[%s19061_s6 + $0x140] ss:$8 sps:$4 sm:$0xff]  }
 0x320   : > { %v4209_v30 = vpop.f32.mrb[44].mxu0  ;;  %v4435_v20 = vpop.f32.mrb[44].mxu1  ;;  %5222 = vmatpush1.bf16.msra.mxu0 %v13252_v5  ;;  %v4633_v57 = vsel %vm4505_vm6, %v11967_v46, %v4569_v1  ;;  %v4684_v17 = vpack.c.bf16 %v4632_v33, %v4628_v27  ;;  %vm4503_vm8 = vcmp.gt.f32.partialorder %v11997_v38, 0.0  ;;  %v4629_v28 = vsel %vm4501_vm15, %v11965_v42, %v4565_v37  ;;  %v13263_v5 = vld [vmem:[%s19061_s6 + $0x154] ss:$8 sps:$4 sm:$0xff]  }
 0x321   : > { %v11968_v22 = vadd.f32 %v4209_v30, %v16332_v26  ;;  %5223 = vmatprep.subr.bf16.mxu0 %v13257_v44  ;;  %v4211_v40 = vpop.f32.mrb[45].mxu0  ;;  %v4437_v6 = vpop.f32.mrb[45].mxu1  ;;  %v16487_v55 = vadd.f32 %v16424_v25, %v16335_v0  ;;  %v4685_v35 = vpack.c.bf16 %v4633_v57, %v4629_v28  ;;  %v16494_v48 = vadd.f32 %v4435_v20, %v16335_v0  ;;  %v13266_v27 = vld [vmem:[%s19061_s6 + $0x164] ss:$8 sps:$4 sm:$0xff]  }
 0x322   : > { %v4213_v18 = vpop.f32.mrb[46].mxu0  ;;  %v4439_v12 = vpop.f32.mrb[46].mxu1  ;;  %v11969_v11 = vadd.f32 %v4211_v40, %v16338_v36  ;;  %v16501_v29 = vsel %vm4507_vm3, %v11999_v21, %v4571_v16  ;;  %v16504_v3 = vadd.f32 %v4437_v6, %v16341_v15  ;;  %v16507_v34 = vsel %vm4503_vm8, %v11997_v38, %v4567_v31  ;;  %v13261_v21 = vld [vmem:[%s19061_s6 + $0x150] ss:$8 sps:$4 sm:$0xff]  }
 0x323   : > { %v4572_v23 = vmul.f32 0.2, %v11968_v22  ;;  %v11970_v54 = vadd.f32 %v4213_v18, %v16332_v26  ;;  %v4215_v61 = vpop.f32.mrb[47].mxu0  ;;  %v4441_v10 = vpop.f32.mrb[47].mxu1  ;;  %vm4508_vm7 = vcmp.gt.f32.partialorder %v11968_v22, 0.0  ;;  %19151 = vst [vmem:[#allocation9_spill] sm:$0xff] %v16501_v29  ;;  %5156 = vmatprep.mubr.bf16.mxu0 %v4685_v35  ;;  %v16517_v9 = vadd.f32 %v4439_v12, %v16335_v0 }
 0x324   : > { %5224 = vmatpush1.bf16.msra.mxu0 %v13255_v14  ;;  %v11971_v41 = vadd.f32 %v4215_v61, %v16338_v36  ;;  %19152 = vst [vmem:[#allocation12_spill] sm:$0xff] %v16507_v34  ;;  %vm4509_vm9 = vcmp.gt.f32.partialorder %v11969_v11, 0.0  ;;  %v4573_v7 = vmul.f32 0.2, %v11969_v11  ;;  %vm4502_vm13 = vcmp.gt.f32.partialorder %v16481_v24, 0.0 }
 0x325   : > { %5225 = vmatprep.subr.bf16.mxu0 %v13260_v60  ;;  %vm4512_vm0 = vcmp.gt.f32.partialorder %v11970_v54, 0.0  ;;  %v4576_v45 = vmul.f32 0.2, %v11970_v54  ;;  %v4636_v14 = vsel %vm4508_vm7, %v11968_v22, %v4572_v23  ;;  %v4566_v22 = vmul.f32 0.2, %v16481_v24 }
 0x326   : > { %vm4513_vm11 = vcmp.gt.f32.partialorder %v11971_v41, 0.0  ;;  %v4577_v44 = vmul.f32 0.2, %v11971_v41  ;;  %vm4506_vm14 = vcmp.gt.f32.partialorder %v16487_v55, 0.0  ;;  %v13264_v60 = vld [vmem:[%s19061_s6 + $0x160] ss:$8 sps:$4 sm:$0xff]   ;;  %v4637_v57 = vsel %vm4509_vm9, %v11969_v11, %v4573_v7 }
 0x327   : > { %5157 = vmatmul.mubr.bf16.gmra.mrb[72].mxu0 %v4684_v17  ;;  %v4640_v13 = vsel %vm4512_vm0, %v11970_v54, %v4576_v45  ;;  %v4570_v16 = vmul.f32 0.2, %v16487_v55  ;;  %v16531_v18 = vmul.f32 0.2, %v16494_v48  ;;  %v16534_v12 = vmul.f32 0.2, %v16504_v3 }
 0x328   : > { %v4219_v42 = vpop.f32.mrb[48].mxu0  ;;  %v4445_v25 = vpop.f32.mrb[48].mxu1  ;;  %5226 = vmatpush1.bf16.msra.mxu0 %v13258_v2  ;;  %v4641_v40 = vsel %vm4513_vm11, %v11971_v41, %v4577_v44  ;;  %v4688_v6 = vpack.c.bf16 %v4640_v13, %v4636_v14  ;;  %v16538_v17 = vadd.f32 %v4441_v10, %v16341_v15  ;;  %v13269_v35 = vld [vmem:[%s19061_s6 + $0x174] ss:$8 sps:$4 sm:$0xff]   ;;  %v16545_v2 = vmul.f32 0.2, %v16517_v9 }
 0x329   : > { %v11972_v46 = vadd.f32 %v4219_v42, %v16332_v26  ;;  %v4221_v30 = vpop.f32.mrb[49].mxu0  ;;  %v4447_v20 = vpop.f32.mrb[49].mxu1  ;;  %5227 = vmatprep.subr.bf16.mxu0 %v13263_v5  ;;  %v4689_v61 = vpack.c.bf16 %v4641_v40, %v4637_v57  ;;  %v16548_v11 = vadd.f32 %v4445_v25, %v16335_v0  ;;  %vm4511_vm12 = vcmp.gt.f32.partialorder %v16504_v3, 0.0 }
 0x32a   : > { %v4223_v37 = vpop.f32.mrb[50].mxu0  ;;  %v4449_v1 = vpop.f32.mrb[50].mxu1  ;;  %v11973_v33 = vadd.f32 %v4221_v30, %v16338_v36  ;;  %v16552_v45 = vadd.f32 %v4447_v20, %v16341_v15  ;;  %v13267_v20 = vld [vmem:[%s19061_s6 + $0x170] ss:$8 sps:$4 sm:$0xff]   ;;  %v16568_v40 = vmul.f32 0.2, %v16538_v17 }
 0x32b   : > { %v4580_v31 = vmul.f32 0.2, %v11972_v46  ;;  %v11974_v28 = vadd.f32 %v4223_v37, %v16332_v26  ;;  %v4225_v23 = vpop.f32.mrb[51].mxu0  ;;  %v4451_v54 = vpop.f32.mrb[51].mxu1  ;;  %vm4516_vm1 = vcmp.gt.f32.partialorder %v11972_v46, 0.0  ;;  %5166 = vmatprep.mubr.bf16.mxu0 %v4689_v61  ;;  %v16555_v44 = vadd.f32 %v4449_v1, %v16335_v0 }
 0x32c   : > { %5228 = vmatpush1.bf16.msra.mxu0 %v13261_v21  ;;  %v11975_v10 = vadd.f32 %v4225_v23, %v16338_v36  ;;  %v4581_v5 = vmul.f32 0.2, %v11973_v33  ;;  %v16558_v25 = vadd.f32 %v4451_v54, %v16341_v15  ;;  %vm4517_vm5 = vcmp.gt.f32.partialorder %v11973_v33, 0.0  ;;  %v13272_v54 = vld [vmem:[%s19061_s6 + $0x184] ss:$8 sps:$4 sm:$0xff]  }
 0x32d   : > { %5229 = vmatprep.subr.bf16.mxu0 %v13266_v27  ;;  %vm4520_vm2 = vcmp.gt.f32.partialorder %v11974_v28, 0.0  ;;  %v4584_v7 = vmul.f32 0.2, %v11974_v28  ;;  %v4644_v37 = vsel %vm4516_vm1, %v11972_v46, %v4580_v31  ;;  %vm4515_vm10 = vcmp.gt.f32.partialorder %v16538_v17, 0.0 }
 0x32e   : > { %vm4521_vm4 = vcmp.gt.f32.partialorder %v11975_v10, 0.0  ;;  %v4585_v21 = vmul.f32 0.2, %v11975_v10  ;;  %v16579_v46 = vmul.f32 0.2, %v16548_v11  ;;  %v16588_v61 = vsel %vm4506_vm14, %v16487_v55, %v4570_v16 }
 0x32f   : > { %5167 = vmatmul.mubr.bf16.gmra.mrb[76].mxu0 %v4688_v6  ;;  %v4648_v1 = vsel %vm4520_vm2, %v11974_v28, %v4584_v7  ;;  %v16582_v31 = vmul.f32 0.2, %v16552_v45  ;;  %19153 = vst [vmem:[#allocation10_spill] sm:$0xff] %v16588_v61  ;;  %v16603_v7 = vsel %vm4502_vm13, %v16481_v24, %v4566_v22  ;;  %vm4510_vm7 = vcmp.gt.f32.partialorder %v16494_v48, 0.0  ;;  %v13284_v61 = vld [vmem:[%s19061_s6 + $0x1c4] ss:$8 sps:$4 sm:$0xff]  }
 0x330   : > { %v4229_v41 = vpop.f32.mrb[52].mxu0  ;;  %v4455_v42 = vpop.f32.mrb[52].mxu1  ;;  %5230 = vmatpush1.bf16.msra.mxu0 %v13264_v60  ;;  %v4649_v57 = vsel %vm4521_vm4, %v11975_v10, %v4585_v21  ;;  %v4692_v23 = vpack.c.bf16 %v4648_v1, %v4644_v37  ;;  %v16594_v10 = vmul.f32 0.2, %v16558_v25  ;;  %19154 = vst [vmem:[#allocation14_spill] sm:$0xff] %v16603_v7  ;;  %vm4514_vm11 = vcmp.gt.f32.partialorder %v16517_v9, 0.0 }
 0x331   : > { %v11976_v30 = vadd.f32 %v4229_v41, %v16332_v26  ;;  %v4231_v14 = vpop.f32.mrb[53].mxu0  ;;  %v4457_v13 = vpop.f32.mrb[53].mxu1  ;;  %v16571_v6 = vadd.f32 %v4455_v42, %v16335_v0  ;;  %5231 = vmatprep.subr.bf16.mxu0 %v13269_v35  ;;  %v16591_v35 = vmul.f32 0.2, %v16555_v44  ;;  %v4645_v41 = vsel %vm4517_vm5, %v11973_v33, %v4581_v5  ;;  %v13270_v42 = vld [vmem:[%s19061_s6 + $0x180] ss:$8 sps:$4 sm:$0xff]  }
 0x332   : > { %v4233_v27 = vpop.f32.mrb[54].mxu0  ;;  %v4459_v60 = vpop.f32.mrb[54].mxu1  ;;  %v11977_v28 = vadd.f32 %v4231_v14, %v16338_v36  ;;  %v16606_v55 = vadd.f32 %v4457_v13, %v16341_v15  ;;  %v4693_v1 = vpack.c.bf16 %v4649_v57, %v4645_v41  ;;  %v13275_v33 = vld [vmem:[%s19061_s6 + $0x194] ss:$8 sps:$4 sm:$0xff]   ;;  %vm4519_vm13 = vcmp.gt.f32.partialorder %v16552_v45, 0.0 }
 0x333   : > { %v4588_v21 = vmul.f32 0.2, %v11976_v30  ;;  %v11978_v16 = vadd.f32 %v4233_v27, %v16332_v26  ;;  %v4235_v14 = vpop.f32.mrb[55].mxu0  ;;  %v4461_v37 = vpop.f32.mrb[55].mxu1  ;;  %vm4524_vm6 = vcmp.gt.f32.partialorder %v11976_v30, 0.0  ;;  %v16619_v57 = vadd.f32 %v4459_v60, %v16335_v0 }
 0x334   : > { %5232 = vmatpush1.bf16.msra.mxu0 %v13267_v20  ;;  %v16613_v5 = vmul.f32 0.2, %v16571_v6  ;;  %v11979_v24 = vadd.f32 %v4235_v14, %v16338_v36  ;;  %v4589_v27 = vmul.f32 0.2, %v11977_v28  ;;  %5176 = vmatprep.mubr.bf16.mxu0 %v4693_v1  ;;  %vm4525_vm3 = vcmp.gt.f32.partialorder %v11977_v28, 0.0 }
 0x335   : > { %5233 = vmatprep.subr.bf16.mxu0 %v13272_v54  ;;  %vm4528_vm15 = vcmp.gt.f32.partialorder %v11978_v16, 0.0  ;;  %v4592_v38 = vmul.f32 0.2, %v11978_v16  ;;  %v16622_v4 = vadd.f32 %v4461_v37, %v16341_v15  ;;  %v13273_v20 = vld [vmem:[%s19061_s6 + $0x190] ss:$8 sps:$4 sm:$0xff]   ;;  %v4652_v1 = vsel %vm4524_vm6, %v11976_v30, %v4588_v21 }
 0x336   : > { %vm4529_vm8 = vcmp.gt.f32.partialorder %v11979_v24, 0.0  ;;  %v4593_v41 = vmul.f32 0.2, %v11979_v24  ;;  %v16642_v8 = vmul.f32 0.2, %v16606_v55  ;;  %v4653_v21 = vsel %vm4525_vm3, %v11977_v28, %v4589_v27 }
 0x337   : > { %5177 = vmatmul.mubr.bf16.gmra.mrb[80].mxu0 %v4692_v23  ;;  %v4656_v51 = vsel %vm4528_vm15, %v11978_v16, %v4592_v38  ;;  %v16645_v38 = vmul.f32 0.2, %v16619_v57  ;;  %vm4523_vm14 = vcmp.gt.f32.partialorder %v16558_v25, 0.0  ;;  %vm4518_vm2 = vcmp.gt.f32.partialorder %v16548_v11, 0.0 }
 0x338   : > { %v4239_v22 = vpop.f32.mrb[56].mxu0  ;;  %v4465_v13 = vpop.f32.mrb[56].mxu1  ;;  %5234 = vmatpush1.bf16.msra.mxu0 %v13270_v42  ;;  %v4696_v43 = vpack.c.bf16 %v4656_v51, %v4652_v1  ;;  %v16653_v51 = vmul.f32 0.2, %v16622_v4  ;;  %v13281_v1 = vld [vmem:[%s19061_s6 + $0x1b4] ss:$8 sps:$4 sm:$0xff]  }
 0x339   : > { %v11980_v54 = vadd.f32 %v4239_v22, %v16332_v26  ;;  %v16626_v14 = vadd.f32 %v4465_v13, %v16335_v0  ;;  %v4241_v60 = vpop.f32.mrb[57].mxu0  ;;  %v4467_v50 = vpop.f32.mrb[57].mxu1  ;;  %5235 = vmatprep.subr.bf16.mxu0 %v13275_v33  ;;  %v4657_v13 = vsel %vm4529_vm8, %v11979_v24, %v4593_v41  ;;  %v16659_v33 = vsel %vm4511_vm12, %v16504_v3, %v16534_v12 }
 0x33a   : > { %v11981_v37 = vadd.f32 %v4241_v60, %v16338_v36  ;;  %v16635_v23 = vadd.f32 %v4467_v50, %v16341_v15  ;;  %v4243_v42 = vpop.f32.mrb[58].mxu0  ;;  %v4469_v22 = vpop.f32.mrb[58].mxu1  ;;  %v13276_v50 = vld [vmem:[%s19061_s6 + $0x1a0] ss:$8 sps:$4 sm:$0xff]   ;;  %19155 = vst [vmem:[#allocation11_spill] sm:$0xff] %v16659_v33  ;;  %v4697_v60 = vpack.c.bf16 %v4657_v13, %v4653_v21  ;;  %v16682_v13 = vsel %vm4515_vm10, %v16538_v17, %v16568_v40 }
 0x33b   : > { %v4596_v30 = vmul.f32 0.2, %v11980_v54  ;;  %vm4532_vm0 = vcmp.gt.f32.partialorder %v11980_v54, 0.0  ;;  %v11982_v28 = vadd.f32 %v4243_v42, %v16332_v26  ;;  %v16663_v24 = vadd.f32 %v4469_v22, %v16335_v0  ;;  %v4245_v27 = vpop.f32.mrb[59].mxu0  ;;  %v4471_v41 = vpop.f32.mrb[59].mxu1  ;;  %19156 = vst [vmem:[#allocation13_spill] sm:$0xff] %v16682_v13 }
 0x33c   : > { %v4597_v16 = vmul.f32 0.2, %v11981_v37  ;;  %vm4533_vm9 = vcmp.gt.f32.partialorder %v11981_v37, 0.0  ;;  %5236 = vmatpush1.bf16.msra.mxu0 %v13273_v20  ;;  %v16672_v3 = vmul.f32 0.2, %v16626_v14  ;;  %v11983_v20 = vadd.f32 %v4245_v27, %v16338_v36  ;;  %5186 = vmatprep.mubr.bf16.mxu0 %v4697_v60 }
 0x33d   : > { %v16675_v12 = vmul.f32 0.2, %v16635_v23  ;;  %5237 = vmatprep.subr.bf16.mxu0 %v13278_v62  ;;  %vm4536_vm1 = vcmp.gt.f32.partialorder %v11982_v28, 0.0  ;;  %v4600_v21 = vmul.f32 0.2, %v11982_v28  ;;  %v16685_v56 = vadd.f32 %v4471_v41, %v16341_v15 }
 0x33e   : > { %v4660_v53 = vsel %vm4532_vm0, %v11980_v54, %v4596_v30  ;;  %vm4522_vm4 = vcmp.gt.f32.partialorder %v16555_v44, 0.0  ;;  %vm4527_vm12 = vcmp.gt.f32.partialorder %v16606_v55, 0.0  ;;  %v16692_v62 = vmul.f32 0.2, %v16663_v24  ;;  %v13279_v27 = vld [vmem:[%s19061_s6 + $0x1b0] ss:$8 sps:$4 sm:$0xff]  }
 0x33f   : > { %vm4537_vm5 = vcmp.gt.f32.partialorder %v11983_v20, 0.0  ;;  %v4601_v17 = vmul.f32 0.2, %v11983_v20  ;;  %5187 = vmatmul.mubr.bf16.gmra.mrb[84].mxu0 %v4696_v43  ;;  %v4661_v40 = vsel %vm4533_vm9, %v11981_v37, %v4597_v16  ;;  %vm4526_vm10 = vcmp.gt.f32.partialorder %v16571_v6, 0.0  ;;  %v13282_v33 = vld [vmem:[%s19061_s6 + $0x1c0] ss:$8 sps:$4 sm:$0xff]  }
 0x340   : > { %v4249_v42 = vpop.f32.mrb[60].mxu0  ;;  %v4475_v22 = vpop.f32.mrb[60].mxu1  ;;  %vm4531_vm15 = vcmp.gt.f32.partialorder %v16622_v4, 0.0  ;;  %5238 = vmatpush1.bf16.msra.mxu0 %v13276_v50  ;;  %v4664_v37 = vsel %vm4536_vm1, %v11982_v28, %v4600_v21  ;;  %vm4535_vm8 = vcmp.gt.f32.partialorder %v16635_v23, 0.0  ;;  %vm4539_vm9 = vcmp.gt.f32.partialorder %v16685_v56, 0.0 }
 0x341   : > { %v11984_v54 = vadd.f32 %v4249_v42, %v16332_v26  ;;  %v16700_v30 = vadd.f32 %v4475_v22, %v16335_v0  ;;  %v4251_v41 = vpop.f32.mrb[61].mxu0  ;;  %v4477_v43 = vpop.f32.mrb[61].mxu1  ;;  %5239 = vmatprep.subr.bf16.mxu0 %v13281_v1  ;;  %v4665_v58 = vsel %vm4537_vm5, %v11983_v20, %v4601_v17  ;;  %v4700_v7 = vpack.c.bf16 %v4664_v37, %v4660_v53 }
 0x342   : > { %v11985_v60 = vadd.f32 %v4251_v41, %v16338_v36  ;;  %v16710_v50 = vadd.f32 %v4477_v43, %v16341_v15  ;;  %v4253_v42 = vpop.f32.mrb[62].mxu0  ;;  %v4479_v22 = vpop.f32.mrb[62].mxu1  ;;  %v4603_v28 = vmul.f32 0.2, %v16685_v56  ;;  %v4701_v16 = vpack.c.bf16 %v4665_v58, %v4661_v40 }
 0x343   : > { %vm4540_vm1 = vcmp.gt.f32.partialorder %v11984_v54, 0.0  ;;  %v4604_v1 = vmul.f32 0.2, %v11984_v54  ;;  %v16722_v21 = vmul.f32 0.2, %v16700_v30  ;;  %v11986_v17 = vadd.f32 %v4253_v42, %v16332_v26  ;;  %v4255_v43 = vpop.f32.mrb[63].mxu0 }
 0x344   : > { %vm4541_vm5 = vcmp.gt.f32.partialorder %v11985_v60, 0.0  ;;  %v4605_v53 = vmul.f32 0.2, %v11985_v60  ;;  %v4607_v20 = vmul.f32 0.2, %v16710_v50  ;;  %5240 = vmatpush1.bf16.msra.mxu0 %v13279_v27  ;;  %v12018_v41 = vadd.f32 %v4479_v22, %v16335_v0  ;;  %v4481_v37 = vpop.f32.mrb[63].mxu1  ;;  %5196 = vmatprep.mubr.bf16.mxu0 %v4701_v16 }
 0x345   : > { %v11987_v13 = vadd.f32 %v4255_v43, %v16338_v36  ;;  %v12019_v34 = vadd.f32 %v4481_v37, %v16341_v15  ;;  %5241 = vmatprep.subr.bf16.mxu0 %v13284_v61  ;;  %v13287_v27 = vld [vmem:[%s19061_s6 + $0x1d4] ss:$8 sps:$4 sm:$0xff]   ;;  %v4668_v26 = vsel %vm4540_vm1, %v11984_v54, %v4604_v1  ;;  %vm4544_vm6 = vcmp.gt.f32.partialorder %v11986_v17, 0.0  ;;  %v13285_v61 = vld [vmem:[%s19061_s6 + $0x1d0] ss:$8 sps:$4 sm:$0xff]   ;;  %v19169_v1 = vld [vmem:[#allocation14_spill] sm:$0xff] }
 0x346   : > { %v4669_v29 = vsel %vm4541_vm5, %v11985_v60, %v4605_v53  ;;  %v4608_v0 = vmul.f32 0.2, %v11986_v17  ;;  %v4610_v42 = vmul.f32 0.2, %v12018_v41  ;;  %v4638_v58 = vsel %vm4510_vm7, %v16494_v48, %v16531_v18  ;;  %v13290_v16 = vld [vmem:[%s19061_s6 + $0x1e4] ss:$8 sps:$4 sm:$0xff]  }
 0x347   : > { %vm4545_vm0 = vcmp.gt.f32.partialorder %v11987_v13, 0.0  ;;  %v4609_v36 = vmul.f32 0.2, %v11987_v13  ;;  %vm4547_vm3 = vcmp.gt.f32.partialorder %v12019_v34, 0.0  ;;  %v4611_v15 = vmul.f32 0.2, %v12019_v34  ;;  %5197 = vmatmul.mubr.bf16.gmra.mrb[88].mxu0 %v4700_v7 }
 0x348   : > { %5242 = vmatpush1.bf16.msra.mxu0 %v13282_v33  ;;  %v4672_v40 = vsel %vm4544_vm6, %v11986_v17, %v4608_v0  ;;  %v4642_v54 = vsel %vm4514_vm11, %v16517_v9, %v16545_v2  ;;  %v4647_v48 = vsel %vm4519_vm13, %v16552_v45, %v16582_v31  ;;  %v4651_v18 = vsel %vm4523_vm14, %v16558_v25, %v16594_v10  ;;  %v19171_v53 = vld [vmem:[#allocation13_spill] sm:$0xff]  ;;  %v13315_v17 = vld [vmem:[%s19063_s8 + $0xe0] ss:$16 sps:$4 sm:$0xff]   ;;  %v19174_v37 = vld [vmem:[#allocation3_spill] sm:$0xff] }
 0x349   : > { %5243 = vmatprep.subr.bf16.mxu0 %v13287_v27  ;;  %v4673_v7 = vsel %vm4545_vm0, %v11987_v13, %v4609_v36  ;;  %v4704_v33 = vpack.c.bf16 %v4672_v40, %v4668_v26  ;;  %v4690_v60 = vpack.c.bf16 %v4642_v54, %v4638_v58  ;;  %v4695_v22 = vpack.c.bf16 %v4651_v18, %v4647_v48  ;;  %v4772_v43 = vld [vmem:[%s19062_s7] sm:$0x3]  ;;  %v19175_v26 = vld [vmem:[#allocation5_spill] sm:$0xff] }
 0x34a   : > { %v4705_v9 = vpack.c.bf16 %v4673_v7, %v4669_v29  ;;  %v4646_v2 = vsel %vm4518_vm2, %v16548_v11, %v16579_v46  ;;  %v4650_v45 = vsel %vm4522_vm4, %v16555_v44, %v16591_v35  ;;  %v4655_v25 = vsel %vm4527_vm12, %v16606_v55, %v16642_v8  ;;  %v13288_v8 = vld [vmem:[%s19061_s6 + $0x1e0] ss:$8 sps:$4 sm:$0xff]  }
 0x34b   : > { %v4694_v31 = vpack.c.bf16 %v4650_v45, %v4646_v2  ;;  %v4659_v29 = vsel %vm4531_vm15, %v16622_v4, %v16653_v51  ;;  %v4654_v11 = vsel %vm4526_vm10, %v16571_v6, %v16613_v5  ;;  %vm19157_vm7 = vcmp.gt.f32.partialorder %v16619_v57, 0.0  ;;  %v13293_v6 = vld [vmem:[%s19061_s6 + $0x1f4] ss:$8 sps:$4 sm:$0xff]  }
 0x34c   : > { %v4658_v44 = vsel %vm19157_vm7, %v16619_v57, %v16645_v38  ;;  %vm4542_vm11 = vcmp.gt.f32.partialorder %v16700_v30, 0.0  ;;  %vm4546_vm13 = vcmp.gt.f32.partialorder %v12018_v41, 0.0  ;;  %5244 = vmatpush1.bf16.msra.mxu0 %v13285_v61  ;;  %5206 = vmatprep.mubr.bf16.mxu0 %v4705_v9  ;;  %v4699_v4 = vpack.c.bf16 %v4659_v29, %v4655_v25 }
 0x34d   : > { %v4698_v46 = vpack.c.bf16 %v4658_v44, %v4654_v11  ;;  %5245 = vmatprep.subr.bf16.mxu0 %v13290_v16  ;;  %v4663_v35 = vsel %vm4535_vm8, %v16635_v23, %v16675_v12  ;;  %v4667_v10 = vsel %vm4539_vm9, %v16685_v56, %v4603_v28  ;;  %vm19158_vm14 = vcmp.gt.f32.partialorder %v16626_v14, 0.0  ;;  %v13291_v12 = vld [vmem:[%s19061_s6 + $0x1f0] ss:$8 sps:$4 sm:$0xff]   ;;  %v19168_v28 = vld [vmem:[#allocation10_spill] sm:$0xff] }
 0x34e   : > { %v4662_v55 = vsel %vm19158_vm14, %v16626_v14, %v16672_v3  ;;  %vm19159_vm2 = vcmp.gt.f32.partialorder %v16663_v24, 0.0  ;;  %v4703_v57 = vpack.c.bf16 %v4667_v10, %v4663_v35  ;;  %vm19160_vm4 = vcmp.gt.f32.partialorder %v16710_v50, 0.0 }
 0x34f   : > { %v4666_v5 = vsel %vm19159_vm2, %v16663_v24, %v16692_v62  ;;  %v4671_v23 = vsel %vm19160_vm4, %v16710_v50, %v4607_v20  ;;  %v4675_v51 = vsel %vm4547_vm3, %v12019_v34, %v4611_v15  ;;  %5207 = vmatmul.mubr.bf16.gmra.mrb[92].mxu0 %v4704_v33  ;;  %v4670_v14 = vsel %vm4542_vm11, %v16700_v30, %v16722_v21  ;;  %v19172_v20 = vld [vmem:[#allocation11_spill] sm:$0xff] }
 0x350   : > { %v4702_v38 = vpack.c.bf16 %v4666_v5, %v4662_v55  ;;  %v4707_v56 = vpack.c.bf16 %v4675_v51, %v4671_v23  ;;  %v4674_v3 = vsel %vm4546_vm13, %v12018_v41, %v4610_v42  ;;  %5246 = vmatpush1.bf16.msra.mxu0 %v13288_v8  ;;  %v19161_v24 = vpack.c.bf16 %v16382_v39, %v16391_v32  ;;  %v19165_v39 = vld [vmem:[#allocation9_spill] sm:$0xff]  ;;  %v19166_v32 = vld [vmem:[#allocation12_spill] sm:$0xff]  ;;  %v5379_v5 = vld [vmem:[%s16906_s18 + $0x8] sm:$0xff] }
 0x351   : > { %v4706_v13 = vpack.c.bf16 %v4674_v3, %v4670_v14  ;;  %5247 = vmatprep.subr.bf16.mxu0 %v13293_v6  ;;  %v19162_v34 = vpack.c.bf16 %v16355_v52, %v16353_v47  ;;  %v19163_v62 = vpack.c.bf16 %v16427_v49, %v16445_v59  ;;  %v19164_v30 = vpack.c.bf16 %v16433_v63, %v16460_v19  ;;  %v13309_v52 = vld [vmem:[%s19063_s8 + $0xa0] ss:$16 sps:$4 sm:$0xff]   ;;  %v13311_v49 = vld [vmem:[%s19063_s8 + $0xa4] ss:$16 sps:$4 sm:$0xff]   ;;  %v13320_v41 = vld [vmem:[%s19063_s8 + $0xc] ss:$16 sps:$4 sm:$0xff]  }
 0x352   : > { %5249 = vmatprep.mubr.bf16.mxu0 %v19161_v24  ;;  %v19167_v50 = vpack.c.bf16 %v19165_v39, %v19166_v32  ;;  %v19170_v21 = vpack.c.bf16 %v19168_v28, %v19169_v1  ;;  %v19173_v47 = vpack.c.bf16 %v19171_v53, %v19172_v20  ;;  %v13314_v63 = vld [vmem:[%s19063_s8 + $0xc4] ss:$16 sps:$4 sm:$0xff]   ;;  %5658 = vmatprep.subr.bf16.mxu1 %v13311_v49  ;;  %v13312_v59 = vld [vmem:[%s19063_s8 + $0xc0] ss:$16 sps:$4 sm:$0xff]   ;;  %v13318_v20 = vld [vmem:[%s19063_s8 + $0x8] ss:$16 sps:$4 sm:$0xff]  }
 0x353   : > { %5659 = vmatpush1.bf16.msra.mxu1 %v13309_v52  ;;  %v13317_v19 = vld [vmem:[%s19063_s8 + $0xe4] ss:$16 sps:$4 sm:$0xff]   ;;  %v16866_v27 = vrot.slane %v4772_v43, %v19174_v37  ;;  %v16869_v0 = vrot.slane %v4772_v43, %v19175_v26  ;;  %v13342_v14 = vld [vmem:[%s19065_s10] ss:$16 sps:$4 sm:$0xff]   ;;  %v5381_v43 = vld [vmem:[%s16906_s18 + $0x18] sm:$0xff] }
 0x354   : > { %5248 = vmatpush1.bf16.msra.mxu0 %v13291_v12  ;;  %5660 = vmatprep.subr.bf16.mxu1 %v13314_v63  ;;  %v13344_v3 = vld [vmem:[%s19065_s10 + $0x4] ss:$16 sps:$4 sm:$0xff]  }
 0x355   : > { %6888 = vmatprep.subr.bf16.mxu0 %v13344_v3  ;;  %v13356_v1 = vld [vmem:[%s19065_s10 + $0x44] ss:$16 sps:$4 sm:$0xff]  }
 0x356   : > { %v13374_v3 = vld [vmem:[%s19065_s10 + $0xa4] ss:$16 sps:$4 sm:$0xff]  }
 0x357   : > { %5250 = vmatmul.mubr.bf16.vlgmr.msra.gmra.mrb[64].mxu0 %v19162_v34  ;;  %5661 = vmatpush1.bf16.msra.mxu1 %v13312_v59  ;;  %v13323_v59 = vld [vmem:[%s19063_s8 + $0x2c] ss:$16 sps:$4 sm:$0xff]  }
 0x358   : > { %5259 = vmatprep.mubr.bf16.mxu0 %v19163_v62  ;;  %5662 = vmatprep.subr.bf16.mxu1 %v13317_v19 }
 0x359   : > { %6889 = vmatpush1.bf16.msra.mxu0 %v13342_v14 }
 0x35b   : > { %5663 = vmatpush1.bf16.msra.mxu1 %v13315_v17 }
 0x35c   : > { %5761 = vmatprep.subr.bf16.mxu1 %v13320_v41 }
 0x35f   : > { %5260 = vmatmul.mubr.bf16.gmra.mrb[68].mxu0 %v19164_v30  ;;  %v13350_v30 = vld [vmem:[%s19065_s10 + $0x24] ss:$16 sps:$4 sm:$0xff]  }
 0x360   : > { %5269 = vmatprep.mubr.bf16.mxu0 %v19167_v50  ;;  %v13348_v50 = vld [vmem:[%s19065_s10 + $0x20] ss:$16 sps:$4 sm:$0xff]   ;;  %6890 = vmatprep.subr.bf16.mxu0 %v13350_v30 }
 0x361   : > { %6891 = vmatpush1.bf16.msra.mxu0 %v13348_v50 }
 0x362   : > { %6892 = vmatprep.subr.bf16.mxu0 %v13356_v1 }
 0x367   : > { %5270 = vmatmul.mubr.bf16.gmra.mrb[72].mxu0 %v19170_v21 }
 0x368   : > { %5279 = vmatprep.mubr.bf16.mxu0 %v19173_v47  ;;  %v5380_v47 = vld [vmem:[%s16906_s18 + $0x10] sm:$0xff] }
 0x36f   : > { %5280 = vmatmul.mubr.bf16.gmra.mrb[76].mxu0 %v4690_v60 }
 0x370   : > { %5289 = vmatprep.mubr.bf16.mxu0 %v4695_v22 }
 0x377   : > { %5290 = vmatmul.mubr.bf16.gmra.mrb[80].mxu0 %v4694_v31 }
 0x378   : > { %5299 = vmatprep.mubr.bf16.mxu0 %v4699_v4  ;;  %v5378_v4 = vld [vmem:[%s16906_s18] sm:$0xff] }
 0x37f   : > { %5300 = vmatmul.mubr.bf16.gmra.mrb[84].mxu0 %v4698_v46 }
 0x380   : > { %5309 = vmatprep.mubr.bf16.mxu0 %v4703_v57 }
 0x387   : > { %5310 = vmatmul.mubr.bf16.gmra.mrb[88].mxu0 %v4702_v38 }
 0x388   : > { %5319 = vmatprep.mubr.bf16.mxu0 %v4707_v56 }
 0x38f   : > { %5320 = vmatmul.mubr.bf16.gmra.mrb[92].mxu0 %v4706_v13 }
 0x42a   : > { %v5251_v42 = vpop.f32.mrb[64].mxu0 }
 0x42b   : > { %v12020_v58 = vadd.f32 %v5251_v42, %v16866_v27  ;;  %v5253_v36 = vpop.f32.mrb[65].mxu0  ;;  %v13354_v42 = vld [vmem:[%s19065_s10 + $0x40] ss:$16 sps:$4 sm:$0xff]  }
 0x42c   : > { %v12021_v15 = vadd.f32 %v5253_v36, %v16869_v0  ;;  %v5255_v61 = vpop.f32.mrb[66].mxu0  ;;  %6893 = vmatpush1.bf16.msra.mxu0 %v13354_v42  ;;  %v5385_v42 = vld [vmem:[%s16906_s18 + $0x38] sm:$0xff] }
 0x42d   : > { %10665 = vst [vmem:[%s16875_s27] sm:$0xff] %v12020_v58  ;;  %v12022_v40 = vadd.f32 %v5255_v61, %v16866_v27  ;;  %v5257_v54 = vpop.f32.mrb[67].mxu0  ;;  %v13362_v61 = vld [vmem:[%s19065_s10 + $0x64] ss:$16 sps:$4 sm:$0xff]  }
 0x42e   : > { %v5330_v48 = vmul.f32 0.5, %v12021_v15  ;;  %10681 = vst [vmem:[%s16882_s0] sm:$0xff] %v12021_v15  ;;  %v12023_v18 = vadd.f32 %v5257_v54, %v16869_v0  ;;  %6894 = vmatprep.subr.bf16.mxu0 %v13362_v61 }
 0x42f   : > { %10666 = vst [vmem:[%s16875_s27 + $0x8] sm:$0xff] %v12022_v40 }
 0x430   : > { %v5346_v7 = vmul.f32 1.442695, %v5330_v48  ;;  %v5331_v33 = vmul.f32 0.5, %v12023_v18  ;;  %10682 = vst [vmem:[%s16882_s0 + $0x8] sm:$0xff] %v12023_v18  ;;  %v19176_v18 = vmov 0  }
 0x432   : > { %13854 = vpow2.f32 %v5346_v7  ;;  %v5348_v16 = vmul.f32 1.442695, %v5331_v33  ;;  %v5261_v60 = vpop.f32.mrb[68].mxu0  ;;  %v13321_v7 = vld [vmem:[%s19063_s8 + $0x28] ss:$16 sps:$4 sm:$0xff]  }
 0x433   : > { %v16892_v22 = vadd.f32 %v5261_v60, %v16866_v27  ;;  %v5263_v9 = vpop.f32.mrb[69].mxu0  ;;  %v13326_v60 = vld [vmem:[%s19063_s8 + $0x4c] ss:$16 sps:$4 sm:$0xff]  }
 0x434   : > { %13856 = vpow2.f32 %v5348_v16  ;;  %v12025_v2 = vadd.f32 %v5263_v9, %v16869_v0  ;;  %v5265_v45 = vpop.f32.mrb[70].mxu0 }
 0x435   : > { %10667 = vst [vmem:[%s16875_s27 + $0x10] sm:$0xff] %v16892_v22  ;;  %v16898_v25 = vadd.f32 %v5265_v45, %v16866_v27  ;;  %v5267_v31 = vpop.f32.mrb[71].mxu0  ;;  %v13360_v45 = vld [vmem:[%s19065_s10 + $0x60] ss:$16 sps:$4 sm:$0xff]  }
 0x436   : > { %v5332_v29 = vmul.f32 0.5, %v12025_v2  ;;  %10683 = vst [vmem:[%s16882_s0 + $0x10] sm:$0xff] %v12025_v2  ;;  %v12027_v11 = vadd.f32 %v5267_v31, %v16869_v0  ;;  %6895 = vmatpush1.bf16.msra.mxu0 %v13360_v45 }
 0x437   : > { %10668 = vst [vmem:[%s16875_s27 + $0x18] sm:$0xff] %v16898_v25 }
 0x438   : > { %v5350_v44 = vmul.f32 1.442695, %v5332_v29  ;;  %v5333_v8 = vmul.f32 0.5, %v12027_v11  ;;  %10684 = vst [vmem:[%s16882_s0 + $0x18] sm:$0xff] %v12027_v11 }
 0x43a   : > { %13858 = vpow2.f32 %v5350_v44  ;;  %v5352_v46 = vmul.f32 1.442695, %v5333_v8  ;;  %v5271_v6 = vpop.f32.mrb[72].mxu0  ;;  %v5382_v44 = vld [vmem:[%s16906_s18 + $0x20] sm:$0xff]  ;;  %v13324_v8 = vld [vmem:[%s19063_s8 + $0x48] ss:$16 sps:$4 sm:$0xff]  }
 0x43b   : > { %v16913_v35 = vadd.f32 %v5271_v6, %v16866_v27  ;;  %v5273_v10 = vpop.f32.mrb[73].mxu0  ;;  %v13329_v6 = vld [vmem:[%s19063_s8 + $0x6c] ss:$16 sps:$4 sm:$0xff]  }
 0x43c   : > { %v13855_v55 = vpop.eup %13854  ;;  %13860 = vpow2.f32 %v5352_v46  ;;  %v12029_v57 = vadd.f32 %v5273_v10, %v16869_v0  ;;  %v5275_v38 = vpop.f32.mrb[74].mxu0 }
 0x43d   : > { %v5394_v23 = vmul.f32 %v13855_v55, %v5378_v4  ;;  %10669 = vst [vmem:[%s16875_s27 + $0x20] sm:$0xff] %v16913_v35  ;;  %v16920_v51 = vadd.f32 %v5275_v38, %v16866_v27  ;;  %v5277_v56 = vpop.f32.mrb[75].mxu0  ;;  %v13366_v38 = vld [vmem:[%s19065_s10 + $0x80] ss:$16 sps:$4 sm:$0xff]  }
 0x43e   : > { %v13857_v24 = vpop.eup %13856  ;;  %v5334_v12 = vmul.f32 0.5, %v12029_v57  ;;  %10685 = vst [vmem:[%s16882_s0 + $0x20] sm:$0xff] %v12029_v57  ;;  %v12031_v13 = vadd.f32 %v5277_v56, %v16869_v0  ;;  %v5383_v57 = vld [vmem:[%s16906_s18 + $0x28] sm:$0xff] }
 0x43f   : > { %v5395_v34 = vmul.f32 %v13857_v24, %v5379_v5  ;;  %10670 = vst [vmem:[%s16875_s27 + $0x28] sm:$0xff] %v16920_v51  ;;  %v5410_v62 = vadd.f32 %v12020_v58, %v5394_v23 }
 0x440   : > { %v5354_v39 = vmul.f32 1.442695, %v5334_v12  ;;  %v5335_v32 = vmul.f32 0.5, %v12031_v13  ;;  %10686 = vst [vmem:[%s16882_s0 + $0x28] sm:$0xff] %v12031_v13 }
 0x441   : > { %v5411_v28 = vadd.f32 %v12022_v40, %v5395_v34  ;;  %v13327_v34 = vld [vmem:[%s19063_s8 + $0x68] ss:$16 sps:$4 sm:$0xff]  }
 0x442   : > { %13862 = vpow2.f32 %v5354_v39  ;;  %v5356_v21 = vmul.f32 1.442695, %v5335_v32  ;;  %v5281_v53 = vpop.f32.mrb[76].mxu0  ;;  %v13332_v39 = vld [vmem:[%s19063_s8 + $0x8c] ss:$16 sps:$4 sm:$0xff]  }
 0x443   : > { %v16947_v52 = vadd.f32 %v5281_v53, %v16866_v27  ;;  %v5283_v49 = vpop.f32.mrb[77].mxu0  ;;  %v16949_v63 = vpack.c.bf16 %v5411_v28, %v5410_v62  ;;  %v13372_v28 = vld [vmem:[%s19065_s10 + $0xa0] ss:$16 sps:$4 sm:$0xff]  }
 0x444   : > { %v13859_v19 = vpop.eup %13858  ;;  %13864 = vpow2.f32 %v5356_v21  ;;  %v12033_v17 = vadd.f32 %v5283_v49, %v16869_v0  ;;  %v5285_v41 = vpop.f32.mrb[78].mxu0 }
 0x445   : > { %10671 = vst [vmem:[%s16875_s27 + $0x30] sm:$0xff] %v16947_v52  ;;  %v16962_v58 = vadd.f32 %v5285_v41, %v16866_v27  ;;  %v5287_v36 = vpop.f32.mrb[79].mxu0  ;;  %5681 = vmatmul.mubr.bf16.vlgmr.msra.gmra.mrb[64].mxu1 %v16949_v63  ;;  %v5396_v15 = vmul.f32 %v13859_v19, %v5380_v47  ;;  %v13330_v47 = vld [vmem:[%s19063_s8 + $0x88] ss:$16 sps:$4 sm:$0xff]   ;;  %v13335_v19 = vld [vmem:[%s19063_s8 + $0xac] ss:$16 sps:$4 sm:$0xff]  }
 0x446   : > { %v13861_v40 = vpop.eup %13860  ;;  %v5336_v54 = vmul.f32 0.5, %v12033_v17  ;;  %10687 = vst [vmem:[%s16882_s0 + $0x30] sm:$0xff] %v12033_v17  ;;  %v12035_v48 = vadd.f32 %v5287_v36, %v16869_v0  ;;  %5762 = vmatpush1.bf16.msra.mxu1 %v13318_v20  ;;  %5690 = vmatprep.mubr.bf16.mxu1 %v19176_v18  ;;  %v5384_v20 = vld [vmem:[%s16906_s18 + $0x30] sm:$0xff] }
 0x447   : > { %10672 = vst [vmem:[%s16875_s27 + $0x38] sm:$0xff] %v16962_v58  ;;  %v5397_v33 = vmul.f32 %v13861_v40, %v5381_v43  ;;  %v5412_v16 = vadd.f32 %v16892_v22, %v5396_v15  ;;  %5763 = vmatprep.subr.bf16.mxu1 %v13323_v59  ;;  %v13368_v22 = vld [vmem:[%s19065_s10 + $0x84] ss:$16 sps:$4 sm:$0xff]   ;;  %v13378_v36 = vld [vmem:[%s19065_s10 + $0xc0] ss:$16 sps:$4 sm:$0xff]  }
 0x448   : > { %v5358_v9 = vmul.f32 1.442695, %v5336_v54  ;;  %v5337_v2 = vmul.f32 0.5, %v12035_v48  ;;  %10688 = vst [vmem:[%s16882_s0 + $0x38] sm:$0xff] %v12035_v48  ;;  %6896 = vmatprep.subr.bf16.mxu0 %v13368_v22  ;;  %v13386_v54 = vld [vmem:[%s19065_s10 + $0xe4] ss:$16 sps:$4 sm:$0xff]  }
 0x449   : > { %v5413_v31 = vadd.f32 %v16898_v25, %v5397_v33  ;;  %6897 = vmatpush1.bf16.msra.mxu0 %v13366_v38  ;;  %v13384_v22 = vld [vmem:[%s19065_s10 + $0xe0] ss:$16 sps:$4 sm:$0xff]  }
 0x44a   : > { %13866 = vpow2.f32 %v5358_v9  ;;  %v5360_v29 = vmul.f32 1.442695, %v5337_v2  ;;  %v5291_v11 = vpop.f32.mrb[80].mxu0  ;;  %5764 = vmatpush1.bf16.msra.mxu1 %v13321_v7  ;;  %6898 = vmatprep.subr.bf16.mxu0 %v13374_v3  ;;  %v13338_v2 = vld [vmem:[%s19063_s8 + $0xcc] ss:$16 sps:$4 sm:$0xff]  }
 0x44b   : > { %v16993_v4 = vadd.f32 %v5291_v11, %v16866_v27  ;;  %v5293_v25 = vpop.f32.mrb[81].mxu0  ;;  %v16995_v46 = vpack.c.bf16 %v5413_v31, %v5412_v16  ;;  %5765 = vmatprep.subr.bf16.mxu1 %v13326_v60  ;;  %v13333_v16 = vld [vmem:[%s19063_s8 + $0xa8] ss:$16 sps:$4 sm:$0xff]  }
 0x44c   : > { %v13863_v10 = vpop.eup %13862  ;;  %13868 = vpow2.f32 %v5360_v29  ;;  %v12037_v55 = vadd.f32 %v5293_v25, %v16869_v0  ;;  %v5295_v5 = vpop.f32.mrb[82].mxu0  ;;  %v13336_v25 = vld [vmem:[%s19063_s8 + $0xc8] ss:$16 sps:$4 sm:$0xff]  }
 0x44d   : > { %10673 = vst [vmem:[%s16875_s27 + $0x40] sm:$0xff] %v16993_v4  ;;  %v17008_v23 = vadd.f32 %v5295_v5, %v16866_v27  ;;  %v5297_v56 = vpop.f32.mrb[83].mxu0  ;;  %5691 = vmatmul.mubr.bf16.gmra.mrb[68].mxu1 %v16995_v46  ;;  %v5398_v14 = vmul.f32 %v13863_v10, %v5382_v44  ;;  %6899 = vmatpush1.bf16.msra.mxu0 %v13372_v28  ;;  %v13347_v28 = vld [vmem:[%s19065_s10 + $0xc] ss:$16 sps:$4 sm:$0xff]  }
 0x44e   : > { %v13865_v24 = vpop.eup %13864  ;;  %v5338_v12 = vmul.f32 0.5, %v12037_v55  ;;  %10689 = vst [vmem:[%s16882_s0 + $0x40] sm:$0xff] %v12037_v55  ;;  %v12039_v13 = vadd.f32 %v5297_v56, %v16869_v0  ;;  %5700 = vmatprep.mubr.bf16.mxu1 %v19176_v18  ;;  %5766 = vmatpush1.bf16.msra.mxu1 %v13324_v8  ;;  %v5386_v8 = vld [vmem:[%s16906_s18 + $0x40] sm:$0xff]  ;;  %v13341_v55 = vld [vmem:[%s19063_s8 + $0xec] ss:$16 sps:$4 sm:$0xff]  }
 0x44f   : > { %10674 = vst [vmem:[%s16875_s27 + $0x48] sm:$0xff] %v17008_v23  ;;  %v5399_v62 = vmul.f32 %v13865_v24, %v5383_v57  ;;  %v5414_v30 = vadd.f32 %v16913_v35, %v5398_v14  ;;  %5767 = vmatprep.subr.bf16.mxu1 %v13329_v6  ;;  %v13380_v35 = vld [vmem:[%s19065_s10 + $0xc4] ss:$16 sps:$4 sm:$0xff]   ;;  %v5387_v56 = vld [vmem:[%s16906_s18 + $0x48] sm:$0xff]  ;;  %v13390_v14 = vld [vmem:[%s19065_s10 + $0x100] ss:$16 sps:$4 sm:$0xff]  }
 0x450   : > { %v5362_v32 = vmul.f32 1.442695, %v5338_v12  ;;  %v5339_v50 = vmul.f32 0.5, %v12039_v13  ;;  %10690 = vst [vmem:[%s16882_s0 + $0x48] sm:$0xff] %v12039_v13  ;;  %6900 = vmatprep.subr.bf16.mxu0 %v13380_v35  ;;  %v13398_v13 = vld [vmem:[%s19065_s10 + $0x124] ss:$16 sps:$4 sm:$0xff]  }
 0x451   : > { %v5415_v1 = vadd.f32 %v16920_v51, %v5399_v62  ;;  %6901 = vmatpush1.bf16.msra.mxu0 %v13378_v36  ;;  %v5389_v36 = vld [vmem:[%s16906_s18 + $0x58] sm:$0xff] }
 0x452   : > { %13870 = vpow2.f32 %v5362_v32  ;;  %v5364_v21 = vmul.f32 1.442695, %v5339_v50  ;;  %v5301_v53 = vpop.f32.mrb[84].mxu0  ;;  %5768 = vmatpush1.bf16.msra.mxu1 %v13327_v34  ;;  %6902 = vmatprep.subr.bf16.mxu0 %v13386_v54 }
 0x453   : > { %v17039_v49 = vadd.f32 %v5301_v53, %v16866_v27  ;;  %v5303_v51 = vpop.f32.mrb[85].mxu0  ;;  %v17041_v59 = vpack.c.bf16 %v5415_v1, %v5414_v30  ;;  %5769 = vmatprep.subr.bf16.mxu1 %v13332_v39  ;;  %v13339_v39 = vld [vmem:[%s19063_s8 + $0xe8] ss:$16 sps:$4 sm:$0xff]  }
 0x454   : > { %v13867_v17 = vpop.eup %13866  ;;  %13872 = vpow2.f32 %v5364_v21  ;;  %v12041_v41 = vadd.f32 %v5303_v51, %v16869_v0  ;;  %v5305_v43 = vpop.f32.mrb[86].mxu0  ;;  %v13396_v21 = vld [vmem:[%s19065_s10 + $0x120] ss:$16 sps:$4 sm:$0xff]  }
 0x455   : > { %10675 = vst [vmem:[%s16875_s27 + $0x50] sm:$0xff] %v17039_v49  ;;  %v17054_v15 = vadd.f32 %v5305_v43, %v16866_v27  ;;  %v5307_v61 = vpop.f32.mrb[87].mxu0  ;;  %5701 = vmatmul.mubr.bf16.gmra.mrb[72].mxu1 %v17041_v59  ;;  %v5400_v40 = vmul.f32 %v13867_v17, %v5384_v20  ;;  %6903 = vmatpush1.bf16.msra.mxu0 %v13384_v22  ;;  %v5388_v51 = vld [vmem:[%s16906_s18 + $0x50] sm:$0xff] }
 0x456   : > { %v13869_v48 = vpop.eup %13868  ;;  %v5340_v7 = vmul.f32 0.5, %v12041_v41  ;;  %10691 = vst [vmem:[%s16882_s0 + $0x50] sm:$0xff] %v12041_v41  ;;  %v12043_v33 = vadd.f32 %v5307_v61, %v16869_v0  ;;  %5710 = vmatprep.mubr.bf16.mxu1 %v19176_v18  ;;  %5770 = vmatpush1.bf16.msra.mxu1 %v13330_v47  ;;  %v13402_v61 = vld [vmem:[%s19065_s10 + $0x140] ss:$16 sps:$4 sm:$0xff]  }
 0x457   : > { %10676 = vst [vmem:[%s16875_s27 + $0x58] sm:$0xff] %v17054_v15  ;;  %v5401_v60 = vmul.f32 %v13869_v48, %v5385_v42  ;;  %v5416_v9 = vadd.f32 %v16947_v52, %v5400_v40  ;;  %5771 = vmatprep.subr.bf16.mxu1 %v13335_v19  ;;  %v13392_v52 = vld [vmem:[%s19065_s10 + $0x104] ss:$16 sps:$4 sm:$0xff]  }
 0x458   : > { %v5366_v45 = vmul.f32 1.442695, %v5340_v7  ;;  %v5341_v31 = vmul.f32 0.5, %v12043_v33  ;;  %10692 = vst [vmem:[%s16882_s0 + $0x58] sm:$0xff] %v12043_v33  ;;  %6904 = vmatprep.subr.bf16.mxu0 %v13392_v52  ;;  %v13410_v7 = vld [vmem:[%s19065_s10 + $0x164] ss:$16 sps:$4 sm:$0xff]  }
 0x459   : > { %v5417_v29 = vadd.f32 %v16962_v58, %v5401_v60  ;;  %6905 = vmatpush1.bf16.msra.mxu0 %v13390_v14  ;;  %v5390_v52 = vld [vmem:[%s16906_s18 + $0x60] sm:$0xff]  ;;  %v5393_v14 = vld [vmem:[%s16906_s18 + $0x78] sm:$0xff] }
 0x45a   : > { %13874 = vpow2.f32 %v5366_v45  ;;  %v5368_v11 = vmul.f32 1.442695, %v5341_v31  ;;  %v5311_v44 = vpop.f32.mrb[88].mxu0  ;;  %5772 = vmatpush1.bf16.msra.mxu1 %v13333_v16  ;;  %6906 = vmatprep.subr.bf16.mxu0 %v13398_v13  ;;  %v13408_v31 = vld [vmem:[%s19065_s10 + $0x160] ss:$16 sps:$4 sm:$0xff]  }
 0x45b   : > { %v17085_v6 = vadd.f32 %v5311_v44, %v16866_v27  ;;  %v5313_v58 = vpop.f32.mrb[89].mxu0  ;;  %v17087_v10 = vpack.c.bf16 %v5417_v29, %v5416_v9  ;;  %5773 = vmatprep.subr.bf16.mxu1 %v13338_v2  ;;  %v5391_v44 = vld [vmem:[%s16906_s18 + $0x68] sm:$0xff] }
 0x45c   : > { %v13871_v5 = vpop.eup %13870  ;;  %13876 = vpow2.f32 %v5368_v11  ;;  %v12045_v57 = vadd.f32 %v5313_v58, %v16869_v0  ;;  %v5315_v38 = vpop.f32.mrb[90].mxu0 }
 0x45d   : > { %10677 = vst [vmem:[%s16875_s27 + $0x60] sm:$0xff] %v17085_v6  ;;  %v17100_v3 = vadd.f32 %v5315_v38, %v16866_v27  ;;  %v5317_v24 = vpop.f32.mrb[91].mxu0  ;;  %5711 = vmatmul.mubr.bf16.gmra.mrb[76].mxu1 %v17087_v10  ;;  %v5402_v12 = vmul.f32 %v13871_v5, %v5386_v8  ;;  %6907 = vmatpush1.bf16.msra.mxu0 %v13396_v21  ;;  %v13375_v21 = vld [vmem:[%s19065_s10 + $0xa8] ss:$16 sps:$4 sm:$0xff]  }
 0x45e   : > { %v13873_v34 = vpop.eup %13872  ;;  %v5342_v62 = vmul.f32 0.5, %v12045_v57  ;;  %10693 = vst [vmem:[%s16882_s0 + $0x60] sm:$0xff] %v12045_v57  ;;  %v12047_v30 = vadd.f32 %v5317_v24, %v16869_v0  ;;  %5720 = vmatprep.mubr.bf16.mxu1 %v19176_v18  ;;  %5774 = vmatpush1.bf16.msra.mxu1 %v13336_v25  ;;  %v5392_v57 = vld [vmem:[%s16906_s18 + $0x70] sm:$0xff] }
 0x45f   : > { %10678 = vst [vmem:[%s16875_s27 + $0x68] sm:$0xff] %v17100_v3  ;;  %v5403_v32 = vmul.f32 %v13873_v34, %v5387_v56  ;;  %v5418_v50 = vadd.f32 %v16993_v4, %v5402_v12  ;;  %5775 = vmatprep.subr.bf16.mxu1 %v13341_v55  ;;  %v13404_v4 = vld [vmem:[%s19065_s10 + $0x144] ss:$16 sps:$4 sm:$0xff]  }
 0x460   : > { %v5370_v1 = vmul.f32 1.442695, %v5342_v62  ;;  %v5343_v35 = vmul.f32 0.5, %v12047_v30  ;;  %10694 = vst [vmem:[%s16882_s0 + $0x68] sm:$0xff] %v12047_v30  ;;  %6908 = vmatprep.subr.bf16.mxu0 %v13404_v4  ;;  %v13381_v4 = vld [vmem:[%s19065_s10 + $0xc8] ss:$16 sps:$4 sm:$0xff]  }
 0x461   : > { %v5419_v53 = vadd.f32 %v17008_v23, %v5403_v32  ;;  %6909 = vmatpush1.bf16.msra.mxu0 %v13402_v61  ;;  %v13359_v32 = vld [vmem:[%s19065_s10 + $0x4c] ss:$16 sps:$4 sm:$0xff]   ;;  %v13399_v61 = vld [vmem:[%s19065_s10 + $0x128] ss:$16 sps:$4 sm:$0xff]  }
 0x462   : > { %13878 = vpow2.f32 %v5370_v1  ;;  %v5372_v20 = vmul.f32 1.442695, %v5343_v35  ;;  %v5321_v47 = vpop.f32.mrb[92].mxu0  ;;  %5776 = vmatpush1.bf16.msra.mxu1 %v13339_v39  ;;  %6910 = vmatprep.subr.bf16.mxu0 %v13410_v7  ;;  %v13351_v39 = vld [vmem:[%s19065_s10 + $0x28] ss:$16 sps:$4 sm:$0xff]  }
 0x463   : > { %v12048_v19 = vadd.f32 %v5321_v47, %v16866_v27  ;;  %v5323_v17 = vpop.f32.mrb[93].mxu0  ;;  %v17128_v41 = vpack.c.bf16 %v5419_v53, %v5418_v50  ;;  %7114 = vmatprep.subr.bf16.mxu1 %v13347_v28  ;;  %v13357_v50 = vld [vmem:[%s19065_s10 + $0x48] ss:$16 sps:$4 sm:$0xff]   ;;  %v13371_v1 = vld [vmem:[%s19065_s10 + $0x8c] ss:$16 sps:$4 sm:$0xff]  }
 0x464   : > { %v13875_v43 = vpop.eup %13874  ;;  %13880 = vpow2.f32 %v5372_v20  ;;  %v12049_v23 = vadd.f32 %v5323_v17, %v16869_v0  ;;  %v5325_v42 = vpop.f32.mrb[94].mxu0  ;;  %v13363_v28 = vld [vmem:[%s19065_s10 + $0x68] ss:$16 sps:$4 sm:$0xff]   ;;  %v13383_v53 = vld [vmem:[%s19065_s10 + $0xcc] ss:$16 sps:$4 sm:$0xff]  }
 0x465   : > { %10679 = vst [vmem:[%s16875_s27 + $0x70] sm:$0xff] %v12048_v19  ;;  %v12050_v40 = vadd.f32 %v5325_v42, %v16866_v27  ;;  %v5327_v54 = vpop.f32.mrb[95].mxu0  ;;  %5721 = vmatmul.mubr.bf16.gmra.mrb[80].mxu1 %v17128_v41  ;;  %v5404_v48 = vmul.f32 %v13875_v43, %v5388_v51  ;;  %6911 = vmatpush1.bf16.msra.mxu0 %v13408_v31  ;;  %v13369_v35 = vld [vmem:[%s19065_s10 + $0x88] ss:$16 sps:$4 sm:$0xff]   ;;  %v13420_v20 = vld [vmem:[%s19065_s10 + $0x1a0] ss:$16 sps:$4 sm:$0xff]  }
 0x466   : > { %v13877_v33 = vpop.eup %13876  ;;  %v5344_v16 = vmul.f32 0.5, %v12049_v23  ;;  %10695 = vst [vmem:[%s16882_s0 + $0x70] sm:$0xff] %v12049_v23  ;;  %v12051_v60 = vadd.f32 %v5327_v54, %v16869_v0  ;;  %5730 = vmatprep.mubr.bf16.mxu1 %v19176_v18  ;;  %v13416_v0 = vld [vmem:[%s19065_s10 + $0x184] ss:$16 sps:$4 sm:$0xff]   ;;  %v13387_v51 = vld [vmem:[%s19065_s10 + $0xe8] ss:$16 sps:$4 sm:$0xff]  }
 0x467   : > { %10680 = vst [vmem:[%s16875_s27 + $0x78] sm:$0xff] %v12050_v40  ;;  %v5405_v27 = vmul.f32 %v13877_v33, %v5389_v36  ;;  %v5420_v9 = vadd.f32 %v17039_v49, %v5404_v48  ;;  %6912 = vmatprep.subr.bf16.mxu0 %v13416_v0  ;;  %v13422_v47 = vld [vmem:[%s19065_s10 + $0x1a4] ss:$16 sps:$4 sm:$0xff]   ;;  %v13393_v43 = vld [vmem:[%s19065_s10 + $0x108] ss:$16 sps:$4 sm:$0xff]   ;;  %s18602_s27 = scalar_lea.vmem %s19069_s14, %s12660_s24 }
 0x468   : > { %v5374_v2 = vmul.f32 1.442695, %v5344_v16  ;;  %v5345_v45 = vmul.f32 0.5, %v12051_v60  ;;  %10696 = vst [vmem:[%s16882_s0 + $0x78] sm:$0xff] %v12051_v60  ;;  %v13428_v17 = vld [vmem:[%s19065_s10 + $0x1c4] ss:$16 sps:$4 sm:$0xff]  }
 0x469   : > { %v5421_v22 = vadd.f32 %v17054_v15, %v5405_v27  ;;  %v13414_v15 = vld [vmem:[%s19065_s10 + $0x180] ss:$16 sps:$4 sm:$0xff]   ;;  %v13401_v23 = vld [vmem:[%s19065_s10 + $0x12c] ss:$16 sps:$4 sm:$0xff]   ;;  %v13434_v42 = vld [vmem:[%s19065_s10 + $0x1e4] ss:$16 sps:$4 sm:$0xff]  }
 0x46a   : > { %13882 = vpow2.f32 %v5374_v2  ;;  %v5376_v29 = vmul.f32 1.442695, %v5345_v45  ;;  %6913 = vmatpush1.bf16.msra.mxu0 %v13414_v15  ;;  %v13432_v36 = vld [vmem:[%s19065_s10 + $0x1e0] ss:$16 sps:$4 sm:$0xff]   ;;  %v13407_v54 = vld [vmem:[%s19065_s10 + $0x14c] ss:$16 sps:$4 sm:$0xff]  }
 0x46b   : > { %v17155_v49 = vpack.c.bf16 %v5421_v22, %v5420_v9  ;;  %6914 = vmatprep.subr.bf16.mxu0 %v13422_v47  ;;  %v13413_v48 = vld [vmem:[%s19065_s10 + $0x16c] ss:$16 sps:$4 sm:$0xff]   ;;  %v13411_v7 = vld [vmem:[%s19065_s10 + $0x168] ss:$16 sps:$4 sm:$0xff]   ;;  %v17310_v22 = vld [vmem:[%s19064_s9] sm:$0xf] }
 0x46c   : > { %v13879_v11 = vpop.eup %13878  ;;  %13884 = vpow2.f32 %v5376_v29  ;;  %v13419_v33 = vld [vmem:[%s19065_s10 + $0x18c] ss:$16 sps:$4 sm:$0xff]   ;;  %v13417_v16 = vld [vmem:[%s19065_s10 + $0x188] ss:$16 sps:$4 sm:$0xff]   ;;  %v17314_v0 = vrot.slane %v17310_v22, %v19174_v37  ;;  %v17318_v29 = vrot.slane %v17310_v22, %v19175_v26  ;;  %v13452_v47 = vld [vmem:[%s19065_s10 + $0x244] ss:$16 sps:$4 sm:$0xff]  }
 0x46d   : > { %5731 = vmatmul.mubr.bf16.gmra.mrb[84].mxu1 %v17155_v49  ;;  %v5406_v8 = vmul.f32 %v13879_v11, %v5390_v52  ;;  %v13425_v60 = vld [vmem:[%s19065_s10 + $0x1ac] ss:$16 sps:$4 sm:$0xff]   ;;  %v13423_v27 = vld [vmem:[%s19065_s10 + $0x1a8] ss:$16 sps:$4 sm:$0xff]  }
 0x46e   : > { %v13881_v25 = vpop.eup %13880  ;;  %5740 = vmatprep.mubr.bf16.mxu1 %v19176_v18  ;;  %6915 = vmatpush1.bf16.msra.mxu0 %v13420_v20  ;;  %v13431_v9 = vld [vmem:[%s19065_s10 + $0x1cc] ss:$16 sps:$4 sm:$0xff]   ;;  %v13429_v2 = vld [vmem:[%s19065_s10 + $0x1c8] ss:$16 sps:$4 sm:$0xff]  }
 0x46f   : > { %v5407_v58 = vmul.f32 %v13881_v25, %v5391_v44  ;;  %v5422_v55 = vadd.f32 %v17085_v6, %v5406_v8  ;;  %v13345_v6 = vld [vmem:[%s19065_s10 + $0x8] ss:$16 sps:$4 sm:$0xff]   ;;  %6916 = vmatprep.subr.bf16.mxu0 %v13428_v17  ;;  %v13443_v31 = vld [vmem:[%s19065_s10 + $0x20c] ss:$16 sps:$4 sm:$0xff]  }
 0x470   : > { %v13435_v45 = vld [vmem:[%s19065_s10 + $0x1e8] ss:$16 sps:$4 sm:$0xff]  }
 0x471   : > { %v5423_v5 = vadd.f32 %v17100_v3, %v5407_v58  ;;  %v13353_v3 = vld [vmem:[%s19065_s10 + $0x2c] ss:$16 sps:$4 sm:$0xff]  }
 0x473   : > { %v17166_v38 = vpack.c.bf16 %v5423_v5, %v5422_v55 }
 0x474   : > { %v13883_v56 = vpop.eup %13882 }
 0x475   : > { %5741 = vmatmul.mubr.bf16.gmra.mrb[88].mxu1 %v17166_v38  ;;  %v5408_v24 = vmul.f32 %v13883_v56, %v5392_v57 }
 0x476   : > { %v13885_v12 = vpop.eup %13884  ;;  %5750 = vmatprep.mubr.bf16.mxu1 %v19176_v18 }
 0x477   : > { %v5409_v13 = vmul.f32 %v13885_v12, %v5393_v14  ;;  %v5424_v34 = vadd.f32 %v12048_v19, %v5408_v24  ;;  %v13426_v19 = vld [vmem:[%s19065_s10 + $0x1c0] ss:$16 sps:$4 sm:$0xff]  }
 0x478   : > { %6917 = vmatpush1.bf16.msra.mxu0 %v13426_v19 }
 0x479   : > { %v5425_v62 = vadd.f32 %v12050_v40, %v5409_v13  ;;  %6918 = vmatprep.subr.bf16.mxu0 %v13434_v42  ;;  %v13440_v40 = vld [vmem:[%s19065_s10 + $0x204] ss:$16 sps:$4 sm:$0xff]  }
 0x47b   : > { %v17171_v30 = vpack.c.bf16 %v5425_v62, %v5424_v34 }
 0x47c   : > { %6919 = vmatpush1.bf16.msra.mxu0 %v13432_v36 }
 0x47d   : > { %5751 = vmatmul.mubr.bf16.gmra.mrb[92].mxu1 %v17171_v30  ;;  %7001 = vmatprep.subr.bf16.mxu0 %v13440_v40 }
 0x47e   : > { %5793 = vmatprep.mubr.bf16.mxu1 %v19176_v18 }
 0x485   : > { %5794 = vmatmul.mubr.bf16.vlgmr.msra.gmra.mrb[96].mxu1 %v16949_v63  ;;  %v13365_v63 = vld [vmem:[%s19065_s10 + $0x6c] ss:$16 sps:$4 sm:$0xff]  }
 0x486   : > { %5803 = vmatprep.mubr.bf16.mxu1 %v19176_v18  ;;  %7115 = vmatpush1.bf16.msra.mxu1 %v13345_v6 }
 0x487   : > { %7116 = vmatprep.subr.bf16.mxu1 %v13353_v3  ;;  %v13438_v3 = vld [vmem:[%s19065_s10 + $0x200] ss:$16 sps:$4 sm:$0xff]  }
 0x48a   : > { %7117 = vmatpush1.bf16.msra.mxu1 %v13351_v39  ;;  %v13441_v39 = vld [vmem:[%s19065_s10 + $0x208] ss:$16 sps:$4 sm:$0xff]  }
 0x48b   : > { %7118 = vmatprep.subr.bf16.mxu1 %v13359_v32 }
 0x48d   : > { %5804 = vmatmul.mubr.bf16.gmra.mrb[100].mxu1 %v16995_v46  ;;  %v13377_v46 = vld [vmem:[%s19065_s10 + $0xac] ss:$16 sps:$4 sm:$0xff]  }
 0x48e   : > { %5813 = vmatprep.mubr.bf16.mxu1 %v19176_v18  ;;  %7119 = vmatpush1.bf16.msra.mxu1 %v13357_v50 }
 0x48f   : > { %7120 = vmatprep.subr.bf16.mxu1 %v13365_v63  ;;  %v13446_v63 = vld [vmem:[%s19065_s10 + $0x224] ss:$16 sps:$4 sm:$0xff]  }
 0x492   : > { %7121 = vmatpush1.bf16.msra.mxu1 %v13363_v28  ;;  %v13449_v28 = vld [vmem:[%s19065_s10 + $0x22c] ss:$16 sps:$4 sm:$0xff]  }
 0x493   : > { %7122 = vmatprep.subr.bf16.mxu1 %v13371_v1 }
 0x495   : > { %5814 = vmatmul.mubr.bf16.gmra.mrb[104].mxu1 %v17041_v59  ;;  %v13389_v59 = vld [vmem:[%s19065_s10 + $0xec] ss:$16 sps:$4 sm:$0xff]  }
 0x496   : > { %5823 = vmatprep.mubr.bf16.mxu1 %v19176_v18  ;;  %7123 = vmatpush1.bf16.msra.mxu1 %v13369_v35 }
 0x497   : > { %7124 = vmatprep.subr.bf16.mxu1 %v13377_v46 }
 0x49a   : > { %7125 = vmatpush1.bf16.msra.mxu1 %v13375_v21  ;;  %v13444_v21 = vld [vmem:[%s19065_s10 + $0x220] ss:$16 sps:$4 sm:$0xff]  }
 0x49b   : > { %7126 = vmatprep.subr.bf16.mxu1 %v13383_v53 }
 0x49d   : > { %5824 = vmatmul.mubr.bf16.gmra.mrb[108].mxu1 %v17087_v10  ;;  %v13395_v10 = vld [vmem:[%s19065_s10 + $0x10c] ss:$16 sps:$4 sm:$0xff]  }
 0x49e   : > { %5833 = vmatprep.mubr.bf16.mxu1 %v19176_v18  ;;  %7127 = vmatpush1.bf16.msra.mxu1 %v13381_v4 }
 0x49f   : > { %7128 = vmatprep.subr.bf16.mxu1 %v13389_v59  ;;  %v13447_v59 = vld [vmem:[%s19065_s10 + $0x228] ss:$16 sps:$4 sm:$0xff]  }
 0x4a2   : > { %7129 = vmatpush1.bf16.msra.mxu1 %v13387_v51 }
 0x4a3   : > { %7130 = vmatprep.subr.bf16.mxu1 %v13395_v10  ;;  %v13455_v10 = vld [vmem:[%s19065_s10 + $0x24c] ss:$16 sps:$4 sm:$0xff]  }
 0x4a5   : > { %5834 = vmatmul.mubr.bf16.gmra.mrb[112].mxu1 %v17128_v41  ;;  %v13405_v41 = vld [vmem:[%s19065_s10 + $0x148] ss:$16 sps:$4 sm:$0xff]  }
 0x4a6   : > { %5843 = vmatprep.mubr.bf16.mxu1 %v19176_v18  ;;  %7131 = vmatpush1.bf16.msra.mxu1 %v13393_v43 }
 0x4a7   : > { %7132 = vmatprep.subr.bf16.mxu1 %v13401_v23 }
 0x4aa   : > { %7133 = vmatpush1.bf16.msra.mxu1 %v13399_v61 }
 0x4ab   : > { %7134 = vmatprep.subr.bf16.mxu1 %v13407_v54 }
 0x4ad   : > { %5844 = vmatmul.mubr.bf16.gmra.mrb[116].mxu1 %v17155_v49 }
 0x4ae   : > { %5853 = vmatprep.mubr.bf16.mxu1 %v19176_v18  ;;  %7135 = vmatpush1.bf16.msra.mxu1 %v13405_v41  ;;  %v13450_v41 = vld [vmem:[%s19065_s10 + $0x240] ss:$16 sps:$4 sm:$0xff]  }
 0x4af   : > { %7136 = vmatprep.subr.bf16.mxu1 %v13413_v48  ;;  %v13453_v48 = vld [vmem:[%s19065_s10 + $0x248] ss:$16 sps:$4 sm:$0xff]  }
 0x4b2   : > { %7137 = vmatpush1.bf16.msra.mxu1 %v13411_v7 }
 0x4b3   : > { %7138 = vmatprep.subr.bf16.mxu1 %v13419_v33 }
 0x4b5   : > { %5854 = vmatmul.mubr.bf16.gmra.mrb[120].mxu1 %v17166_v38 }
 0x4b6   : > { %5863 = vmatprep.mubr.bf16.mxu1 %v19176_v18  ;;  %7139 = vmatpush1.bf16.msra.mxu1 %v13417_v16  ;;  %v13437_v18 = vld [vmem:[%s19065_s10 + $0x1ec] ss:$16 sps:$4 sm:$0xff]   ;;  %v13458_v16 = vld [vmem:[%s19065_s10 + $0x264] ss:$16 sps:$4 sm:$0xff]  }
 0x4b7   : > { %7140 = vmatprep.subr.bf16.mxu1 %v13425_v60  ;;  %v13461_v60 = vld [vmem:[%s19065_s10 + $0x26c] ss:$16 sps:$4 sm:$0xff]  }
 0x4ba   : > { %7141 = vmatpush1.bf16.msra.mxu1 %v13423_v27 }
 0x4bb   : > { %7142 = vmatprep.subr.bf16.mxu1 %v13431_v9 }
 0x4bd   : > { %5864 = vmatmul.mubr.bf16.gmra.mrb[124].mxu1 %v17171_v30 }
 0x4be   : > { %7143 = vmatpush1.bf16.msra.mxu1 %v13429_v2 }
 0x4bf   : > { %7144 = vmatprep.subr.bf16.mxu1 %v13437_v18  ;;  %v13456_v18 = vld [vmem:[%s19065_s10 + $0x260] ss:$16 sps:$4 sm:$0xff]  }
 0x4c2   : > { %7145 = vmatpush1.bf16.msra.mxu1 %v13435_v45 }
 0x4c3   : > { %7227 = vmatprep.subr.bf16.mxu1 %v13443_v31 }
 0x518   : > { %v5682_v52 = vpop.f32.mrb[64].mxu1 }
 0x519   : > { %v5683_v49 = vadd.f32 %v5682_v52, %v17314_v0  ;;  %v5684_v11 = vpop.f32.mrb[65].mxu1  ;;  %v13459_v52 = vld [vmem:[%s19065_s10 + $0x268] ss:$16 sps:$4 sm:$0xff]  }
 0x51a   : > { %v5685_v44 = vadd.f32 %v5684_v11, %v17318_v29  ;;  %v5686_v15 = vpop.f32.mrb[66].mxu1  ;;  %v13464_v11 = vld [vmem:[%s19065_s10 + $0x284] ss:$16 sps:$4 sm:$0xff]  }
 0x51b   : > { %v5938_v8 = vmul.f32 0.2, %v5683_v49  ;;  %v5687_v25 = vadd.f32 %v5686_v15, %v17314_v0  ;;  %v5688_v58 = vpop.f32.mrb[67].mxu1  ;;  %vm5874_vm12 = vcmp.gt.f32.partialorder %v5683_v49, 0.0  ;;  %v13467_v15 = vld [vmem:[%s19065_s10 + $0x28c] ss:$16 sps:$4 sm:$0xff]  }
 0x51c   : > { %v5939_v55 = vmul.f32 0.2, %v5685_v44  ;;  %v5689_v5 = vadd.f32 %v5688_v58, %v17318_v29  ;;  %vm5875_vm10 = vcmp.gt.f32.partialorder %v5685_v44, 0.0 }
 0x51d   : > { %vm5878_vm6 = vcmp.gt.f32.partialorder %v5687_v25, 0.0  ;;  %v5942_v57 = vmul.f32 0.2, %v5687_v25  ;;  %v6002_v56 = vsel %vm5874_vm12, %v5683_v49, %v5938_v8 }
 0x51e   : > { %vm5879_vm15 = vcmp.gt.f32.partialorder %v5689_v5, 0.0  ;;  %v5943_v38 = vmul.f32 0.2, %v5689_v5  ;;  %v6003_v13 = vsel %vm5875_vm10, %v5685_v44, %v5939_v55 }
 0x51f   : > { %v6006_v14 = vsel %vm5878_vm6, %v5687_v25, %v5942_v57 }
 0x520   : > { %v6066_v24 = vpack.c.bf16 %v6006_v14, %v6002_v56  ;;  %v5692_v12 = vpop.f32.mrb[68].mxu1  ;;  %v6007_v34 = vsel %vm5879_vm15, %v5689_v5, %v5943_v38 }
 0x521   : > { %v5693_v62 = vadd.f32 %v5692_v12, %v17314_v0  ;;  %v5694_v30 = vpop.f32.mrb[69].mxu1  ;;  %v6067_v6 = vpack.c.bf16 %v6007_v34, %v6003_v13  ;;  %v13465_v12 = vld [vmem:[%s19065_s10 + $0x288] ss:$16 sps:$4 sm:$0xff]  }
 0x522   : > { %v5695_v32 = vadd.f32 %v5694_v30, %v17318_v29  ;;  %v5696_v50 = vpop.f32.mrb[70].mxu1  ;;  %v13473_v30 = vld [vmem:[%s19065_s10 + $0x2ac] ss:$16 sps:$4 sm:$0xff]  }
 0x523   : > { %v5946_v1 = vmul.f32 0.2, %v5693_v62  ;;  %v5697_v35 = vadd.f32 %v5696_v50, %v17314_v0  ;;  %v5698_v46 = vpop.f32.mrb[71].mxu1  ;;  %6920 = vmatprep.mubr.bf16.mxu0 %v6067_v6  ;;  %7146 = vmatprep.mubr.bf16.mxu1 %v6067_v6  ;;  %vm5882_vm3 = vcmp.gt.f32.partialorder %v5693_v62, 0.0 }
 0x524   : > { %v5947_v53 = vmul.f32 0.2, %v5695_v32  ;;  %v5699_v4 = vadd.f32 %v5698_v46, %v17318_v29  ;;  %6921 = vmatmul.mubr.bf16.vlgmr.msra.gmra.mrb[96].mxu0 %v6066_v24  ;;  %7147 = vmatmul.mubr.bf16.vlgmr.msra.gmra.mrb[128].mxu1 %v6066_v24  ;;  %vm5883_vm8 = vcmp.gt.f32.partialorder %v5695_v32, 0.0  ;;  %v13462_v24 = vld [vmem:[%s19065_s10 + $0x280] ss:$16 sps:$4 sm:$0xff]  }
 0x525   : > { %vm5886_vm0 = vcmp.gt.f32.partialorder %v5697_v35, 0.0  ;;  %v5950_v20 = vmul.f32 0.2, %v5697_v35  ;;  %7002 = vmatpush1.bf16.msra.mxu0 %v13438_v3  ;;  %7228 = vmatpush1.bf16.msra.mxu1 %v13441_v39  ;;  %v6010_v19 = vsel %vm5882_vm3, %v5693_v62, %v5946_v1  ;;  %v13470_v62 = vld [vmem:[%s19065_s10 + $0x2a4] ss:$16 sps:$4 sm:$0xff]  }
 0x526   : > { %vm5887_vm9 = vcmp.gt.f32.partialorder %v5699_v4, 0.0  ;;  %v5951_v51 = vmul.f32 0.2, %v5699_v4  ;;  %7003 = vmatprep.subr.bf16.mxu0 %v13446_v63  ;;  %7229 = vmatprep.subr.bf16.mxu1 %v13449_v28  ;;  %v6011_v23 = vsel %vm5883_vm8, %v5695_v32, %v5947_v53  ;;  %v13468_v32 = vld [vmem:[%s19065_s10 + $0x2a0] ss:$16 sps:$4 sm:$0xff]  }
 0x527   : > { %v6014_v17 = vsel %vm5886_vm0, %v5697_v35, %v5950_v20  ;;  %v13471_v28 = vld [vmem:[%s19065_s10 + $0x2a8] ss:$16 sps:$4 sm:$0xff]   ;;  %v13476_v35 = vld [vmem:[%s19065_s10 + $0x2c4] ss:$16 sps:$4 sm:$0xff]  }
 0x528   : > { %v5702_v43 = vpop.f32.mrb[72].mxu1  ;;  %v6015_v42 = vsel %vm5887_vm9, %v5699_v4, %v5951_v51  ;;  %v6070_v36 = vpack.c.bf16 %v6014_v17, %v6010_v19 }
 0x529   : > { %v5703_v61 = vadd.f32 %v5702_v43, %v17314_v0  ;;  %v5704_v40 = vpop.f32.mrb[73].mxu1  ;;  %7004 = vmatpush1.bf16.msra.mxu0 %v13444_v21  ;;  %7230 = vmatpush1.bf16.msra.mxu1 %v13447_v59  ;;  %v6071_v54 = vpack.c.bf16 %v6015_v42, %v6011_v23  ;;  %v13479_v21 = vld [vmem:[%s19065_s10 + $0x2cc] ss:$16 sps:$4 sm:$0xff]   ;;  %v13474_v43 = vld [vmem:[%s19065_s10 + $0x2c0] ss:$16 sps:$4 sm:$0xff]  }
 0x52a   : > { %v5705_v7 = vadd.f32 %v5704_v40, %v17318_v29  ;;  %v5706_v33 = vpop.f32.mrb[74].mxu1  ;;  %7005 = vmatprep.subr.bf16.mxu0 %v13452_v47  ;;  %7231 = vmatprep.subr.bf16.mxu1 %v13455_v10  ;;  %v13477_v23 = vld [vmem:[%s19065_s10 + $0x2c8] ss:$16 sps:$4 sm:$0xff]   ;;  %v13485_v40 = vld [vmem:[%s19065_s10 + $0x2ec] ss:$16 sps:$4 sm:$0xff]  }
 0x52b   : > { %v5954_v27 = vmul.f32 0.2, %v5703_v61  ;;  %v5707_v9 = vadd.f32 %v5706_v33, %v17314_v0  ;;  %v5708_v2 = vpop.f32.mrb[75].mxu1  ;;  %6930 = vmatprep.mubr.bf16.mxu0 %v6071_v54  ;;  %7156 = vmatprep.mubr.bf16.mxu1 %v6071_v54  ;;  %vm5890_vm1 = vcmp.gt.f32.partialorder %v5703_v61, 0.0 }
 0x52c   : > { %v5955_v45 = vmul.f32 0.2, %v5705_v7  ;;  %v5709_v31 = vadd.f32 %v5708_v2, %v17318_v29  ;;  %6931 = vmatmul.mubr.bf16.gmra.mrb[100].mxu0 %v6070_v36  ;;  %7157 = vmatmul.mubr.bf16.gmra.mrb[132].mxu1 %v6070_v36  ;;  %vm5891_vm5 = vcmp.gt.f32.partialorder %v5705_v7, 0.0 }
 0x52d   : > { %vm5894_vm7 = vcmp.gt.f32.partialorder %v5707_v9, 0.0  ;;  %v5958_v49 = vmul.f32 0.2, %v5707_v9  ;;  %7006 = vmatpush1.bf16.msra.mxu0 %v13450_v41  ;;  %7232 = vmatpush1.bf16.msra.mxu1 %v13453_v48  ;;  %v6018_v8 = vsel %vm5890_vm1, %v5703_v61, %v5954_v27  ;;  %v13482_v61 = vld [vmem:[%s19065_s10 + $0x2e4] ss:$16 sps:$4 sm:$0xff]  }
 0x52e   : > { %vm5895_vm11 = vcmp.gt.f32.partialorder %v5709_v31, 0.0  ;;  %v5959_v44 = vmul.f32 0.2, %v5709_v31  ;;  %7007 = vmatprep.subr.bf16.mxu0 %v13458_v16  ;;  %7233 = vmatprep.subr.bf16.mxu1 %v13461_v60  ;;  %v6019_v55 = vsel %vm5891_vm5, %v5705_v7, %v5955_v45  ;;  %v13480_v7 = vld [vmem:[%s19065_s10 + $0x2e0] ss:$16 sps:$4 sm:$0xff]  }
 0x52f   : > { %v6022_v25 = vsel %vm5894_vm7, %v5707_v9, %v5958_v49  ;;  %v13483_v60 = vld [vmem:[%s19065_s10 + $0x2e8] ss:$16 sps:$4 sm:$0xff]   ;;  %v13488_v9 = vld [vmem:[%s19065_s10 + $0x304] ss:$16 sps:$4 sm:$0xff]  }
 0x530   : > { %v5712_v58 = vpop.f32.mrb[76].mxu1  ;;  %v6023_v5 = vsel %vm5895_vm11, %v5709_v31, %v5959_v44  ;;  %v6074_v57 = vpack.c.bf16 %v6022_v25, %v6018_v8 }
 0x531   : > { %v5713_v38 = vadd.f32 %v5712_v58, %v17314_v0  ;;  %v5714_v56 = vpop.f32.mrb[77].mxu1  ;;  %7008 = vmatpush1.bf16.msra.mxu0 %v13456_v18  ;;  %7234 = vmatpush1.bf16.msra.mxu1 %v13459_v52  ;;  %v6075_v14 = vpack.c.bf16 %v6023_v5, %v6019_v55  ;;  %v13491_v18 = vld [vmem:[%s19065_s10 + $0x30c] ss:$16 sps:$4 sm:$0xff]   ;;  %v13486_v58 = vld [vmem:[%s19065_s10 + $0x300] ss:$16 sps:$4 sm:$0xff]  }
 0x532   : > { %v5715_v13 = vadd.f32 %v5714_v56, %v17318_v29  ;;  %v5716_v34 = vpop.f32.mrb[78].mxu1  ;;  %7009 = vmatprep.subr.bf16.mxu0 %v13464_v11  ;;  %7235 = vmatprep.subr.bf16.mxu1 %v13467_v15  ;;  %v13489_v55 = vld [vmem:[%s19065_s10 + $0x308] ss:$16 sps:$4 sm:$0xff]   ;;  %v13497_v56 = vld [vmem:[%s19065_s10 + $0x32c] ss:$16 sps:$4 sm:$0xff]  }
 0x533   : > { %v5962_v6 = vmul.f32 0.2, %v5713_v38  ;;  %v5717_v3 = vadd.f32 %v5716_v34, %v17314_v0  ;;  %v5718_v39 = vpop.f32.mrb[79].mxu1  ;;  %6940 = vmatprep.mubr.bf16.mxu0 %v6075_v14  ;;  %7166 = vmatprep.mubr.bf16.mxu1 %v6075_v14  ;;  %vm5898_vm13 = vcmp.gt.f32.partialorder %v5713_v38, 0.0 }
 0x534   : > { %v5963_v50 = vmul.f32 0.2, %v5715_v13  ;;  %v5719_v63 = vadd.f32 %v5718_v39, %v17318_v29  ;;  %6941 = vmatmul.mubr.bf16.gmra.mrb[104].mxu0 %v6074_v57  ;;  %7167 = vmatmul.mubr.bf16.gmra.mrb[136].mxu1 %v6074_v57  ;;  %vm5899_vm14 = vcmp.gt.f32.partialorder %v5715_v13, 0.0 }
 0x535   : > { %vm5902_vm2 = vcmp.gt.f32.partialorder %v5717_v3, 0.0  ;;  %v5966_v1 = vmul.f32 0.2, %v5717_v3  ;;  %7010 = vmatpush1.bf16.msra.mxu0 %v13462_v24  ;;  %7236 = vmatpush1.bf16.msra.mxu1 %v13465_v12  ;;  %v6026_v53 = vsel %vm5898_vm13, %v5713_v38, %v5962_v6  ;;  %v13494_v38 = vld [vmem:[%s19065_s10 + $0x324] ss:$16 sps:$4 sm:$0xff]  }
 0x536   : > { %vm5903_vm4 = vcmp.gt.f32.partialorder %v5719_v63, 0.0  ;;  %v5967_v46 = vmul.f32 0.2, %v5719_v63  ;;  %7011 = vmatprep.subr.bf16.mxu0 %v13470_v62  ;;  %7237 = vmatprep.subr.bf16.mxu1 %v13473_v30  ;;  %v6027_v20 = vsel %vm5899_vm14, %v5715_v13, %v5963_v50  ;;  %v13492_v13 = vld [vmem:[%s19065_s10 + $0x320] ss:$16 sps:$4 sm:$0xff]  }
 0x537   : > { %v6030_v4 = vsel %vm5902_vm2, %v5717_v3, %v5966_v1  ;;  %v13495_v30 = vld [vmem:[%s19065_s10 + $0x328] ss:$16 sps:$4 sm:$0xff]   ;;  %v13500_v3 = vld [vmem:[%s19065_s10 + $0x344] ss:$16 sps:$4 sm:$0xff]  }
 0x538   : > { %v5722_v59 = vpop.f32.mrb[80].mxu1  ;;  %v6031_v47 = vsel %vm5903_vm4, %v5719_v63, %v5967_v46  ;;  %v6078_v51 = vpack.c.bf16 %v6030_v4, %v6026_v53 }
 0x539   : > { %v5723_v10 = vadd.f32 %v5722_v59, %v17314_v0  ;;  %v5724_v19 = vpop.f32.mrb[81].mxu1  ;;  %7012 = vmatpush1.bf16.msra.mxu0 %v13468_v32  ;;  %7238 = vmatpush1.bf16.msra.mxu1 %v13471_v28  ;;  %v6079_v17 = vpack.c.bf16 %v6031_v47, %v6027_v20  ;;  %v13503_v32 = vld [vmem:[%s19065_s10 + $0x34c] ss:$16 sps:$4 sm:$0xff]   ;;  %v13498_v59 = vld [vmem:[%s19065_s10 + $0x340] ss:$16 sps:$4 sm:$0xff]  }
 0x53a   : > { %v5725_v42 = vadd.f32 %v5724_v19, %v17318_v29  ;;  %v5726_v36 = vpop.f32.mrb[82].mxu1  ;;  %7013 = vmatprep.subr.bf16.mxu0 %v13476_v35  ;;  %7239 = vmatprep.subr.bf16.mxu1 %v13479_v21  ;;  %v13501_v20 = vld [vmem:[%s19065_s10 + $0x348] ss:$16 sps:$4 sm:$0xff]   ;;  %v13509_v19 = vld [vmem:[%s19065_s10 + $0x36c] ss:$16 sps:$4 sm:$0xff]  }
 0x53b   : > { %v5970_v54 = vmul.f32 0.2, %v5723_v10  ;;  %v5727_v41 = vadd.f32 %v5726_v36, %v17314_v0  ;;  %v5728_v48 = vpop.f32.mrb[83].mxu1  ;;  %6950 = vmatprep.mubr.bf16.mxu0 %v6079_v17  ;;  %7176 = vmatprep.mubr.bf16.mxu1 %v6079_v17  ;;  %vm5906_vm12 = vcmp.gt.f32.partialorder %v5723_v10, 0.0 }
 0x53c   : > { %v5971_v33 = vmul.f32 0.2, %v5725_v42  ;;  %v5729_v16 = vadd.f32 %v5728_v48, %v17318_v29  ;;  %6951 = vmatmul.mubr.bf16.gmra.mrb[108].mxu0 %v6078_v51  ;;  %7177 = vmatmul.mubr.bf16.gmra.mrb[140].mxu1 %v6078_v51  ;;  %vm5907_vm10 = vcmp.gt.f32.partialorder %v5725_v42, 0.0 }
 0x53d   : > { %vm5910_vm6 = vcmp.gt.f32.partialorder %v5727_v41, 0.0  ;;  %v5974_v27 = vmul.f32 0.2, %v5727_v41  ;;  %7014 = vmatpush1.bf16.msra.mxu0 %v13474_v43  ;;  %7240 = vmatpush1.bf16.msra.mxu1 %v13477_v23  ;;  %v6034_v45 = vsel %vm5906_vm12, %v5723_v10, %v5970_v54  ;;  %v13506_v10 = vld [vmem:[%s19065_s10 + $0x364] ss:$16 sps:$4 sm:$0xff]  }
 0x53e   : > { %vm5911_vm15 = vcmp.gt.f32.partialorder %v5729_v16, 0.0  ;;  %v5975_v2 = vmul.f32 0.2, %v5729_v16  ;;  %7015 = vmatprep.subr.bf16.mxu0 %v13482_v61  ;;  %7241 = vmatprep.subr.bf16.mxu1 %v13485_v40  ;;  %v6035_v49 = vsel %vm5907_vm10, %v5725_v42, %v5971_v33  ;;  %v13504_v42 = vld [vmem:[%s19065_s10 + $0x360] ss:$16 sps:$4 sm:$0xff]  }
 0x53f   : > { %v6038_v31 = vsel %vm5910_vm6, %v5727_v41, %v5974_v27  ;;  %v13507_v40 = vld [vmem:[%s19065_s10 + $0x368] ss:$16 sps:$4 sm:$0xff]   ;;  %v13512_v41 = vld [vmem:[%s19065_s10 + $0x384] ss:$16 sps:$4 sm:$0xff]  }
 0x540   : > { %v5732_v52 = vpop.f32.mrb[84].mxu1  ;;  %v6039_v11 = vsel %vm5911_vm15, %v5729_v16, %v5975_v2  ;;  %v6082_v44 = vpack.c.bf16 %v6038_v31, %v6034_v45 }
 0x541   : > { %v5733_v15 = vadd.f32 %v5732_v52, %v17314_v0  ;;  %v5734_v8 = vpop.f32.mrb[85].mxu1  ;;  %7016 = vmatpush1.bf16.msra.mxu0 %v13480_v7  ;;  %7242 = vmatpush1.bf16.msra.mxu1 %v13483_v60  ;;  %v6083_v25 = vpack.c.bf16 %v6039_v11, %v6035_v49  ;;  %v13515_v7 = vld [vmem:[%s19065_s10 + $0x38c] ss:$16 sps:$4 sm:$0xff]   ;;  %v13510_v52 = vld [vmem:[%s19065_s10 + $0x380] ss:$16 sps:$4 sm:$0xff]  }
 0x542   : > { %v5735_v5 = vadd.f32 %v5734_v8, %v17318_v29  ;;  %v5736_v57 = vpop.f32.mrb[86].mxu1  ;;  %7017 = vmatprep.subr.bf16.mxu0 %v13488_v9  ;;  %7243 = vmatprep.subr.bf16.mxu1 %v13491_v18  ;;  %v13513_v49 = vld [vmem:[%s19065_s10 + $0x388] ss:$16 sps:$4 sm:$0xff]   ;;  %v13521_v8 = vld [vmem:[%s19065_s10 + $0x3ac] ss:$16 sps:$4 sm:$0xff]  }
 0x543   : > { %v5978_v14 = vmul.f32 0.2, %v5733_v15  ;;  %v5737_v24 = vadd.f32 %v5736_v57, %v17314_v0  ;;  %v5738_v12 = vpop.f32.mrb[87].mxu1  ;;  %6960 = vmatprep.mubr.bf16.mxu0 %v6083_v25  ;;  %7186 = vmatprep.mubr.bf16.mxu1 %v6083_v25  ;;  %vm5914_vm3 = vcmp.gt.f32.partialorder %v5733_v15, 0.0 }
 0x544   : > { %v5979_v34 = vmul.f32 0.2, %v5735_v5  ;;  %v5739_v62 = vadd.f32 %v5738_v12, %v17318_v29  ;;  %6961 = vmatmul.mubr.bf16.gmra.mrb[112].mxu0 %v6082_v44  ;;  %7187 = vmatmul.mubr.bf16.gmra.mrb[144].mxu1 %v6082_v44  ;;  %vm5915_vm8 = vcmp.gt.f32.partialorder %v5735_v5, 0.0  ;;  %v13524_v12 = vld [vmem:[%s19065_s10 + $0x3c4] ss:$16 sps:$4 sm:$0xff]  }
 0x545   : > { %vm5918_vm0 = vcmp.gt.f32.partialorder %v5737_v24, 0.0  ;;  %v5982_v6 = vmul.f32 0.2, %v5737_v24  ;;  %7018 = vmatpush1.bf16.msra.mxu0 %v13486_v58  ;;  %7244 = vmatpush1.bf16.msra.mxu1 %v13489_v55  ;;  %v6042_v50 = vsel %vm5914_vm3, %v5733_v15, %v5978_v14  ;;  %v13518_v15 = vld [vmem:[%s19065_s10 + $0x3a4] ss:$16 sps:$4 sm:$0xff]  }
 0x546   : > { %vm5919_vm9 = vcmp.gt.f32.partialorder %v5739_v62, 0.0  ;;  %v5983_v39 = vmul.f32 0.2, %v5739_v62  ;;  %7019 = vmatprep.subr.bf16.mxu0 %v13494_v38  ;;  %7245 = vmatprep.subr.bf16.mxu1 %v13497_v56  ;;  %v6043_v1 = vsel %vm5915_vm8, %v5735_v5, %v5979_v34  ;;  %v13516_v5 = vld [vmem:[%s19065_s10 + $0x3a0] ss:$16 sps:$4 sm:$0xff]  }
 0x547   : > { %v6046_v63 = vsel %vm5918_vm0, %v5737_v24, %v5982_v6  ;;  %v13519_v56 = vld [vmem:[%s19065_s10 + $0x3a8] ss:$16 sps:$4 sm:$0xff]   ;;  %v19177_v14 = vld [vmem:[#allocation4_spill] sm:$0xff] }
 0x548   : > { %v5742_v28 = vpop.f32.mrb[88].mxu1  ;;  %v6047_v35 = vsel %vm5919_vm9, %v5739_v62, %v5983_v39  ;;  %v6086_v46 = vpack.c.bf16 %v6046_v63, %v6042_v50  ;;  %v17522_v24 = vrot.slane %v17310_v22, %v19177_v14  ;;  %v13527_v62 = vld [vmem:[%s19065_s10 + $0x3cc] ss:$16 sps:$4 sm:$0xff]  }
 0x549   : > { %v5743_v21 = vadd.f32 %v5742_v28, %v17314_v0  ;;  %v5744_v53 = vpop.f32.mrb[89].mxu1  ;;  %7020 = vmatpush1.bf16.msra.mxu0 %v13492_v13  ;;  %7246 = vmatpush1.bf16.msra.mxu1 %v13495_v30  ;;  %v6087_v4 = vpack.c.bf16 %v6047_v35, %v6043_v1  ;;  %v19178_v13 = vld [vmem:[#allocation6_spill] sm:$0xff]  ;;  %v13525_v35 = vld [vmem:[%s19065_s10 + $0x3c8] ss:$16 sps:$4 sm:$0xff]  }
 0x54a   : > { %v5745_v47 = vadd.f32 %v5744_v53, %v17318_v29  ;;  %v5746_v51 = vpop.f32.mrb[90].mxu1  ;;  %7021 = vmatprep.subr.bf16.mxu0 %v13500_v3  ;;  %7247 = vmatprep.subr.bf16.mxu1 %v13503_v32  ;;  %v17529_v34 = vrot.slane %v17310_v22, %v19178_v13  ;;  %v13522_v22 = vld [vmem:[%s19065_s10 + $0x3c0] ss:$16 sps:$4 sm:$0xff]   ;;  %v13530_v53 = vld [vmem:[%s19065_s10 + $0x3e4] ss:$16 sps:$4 sm:$0xff]  }
 0x54b   : > { %v5986_v17 = vmul.f32 0.2, %v5743_v21  ;;  %v5747_v43 = vadd.f32 %v5746_v51, %v17314_v0  ;;  %v5748_v23 = vpop.f32.mrb[91].mxu1  ;;  %6970 = vmatprep.mubr.bf16.mxu0 %v6087_v4  ;;  %7196 = vmatprep.mubr.bf16.mxu1 %v6087_v4  ;;  %vm5922_vm1 = vcmp.gt.f32.partialorder %v5743_v21, 0.0  ;;  %v13533_v4 = vld [vmem:[%s19065_s10 + $0x3ec] ss:$16 sps:$4 sm:$0xff]  }
 0x54c   : > { %v5987_v36 = vmul.f32 0.2, %v5745_v47  ;;  %v5749_v61 = vadd.f32 %v5748_v23, %v17318_v29  ;;  %6971 = vmatmul.mubr.bf16.gmra.mrb[116].mxu0 %v6086_v46  ;;  %7197 = vmatmul.mubr.bf16.gmra.mrb[148].mxu1 %v6086_v46  ;;  %vm5923_vm5 = vcmp.gt.f32.partialorder %v5745_v47, 0.0  ;;  %v13528_v51 = vld [vmem:[%s19065_s10 + $0x3e0] ss:$16 sps:$4 sm:$0xff]  }
 0x54d   : > { %vm5926_vm7 = vcmp.gt.f32.partialorder %v5747_v43, 0.0  ;;  %v5990_v54 = vmul.f32 0.2, %v5747_v43  ;;  %7022 = vmatpush1.bf16.msra.mxu0 %v13498_v59  ;;  %7248 = vmatpush1.bf16.msra.mxu1 %v13501_v20  ;;  %v6050_v33 = vsel %vm5922_vm1, %v5743_v21, %v5986_v17  ;;  %v13531_v17 = vld [vmem:[%s19065_s10 + $0x3e8] ss:$16 sps:$4 sm:$0xff]  }
 0x54e   : > { %vm5927_vm11 = vcmp.gt.f32.partialorder %v5749_v61, 0.0  ;;  %v5991_v48 = vmul.f32 0.2, %v5749_v61  ;;  %7023 = vmatprep.subr.bf16.mxu0 %v13506_v10  ;;  %7249 = vmatprep.subr.bf16.mxu1 %v13509_v19  ;;  %v6051_v27 = vsel %vm5923_vm5, %v5745_v47, %v5987_v36  ;;  %v13536_v23 = vld [vmem:[%s19067_s12 + $0x4] ss:$28 sps:$4 sm:$0xff]  }
 0x54f   : > { %v6054_v16 = vsel %vm5926_vm7, %v5747_v43, %v5990_v54  ;;  %v13539_v36 = vld [vmem:[%s19067_s12 + $0xc] ss:$28 sps:$4 sm:$0xff]  }
 0x550   : > { %v5752_v60 = vpop.f32.mrb[92].mxu1  ;;  %v6055_v9 = vsel %vm5927_vm11, %v5749_v61, %v5991_v48  ;;  %v6090_v2 = vpack.c.bf16 %v6054_v16, %v6050_v33 }
 0x551   : > { %v5753_v18 = vadd.f32 %v5752_v60, %v17314_v0  ;;  %v5754_v45 = vpop.f32.mrb[93].mxu1  ;;  %7024 = vmatpush1.bf16.msra.mxu0 %v13504_v42  ;;  %7250 = vmatpush1.bf16.msra.mxu1 %v13507_v40  ;;  %v6091_v31 = vpack.c.bf16 %v6055_v9, %v6051_v27  ;;  %v13534_v27 = vld [vmem:[%s19067_s12] ss:$28 sps:$4 sm:$0xff]   ;;  %v13537_v9 = vld [vmem:[%s19067_s12 + $0x8] ss:$28 sps:$4 sm:$0xff]  }
 0x552   : > { %v5755_v11 = vadd.f32 %v5754_v45, %v17318_v29  ;;  %v5756_v44 = vpop.f32.mrb[94].mxu1  ;;  %7025 = vmatprep.subr.bf16.mxu0 %v13512_v41  ;;  %7251 = vmatprep.subr.bf16.mxu1 %v13515_v7  ;;  %v13542_v45 = vld [vmem:[%s19067_s12 + $0x3c] ss:$28 sps:$4 sm:$0xff]  }
 0x553   : > { %v5994_v25 = vmul.f32 0.2, %v5753_v18  ;;  %v5757_v58 = vadd.f32 %v5756_v44, %v17314_v0  ;;  %v5758_v55 = vpop.f32.mrb[95].mxu1  ;;  %6980 = vmatprep.mubr.bf16.mxu0 %v6091_v31  ;;  %7206 = vmatprep.mubr.bf16.mxu1 %v6091_v31  ;;  %vm5930_vm13 = vcmp.gt.f32.partialorder %v5753_v18, 0.0  ;;  %v13545_v31 = vld [vmem:[%s19067_s12 + $0x44] ss:$28 sps:$4 sm:$0xff]  }
 0x554   : > { %v5995_v57 = vmul.f32 0.2, %v5755_v11  ;;  %v5759_v38 = vadd.f32 %v5758_v55, %v17318_v29  ;;  %6981 = vmatmul.mubr.bf16.gmra.mrb[120].mxu0 %v6090_v2  ;;  %7207 = vmatmul.mubr.bf16.gmra.mrb[152].mxu1 %v6090_v2  ;;  %vm5931_vm14 = vcmp.gt.f32.partialorder %v5755_v11, 0.0  ;;  %v13540_v44 = vld [vmem:[%s19067_s12 + $0x38] ss:$28 sps:$4 sm:$0xff]  }
 0x555   : > { %vm5934_vm2 = vcmp.gt.f32.partialorder %v5757_v58, 0.0  ;;  %v5998_v0 = vmul.f32 0.2, %v5757_v58  ;;  %7026 = vmatpush1.bf16.msra.mxu0 %v13510_v52  ;;  %7252 = vmatpush1.bf16.msra.mxu1 %v13513_v49  ;;  %v6058_v30 = vsel %vm5930_vm13, %v5753_v18, %v5994_v25  ;;  %v13543_v25 = vld [vmem:[%s19067_s12 + $0x40] ss:$28 sps:$4 sm:$0xff]  }
 0x556   : > { %vm5935_vm4 = vcmp.gt.f32.partialorder %v5759_v38, 0.0  ;;  %v5999_v29 = vmul.f32 0.2, %v5759_v38  ;;  %7027 = vmatprep.subr.bf16.mxu0 %v13518_v15  ;;  %7253 = vmatprep.subr.bf16.mxu1 %v13521_v8  ;;  %v6059_v39 = vsel %vm5931_vm14, %v5755_v11, %v5995_v57  ;;  %v13548_v55 = vld [vmem:[%s19067_s12 + $0x74] ss:$28 sps:$4 sm:$0xff]  }
 0x557   : > { %v6062_v6 = vsel %vm5934_vm2, %v5757_v58, %v5998_v0  ;;  %v13551_v57 = vld [vmem:[%s19067_s12 + $0x7c] ss:$28 sps:$4 sm:$0xff]  }
 0x558   : > { %v5795_v3 = vpop.f32.mrb[96].mxu1  ;;  %v6063_v32 = vsel %vm5935_vm4, %v5759_v38, %v5999_v29  ;;  %v6094_v50 = vpack.c.bf16 %v6062_v6, %v6058_v30 }
 0x559   : > { %v5796_v63 = vadd.f32 %v5795_v3, %v17522_v24  ;;  %v5797_v28 = vpop.f32.mrb[97].mxu1  ;;  %7028 = vmatpush1.bf16.msra.mxu0 %v13516_v5  ;;  %7254 = vmatpush1.bf16.msra.mxu1 %v13519_v56  ;;  %v6095_v1 = vpack.c.bf16 %v6063_v32, %v6059_v39  ;;  %v13546_v39 = vld [vmem:[%s19067_s12 + $0x70] ss:$28 sps:$4 sm:$0xff]   ;;  %v13549_v32 = vld [vmem:[%s19067_s12 + $0x78] ss:$28 sps:$4 sm:$0xff]  }
 0x55a   : > { %v5798_v46 = vadd.f32 %v5797_v28, %v17529_v34  ;;  %v5799_v21 = vpop.f32.mrb[98].mxu1  ;;  %7029 = vmatprep.subr.bf16.mxu0 %v13524_v12  ;;  %7255 = vmatprep.subr.bf16.mxu1 %v13527_v62  ;;  %v13554_v28 = vld [vmem:[%s19067_s12 + $0xac] ss:$28 sps:$4 sm:$0xff]  }
 0x55b   : > { %v5940_v59 = vmul.f32 0.2, %v5796_v63  ;;  %v5800_v20 = vadd.f32 %v5799_v21, %v17522_v24  ;;  %v5801_v47 = vpop.f32.mrb[99].mxu1  ;;  %6990 = vmatprep.mubr.bf16.mxu0 %v6095_v1  ;;  %7216 = vmatprep.mubr.bf16.mxu1 %v6095_v1  ;;  %vm5876_vm12 = vcmp.gt.f32.partialorder %v5796_v63, 0.0  ;;  %v13557_v1 = vld [vmem:[%s19067_s12 + $0xb4] ss:$28 sps:$4 sm:$0xff]  }
 0x55c   : > { %v5941_v10 = vmul.f32 0.2, %v5798_v46  ;;  %v5802_v19 = vadd.f32 %v5801_v47, %v17529_v34  ;;  %6991 = vmatmul.mubr.bf16.gmra.mrb[124].mxu0 %v6094_v50  ;;  %7217 = vmatmul.mubr.bf16.gmra.mrb[156].mxu1 %v6094_v50  ;;  %vm5877_vm10 = vcmp.gt.f32.partialorder %v5798_v46, 0.0  ;;  %v13552_v21 = vld [vmem:[%s19067_s12 + $0xa8] ss:$28 sps:$4 sm:$0xff]  }
 0x55d   : > { %vm5880_vm6 = vcmp.gt.f32.partialorder %v5800_v20, 0.0  ;;  %v5944_v43 = vmul.f32 0.2, %v5800_v20  ;;  %7030 = vmatpush1.bf16.msra.mxu0 %v13522_v22  ;;  %7256 = vmatpush1.bf16.msra.mxu1 %v13525_v35  ;;  %v6004_v61 = vsel %vm5876_vm12, %v5796_v63, %v5940_v59  ;;  %v13555_v59 = vld [vmem:[%s19067_s12 + $0xb0] ss:$28 sps:$4 sm:$0xff]  }
 0x55e   : > { %vm5881_vm15 = vcmp.gt.f32.partialorder %v5802_v19, 0.0  ;;  %v5945_v42 = vmul.f32 0.2, %v5802_v19  ;;  %7031 = vmatprep.subr.bf16.mxu0 %v13530_v53  ;;  %7257 = vmatprep.subr.bf16.mxu1 %v13533_v4  ;;  %v6005_v48 = vsel %vm5877_vm10, %v5798_v46, %v5941_v10  ;;  %v13560_v47 = vld [vmem:[%s19067_s12 + $0xe4] ss:$28 sps:$4 sm:$0xff]  }
 0x55f   : > { %v6008_v40 = vsel %vm5880_vm6, %v5800_v20, %v5944_v43  ;;  %v13563_v10 = vld [vmem:[%s19067_s12 + $0xec] ss:$28 sps:$4 sm:$0xff]  }
 0x560   : > { %v6068_v54 = vpack.c.bf16 %v6008_v40, %v6004_v61  ;;  %v5805_v41 = vpop.f32.mrb[100].mxu1  ;;  %v6009_v7 = vsel %vm5881_vm15, %v5802_v19, %v5945_v42 }
 0x561   : > { %v5806_v33 = vadd.f32 %v5805_v41, %v17522_v24  ;;  %v5807_v16 = vpop.f32.mrb[101].mxu1  ;;  %7032 = vmatpush1.bf16.msra.mxu0 %v13528_v51  ;;  %7258 = vmatpush1.bf16.msra.mxu1 %v13531_v17  ;;  %v6069_v60 = vpack.c.bf16 %v6009_v7, %v6005_v48  ;;  %v13558_v41 = vld [vmem:[%s19067_s12 + $0xe0] ss:$28 sps:$4 sm:$0xff]   ;;  %v13561_v48 = vld [vmem:[%s19067_s12 + $0xe8] ss:$28 sps:$4 sm:$0xff]  }
 0x562   : > { %v5808_v2 = vadd.f32 %v5807_v16, %v17529_v34  ;;  %v5809_v18 = vpop.f32.mrb[102].mxu1  ;;  %9009 = vmatprep.subr.bf16.mxu0 %v13536_v23  ;;  %9235 = vmatprep.subr.bf16.mxu1 %v13539_v36  ;;  %v13566_v16 = vld [vmem:[%s19067_s12 + $0x11c] ss:$28 sps:$4 sm:$0xff]  }
 0x563   : > { %v5948_v52 = vmul.f32 0.2, %v5806_v33  ;;  %v5810_v49 = vadd.f32 %v5809_v18, %v17522_v24  ;;  %v5811_v11 = vpop.f32.mrb[103].mxu1  ;;  %7033 = vmatprep.mubr.bf16.mxu0 %v6069_v60  ;;  %7259 = vmatprep.mubr.bf16.mxu1 %v6069_v60  ;;  %vm5884_vm3 = vcmp.gt.f32.partialorder %v5806_v33, 0.0  ;;  %v13569_v60 = vld [vmem:[%s19067_s12 + $0x124] ss:$28 sps:$4 sm:$0xff]  }
 0x564   : > { %v5949_v15 = vmul.f32 0.2, %v5808_v2  ;;  %v5812_v8 = vadd.f32 %v5811_v11, %v17529_v34  ;;  %7034 = vmatmul.mubr.bf16.vlgmr.msra.gmra.mrb[96].mxu0 %v6068_v54  ;;  %7260 = vmatmul.mubr.bf16.vlgmr.msra.gmra.mrb[128].mxu1 %v6068_v54  ;;  %vm5885_vm8 = vcmp.gt.f32.partialorder %v5808_v2, 0.0  ;;  %v13564_v18 = vld [vmem:[%s19067_s12 + $0x118] ss:$28 sps:$4 sm:$0xff]  }
 0x565   : > { %vm5888_vm0 = vcmp.gt.f32.partialorder %v5810_v49, 0.0  ;;  %v5952_v58 = vmul.f32 0.2, %v5810_v49  ;;  %9010 = vmatpush1.bf16.msra.mxu0 %v13534_v27  ;;  %9236 = vmatpush1.bf16.msra.mxu1 %v13537_v9  ;;  %v6012_v38 = vsel %vm5884_vm3, %v5806_v33, %v5948_v52  ;;  %v13567_v52 = vld [vmem:[%s19067_s12 + $0x120] ss:$28 sps:$4 sm:$0xff]  }
 0x566   : > { %vm5889_vm9 = vcmp.gt.f32.partialorder %v5812_v8, 0.0  ;;  %v5953_v5 = vmul.f32 0.2, %v5812_v8  ;;  %9011 = vmatprep.subr.bf16.mxu0 %v13542_v45  ;;  %9237 = vmatprep.subr.bf16.mxu1 %v13545_v31  ;;  %v6013_v12 = vsel %vm5885_vm8, %v5808_v2, %v5949_v15  ;;  %v13572_v11 = vld [vmem:[%s19067_s12 + $0x154] ss:$28 sps:$4 sm:$0xff]  }
 0x567   : > { %v6016_v56 = vsel %vm5888_vm0, %v5810_v49, %v5952_v58  ;;  %v13575_v15 = vld [vmem:[%s19067_s12 + $0x15c] ss:$28 sps:$4 sm:$0xff]  }
 0x568   : > { %v5815_v0 = vpop.f32.mrb[104].mxu1  ;;  %v6017_v29 = vsel %vm5889_vm9, %v5812_v8, %v5953_v5  ;;  %v6072_v62 = vpack.c.bf16 %v6016_v56, %v6012_v38 }
 0x569   : > { %v5816_v30 = vadd.f32 %v5815_v0, %v17522_v24  ;;  %v5817_v6 = vpop.f32.mrb[105].mxu1  ;;  %v6073_v3 = vpack.c.bf16 %v6017_v29, %v6013_v12  ;;  %9012 = vmatpush1.bf16.msra.mxu0 %v13540_v44  ;;  %9238 = vmatpush1.bf16.msra.mxu1 %v13543_v25  ;;  %v13570_v12 = vld [vmem:[%s19067_s12 + $0x150] ss:$28 sps:$4 sm:$0xff]   ;;  %v13573_v29 = vld [vmem:[%s19067_s12 + $0x158] ss:$28 sps:$4 sm:$0xff]  }
 0x56a   : > { %v5818_v50 = vadd.f32 %v5817_v6, %v17529_v34  ;;  %v5819_v63 = vpop.f32.mrb[106].mxu1  ;;  %9013 = vmatprep.subr.bf16.mxu0 %v13548_v55  ;;  %9239 = vmatprep.subr.bf16.mxu1 %v13551_v57  ;;  %v13578_v6 = vld [vmem:[%s19067_s12 + $0x18c] ss:$28 sps:$4 sm:$0xff]  }
 0x56b   : > { %v5956_v22 = vmul.f32 0.2, %v5816_v30  ;;  %v5820_v35 = vadd.f32 %v5819_v63, %v17522_v24  ;;  %v5821_v46 = vpop.f32.mrb[107].mxu1  ;;  %7043 = vmatprep.mubr.bf16.mxu0 %v6073_v3  ;;  %7269 = vmatprep.mubr.bf16.mxu1 %v6073_v3  ;;  %vm5892_vm1 = vcmp.gt.f32.partialorder %v5816_v30, 0.0  ;;  %v13581_v3 = vld [vmem:[%s19067_s12 + $0x194] ss:$28 sps:$4 sm:$0xff]  }
 0x56c   : > { %v5957_v53 = vmul.f32 0.2, %v5818_v50  ;;  %v5822_v4 = vadd.f32 %v5821_v46, %v17529_v34  ;;  %7044 = vmatmul.mubr.bf16.gmra.mrb[100].mxu0 %v6072_v62  ;;  %7270 = vmatmul.mubr.bf16.gmra.mrb[132].mxu1 %v6072_v62  ;;  %vm5893_vm5 = vcmp.gt.f32.partialorder %v5818_v50, 0.0  ;;  %v13576_v63 = vld [vmem:[%s19067_s12 + $0x188] ss:$28 sps:$4 sm:$0xff]  }
 0x56d   : > { %vm5896_vm7 = vcmp.gt.f32.partialorder %v5820_v35, 0.0  ;;  %v5960_v20 = vmul.f32 0.2, %v5820_v35  ;;  %9014 = vmatpush1.bf16.msra.mxu0 %v13546_v39  ;;  %9240 = vmatpush1.bf16.msra.mxu1 %v13549_v32  ;;  %v6020_v19 = vsel %vm5892_vm1, %v5816_v30, %v5956_v22  ;;  %v13579_v22 = vld [vmem:[%s19067_s12 + $0x190] ss:$28 sps:$4 sm:$0xff]  }
 0x56e   : > { %vm5897_vm11 = vcmp.gt.f32.partialorder %v5822_v4, 0.0  ;;  %v5961_v51 = vmul.f32 0.2, %v5822_v4  ;;  %9015 = vmatprep.subr.bf16.mxu0 %v13554_v28  ;;  %9241 = vmatprep.subr.bf16.mxu1 %v13557_v1  ;;  %v6021_v23 = vsel %vm5893_vm5, %v5818_v50, %v5957_v53  ;;  %v13584_v46 = vld [vmem:[%s19067_s12 + $0x1c4] ss:$28 sps:$4 sm:$0xff]  }
 0x56f   : > { %v6024_v17 = vsel %vm5896_vm7, %v5820_v35, %v5960_v20  ;;  %v13587_v53 = vld [vmem:[%s19067_s12 + $0x1cc] ss:$28 sps:$4 sm:$0xff]  }
 0x570   : > { %v5825_v43 = vpop.f32.mrb[108].mxu1  ;;  %v6025_v42 = vsel %vm5897_vm11, %v5822_v4, %v5961_v51  ;;  %v6076_v36 = vpack.c.bf16 %v6024_v17, %v6020_v19 }
 0x571   : > { %v5826_v61 = vadd.f32 %v5825_v43, %v17522_v24  ;;  %v5827_v40 = vpop.f32.mrb[109].mxu1  ;;  %v6077_v54 = vpack.c.bf16 %v6025_v42, %v6021_v23  ;;  %9016 = vmatpush1.bf16.msra.mxu0 %v13552_v21  ;;  %9242 = vmatpush1.bf16.msra.mxu1 %v13555_v59  ;;  %v13582_v23 = vld [vmem:[%s19067_s12 + $0x1c0] ss:$28 sps:$4 sm:$0xff]   ;;  %v13585_v42 = vld [vmem:[%s19067_s12 + $0x1c8] ss:$28 sps:$4 sm:$0xff]  }
 0x572   : > { %v5828_v7 = vadd.f32 %v5827_v40, %v17529_v34  ;;  %v5829_v33 = vpop.f32.mrb[110].mxu1  ;;  %9017 = vmatprep.subr.bf16.mxu0 %v13560_v47  ;;  %9243 = vmatprep.subr.bf16.mxu1 %v13563_v10  ;;  %v13590_v40 = vld [vmem:[%s19067_s12 + $0x1fc] ss:$28 sps:$4 sm:$0xff]  }
 0x573   : > { %v5964_v27 = vmul.f32 0.2, %v5826_v61  ;;  %v5830_v9 = vadd.f32 %v5829_v33, %v17522_v24  ;;  %v5831_v2 = vpop.f32.mrb[111].mxu1  ;;  %7053 = vmatprep.mubr.bf16.mxu0 %v6077_v54  ;;  %7279 = vmatprep.mubr.bf16.mxu1 %v6077_v54  ;;  %vm5900_vm13 = vcmp.gt.f32.partialorder %v5826_v61, 0.0  ;;  %v13593_v54 = vld [vmem:[%s19067_s12 + $0x204] ss:$28 sps:$4 sm:$0xff]  }
 0x574   : > { %v5965_v45 = vmul.f32 0.2, %v5828_v7  ;;  %v5832_v31 = vadd.f32 %v5831_v2, %v17529_v34  ;;  %7054 = vmatmul.mubr.bf16.gmra.mrb[104].mxu0 %v6076_v36  ;;  %7280 = vmatmul.mubr.bf16.gmra.mrb[136].mxu1 %v6076_v36  ;;  %vm5901_vm14 = vcmp.gt.f32.partialorder %v5828_v7, 0.0  ;;  %v13588_v33 = vld [vmem:[%s19067_s12 + $0x1f8] ss:$28 sps:$4 sm:$0xff]  }
 0x575   : > { %vm5904_vm2 = vcmp.gt.f32.partialorder %v5830_v9, 0.0  ;;  %v5968_v49 = vmul.f32 0.2, %v5830_v9  ;;  %9018 = vmatpush1.bf16.msra.mxu0 %v13558_v41  ;;  %9244 = vmatpush1.bf16.msra.mxu1 %v13561_v48  ;;  %v6028_v8 = vsel %vm5900_vm13, %v5826_v61, %v5964_v27  ;;  %v13591_v27 = vld [vmem:[%s19067_s12 + $0x200] ss:$28 sps:$4 sm:$0xff]  }
 0x576   : > { %vm5905_vm4 = vcmp.gt.f32.partialorder %v5832_v31, 0.0  ;;  %v5969_v44 = vmul.f32 0.2, %v5832_v31  ;;  %9019 = vmatprep.subr.bf16.mxu0 %v13566_v16  ;;  %9245 = vmatprep.subr.bf16.mxu1 %v13569_v60  ;;  %v6029_v55 = vsel %vm5901_vm14, %v5828_v7, %v5965_v45  ;;  %v13596_v2 = vld [vmem:[%s19067_s12 + $0x234] ss:$28 sps:$4 sm:$0xff]  }
 0x577   : > { %v6032_v25 = vsel %vm5904_vm2, %v5830_v9, %v5968_v49  ;;  %v13599_v45 = vld [vmem:[%s19067_s12 + $0x23c] ss:$28 sps:$4 sm:$0xff]  }
 0x578   : > { %v5835_v58 = vpop.f32.mrb[112].mxu1  ;;  %v6033_v5 = vsel %vm5905_vm4, %v5832_v31, %v5969_v44  ;;  %v6080_v57 = vpack.c.bf16 %v6032_v25, %v6028_v8 }
 0x579   : > { %v5836_v38 = vadd.f32 %v5835_v58, %v17522_v24  ;;  %v5837_v56 = vpop.f32.mrb[113].mxu1  ;;  %v6081_v0 = vpack.c.bf16 %v6033_v5, %v6029_v55  ;;  %9020 = vmatpush1.bf16.msra.mxu0 %v13564_v18  ;;  %9246 = vmatpush1.bf16.msra.mxu1 %v13567_v52  ;;  %v13594_v55 = vld [vmem:[%s19067_s12 + $0x230] ss:$28 sps:$4 sm:$0xff]   ;;  %v13597_v5 = vld [vmem:[%s19067_s12 + $0x238] ss:$28 sps:$4 sm:$0xff]  }
 0x57a   : > { %v5838_v62 = vadd.f32 %v5837_v56, %v17529_v34  ;;  %v5839_v30 = vpop.f32.mrb[114].mxu1  ;;  %9021 = vmatprep.subr.bf16.mxu0 %v13572_v11  ;;  %9247 = vmatprep.subr.bf16.mxu1 %v13575_v15  ;;  %v13602_v56 = vld [vmem:[%s19067_s12 + $0x26c] ss:$28 sps:$4 sm:$0xff]  }
 0x57b   : > { %v5972_v39 = vmul.f32 0.2, %v5836_v38  ;;  %v5840_v32 = vadd.f32 %v5839_v30, %v17522_v24  ;;  %v5841_v50 = vpop.f32.mrb[115].mxu1  ;;  %7063 = vmatprep.mubr.bf16.mxu0 %v6081_v0  ;;  %7289 = vmatprep.mubr.bf16.mxu1 %v6081_v0  ;;  %vm5908_vm12 = vcmp.gt.f32.partialorder %v5836_v38, 0.0  ;;  %v13605_v0 = vld [vmem:[%s19067_s12 + $0x274] ss:$28 sps:$4 sm:$0xff]  }
 0x57c   : > { %v5973_v28 = vmul.f32 0.2, %v5838_v62  ;;  %v5842_v1 = vadd.f32 %v5841_v50, %v17529_v34  ;;  %7064 = vmatmul.mubr.bf16.gmra.mrb[108].mxu0 %v6080_v57  ;;  %7290 = vmatmul.mubr.bf16.gmra.mrb[140].mxu1 %v6080_v57  ;;  %vm5909_vm10 = vcmp.gt.f32.partialorder %v5838_v62, 0.0  ;;  %v13600_v30 = vld [vmem:[%s19067_s12 + $0x268] ss:$28 sps:$4 sm:$0xff]  }
 0x57d   : > { %vm5912_vm6 = vcmp.gt.f32.partialorder %v5840_v32, 0.0  ;;  %v5976_v35 = vmul.f32 0.2, %v5840_v32  ;;  %9022 = vmatpush1.bf16.msra.mxu0 %v13570_v12  ;;  %9248 = vmatpush1.bf16.msra.mxu1 %v13573_v29  ;;  %v6036_v4 = vsel %vm5908_vm12, %v5836_v38, %v5972_v39  ;;  %v13603_v39 = vld [vmem:[%s19067_s12 + $0x270] ss:$28 sps:$4 sm:$0xff]  }
 0x57e   : > { %vm5913_vm15 = vcmp.gt.f32.partialorder %v5842_v1, 0.0  ;;  %v5977_v21 = vmul.f32 0.2, %v5842_v1  ;;  %9023 = vmatprep.subr.bf16.mxu0 %v13578_v6  ;;  %9249 = vmatprep.subr.bf16.mxu1 %v13581_v3  ;;  %v6037_v47 = vsel %vm5909_vm10, %v5838_v62, %v5973_v28  ;;  %v13608_v50 = vld [vmem:[%s19067_s12 + $0x2a4] ss:$28 sps:$4 sm:$0xff]  }
 0x57f   : > { %v6040_v59 = vsel %vm5912_vm6, %v5840_v32, %v5976_v35  ;;  %v13611_v28 = vld [vmem:[%s19067_s12 + $0x2ac] ss:$28 sps:$4 sm:$0xff]  }
 0x580   : > { %v5845_v20 = vpop.f32.mrb[116].mxu1  ;;  %v6041_v51 = vsel %vm5913_vm15, %v5842_v1, %v5977_v21  ;;  %v6084_v10 = vpack.c.bf16 %v6040_v59, %v6036_v4 }
 0x581   : > { %v5846_v19 = vadd.f32 %v5845_v20, %v17522_v24  ;;  %v5847_v17 = vpop.f32.mrb[117].mxu1  ;;  %v6085_v43 = vpack.c.bf16 %v6041_v51, %v6037_v47  ;;  %9024 = vmatpush1.bf16.msra.mxu0 %v13576_v63  ;;  %9250 = vmatpush1.bf16.msra.mxu1 %v13579_v22  ;;  %v13606_v47 = vld [vmem:[%s19067_s12 + $0x2a0] ss:$28 sps:$4 sm:$0xff]   ;;  %v13609_v51 = vld [vmem:[%s19067_s12 + $0x2a8] ss:$28 sps:$4 sm:$0xff]  }
 0x582   : > { %v5848_v36 = vadd.f32 %v5847_v17, %v17529_v34  ;;  %v5849_v61 = vpop.f32.mrb[118].mxu1  ;;  %9025 = vmatprep.subr.bf16.mxu0 %v13584_v46  ;;  %9251 = vmatprep.subr.bf16.mxu1 %v13587_v53 }
 0x583   : > { %v5980_v41 = vmul.f32 0.2, %v5846_v19  ;;  %v5850_v48 = vadd.f32 %v5849_v61, %v17522_v24  ;;  %v5851_v7 = vpop.f32.mrb[119].mxu1  ;;  %7073 = vmatprep.mubr.bf16.mxu0 %v6085_v43  ;;  %7299 = vmatprep.mubr.bf16.mxu1 %v6085_v43  ;;  %vm5916_vm3 = vcmp.gt.f32.partialorder %v5846_v19, 0.0 }
 0x584   : > { %v5981_v16 = vmul.f32 0.2, %v5848_v36  ;;  %v5852_v60 = vadd.f32 %v5851_v7, %v17529_v34  ;;  %7074 = vmatmul.mubr.bf16.gmra.mrb[112].mxu0 %v6084_v10  ;;  %7300 = vmatmul.mubr.bf16.gmra.mrb[144].mxu1 %v6084_v10  ;;  %vm5917_vm8 = vcmp.gt.f32.partialorder %v5848_v36, 0.0 }
 0x585   : > { %vm5920_vm0 = vcmp.gt.f32.partialorder %v5850_v48, 0.0  ;;  %v5984_v9 = vmul.f32 0.2, %v5850_v48  ;;  %9026 = vmatpush1.bf16.msra.mxu0 %v13582_v23  ;;  %9252 = vmatpush1.bf16.msra.mxu1 %v13585_v42  ;;  %v6044_v31 = vsel %vm5916_vm3, %v5846_v19, %v5980_v41 }
 0x586   : > { %vm5921_vm9 = vcmp.gt.f32.partialorder %v5852_v60, 0.0  ;;  %v5985_v18 = vmul.f32 0.2, %v5852_v60  ;;  %9027 = vmatprep.subr.bf16.mxu0 %v13590_v40  ;;  %9253 = vmatprep.subr.bf16.mxu1 %v13593_v54  ;;  %v6045_v11 = vsel %vm5917_vm8, %v5848_v36, %v5981_v16  ;;  %v13614_v16 = vld [vmem:[%s19067_s12 + $0x2dc] ss:$28 sps:$4 sm:$0xff]  }
 0x587   : > { %v6048_v52 = vsel %vm5920_vm0, %v5850_v48, %v5984_v9  ;;  %v13618_v9 = vld [vmem:[%s19067_s12 + $0x310] ss:$28 sps:$4 sm:$0xff]  }
 0x588   : > { %v5855_v49 = vpop.f32.mrb[120].mxu1  ;;  %v6049_v44 = vsel %vm5921_vm9, %v5852_v60, %v5985_v18  ;;  %v6088_v15 = vpack.c.bf16 %v6048_v52, %v6044_v31  ;;  %v13615_v60 = vld [vmem:[%s19067_s12 + $0x2e0] ss:$28 sps:$4 sm:$0xff]   ;;  %v13621_v18 = vld [vmem:[%s19067_s12 + $0x318] ss:$28 sps:$4 sm:$0xff]  }
 0x589   : > { %v5856_v8 = vadd.f32 %v5855_v49, %v17522_v24  ;;  %v5857_v25 = vpop.f32.mrb[121].mxu1  ;;  %v6089_v58 = vpack.c.bf16 %v6049_v44, %v6045_v11  ;;  %9028 = vmatpush1.bf16.msra.mxu0 %v13588_v33  ;;  %9254 = vmatpush1.bf16.msra.mxu1 %v13591_v27  ;;  %v13617_v27 = vld [vmem:[%s19067_s12 + $0x2e4] ss:$28 sps:$4 sm:$0xff]   ;;  %v13626_v52 = vld [vmem:[%s19067_s12 + $0x34c] ss:$28 sps:$4 sm:$0xff]  }
 0x58a   : > { %v5858_v57 = vadd.f32 %v5857_v25, %v17529_v34  ;;  %v5859_v38 = vpop.f32.mrb[122].mxu1  ;;  %9029 = vmatprep.subr.bf16.mxu0 %v13596_v2  ;;  %9255 = vmatprep.subr.bf16.mxu1 %v13599_v45  ;;  %v13620_v2 = vld [vmem:[%s19067_s12 + $0x314] ss:$28 sps:$4 sm:$0xff]   ;;  %v13623_v45 = vld [vmem:[%s19067_s12 + $0x31c] ss:$28 sps:$4 sm:$0xff]  }
 0x58b   : > { %v5988_v12 = vmul.f32 0.2, %v5856_v8  ;;  %v5860_v29 = vadd.f32 %v5859_v38, %v17522_v24  ;;  %v5861_v62 = vpop.f32.mrb[123].mxu1  ;;  %7083 = vmatprep.mubr.bf16.mxu0 %v6089_v58  ;;  %7309 = vmatprep.mubr.bf16.mxu1 %v6089_v58  ;;  %vm5924_vm1 = vcmp.gt.f32.partialorder %v5856_v8, 0.0  ;;  %v13624_v31 = vld [vmem:[%s19067_s12 + $0x348] ss:$28 sps:$4 sm:$0xff]  }
 0x58c   : > { %v5989_v6 = vmul.f32 0.2, %v5858_v57  ;;  %v5862_v3 = vadd.f32 %v5861_v62, %v17529_v34  ;;  %7084 = vmatmul.mubr.bf16.gmra.mrb[116].mxu0 %v6088_v15  ;;  %7310 = vmatmul.mubr.bf16.gmra.mrb[148].mxu1 %v6088_v15  ;;  %vm5925_vm5 = vcmp.gt.f32.partialorder %v5858_v57, 0.0  ;;  %v13627_v49 = vld [vmem:[%s19067_s12 + $0x350] ss:$28 sps:$4 sm:$0xff]  }
 0x58d   : > { %vm5928_vm7 = vcmp.gt.f32.partialorder %v5860_v29, 0.0  ;;  %v5992_v32 = vmul.f32 0.2, %v5860_v29  ;;  %9030 = vmatpush1.bf16.msra.mxu0 %v13594_v55  ;;  %9256 = vmatpush1.bf16.msra.mxu1 %v13597_v5  ;;  %v6052_v1 = vsel %vm5924_vm1, %v5856_v8, %v5988_v12  ;;  %v13629_v11 = vld [vmem:[%s19067_s12 + $0x354] ss:$28 sps:$4 sm:$0xff]  }
 0x58e   : > { %vm5929_vm11 = vcmp.gt.f32.partialorder %v5862_v3, 0.0  ;;  %v5993_v63 = vmul.f32 0.2, %v5862_v3  ;;  %9031 = vmatprep.subr.bf16.mxu0 %v13602_v56  ;;  %9257 = vmatprep.subr.bf16.mxu1 %v13605_v0  ;;  %v6053_v46 = vsel %vm5925_vm5, %v5858_v57, %v5989_v6  ;;  %v13632_v44 = vld [vmem:[%s19067_s12 + $0x384] ss:$28 sps:$4 sm:$0xff]  }
 0x58f   : > { %v6056_v22 = vsel %vm5928_vm7, %v5860_v29, %v5992_v32  ;;  %v13635_v15 = vld [vmem:[%s19067_s12 + $0x38c] ss:$28 sps:$4 sm:$0xff]   ;;  %v6226_v8 = vld [vmem:[%s19066_s11] sm:$0xf] }
 0x590   : > { %v5865_v35 = vpop.f32.mrb[124].mxu1  ;;  %v6057_v21 = vsel %vm5929_vm11, %v5862_v3, %v5993_v63  ;;  %v6092_v53 = vpack.c.bf16 %v6056_v22, %v6052_v1  ;;  %v17795_v25 = vrot.slane %v6226_v8, %v19174_v37  ;;  %v17798_v58 = vrot.slane %v6226_v8, %v19177_v14 }
 0x591   : > { %v5866_v4 = vadd.f32 %v5865_v35, %v17522_v24  ;;  %v5867_v59 = vpop.f32.mrb[125].mxu1  ;;  %v6093_v20 = vpack.c.bf16 %v6057_v21, %v6053_v46  ;;  %9032 = vmatpush1.bf16.msra.mxu0 %v13600_v30  ;;  %9258 = vmatpush1.bf16.msra.mxu1 %v13603_v39  ;;  %v17801_v55 = vrot.slane %v6226_v8, %v19175_v26 }
 0x592   : > { %v5868_v10 = vadd.f32 %v5867_v59, %v17529_v34  ;;  %v5869_v19 = vpop.f32.mrb[126].mxu1  ;;  %9033 = vmatprep.subr.bf16.mxu0 %v13608_v50  ;;  %9259 = vmatprep.subr.bf16.mxu1 %v13611_v28  ;;  %v17804_v5 = vrot.slane %v6226_v8, %v19178_v13 }
 0x593   : > { %v5996_v17 = vmul.f32 0.2, %v5866_v4  ;;  %v5870_v43 = vadd.f32 %v5869_v19, %v17522_v24  ;;  %v5871_v23 = vpop.f32.mrb[127].mxu1  ;;  %7093 = vmatprep.mubr.bf16.mxu0 %v6093_v20  ;;  %7319 = vmatprep.mubr.bf16.mxu1 %v6093_v20  ;;  %vm5932_vm13 = vcmp.gt.f32.partialorder %v5866_v4, 0.0 }
 0x594   : > { %v5997_v42 = vmul.f32 0.2, %v5868_v10  ;;  %v5872_v36 = vadd.f32 %v5871_v23, %v17529_v34  ;;  %7094 = vmatmul.mubr.bf16.gmra.mrb[120].mxu0 %v6092_v53  ;;  %7320 = vmatmul.mubr.bf16.gmra.mrb[152].mxu1 %v6092_v53  ;;  %vm5933_vm14 = vcmp.gt.f32.partialorder %v5868_v10, 0.0  ;;  %v13612_v34 = vld [vmem:[%s19067_s12 + $0x2d8] ss:$28 sps:$4 sm:$0xff]  }
 0x595   : > { %vm5936_vm2 = vcmp.gt.f32.partialorder %v5870_v43, 0.0  ;;  %v6000_v61 = vmul.f32 0.2, %v5870_v43  ;;  %9034 = vmatpush1.bf16.msra.mxu0 %v13606_v47  ;;  %9260 = vmatpush1.bf16.msra.mxu1 %v13609_v51  ;;  %v6060_v54 = vsel %vm5932_vm13, %v5866_v4, %v5996_v17 }
 0x596   : > { %vm5937_vm4 = vcmp.gt.f32.partialorder %v5872_v36, 0.0  ;;  %v6001_v40 = vmul.f32 0.2, %v5872_v36  ;;  %v6061_v48 = vsel %vm5933_vm14, %v5868_v10, %v5997_v42  ;;  %9035 = vmatprep.subr.bf16.mxu0 %v13614_v16  ;;  %9261 = vmatprep.subr.bf16.mxu1 %v13617_v27  ;;  %v13630_v27 = vld [vmem:[%s19067_s12 + $0x380] ss:$28 sps:$4 sm:$0xff]  }
 0x597   : > { %v6064_v41 = vsel %vm5936_vm2, %v5870_v43, %v6000_v61 }
 0x598   : > { %v6065_v24 = vsel %vm5937_vm4, %v5872_v36, %v6001_v40  ;;  %v6096_v7 = vpack.c.bf16 %v6064_v41, %v6060_v54 }
 0x599   : > { %v6097_v33 = vpack.c.bf16 %v6065_v24, %v6061_v48  ;;  %9036 = vmatpush1.bf16.msra.mxu0 %v13612_v34  ;;  %9262 = vmatpush1.bf16.msra.mxu1 %v13615_v60 }
 0x59a   : > { %9037 = vmatprep.subr.bf16.mxu0 %v13620_v2  ;;  %9263 = vmatprep.subr.bf16.mxu1 %v13623_v45 }
 0x59b   : > { %7103 = vmatprep.mubr.bf16.mxu0 %v6097_v33  ;;  %7329 = vmatprep.mubr.bf16.mxu1 %v6097_v33 }
 0x59c   : > { %7104 = vmatmul.mubr.bf16.gmra.mrb[124].mxu0 %v6096_v7  ;;  %7330 = vmatmul.mubr.bf16.gmra.mrb[156].mxu1 %v6096_v7 }
 0x59d   : > { %9038 = vmatpush1.bf16.msra.mxu0 %v13618_v9  ;;  %9264 = vmatpush1.bf16.msra.mxu1 %v13621_v18  ;;  %v13633_v9 = vld [vmem:[%s19067_s12 + $0x388] ss:$28 sps:$4 sm:$0xff]  }
 0x59e   : > { %9039 = vmatprep.subr.bf16.mxu0 %v13626_v52  ;;  %9265 = vmatprep.subr.bf16.mxu1 %v13629_v11  ;;  %v13638_v11 = vld [vmem:[%s19067_s12 + $0x3bc] ss:$28 sps:$4 sm:$0xff]  }
 0x5a1   : > { %9040 = vmatpush1.bf16.msra.mxu0 %v13624_v31  ;;  %9266 = vmatpush1.bf16.msra.mxu1 %v13627_v49 }
 0x5a2   : > { %9122 = vmatprep.subr.bf16.mxu0 %v13632_v44  ;;  %9348 = vmatprep.subr.bf16.mxu1 %v13635_v15  ;;  %v13641_v44 = vld [vmem:[%s19067_s12 + $0x3c4] ss:$28 sps:$4 sm:$0xff]  }
 0x637   : > { %v7035_v57 = vpop.f32.mrb[96].mxu0  ;;  %v7261_v38 = vpop.f32.mrb[128].mxu1 }
 0x638   : > { %v12052_v56 = vadd.f32 %v7035_v57, %v17795_v25  ;;  %v12084_v0 = vadd.f32 %v7261_v38, %v17798_v58  ;;  %v7037_v12 = vpop.f32.mrb[97].mxu0  ;;  %v7263_v29 = vpop.f32.mrb[129].mxu1  ;;  %v13636_v57 = vld [vmem:[%s19067_s12 + $0x3b8] ss:$28 sps:$4 sm:$0xff]   ;;  %v13639_v38 = vld [vmem:[%s19067_s12 + $0x3c0] ss:$28 sps:$4 sm:$0xff]  }
 0x639   : > { %v12053_v62 = vadd.f32 %v7037_v12, %v17801_v55  ;;  %v12085_v30 = vadd.f32 %v7263_v29, %v17804_v5  ;;  %v7039_v6 = vpop.f32.mrb[98].mxu0  ;;  %v7265_v3 = vpop.f32.mrb[130].mxu1  ;;  %v13644_v12 = vld [vmem:[%s19067_s12 + $0x3f4] ss:$28 sps:$4 sm:$0xff]  }
 0x63a   : > { %vm7340_vm12 = vcmp.gt.f32.partialorder %v12052_v56, 0.0  ;;  %v7404_v39 = vmul.f32 0.2, %v12052_v56  ;;  %vm7342_vm10 = vcmp.gt.f32.partialorder %v12084_v0, 0.0  ;;  %v7406_v32 = vmul.f32 0.2, %v12084_v0 }
 0x63b   : > { %vm7341_vm6 = vcmp.gt.f32.partialorder %v12053_v62, 0.0  ;;  %v7405_v50 = vmul.f32 0.2, %v12053_v62  ;;  %vm7343_vm15 = vcmp.gt.f32.partialorder %v12085_v30, 0.0  ;;  %v7407_v63 = vmul.f32 0.2, %v12085_v30 }
 0x63c   : > { %v12054_v28 = vadd.f32 %v7039_v6, %v17795_v25  ;;  %v12086_v1 = vadd.f32 %v7265_v3, %v17798_v58  ;;  %v7041_v22 = vpop.f32.mrb[99].mxu0  ;;  %v7267_v35 = vpop.f32.mrb[131].mxu1  ;;  %v7468_v46 = vsel %vm7340_vm12, %v12052_v56, %v7404_v39  ;;  %v7470_v21 = vsel %vm7342_vm10, %v12084_v0, %v7406_v32  ;;  %v13647_v6 = vld [vmem:[%s19067_s12 + $0x3fc] ss:$28 sps:$4 sm:$0xff]  }
 0x63d   : > { %v12055_v53 = vadd.f32 %v7041_v22, %v17801_v55  ;;  %v12087_v4 = vadd.f32 %v7267_v35, %v17804_v5  ;;  %v7469_v10 = vsel %vm7341_vm6, %v12053_v62, %v7405_v50  ;;  %v7471_v19 = vsel %vm7343_vm15, %v12085_v30, %v7407_v63 }
 0x63e   : > { %vm7344_vm3 = vcmp.gt.f32.partialorder %v12054_v28, 0.0  ;;  %v7408_v59 = vmul.f32 0.2, %v12054_v28  ;;  %vm7346_vm8 = vcmp.gt.f32.partialorder %v12086_v1, 0.0  ;;  %v7410_v20 = vmul.f32 0.2, %v12086_v1 }
 0x63f   : > { %vm7345_vm0 = vcmp.gt.f32.partialorder %v12055_v53, 0.0  ;;  %v7409_v47 = vmul.f32 0.2, %v12055_v53  ;;  %vm7347_vm9 = vcmp.gt.f32.partialorder %v12087_v4, 0.0  ;;  %v7411_v51 = vmul.f32 0.2, %v12087_v4 }
 0x640   : > { %v7472_v17 = vsel %vm7344_vm3, %v12054_v28, %v7408_v59  ;;  %v7474_v43 = vsel %vm7346_vm8, %v12086_v1, %v7410_v20  ;;  %v7045_v23 = vpop.f32.mrb[100].mxu0  ;;  %v7271_v42 = vpop.f32.mrb[132].mxu1 }
 0x641   : > { %v17816_v36 = vpack.c.bf16 %v7472_v17, %v7468_v46  ;;  %v17818_v61 = vpack.c.bf16 %v7474_v43, %v7470_v21  ;;  %v7473_v40 = vsel %vm7345_vm0, %v12055_v53, %v7409_v47  ;;  %v7475_v54 = vsel %vm7347_vm9, %v12087_v4, %v7411_v51  ;;  %v7047_v41 = vpop.f32.mrb[101].mxu0  ;;  %v7273_v48 = vpop.f32.mrb[133].mxu1 }
 0x642   : > { %v17820_v24 = vpack.c.bf16 %v7473_v40, %v7469_v10  ;;  %v17822_v7 = vpack.c.bf16 %v7475_v54, %v7471_v19  ;;  %v12056_v33 = vadd.f32 %v7045_v23, %v17795_v25  ;;  %v12088_v34 = vadd.f32 %v7271_v42, %v17798_v58  ;;  %v7049_v16 = vpop.f32.mrb[102].mxu0  ;;  %v7275_v60 = vpop.f32.mrb[134].mxu1  ;;  %v13642_v10 = vld [vmem:[%s19067_s12 + $0x3f0] ss:$28 sps:$4 sm:$0xff]  }
 0x643   : > { %v12057_v2 = vadd.f32 %v7047_v41, %v17801_v55  ;;  %v12089_v18 = vadd.f32 %v7273_v48, %v17804_v5  ;;  %v12058_v45 = vadd.f32 %v7049_v16, %v17795_v25  ;;  %v12090_v31 = vadd.f32 %v7275_v60, %v17798_v58  ;;  %v7051_v52 = vpop.f32.mrb[103].mxu0  ;;  %v7277_v49 = vpop.f32.mrb[135].mxu1 }
 0x644   : > { %vm7348_vm1 = vcmp.gt.f32.partialorder %v12056_v33, 0.0  ;;  %v7412_v15 = vmul.f32 0.2, %v12056_v33  ;;  %vm7350_vm5 = vcmp.gt.f32.partialorder %v12088_v34, 0.0  ;;  %v7414_v8 = vmul.f32 0.2, %v12088_v34  ;;  %9041 = vmatprep.mubr.bf16.mxu0 %v17820_v24  ;;  %9267 = vmatprep.mubr.bf16.mxu1 %v17820_v24 }
 0x645   : > { %vm7349_vm7 = vcmp.gt.f32.partialorder %v12057_v2, 0.0  ;;  %v7413_v56 = vmul.f32 0.2, %v12057_v2  ;;  %vm7351_vm11 = vcmp.gt.f32.partialorder %v12089_v18, 0.0  ;;  %v7415_v0 = vmul.f32 0.2, %v12089_v18  ;;  %9042 = vmatmul.mubr.bf16.vlgmr.msra.gmra.mrb[128].mxu0 %v17816_v36  ;;  %9268 = vmatmul.mubr.bf16.vlgmr.msra.gmra.mrb[160].mxu1 %v17816_v36 }
 0x646   : > { %v7476_v29 = vsel %vm7348_vm1, %v12056_v33, %v7412_v15  ;;  %v7478_v62 = vsel %vm7350_vm5, %v12088_v34, %v7414_v8  ;;  %vm7352_vm13 = vcmp.gt.f32.partialorder %v12058_v45, 0.0  ;;  %v7416_v30 = vmul.f32 0.2, %v12058_v45  ;;  %9123 = vmatpush1.bf16.msra.mxu0 %v13630_v27  ;;  %9349 = vmatpush1.bf16.msra.mxu1 %v13633_v9  ;;  %v13645_v27 = vld [vmem:[%s19067_s12 + $0x3f8] ss:$28 sps:$4 sm:$0xff]  }
 0x647   : > { %v7477_v3 = vsel %vm7349_vm7, %v12057_v2, %v7413_v56  ;;  %v7479_v39 = vsel %vm7351_vm11, %v12089_v18, %v7415_v0  ;;  %vm7354_vm14 = vcmp.gt.f32.partialorder %v12090_v31, 0.0  ;;  %v7418_v32 = vmul.f32 0.2, %v12090_v31  ;;  %v7055_v50 = vpop.f32.mrb[104].mxu0  ;;  %v7281_v63 = vpop.f32.mrb[136].mxu1  ;;  %9124 = vmatprep.subr.bf16.mxu0 %v13638_v11  ;;  %9350 = vmatprep.subr.bf16.mxu1 %v13641_v44 }
 0x648   : > { %v7480_v28 = vsel %vm7352_vm13, %v12058_v45, %v7416_v30  ;;  %v12059_v1 = vadd.f32 %v7051_v52, %v17801_v55  ;;  %v12091_v22 = vadd.f32 %v7277_v49, %v17804_v5  ;;  %v12060_v35 = vadd.f32 %v7055_v50, %v17795_v25  ;;  %v7057_v46 = vpop.f32.mrb[105].mxu0  ;;  %v7283_v21 = vpop.f32.mrb[137].mxu1  ;;  %v13650_v9 = vld [vmem:[%s19067_s12 + $0x42c] ss:$28 sps:$4 sm:$0xff]   ;;  %v13653_v49 = vld [vmem:[%s19067_s12 + $0x434] ss:$28 sps:$4 sm:$0xff]  }
 0x649   : > { %v17861_v53 = vpack.c.bf16 %v7480_v28, %v7476_v29  ;;  %v7482_v4 = vsel %vm7354_vm14, %v12090_v31, %v7418_v32  ;;  %v12092_v59 = vadd.f32 %v7281_v63, %v17798_v58  ;;  %v12061_v20 = vadd.f32 %v7057_v46, %v17801_v55  ;;  %v7059_v47 = vpop.f32.mrb[106].mxu0  ;;  %v7285_v51 = vpop.f32.mrb[138].mxu1  ;;  %v13648_v52 = vld [vmem:[%s19067_s12 + $0x428] ss:$28 sps:$4 sm:$0xff]   ;;  %v13651_v56 = vld [vmem:[%s19067_s12 + $0x430] ss:$28 sps:$4 sm:$0xff]  }
 0x64a   : > { %v17868_v19 = vpack.c.bf16 %v7482_v4, %v7478_v62  ;;  %vm7353_vm2 = vcmp.gt.f32.partialorder %v12059_v1, 0.0  ;;  %v7417_v17 = vmul.f32 0.2, %v12059_v1  ;;  %vm7355_vm4 = vcmp.gt.f32.partialorder %v12091_v22, 0.0  ;;  %9125 = vmatpush1.bf16.msra.mxu0 %v13636_v57  ;;  %9351 = vmatpush1.bf16.msra.mxu1 %v13639_v38  ;;  %v7061_v43 = vpop.f32.mrb[107].mxu0  ;;  %v7287_v23 = vpop.f32.mrb[139].mxu1 }
 0x64b   : > { %v7419_v42 = vmul.f32 0.2, %v12091_v22  ;;  %vm7356_vm12 = vcmp.gt.f32.partialorder %v12060_v35, 0.0  ;;  %v7420_v40 = vmul.f32 0.2, %v12060_v35  ;;  %vm7358_vm10 = vcmp.gt.f32.partialorder %v12092_v59, 0.0  ;;  %9126 = vmatprep.subr.bf16.mxu0 %v13644_v12  ;;  %9352 = vmatprep.subr.bf16.mxu1 %v13647_v6 }
 0x64c   : > { %v7481_v54 = vsel %vm7353_vm2, %v12059_v1, %v7417_v17  ;;  %v7422_v41 = vmul.f32 0.2, %v12092_v59  ;;  %vm7357_vm6 = vcmp.gt.f32.partialorder %v12061_v20, 0.0  ;;  %v7421_v48 = vmul.f32 0.2, %v12061_v20 }
 0x64d   : > { %v17870_v33 = vpack.c.bf16 %v7481_v54, %v7477_v3  ;;  %v7483_v34 = vsel %vm7355_vm4, %v12091_v22, %v7419_v42  ;;  %v7484_v16 = vsel %vm7356_vm12, %v12060_v35, %v7420_v40  ;;  %v12093_v60 = vadd.f32 %v7283_v21, %v17804_v5  ;;  %v13656_v11 = vld [vmem:[%s19067_s12 + $0x464] ss:$28 sps:$4 sm:$0xff]   ;;  %v13659_v3 = vld [vmem:[%s19067_s12 + $0x46c] ss:$28 sps:$4 sm:$0xff]   ;;  %v13660_v54 = vld [vmem:[%s19067_s12 + $0x498] ss:$28 sps:$4 sm:$0xff]  }
 0x64e   : > { %v17880_v2 = vpack.c.bf16 %v7483_v34, %v7479_v39  ;;  %v7486_v18 = vsel %vm7358_vm10, %v12092_v59, %v7422_v41  ;;  %v7485_v45 = vsel %vm7357_vm6, %v12061_v20, %v7421_v48  ;;  %v12062_v31 = vadd.f32 %v7059_v47, %v17795_v25  ;;  %9127 = vmatpush1.bf16.msra.mxu0 %v13642_v10  ;;  %v13654_v6 = vld [vmem:[%s19067_s12 + $0x460] ss:$28 sps:$4 sm:$0xff]   ;;  %v13657_v17 = vld [vmem:[%s19067_s12 + $0x468] ss:$28 sps:$4 sm:$0xff]  }
 0x64f   : > { %vm7359_vm15 = vcmp.gt.f32.partialorder %v12093_v60, 0.0  ;;  %v7423_v44 = vmul.f32 0.2, %v12093_v60  ;;  %v12094_v15 = vadd.f32 %v7285_v51, %v17798_v58  ;;  %v12063_v8 = vadd.f32 %v7061_v43, %v17801_v55  ;;  %9051 = vmatprep.mubr.bf16.mxu0 %v17870_v33  ;;  %9277 = vmatprep.mubr.bf16.mxu1 %v17870_v33  ;;  %v7065_v57 = vpop.f32.mrb[108].mxu0  ;;  %v7291_v38 = vpop.f32.mrb[140].mxu1 }
 0x650   : > { %vm7360_vm3 = vcmp.gt.f32.partialorder %v12062_v31, 0.0  ;;  %v7424_v0 = vmul.f32 0.2, %v12062_v31  ;;  %v12095_v12 = vadd.f32 %v7287_v23, %v17804_v5  ;;  %9052 = vmatmul.mubr.bf16.gmra.mrb[132].mxu0 %v17861_v53  ;;  %9278 = vmatmul.mubr.bf16.gmra.mrb[164].mxu1 %v17861_v53  ;;  %v12064_v29 = vadd.f32 %v7065_v57, %v17795_v25  ;;  %v7067_v62 = vpop.f32.mrb[109].mxu0  ;;  %v7293_v30 = vpop.f32.mrb[141].mxu1 }
 0x651   : > { %v7487_v39 = vsel %vm7359_vm15, %v12093_v60, %v7423_v44  ;;  %vm7362_vm8 = vcmp.gt.f32.partialorder %v12094_v15, 0.0  ;;  %v7426_v32 = vmul.f32 0.2, %v12094_v15  ;;  %vm7361_vm0 = vcmp.gt.f32.partialorder %v12063_v8, 0.0  ;;  %9353 = vmatpush1.bf16.msra.mxu1 %v13645_v27  ;;  %9128 = vmatprep.subr.bf16.mxu0 %v13650_v9  ;;  %v7069_v50 = vpop.f32.mrb[110].mxu0  ;;  %v7295_v63 = vpop.f32.mrb[142].mxu1 }
 0x652   : > { %v7488_v28 = vsel %vm7360_vm3, %v12062_v31, %v7424_v0  ;;  %v7425_v1 = vmul.f32 0.2, %v12063_v8  ;;  %vm7363_vm9 = vcmp.gt.f32.partialorder %v12095_v12, 0.0  ;;  %v7427_v22 = vmul.f32 0.2, %v12095_v12  ;;  %9354 = vmatprep.subr.bf16.mxu1 %v13653_v49  ;;  %9129 = vmatpush1.bf16.msra.mxu0 %v13648_v52  ;;  %v7071_v35 = vpop.f32.mrb[111].mxu0 }
 0x653   : > { %v17911_v46 = vpack.c.bf16 %v7488_v28, %v7484_v16  ;;  %v7490_v21 = vsel %vm7362_vm8, %v12094_v15, %v7426_v32  ;;  %vm7364_vm1 = vcmp.gt.f32.partialorder %v12064_v29, 0.0  ;;  %v7428_v4 = vmul.f32 0.2, %v12064_v29  ;;  %v7297_v59 = vpop.f32.mrb[143].mxu1  ;;  %9130 = vmatprep.subr.bf16.mxu0 %v13656_v11  ;;  %v13662_v41 = vld [vmem:[%s19067_s12 + $0x49c] ss:$28 sps:$4 sm:$0xff]  }
 0x654   : > { %v17913_v20 = vpack.c.bf16 %v7490_v21, %v7486_v18  ;;  %v7489_v47 = vsel %vm7361_vm0, %v12063_v8, %v7425_v1  ;;  %v7491_v51 = vsel %vm7363_vm9, %v12095_v12, %v7427_v22  ;;  %v12096_v10 = vadd.f32 %v7291_v38, %v17798_v58  ;;  %v13665_v48 = vld [vmem:[%s19067_s12 + $0x4a4] ss:$28 sps:$4 sm:$0xff]   ;;  %v13668_v27 = vld [vmem:[%s19067_s12 + $0x4d4] ss:$28 sps:$4 sm:$0xff]   ;;  %v13671_v38 = vld [vmem:[%s19067_s12 + $0x4dc] ss:$28 sps:$4 sm:$0xff]  }
 0x655   : > { %v17920_v43 = vpack.c.bf16 %v7489_v47, %v7485_v45  ;;  %v17922_v23 = vpack.c.bf16 %v7491_v51, %v7487_v39  ;;  %v7492_v42 = vsel %vm7364_vm1, %v12064_v29, %v7428_v4  ;;  %v12065_v40 = vadd.f32 %v7067_v62, %v17801_v55  ;;  %9355 = vmatpush1.bf16.msra.mxu1 %v13651_v56  ;;  %v13663_v49 = vld [vmem:[%s19067_s12 + $0x4a0] ss:$28 sps:$4 sm:$0xff]   ;;  %v13666_v57 = vld [vmem:[%s19067_s12 + $0x4d0] ss:$28 sps:$4 sm:$0xff]   ;;  %v13669_v4 = vld [vmem:[%s19067_s12 + $0x4d8] ss:$28 sps:$4 sm:$0xff]  }
 0x656   : > { %vm7366_vm5 = vcmp.gt.f32.partialorder %v12096_v10, 0.0  ;;  %v7430_v34 = vmul.f32 0.2, %v12096_v10  ;;  %v12097_v16 = vadd.f32 %v7293_v30, %v17804_v5  ;;  %v12066_v60 = vadd.f32 %v7069_v50, %v17795_v25  ;;  %9356 = vmatprep.subr.bf16.mxu1 %v13659_v3  ;;  %9131 = vmatpush1.bf16.msra.mxu0 %v13654_v6 }
 0x657   : > { %vm7365_vm7 = vcmp.gt.f32.partialorder %v12065_v40, 0.0  ;;  %v7429_v9 = vmul.f32 0.2, %v12065_v40  ;;  %v12098_v18 = vadd.f32 %v7295_v63, %v17798_v58  ;;  %v12067_v45 = vadd.f32 %v7071_v35, %v17801_v55  ;;  %9061 = vmatprep.mubr.bf16.mxu0 %v17920_v43  ;;  %9287 = vmatprep.mubr.bf16.mxu1 %v17920_v43  ;;  %v7075_v31 = vpop.f32.mrb[112].mxu0  ;;  %v7301_v52 = vpop.f32.mrb[144].mxu1 }
 0x658   : > { %v7494_v11 = vsel %vm7366_vm5, %v12096_v10, %v7430_v34  ;;  %vm7367_vm11 = vcmp.gt.f32.partialorder %v12097_v16, 0.0  ;;  %v7431_v44 = vmul.f32 0.2, %v12097_v16  ;;  %vm7368_vm13 = vcmp.gt.f32.partialorder %v12066_v60, 0.0  ;;  %9062 = vmatmul.mubr.bf16.gmra.mrb[136].mxu0 %v17911_v46  ;;  %9288 = vmatmul.mubr.bf16.gmra.mrb[168].mxu1 %v17911_v46  ;;  %v7077_v15 = vpop.f32.mrb[113].mxu0  ;;  %v7303_v8 = vpop.f32.mrb[145].mxu1 }
 0x659   : > { %v7493_v56 = vsel %vm7365_vm7, %v12065_v40, %v7429_v9  ;;  %v7432_v0 = vmul.f32 0.2, %v12066_v60  ;;  %vm7370_vm14 = vcmp.gt.f32.partialorder %v12098_v18, 0.0  ;;  %v7434_v12 = vmul.f32 0.2, %v12098_v18  ;;  %9357 = vmatpush1.bf16.msra.mxu1 %v13657_v17  ;;  %9132 = vmatprep.subr.bf16.mxu0 %v13662_v41  ;;  %v7079_v29 = vpop.f32.mrb[114].mxu0 }
 0x65a   : > { %v7495_v62 = vsel %vm7367_vm11, %v12097_v16, %v7431_v44  ;;  %vm7369_vm2 = vcmp.gt.f32.partialorder %v12067_v45, 0.0  ;;  %v7433_v30 = vmul.f32 0.2, %v12067_v45  ;;  %v12099_v6 = vadd.f32 %v7297_v59, %v17804_v5  ;;  %9358 = vmatprep.subr.bf16.mxu1 %v13665_v48  ;;  %9133 = vmatpush1.bf16.msra.mxu0 %v13660_v54  ;;  %v7305_v3 = vpop.f32.mrb[146].mxu1  ;;  %v7081_v39 = vpop.f32.mrb[115].mxu0 }
 0x65b   : > { %v7496_v32 = vsel %vm7368_vm13, %v12066_v60, %v7432_v0  ;;  %v7498_v50 = vsel %vm7370_vm14, %v12098_v18, %v7434_v12  ;;  %v12068_v63 = vadd.f32 %v7075_v31, %v17795_v25  ;;  %v12100_v28 = vadd.f32 %v7301_v52, %v17798_v58  ;;  %v7307_v1 = vpop.f32.mrb[147].mxu1  ;;  %9134 = vmatprep.subr.bf16.mxu0 %v13668_v27  ;;  %v13674_v59 = vld [vmem:[%s19067_s12 + $0x50c] ss:$28 sps:$4 sm:$0xff]   ;;  %v13677_v9 = vld [vmem:[%s19067_s12 + $0x514] ss:$28 sps:$4 sm:$0xff]  }
 0x65c   : > { %v17961_v22 = vpack.c.bf16 %v7496_v32, %v7492_v42  ;;  %v17963_v35 = vpack.c.bf16 %v7498_v50, %v7494_v11  ;;  %v7497_v21 = vsel %vm7369_vm2, %v12067_v45, %v7433_v30  ;;  %vm7371_vm4 = vcmp.gt.f32.partialorder %v12099_v6, 0.0  ;;  %v13672_v54 = vld [vmem:[%s19067_s12 + $0x508] ss:$28 sps:$4 sm:$0xff]  }
 0x65d   : > { %v17971_v47 = vpack.c.bf16 %v7497_v21, %v7493_v56  ;;  %v7435_v51 = vmul.f32 0.2, %v12099_v6  ;;  %vm7372_vm12 = vcmp.gt.f32.partialorder %v12068_v63, 0.0  ;;  %v7436_v10 = vmul.f32 0.2, %v12068_v63  ;;  %9359 = vmatpush1.bf16.msra.mxu1 %v13663_v49 }
 0x65e   : > { %vm7374_vm10 = vcmp.gt.f32.partialorder %v12100_v28, 0.0  ;;  %v7438_v17 = vmul.f32 0.2, %v12100_v28  ;;  %v12069_v42 = vadd.f32 %v7077_v15, %v17801_v55  ;;  %v12101_v40 = vadd.f32 %v7303_v8, %v17804_v5  ;;  %9360 = vmatprep.subr.bf16.mxu1 %v13671_v38  ;;  %9135 = vmatpush1.bf16.msra.mxu0 %v13666_v57  ;;  %v13680_v18 = vld [vmem:[%s19067_s12 + $0x544] ss:$28 sps:$4 sm:$0xff]  }
 0x65f   : > { %v7499_v41 = vsel %vm7371_vm4, %v12099_v6, %v7435_v51  ;;  %v7500_v48 = vsel %vm7372_vm12, %v12068_v63, %v7436_v10  ;;  %v12070_v34 = vadd.f32 %v7079_v29, %v17795_v25  ;;  %v12102_v16 = vadd.f32 %v7305_v3, %v17798_v58  ;;  %9071 = vmatprep.mubr.bf16.mxu0 %v17971_v47  ;;  %v7085_v60 = vpop.f32.mrb[116].mxu0  ;;  %v7311_v27 = vpop.f32.mrb[148].mxu1  ;;  %v13675_v49 = vld [vmem:[%s19067_s12 + $0x510] ss:$28 sps:$4 sm:$0xff]   ;;  %v13678_v15 = vld [vmem:[%s19067_s12 + $0x540] ss:$28 sps:$4 sm:$0xff]  }
 0x660   : > { %v17987_v45 = vpack.c.bf16 %v7499_v41, %v7495_v62  ;;  %v7502_v31 = vsel %vm7374_vm10, %v12100_v28, %v7438_v17  ;;  %vm7373_vm6 = vcmp.gt.f32.partialorder %v12069_v42, 0.0  ;;  %v7437_v52 = vmul.f32 0.2, %v12069_v42  ;;  %9297 = vmatprep.mubr.bf16.mxu1 %v17971_v47  ;;  %9072 = vmatmul.mubr.bf16.gmra.mrb[140].mxu0 %v17961_v22  ;;  %v7087_v11 = vpop.f32.mrb[117].mxu0  ;;  %v7313_v44 = vpop.f32.mrb[149].mxu1 }
 0x661   : > { %vm7375_vm15 = vcmp.gt.f32.partialorder %v12101_v40, 0.0  ;;  %v7439_v8 = vmul.f32 0.2, %v12101_v40  ;;  %vm7376_vm3 = vcmp.gt.f32.partialorder %v12070_v34, 0.0  ;;  %v7440_v57 = vmul.f32 0.2, %v12070_v34  ;;  %9298 = vmatmul.mubr.bf16.gmra.mrb[172].mxu1 %v17961_v22  ;;  %9136 = vmatprep.subr.bf16.mxu0 %v13674_v59 }
 0x662   : > { %v7501_v38 = vsel %vm7373_vm6, %v12069_v42, %v7437_v52  ;;  %vm7378_vm8 = vcmp.gt.f32.partialorder %v12102_v16, 0.0  ;;  %v7442_v56 = vmul.f32 0.2, %v12102_v16  ;;  %v12071_v0 = vadd.f32 %v7081_v39, %v17801_v55  ;;  %9361 = vmatpush1.bf16.msra.mxu1 %v13669_v4  ;;  %9137 = vmatpush1.bf16.msra.mxu0 %v13672_v54  ;;  %v7089_v12 = vpop.f32.mrb[118].mxu0  ;;  %v7315_v29 = vpop.f32.mrb[150].mxu1 }
 0x663   : > { %v7503_v62 = vsel %vm7375_vm15, %v12101_v40, %v7439_v8  ;;  %v7504_v30 = vsel %vm7376_vm3, %v12070_v34, %v7440_v57  ;;  %v12103_v6 = vadd.f32 %v7307_v1, %v17804_v5  ;;  %v12072_v3 = vadd.f32 %v7085_v60, %v17795_v25  ;;  %9362 = vmatprep.subr.bf16.mxu1 %v13677_v9  ;;  %v7091_v32 = vpop.f32.mrb[119].mxu0  ;;  %v7317_v50 = vpop.f32.mrb[151].mxu1  ;;  %v13683_v63 = vld [vmem:[%s19067_s12 + $0x54c] ss:$28 sps:$4 sm:$0xff]   ;;  %v13686_v1 = vld [vmem:[%s19067_s12 + $0x57c] ss:$28 sps:$4 sm:$0xff]  }
 0x664   : > { %v18005_v28 = vpack.c.bf16 %v7504_v30, %v7500_v48  ;;  %v7506_v39 = vsel %vm7378_vm8, %v12102_v16, %v7442_v56  ;;  %vm7377_vm0 = vcmp.gt.f32.partialorder %v12071_v0, 0.0  ;;  %v7441_v21 = vmul.f32 0.2, %v12071_v0  ;;  %9138 = vmatprep.subr.bf16.mxu0 %v13680_v18  ;;  %v13681_v40 = vld [vmem:[%s19067_s12 + $0x548] ss:$28 sps:$4 sm:$0xff]  }
 0x665   : > { %v18011_v4 = vpack.c.bf16 %v7506_v39, %v7502_v31  ;;  %vm7379_vm9 = vcmp.gt.f32.partialorder %v12103_v6, 0.0  ;;  %v7443_v59 = vmul.f32 0.2, %v12103_v6  ;;  %vm7380_vm1 = vcmp.gt.f32.partialorder %v12072_v3, 0.0  ;;  %v13684_v54 = vld [vmem:[%s19067_s12 + $0x578] ss:$28 sps:$4 sm:$0xff]  }
 0x666   : > { %v7505_v51 = vsel %vm7377_vm0, %v12071_v0, %v7441_v21  ;;  %v7444_v10 = vmul.f32 0.2, %v12072_v3  ;;  %v12104_v17 = vadd.f32 %v7311_v27, %v17798_v58  ;;  %v12073_v42 = vadd.f32 %v7087_v11, %v17801_v55  ;;  %9363 = vmatpush1.bf16.msra.mxu1 %v13675_v49  ;;  %9139 = vmatpush1.bf16.msra.mxu0 %v13678_v15  ;;  %v13689_v9 = vld [vmem:[%s19067_s12 + $0x584] ss:$28 sps:$4 sm:$0xff]   ;;  %v13692_v18 = vld [vmem:[%s19067_s12 + $0x5b4] ss:$28 sps:$4 sm:$0xff]  }
 0x667   : > { %v18021_v41 = vpack.c.bf16 %v7505_v51, %v7501_v38  ;;  %v7507_v48 = vsel %vm7379_vm9, %v12103_v6, %v7443_v59  ;;  %v12105_v34 = vadd.f32 %v7313_v44, %v17804_v5  ;;  %v12074_v16 = vadd.f32 %v7089_v12, %v17795_v25  ;;  %9364 = vmatprep.subr.bf16.mxu1 %v13683_v63  ;;  %v7095_v60 = vpop.f32.mrb[120].mxu0  ;;  %v7321_v27 = vpop.f32.mrb[152].mxu1  ;;  %v13690_v51 = vld [vmem:[%s19067_s12 + $0x5b0] ss:$28 sps:$4 sm:$0xff]  }
 0x668   : > { %v18031_v31 = vpack.c.bf16 %v7507_v48, %v7503_v62  ;;  %vm7382_vm5 = vcmp.gt.f32.partialorder %v12104_v17, 0.0  ;;  %v7446_v52 = vmul.f32 0.2, %v12104_v17  ;;  %9140 = vmatprep.subr.bf16.mxu0 %v13686_v1  ;;  %v7097_v49 = vpop.f32.mrb[121].mxu0  ;;  %v7323_v11 = vpop.f32.mrb[153].mxu1  ;;  %v7508_v44 = vsel %vm7380_vm1, %v12072_v3, %v7444_v10 }
 0x669   : > { %vm7381_vm7 = vcmp.gt.f32.partialorder %v12073_v42, 0.0  ;;  %v7445_v15 = vmul.f32 0.2, %v12073_v42  ;;  %v7447_v8 = vmul.f32 0.2, %v12105_v34  ;;  %9081 = vmatprep.mubr.bf16.mxu0 %v18021_v41  ;;  %9307 = vmatprep.mubr.bf16.mxu1 %v18021_v41  ;;  %vm7383_vm11 = vcmp.gt.f32.partialorder %v12105_v34, 0.0 }
 0x66a   : > { %vm7384_vm13 = vcmp.gt.f32.partialorder %v12074_v16, 0.0  ;;  %v7448_v57 = vmul.f32 0.2, %v12074_v16  ;;  %v12106_v38 = vadd.f32 %v7315_v29, %v17798_v58  ;;  %9082 = vmatmul.mubr.bf16.gmra.mrb[144].mxu0 %v18005_v28  ;;  %9308 = vmatmul.mubr.bf16.gmra.mrb[176].mxu1 %v18005_v28  ;;  %v7099_v56 = vpop.f32.mrb[122].mxu0  ;;  %v7325_v0 = vpop.f32.mrb[154].mxu1  ;;  %v7510_v12 = vsel %vm7382_vm5, %v12104_v17, %v7446_v52 }
 0x66b   : > { %v7509_v62 = vsel %vm7381_vm7, %v12073_v42, %v7445_v15  ;;  %v12075_v30 = vadd.f32 %v7091_v32, %v17801_v55  ;;  %v12107_v6 = vadd.f32 %v7317_v50, %v17804_v5  ;;  %9365 = vmatpush1.bf16.msra.mxu1 %v13681_v40  ;;  %v13687_v3 = vld [vmem:[%s19067_s12 + $0x580] ss:$28 sps:$4 sm:$0xff]   ;;  %v7101_v63 = vpop.f32.mrb[123].mxu0  ;;  %v7327_v29 = vpop.f32.mrb[155].mxu1  ;;  %v12076_v1 = vadd.f32 %v7095_v60, %v17795_v25  ;;  %v13693_v60 = vld [vmem:[%s19067_s12 + $0x5b8] ss:$28 sps:$4 sm:$0xff]  }
 0x66c   : > { %v7512_v39 = vsel %vm7384_vm13, %v12074_v16, %v7448_v57  ;;  %vm7386_vm14 = vcmp.gt.f32.partialorder %v12106_v38, 0.0  ;;  %v7450_v21 = vmul.f32 0.2, %v12106_v38  ;;  %9366 = vmatprep.subr.bf16.mxu1 %v13689_v9  ;;  %9141 = vmatpush1.bf16.msra.mxu0 %v13684_v54  ;;  %v13695_v32 = vld [vmem:[%s19067_s12 + $0x5bc] ss:$28 sps:$4 sm:$0xff]   ;;  %v12108_v48 = vadd.f32 %v7321_v27, %v17798_v58 }
 0x66d   : > { %v18049_v59 = vpack.c.bf16 %v7512_v39, %v7508_v44  ;;  %vm7385_vm2 = vcmp.gt.f32.partialorder %v12075_v30, 0.0  ;;  %v7449_v50 = vmul.f32 0.2, %v12075_v30  ;;  %vm7387_vm4 = vcmp.gt.f32.partialorder %v12107_v6, 0.0  ;;  %9142 = vmatprep.subr.bf16.mxu0 %v13692_v18  ;;  %v13696_v18 = vld [vmem:[%s19067_s12 + $0x5e8] ss:$28 sps:$4 sm:$0xff]  }
 0x66e   : > { %v7514_v10 = vsel %vm7386_vm14, %v12106_v38, %v7450_v21  ;;  %v7451_v17 = vmul.f32 0.2, %v12107_v6  ;;  %vm7388_vm12 = vcmp.gt.f32.partialorder %v12076_v1, 0.0  ;;  %v7452_v42 = vmul.f32 0.2, %v12076_v1 }
 0x66f   : > { %v18054_v40 = vpack.c.bf16 %v7514_v10, %v7510_v12  ;;  %v7513_v54 = vsel %vm7385_vm2, %v12075_v30, %v7449_v50  ;;  %v12077_v16 = vadd.f32 %v7097_v49, %v17801_v55  ;;  %9367 = vmatpush1.bf16.msra.mxu1 %v13687_v3  ;;  %v7105_v9 = vpop.f32.mrb[124].mxu0  ;;  %v7331_v52 = vpop.f32.mrb[156].mxu1  ;;  %v7511_v44 = vsel %vm7383_vm11, %v12105_v34, %v7447_v8  ;;  %v13698_v49 = vld [vmem:[%s19067_s12 + $0x5ec] ss:$28 sps:$4 sm:$0xff]   ;;  %v13701_v38 = vld [vmem:[%s19067_s12 + $0x5f4] ss:$28 sps:$4 sm:$0xff]  }
 0x670   : > { %v18065_v15 = vpack.c.bf16 %v7513_v54, %v7509_v62  ;;  %v7515_v57 = vsel %vm7387_vm4, %v12107_v6, %v7451_v17  ;;  %v12109_v27 = vadd.f32 %v7323_v11, %v17804_v5  ;;  %9368 = vmatprep.subr.bf16.mxu1 %v13695_v32  ;;  %v7107_v12 = vpop.f32.mrb[125].mxu0  ;;  %v7333_v30 = vpop.f32.mrb[157].mxu1  ;;  %vm7390_vm10 = vcmp.gt.f32.partialorder %v12108_v48, 0.0  ;;  %9143 = vmatpush1.bf16.msra.mxu0 %v13690_v51  ;;  %v13704_v32 = vld [vmem:[%s19067_s12 + $0x624] ss:$28 sps:$4 sm:$0xff]  }
 0x671   : > { %v18075_v3 = vpack.c.bf16 %v7515_v57, %v7511_v44  ;;  %v7454_v34 = vmul.f32 0.2, %v12108_v48  ;;  %vm7389_vm6 = vcmp.gt.f32.partialorder %v12077_v16, 0.0  ;;  %v7109_v8 = vpop.f32.mrb[126].mxu0  ;;  %v7335_v62 = vpop.f32.mrb[158].mxu1  ;;  %v7516_v11 = vsel %vm7388_vm12, %v12076_v1, %v7452_v42  ;;  %9144 = vmatprep.subr.bf16.mxu0 %v13698_v49 }
 0x672   : > { %v7453_v6 = vmul.f32 0.2, %v12077_v16  ;;  %vm7391_vm15 = vcmp.gt.f32.partialorder %v12109_v27, 0.0  ;;  %v12078_v39 = vadd.f32 %v7099_v56, %v17795_v25  ;;  %9091 = vmatprep.mubr.bf16.mxu0 %v18065_v15  ;;  %9317 = vmatprep.mubr.bf16.mxu1 %v18065_v15  ;;  %v7111_v21 = vpop.f32.mrb[127].mxu0  ;;  %v7455_v50 = vmul.f32 0.2, %v12109_v27 }
 0x673   : > { %v12110_v51 = vadd.f32 %v7325_v0, %v17798_v58  ;;  %v12079_v10 = vadd.f32 %v7101_v63, %v17801_v55  ;;  %v12111_v1 = vadd.f32 %v7327_v29, %v17804_v5  ;;  %9092 = vmatmul.mubr.bf16.gmra.mrb[148].mxu0 %v18049_v59  ;;  %v13699_v56 = vld [vmem:[%s19067_s12 + $0x5f0] ss:$28 sps:$4 sm:$0xff]   ;;  %v7337_v17 = vpop.f32.mrb[159].mxu1  ;;  %v7518_v42 = vsel %vm7390_vm10, %v12108_v48, %v7454_v34  ;;  %v13702_v0 = vld [vmem:[%s19067_s12 + $0x620] ss:$28 sps:$4 sm:$0xff]  }
 0x674   : > { %v7517_v54 = vsel %vm7389_vm6, %v12077_v16, %v7453_v6  ;;  %vm7392_vm3 = vcmp.gt.f32.partialorder %v12078_v39, 0.0  ;;  %v7456_v44 = vmul.f32 0.2, %v12078_v39  ;;  %9318 = vmatmul.mubr.bf16.gmra.mrb[180].mxu1 %v18049_v59  ;;  %9145 = vmatpush1.bf16.msra.mxu0 %v13696_v18  ;;  %v12080_v16 = vadd.f32 %v7105_v9, %v17795_v25  ;;  %v13707_v18 = vld [vmem:[%s19067_s12 + $0x62c] ss:$28 sps:$4 sm:$0xff]  }
 0x675   : > { %vm7394_vm8 = vcmp.gt.f32.partialorder %v12110_v51, 0.0  ;;  %v7458_v63 = vmul.f32 0.2, %v12110_v51  ;;  %vm7393_vm0 = vcmp.gt.f32.partialorder %v12079_v10, 0.0  ;;  %v7457_v29 = vmul.f32 0.2, %v12079_v10  ;;  %9369 = vmatpush1.bf16.msra.mxu1 %v13693_v60  ;;  %9146 = vmatprep.subr.bf16.mxu0 %v13704_v32 }
 0x676   : > { %v7520_v57 = vsel %vm7392_vm3, %v12078_v39, %v7456_v44  ;;  %vm7395_vm9 = vcmp.gt.f32.partialorder %v12111_v1, 0.0  ;;  %v7459_v48 = vmul.f32 0.2, %v12111_v1  ;;  %9370 = vmatprep.subr.bf16.mxu1 %v13701_v38  ;;  %v12112_v13 = vadd.f32 %v7331_v52, %v17798_v58  ;;  %v13710_v9 = vld [vmem:[%s19067_s12 + $0x65c] ss:$28 sps:$4 sm:$0xff]  }
 0x677   : > { %v18098_v34 = vpack.c.bf16 %v7520_v57, %v7516_v11  ;;  %v7522_v49 = vsel %vm7394_vm8, %v12110_v51, %v7458_v63  ;;  %v7521_v6 = vsel %vm7393_vm0, %v12079_v10, %v7457_v29  ;;  %v7519_v26 = vsel %vm7391_vm15, %v12109_v27, %v7455_v50  ;;  %v13708_v51 = vld [vmem:[%s19067_s12 + $0x658] ss:$28 sps:$4 sm:$0xff]  }
 0x678   : > { %v18102_v14 = vpack.c.bf16 %v7522_v49, %v7518_v42  ;;  %v18104_v37 = vpack.c.bf16 %v7521_v6, %v7517_v54  ;;  %v7523_v60 = vsel %vm7395_vm9, %v12111_v1, %v7459_v48  ;;  %vm7396_vm1 = vcmp.gt.f32.partialorder %v12080_v16, 0.0  ;;  %9147 = vmatpush1.bf16.msra.mxu0 %v13702_v0  ;;  %v13719_v49 = vld [vmem:[%s19067_s12 + $0x69c] ss:$28 sps:$4 sm:$0xff]  }
 0x679   : > { %v18112_v38 = vpack.c.bf16 %v7523_v60, %v7519_v26  ;;  %v7460_v11 = vmul.f32 0.2, %v12080_v16  ;;  %v7462_v52 = vmul.f32 0.2, %v12112_v13  ;;  %9371 = vmatpush1.bf16.msra.mxu1 %v13699_v56  ;;  %v12081_v27 = vadd.f32 %v7107_v12, %v17801_v55  ;;  %v13705_v26 = vld [vmem:[%s19067_s12 + $0x628] ss:$28 sps:$4 sm:$0xff]   ;;  %9148 = vmatprep.subr.bf16.mxu0 %v13710_v9 }
 0x67a   : > { %v12113_v39 = vadd.f32 %v7333_v30, %v17804_v5  ;;  %v12082_v32 = vadd.f32 %v7109_v8, %v17795_v25  ;;  %v12114_v50 = vadd.f32 %v7335_v62, %v17798_v58  ;;  %9101 = vmatprep.mubr.bf16.mxu0 %v18104_v37  ;;  %vm7398_vm5 = vcmp.gt.f32.partialorder %v12112_v13, 0.0  ;;  %9327 = vmatprep.mubr.bf16.mxu1 %v18104_v37  ;;  %v13713_v25 = vld [vmem:[%s19067_s12 + $0x664] ss:$28 sps:$4 sm:$0xff]   ;;  %v13716_v58 = vld [vmem:[%s19067_s12 + $0x694] ss:$28 sps:$4 sm:$0xff]  }
 0x67b   : > { %v12083_v10 = vadd.f32 %v7111_v21, %v17801_v55  ;;  %v12115_v12 = vadd.f32 %v7337_v17, %v17804_v5  ;;  %v7524_v30 = vsel %vm7396_vm1, %v12080_v16, %v7460_v11  ;;  %vm7397_vm7 = vcmp.gt.f32.partialorder %v12081_v27, 0.0  ;;  %9102 = vmatmul.mubr.bf16.gmra.mrb[152].mxu0 %v18098_v34  ;;  %v13711_v55 = vld [vmem:[%s19067_s12 + $0x660] ss:$28 sps:$4 sm:$0xff]   ;;  %9372 = vmatprep.subr.bf16.mxu1 %v13707_v18  ;;  %v13714_v17 = vld [vmem:[%s19067_s12 + $0x690] ss:$28 sps:$4 sm:$0xff]  }
 0x67c   : > { %v7461_v8 = vmul.f32 0.2, %v12081_v27  ;;  %v7463_v62 = vmul.f32 0.2, %v12113_v39  ;;  %9328 = vmatmul.mubr.bf16.gmra.mrb[184].mxu1 %v18098_v34  ;;  %vm7400_vm11 = vcmp.gt.f32.partialorder %v12082_v32, 0.0  ;;  %vm7402_vm13 = vcmp.gt.f32.partialorder %v12114_v50, 0.0  ;;  %9149 = vmatpush1.bf16.msra.mxu0 %v13708_v51 }
 0x67d   : > { %v7464_v5 = vmul.f32 0.2, %v12082_v32  ;;  %v7466_v21 = vmul.f32 0.2, %v12114_v50  ;;  %v7526_v1 = vsel %vm7398_vm5, %v12112_v13, %v7462_v52  ;;  %vm7399_vm14 = vcmp.gt.f32.partialorder %v12113_v39, 0.0  ;;  %9373 = vmatpush1.bf16.msra.mxu1 %v13705_v26  ;;  %9150 = vmatprep.subr.bf16.mxu0 %v13716_v58 }
 0x67e   : > { %vm7401_vm2 = vcmp.gt.f32.partialorder %v12083_v10, 0.0  ;;  %v7465_v56 = vmul.f32 0.2, %v12083_v10  ;;  %vm7403_vm4 = vcmp.gt.f32.partialorder %v12115_v12, 0.0  ;;  %v7467_v44 = vmul.f32 0.2, %v12115_v12  ;;  %9374 = vmatprep.subr.bf16.mxu1 %v13713_v25 }
 0x67f   : > { %v7528_v42 = vsel %vm7400_vm11, %v12082_v32, %v7464_v5  ;;  %v7530_v54 = vsel %vm7402_vm13, %v12114_v50, %v7466_v21  ;;  %v7525_v0 = vsel %vm7397_vm7, %v12081_v27, %v7461_v8  ;;  %v7527_v57 = vsel %vm7399_vm14, %v12113_v39, %v7463_v62  ;;  %v13717_v60 = vld [vmem:[%s19067_s12 + $0x698] ss:$28 sps:$4 sm:$0xff]   ;;  %v13722_v18 = vld [vmem:[%s19067_s12 + $0x6cc] ss:$28 sps:$4 sm:$0xff]  }
 0x680   : > { %v18145_v63 = vpack.c.bf16 %v7528_v42, %v7524_v30  ;;  %v18147_v13 = vpack.c.bf16 %v7530_v54, %v7526_v1  ;;  %v7529_v29 = vsel %vm7401_vm2, %v12083_v10, %v7465_v56  ;;  %v7531_v16 = vsel %vm7403_vm4, %v12115_v12, %v7467_v44  ;;  %9151 = vmatpush1.bf16.msra.mxu0 %v13714_v17  ;;  %v13725_v9 = vld [vmem:[%s19067_s12 + $0x6d4] ss:$28 sps:$4 sm:$0xff]   ;;  %v13720_v11 = vld [vmem:[%s19067_s12 + $0x6c8] ss:$28 sps:$4 sm:$0xff]   ;;  %v13734_v30 = vld [vmem:[%s19067_s12 + $0x80] ss:$28 sps:$4 sm:$0xff]  }
 0x681   : > { %v18150_v48 = vpack.c.bf16 %v7529_v29, %v7525_v0  ;;  %v18155_v6 = vpack.c.bf16 %v7531_v16, %v7527_v57  ;;  %9375 = vmatpush1.bf16.msra.mxu1 %v13711_v55  ;;  %v13728_v52 = vld [vmem:[%s19067_s12 + $0x14] ss:$28 sps:$4 sm:$0xff]   ;;  %9152 = vmatprep.subr.bf16.mxu0 %v13722_v18  ;;  %v13733_v26 = vld [vmem:[%s19067_s12 + $0x4c] ss:$28 sps:$4 sm:$0xff]   ;;  %v13736_v12 = vld [vmem:[%s19067_s12 + $0x84] ss:$28 sps:$4 sm:$0xff]  }
 0x682   : > { %9376 = vmatprep.subr.bf16.mxu1 %v13719_v49  ;;  %v13723_v27 = vld [vmem:[%s19067_s12 + $0x6d0] ss:$28 sps:$4 sm:$0xff]   ;;  %v13729_v39 = vld [vmem:[%s19067_s12 + $0x1d8] ss:$28 sps:$4 sm:$0xff]   ;;  %v13731_v10 = vld [vmem:[%s19067_s12 + $0x48] ss:$28 sps:$4 sm:$0xff]  }
 0x683   : > { %9111 = vmatprep.mubr.bf16.mxu0 %v18150_v48  ;;  %9337 = vmatprep.mubr.bf16.mxu1 %v18150_v48  ;;  %v13726_v32 = vld [vmem:[%s19067_s12 + $0x10] ss:$28 sps:$4 sm:$0xff]   ;;  %v13730_v50 = vld [vmem:[%s19067_s12 + $0x18] ss:$28 sps:$4 sm:$0xff]   ;;  %v13745_v58 = vld [vmem:[%s19067_s12 + $0x248] ss:$28 sps:$4 sm:$0xff]  }
 0x684   : > { %9112 = vmatmul.mubr.bf16.gmra.mrb[156].mxu0 %v18145_v63  ;;  %9338 = vmatmul.mubr.bf16.gmra.mrb[188].mxu1 %v18145_v63  ;;  %v13737_v51 = vld [vmem:[%s19067_s12 + $0x210] ss:$28 sps:$4 sm:$0xff]   ;;  %v13741_v8 = vld [vmem:[%s19067_s12 + $0xbc] ss:$28 sps:$4 sm:$0xff]   ;;  %v13746_v62 = vld [vmem:[%s19067_s12 + $0x88] ss:$28 sps:$4 sm:$0xff]  }
 0x685   : > { %9154 = vmatprep.mubr.bf16.mxu0 %v17822_v7  ;;  %9377 = vmatpush1.bf16.msra.mxu1 %v13717_v60  ;;  %v13738_v25 = vld [vmem:[%s19067_s12 + $0x50] ss:$28 sps:$4 sm:$0xff]   ;;  %v13753_v55 = vld [vmem:[%s19067_s12 + $0x280] ss:$28 sps:$4 sm:$0xff]   ;;  %v13739_v5 = vld [vmem:[%s19067_s12 + $0xb8] ss:$28 sps:$4 sm:$0xff]  }
 0x686   : > { %9380 = vmatprep.mubr.bf16.mxu1 %v17822_v7  ;;  %9378 = vmatprep.subr.bf16.mxu1 %v13725_v9  ;;  %v13744_v21 = vld [vmem:[%s19067_s12 + $0xf4] ss:$28 sps:$4 sm:$0xff]   ;;  %v13754_v1 = vld [vmem:[%s19067_s12 + $0xc0] ss:$28 sps:$4 sm:$0xff]   ;;  %v13749_v42 = vld [vmem:[%s19067_s12 + $0x12c] ss:$28 sps:$4 sm:$0xff]  }
 0x687   : > { %9153 = vmatpush1.bf16.msra.mxu0 %v13720_v11  ;;  %v13761_v56 = vld [vmem:[%s19067_s12 + $0x2b8] ss:$28 sps:$4 sm:$0xff]   ;;  %v13742_v17 = vld [vmem:[%s19067_s12 + $0xf0] ss:$28 sps:$4 sm:$0xff]   ;;  %v13747_v0 = vld [vmem:[%s19067_s12 + $0x128] ss:$28 sps:$4 sm:$0xff]  }
 0x688   : > { %9461 = vmatprep.subr.bf16.mxu0 %v13728_v52  ;;  %v13762_v54 = vld [vmem:[%s19067_s12 + $0xf8] ss:$28 sps:$4 sm:$0xff]   ;;  %v13769_v44 = vld [vmem:[%s19067_s12 + $0x2f0] ss:$28 sps:$4 sm:$0xff]   ;;  %v13752_v29 = vld [vmem:[%s19067_s12 + $0x164] ss:$28 sps:$4 sm:$0xff]  }
 0x689   : > { %9379 = vmatpush1.bf16.msra.mxu1 %v13723_v27  ;;  %v13770_v57 = vld [vmem:[%s19067_s12 + $0x130] ss:$28 sps:$4 sm:$0xff]   ;;  %v13777_v16 = vld [vmem:[%s19067_s12 + $0x328] ss:$28 sps:$4 sm:$0xff]   ;;  %v13750_v49 = vld [vmem:[%s19067_s12 + $0x160] ss:$28 sps:$4 sm:$0xff]  }
 0x68a   : > { %11764 = vmatprep.subr.bf16.mxu1 %v13729_v39  ;;  %v13757_v60 = vld [vmem:[%s19067_s12 + $0x19c] ss:$28 sps:$4 sm:$0xff]   ;;  %v13778_v18 = vld [vmem:[%s19067_s12 + $0x168] ss:$28 sps:$4 sm:$0xff]   ;;  %v13760_v52 = vld [vmem:[%s19067_s12 + $0x1d4] ss:$28 sps:$4 sm:$0xff]  }
 0x68b   : > { %v13785_v9 = vld [vmem:[%s19067_s12 + $0x360] ss:$28 sps:$4 sm:$0xff]   ;;  %v13755_v11 = vld [vmem:[%s19067_s12 + $0x198] ss:$28 sps:$4 sm:$0xff]  }
 0x68c   : > { %9155 = vmatmul.mubr.bf16.vlgmr.msra.gmra.mrb[128].mxu0 %v17818_v61  ;;  %9381 = vmatmul.mubr.bf16.vlgmr.msra.gmra.mrb[160].mxu1 %v17818_v61  ;;  %v13786_v27 = vld [vmem:[%s19067_s12 + $0x1a0] ss:$28 sps:$4 sm:$0xff]   ;;  %v13793_v39 = vld [vmem:[%s19067_s12 + $0x558] ss:$28 sps:$4 sm:$0xff]  }
 0x68d   : > { %9164 = vmatprep.mubr.bf16.mxu0 %v17880_v2  ;;  %9390 = vmatprep.mubr.bf16.mxu1 %v17880_v2 }
 0x68e   : > { %9462 = vmatpush1.bf16.msra.mxu0 %v13726_v32  ;;  %11765 = vmatpush3.bf16.msra.mxu1 %v13730_v50  ;;  %v13758_v32 = vld [vmem:[%s19067_s12 + $0x1d0] ss:$28 sps:$4 sm:$0xff]  }
 0x68f   : > { %9463 = vmatprep.subr.bf16.mxu0 %v13733_v26  ;;  %11766 = vmatprep.subr.bf16.mxu1 %v13737_v51  ;;  %v13765_v50 = vld [vmem:[%s19067_s12 + $0x20c] ss:$28 sps:$4 sm:$0xff]   ;;  %v13768_v51 = vld [vmem:[%s19067_s12 + $0x244] ss:$28 sps:$4 sm:$0xff]  }
 0x690   : > { %v13763_v26 = vld [vmem:[%s19067_s12 + $0x208] ss:$28 sps:$4 sm:$0xff]  }
 0x692   : > { %9464 = vmatpush1.bf16.msra.mxu0 %v13731_v10  ;;  %11767 = vmatpush3.bf16.msra.mxu1 %v13738_v25  ;;  %v13766_v10 = vld [vmem:[%s19067_s12 + $0x240] ss:$28 sps:$4 sm:$0xff]   ;;  %v13771_v25 = vld [vmem:[%s19067_s12 + $0x278] ss:$28 sps:$4 sm:$0xff]  }
 0x693   : > { %9465 = vmatprep.subr.bf16.mxu0 %v13736_v12  ;;  %11768 = vmatprep.subr.bf16.mxu1 %v13745_v58  ;;  %v13773_v12 = vld [vmem:[%s19067_s12 + $0x27c] ss:$28 sps:$4 sm:$0xff]   ;;  %v13776_v58 = vld [vmem:[%s19067_s12 + $0x2b4] ss:$28 sps:$4 sm:$0xff]  }
 0x694   : > { %9165 = vmatmul.mubr.bf16.gmra.mrb[132].mxu0 %v17868_v19  ;;  %9391 = vmatmul.mubr.bf16.gmra.mrb[164].mxu1 %v17868_v19 }
 0x695   : > { %9174 = vmatprep.mubr.bf16.mxu0 %v17922_v23  ;;  %9400 = vmatprep.mubr.bf16.mxu1 %v17922_v23 }
 0x696   : > { %9466 = vmatpush1.bf16.msra.mxu0 %v13734_v30  ;;  %11769 = vmatpush3.bf16.msra.mxu1 %v13746_v62  ;;  %v13774_v30 = vld [vmem:[%s19067_s12 + $0x2b0] ss:$28 sps:$4 sm:$0xff]   ;;  %v13779_v62 = vld [vmem:[%s19067_s12 + $0x2e8] ss:$28 sps:$4 sm:$0xff]  }
 0x697   : > { %9467 = vmatprep.subr.bf16.mxu0 %v13741_v8  ;;  %11770 = vmatprep.subr.bf16.mxu1 %v13753_v55  ;;  %v13781_v8 = vld [vmem:[%s19067_s12 + $0x2ec] ss:$28 sps:$4 sm:$0xff]   ;;  %v13784_v55 = vld [vmem:[%s19067_s12 + $0x324] ss:$28 sps:$4 sm:$0xff]  }
 0x69a   : > { %9468 = vmatpush1.bf16.msra.mxu0 %v13739_v5  ;;  %11771 = vmatpush3.bf16.msra.mxu1 %v13754_v1  ;;  %v13782_v5 = vld [vmem:[%s19067_s12 + $0x320] ss:$28 sps:$4 sm:$0xff]   ;;  %v13787_v1 = vld [vmem:[%s19067_s12 + $0x358] ss:$28 sps:$4 sm:$0xff]  }
 0x69b   : > { %9469 = vmatprep.subr.bf16.mxu0 %v13744_v21  ;;  %11772 = vmatprep.subr.bf16.mxu1 %v13761_v56  ;;  %v13789_v21 = vld [vmem:[%s19067_s12 + $0x35c] ss:$28 sps:$4 sm:$0xff]   ;;  %v13792_v56 = vld [vmem:[%s19067_s12 + $0x394] ss:$28 sps:$4 sm:$0xff]  }
 0x69c   : > { %9175 = vmatmul.mubr.bf16.gmra.mrb[136].mxu0 %v17913_v20  ;;  %9401 = vmatmul.mubr.bf16.gmra.mrb[168].mxu1 %v17913_v20 }
 0x69d   : > { %9184 = vmatprep.mubr.bf16.mxu0 %v17987_v45  ;;  %9410 = vmatprep.mubr.bf16.mxu1 %v17987_v45 }
 0x69e   : > { %9470 = vmatpush1.bf16.msra.mxu0 %v13742_v17  ;;  %11773 = vmatpush3.bf16.msra.mxu1 %v13762_v54  ;;  %v13790_v17 = vld [vmem:[%s19067_s12 + $0x390] ss:$28 sps:$4 sm:$0xff]  }
 0x69f   : > { %9471 = vmatprep.subr.bf16.mxu0 %v13749_v42  ;;  %11774 = vmatprep.subr.bf16.mxu1 %v13769_v44  ;;  %v13794_v42 = vld [vmem:[%s19067_s12 + $0x398] ss:$28 sps:$4 sm:$0xff]   ;;  %v13801_v54 = vld [vmem:[%s19067_s12 + $0x590] ss:$28 sps:$4 sm:$0xff]   ;;  %v13795_v44 = vld [vmem:[%s19067_s12 + $0x3c8] ss:$28 sps:$4 sm:$0xff]  }
 0x6a2   : > { %9472 = vmatpush1.bf16.msra.mxu0 %v13747_v0  ;;  %11775 = vmatpush3.bf16.msra.mxu1 %v13770_v57  ;;  %v13800_v0 = vld [vmem:[%s19067_s12 + $0x404] ss:$28 sps:$4 sm:$0xff]   ;;  %v13805_v57 = vld [vmem:[%s19067_s12 + $0x43c] ss:$28 sps:$4 sm:$0xff]  }
 0x6a3   : > { %9473 = vmatprep.subr.bf16.mxu0 %v13752_v29  ;;  %11776 = vmatprep.subr.bf16.mxu1 %v13777_v16  ;;  %v13802_v29 = vld [vmem:[%s19067_s12 + $0x3d0] ss:$28 sps:$4 sm:$0xff]   ;;  %v13810_v16 = vld [vmem:[%s19067_s12 + $0x408] ss:$28 sps:$4 sm:$0xff]  }
 0x6a4   : > { %9185 = vmatmul.mubr.bf16.gmra.mrb[140].mxu0 %v17963_v35  ;;  %9411 = vmatmul.mubr.bf16.gmra.mrb[172].mxu1 %v17963_v35 }
 0x6a5   : > { %9194 = vmatprep.mubr.bf16.mxu0 %v18031_v31  ;;  %9420 = vmatprep.mubr.bf16.mxu1 %v18031_v31 }
 0x6a6   : > { %9474 = vmatpush1.bf16.msra.mxu0 %v13750_v49  ;;  %11777 = vmatpush3.bf16.msra.mxu1 %v13778_v18  ;;  %v13817_v49 = vld [vmem:[%s19067_s12 + $0x600] ss:$28 sps:$4 sm:$0xff]   ;;  %v13808_v18 = vld [vmem:[%s19067_s12 + $0x474] ss:$28 sps:$4 sm:$0xff]  }
 0x6a7   : > { %9475 = vmatprep.subr.bf16.mxu0 %v13757_v60  ;;  %11778 = vmatprep.subr.bf16.mxu1 %v13785_v9  ;;  %v13803_v60 = vld [vmem:[%s19067_s12 + $0x438] ss:$28 sps:$4 sm:$0xff]   ;;  %v13806_v9 = vld [vmem:[%s19067_s12 + $0x470] ss:$28 sps:$4 sm:$0xff]  }
 0x6aa   : > { %9476 = vmatpush1.bf16.msra.mxu0 %v13755_v11  ;;  %11779 = vmatpush3.bf16.msra.mxu1 %v13786_v27  ;;  %v13825_v11 = vld [vmem:[%s19067_s12 + $0x638] ss:$28 sps:$4 sm:$0xff]   ;;  %v13811_v27 = vld [vmem:[%s19067_s12 + $0x4a8] ss:$28 sps:$4 sm:$0xff]  }
 0x6ab   : > { %9477 = vmatprep.subr.bf16.mxu0 %v13760_v52  ;;  %11828 = vmatprep.subr.bf16.mxu1 %v13793_v39  ;;  %v13826_v52 = vld [vmem:[%s19067_s12 + $0x478] ss:$28 sps:$4 sm:$0xff]   ;;  %v13833_v39 = vld [vmem:[%s19067_s12 + $0x670] ss:$28 sps:$4 sm:$0xff]  }
 0x6ac   : > { %9195 = vmatmul.mubr.bf16.gmra.mrb[144].mxu0 %v18011_v4  ;;  %9421 = vmatmul.mubr.bf16.gmra.mrb[176].mxu1 %v18011_v4 }
 0x6ad   : > { %9204 = vmatprep.mubr.bf16.mxu0 %v18075_v3  ;;  %9430 = vmatprep.mubr.bf16.mxu1 %v18075_v3 }
 0x6ae   : > { %9478 = vmatpush1.bf16.msra.mxu0 %v13758_v32  ;;  %v13814_v32 = vld [vmem:[%s19067_s12 + $0x4e0] ss:$28 sps:$4 sm:$0xff]  }
 0x6af   : > { %9479 = vmatprep.subr.bf16.mxu0 %v13765_v50  ;;  %v13821_v50 = vld [vmem:[%s19067_s12 + $0x51c] ss:$28 sps:$4 sm:$0xff]  }
 0x6b2   : > { %9480 = vmatpush1.bf16.msra.mxu0 %v13763_v26  ;;  %v13841_v26 = vld [vmem:[%s19067_s12 + $0x6a8] ss:$28 sps:$4 sm:$0xff]  }
 0x6b3   : > { %9481 = vmatprep.subr.bf16.mxu0 %v13768_v51  ;;  %v13819_v51 = vld [vmem:[%s19067_s12 + $0x518] ss:$28 sps:$4 sm:$0xff]  }
 0x6b4   : > { %9205 = vmatmul.mubr.bf16.gmra.mrb[148].mxu0 %v18054_v40  ;;  %9431 = vmatmul.mubr.bf16.gmra.mrb[180].mxu1 %v18054_v40 }
 0x6b5   : > { %9214 = vmatprep.mubr.bf16.mxu0 %v18112_v38  ;;  %9440 = vmatprep.mubr.bf16.mxu1 %v18112_v38 }
 0x6b6   : > { %9482 = vmatpush1.bf16.msra.mxu0 %v13766_v10  ;;  %v13824_v10 = vld [vmem:[%s19067_s12 + $0x554] ss:$28 sps:$4 sm:$0xff]  }
 0x6b7   : > { %9483 = vmatprep.subr.bf16.mxu0 %v13773_v12  ;;  %v13822_v12 = vld [vmem:[%s19067_s12 + $0x550] ss:$28 sps:$4 sm:$0xff]  }
 0x6ba   : > { %9484 = vmatpush1.bf16.msra.mxu0 %v13771_v25  ;;  %v13849_v25 = vld [vmem:[%s19067_s12 + $0x6e0] ss:$28 sps:$4 sm:$0xff]  }
 0x6bb   : > { %9485 = vmatprep.subr.bf16.mxu0 %v13776_v58  ;;  %v13850_v58 = vld [vmem:[%s19067_s12 + $0x520] ss:$28 sps:$4 sm:$0xff]  }
 0x6bc   : > { %9215 = vmatmul.mubr.bf16.gmra.mrb[152].mxu0 %v18102_v14  ;;  %9441 = vmatmul.mubr.bf16.gmra.mrb[184].mxu1 %v18102_v14 }
 0x6bd   : > { %9224 = vmatprep.mubr.bf16.mxu0 %v18155_v6  ;;  %9450 = vmatprep.mubr.bf16.mxu1 %v18155_v6 }
 0x6be   : > { %9486 = vmatpush1.bf16.msra.mxu0 %v13774_v30  ;;  %v13827_v30 = vld [vmem:[%s19067_s12 + $0x588] ss:$28 sps:$4 sm:$0xff]  }
 0x6bf   : > { %9487 = vmatprep.subr.bf16.mxu0 %v13781_v8  ;;  %v13832_v8 = vld [vmem:[%s19067_s12 + $0x5c4] ss:$28 sps:$4 sm:$0xff]  }
 0x6c2   : > { %9488 = vmatpush1.bf16.msra.mxu0 %v13779_v62  ;;  %v13837_v62 = vld [vmem:[%s19067_s12 + $0x5fc] ss:$28 sps:$4 sm:$0xff]  }
 0x6c3   : > { %9489 = vmatprep.subr.bf16.mxu0 %v13784_v55  ;;  %v13840_v55 = vld [vmem:[%s19067_s12 + $0x634] ss:$28 sps:$4 sm:$0xff]  }
 0x6c4   : > { %9225 = vmatmul.mubr.bf16.gmra.mrb[156].mxu0 %v18147_v13  ;;  %9451 = vmatmul.mubr.bf16.gmra.mrb[188].mxu1 %v18147_v13 }
 0x6c5   : > { %9493 = vmatprep.mubr.bf16.mxu0 %v17820_v24  ;;  %9719 = vmatprep.mubr.bf16.mxu1 %v17820_v24  ;;  %v13797_v24 = vld [vmem:[%s19067_s12 + $0x3cc] ss:$28 sps:$4 sm:$0xff]  }
 0x6c6   : > { %9490 = vmatpush1.bf16.msra.mxu0 %v13782_v5  ;;  %v13838_v5 = vld [vmem:[%s19067_s12 + $0x630] ss:$28 sps:$4 sm:$0xff]  }
 0x6c7   : > { %9491 = vmatprep.subr.bf16.mxu0 %v13789_v21  ;;  %v13848_v21 = vld [vmem:[%s19067_s12 + $0x6a4] ss:$28 sps:$4 sm:$0xff]  }
 0x6ca   : > { %9492 = vmatpush1.bf16.msra.mxu0 %v13787_v1  ;;  %v13846_v1 = vld [vmem:[%s19067_s12 + $0x6a0] ss:$28 sps:$4 sm:$0xff]  }
 0x6cb   : > { %9574 = vmatprep.subr.bf16.mxu0 %v13792_v56 }
 0x6cc   : > { %9720 = vmatmul.mubr.bf16.vlgmr.msra.gmra.mrb[192].mxu1 %v17816_v36 }
 0x6cd   : > { %9494 = vmatmul.mubr.bf16.vlgmr.msra.gmra.mrb[160].mxu0 %v17816_v36  ;;  %9727 = vmatprep.mubr.bf16.mxu1 %v17870_v33  ;;  %v13809_v36 = vld [vmem:[%s19067_s12 + $0x5c8] ss:$28 sps:$4 sm:$0xff]  }
 0x6ce   : > { %9503 = vmatprep.mubr.bf16.mxu0 %v17870_v33  ;;  %9575 = vmatpush1.bf16.msra.mxu0 %v13790_v17  ;;  %v13798_v33 = vld [vmem:[%s19067_s12 + $0x400] ss:$28 sps:$4 sm:$0xff]  }
 0x6cf   : > { %11829 = vmatpush3.bf16.msra.mxu1 %v13794_v42  ;;  %9576 = vmatprep.subr.bf16.mxu0 %v13797_v24 }
 0x6d0   : > { %11830 = vmatprep.subr.bf16.mxu1 %v13801_v54 }
 0x6d2   : > { %9577 = vmatpush1.bf16.msra.mxu0 %v13795_v44 }
 0x6d3   : > { %9578 = vmatprep.subr.bf16.mxu0 %v13800_v0  ;;  %11831 = vmatpush3.bf16.msra.mxu1 %v13802_v29 }
 0x6d4   : > { %11832 = vmatprep.subr.bf16.mxu1 %v13809_v36  ;;  %9728 = vmatmul.mubr.bf16.gmra.mrb[196].mxu1 %v17861_v53 }
 0x6d5   : > { %9504 = vmatmul.mubr.bf16.gmra.mrb[164].mxu0 %v17861_v53  ;;  %9735 = vmatprep.mubr.bf16.mxu1 %v17920_v43  ;;  %v13818_v53 = vld [vmem:[%s19067_s12 + $0x440] ss:$28 sps:$4 sm:$0xff]  }
 0x6d6   : > { %9513 = vmatprep.mubr.bf16.mxu0 %v17920_v43  ;;  %9579 = vmatpush1.bf16.msra.mxu0 %v13798_v33  ;;  %v13813_v43 = vld [vmem:[%s19067_s12 + $0x4ac] ss:$28 sps:$4 sm:$0xff]  }
 0x6d7   : > { %9580 = vmatprep.subr.bf16.mxu0 %v13805_v57  ;;  %11833 = vmatpush3.bf16.msra.mxu1 %v13810_v16 }
 0x6d8   : > { %11834 = vmatprep.subr.bf16.mxu1 %v13817_v49 }
 0x6da   : > { %9581 = vmatpush1.bf16.msra.mxu0 %v13803_v60 }
 0x6db   : > { %9582 = vmatprep.subr.bf16.mxu0 %v13808_v18  ;;  %11835 = vmatpush3.bf16.msra.mxu1 %v13818_v53 }
 0x6dc   : > { %9736 = vmatmul.mubr.bf16.gmra.mrb[200].mxu1 %v17911_v46  ;;  %11836 = vmatprep.subr.bf16.mxu1 %v13825_v11 }
 0x6dd   : > { %9514 = vmatmul.mubr.bf16.gmra.mrb[168].mxu0 %v17911_v46  ;;  %9743 = vmatprep.mubr.bf16.mxu1 %v17971_v47  ;;  %v13816_v46 = vld [vmem:[%s19067_s12 + $0x4e4] ss:$28 sps:$4 sm:$0xff]  }
 0x6de   : > { %9523 = vmatprep.mubr.bf16.mxu0 %v17971_v47  ;;  %9583 = vmatpush1.bf16.msra.mxu0 %v13806_v9  ;;  %v13834_v47 = vld [vmem:[%s19067_s12 + $0x4b0] ss:$28 sps:$4 sm:$0xff]  }
 0x6df   : > { %9584 = vmatprep.subr.bf16.mxu0 %v13813_v43  ;;  %11837 = vmatpush3.bf16.msra.mxu1 %v13826_v52 }
 0x6e0   : > { %11838 = vmatprep.subr.bf16.mxu1 %v13833_v39 }
 0x6e2   : > { %9585 = vmatpush1.bf16.msra.mxu0 %v13811_v27 }
 0x6e3   : > { %9586 = vmatprep.subr.bf16.mxu0 %v13816_v46  ;;  %11839 = vmatpush3.bf16.msra.mxu1 %v13834_v47 }
 0x6e4   : > { %9744 = vmatmul.mubr.bf16.gmra.mrb[204].mxu1 %v17961_v22  ;;  %11840 = vmatprep.subr.bf16.mxu1 %v13841_v26 }
 0x6e5   : > { %9524 = vmatmul.mubr.bf16.gmra.mrb[172].mxu0 %v17961_v22  ;;  %9751 = vmatprep.mubr.bf16.mxu1 %v18021_v41  ;;  %v13842_v22 = vld [vmem:[%s19067_s12 + $0x4e8] ss:$28 sps:$4 sm:$0xff]  }
 0x6e6   : > { %9533 = vmatprep.mubr.bf16.mxu0 %v18021_v41  ;;  %9587 = vmatpush1.bf16.msra.mxu0 %v13814_v32  ;;  %v13829_v41 = vld [vmem:[%s19067_s12 + $0x58c] ss:$28 sps:$4 sm:$0xff]  }
 0x6e7   : > { %9588 = vmatprep.subr.bf16.mxu0 %v13821_v50  ;;  %11841 = vmatpush3.bf16.msra.mxu1 %v13842_v22 }
 0x6e8   : > { %11842 = vmatprep.subr.bf16.mxu1 %v13849_v25 }
 0x6ea   : > { %9589 = vmatpush1.bf16.msra.mxu0 %v13819_v51 }
 0x6eb   : > { %9590 = vmatprep.subr.bf16.mxu0 %v13824_v10  ;;  %11843 = vmatpush3.bf16.msra.mxu1 %v13850_v58 }
 0x6ec   : > { %9752 = vmatmul.mubr.bf16.gmra.mrb[208].mxu1 %v18005_v28 }
 0x6ed   : > { %9534 = vmatmul.mubr.bf16.gmra.mrb[176].mxu0 %v18005_v28  ;;  %9759 = vmatprep.mubr.bf16.mxu1 %v18065_v15  ;;  %v13830_v28 = vld [vmem:[%s19067_s12 + $0x5c0] ss:$28 sps:$4 sm:$0xff]  }
 0x6ee   : > { %9543 = vmatprep.mubr.bf16.mxu0 %v18065_v15  ;;  %9591 = vmatpush1.bf16.msra.mxu0 %v13822_v12  ;;  %v13835_v15 = vld [vmem:[%s19067_s12 + $0x5f8] ss:$28 sps:$4 sm:$0xff]  }
 0x6ef   : > { %9592 = vmatprep.subr.bf16.mxu0 %v13829_v41 }
 0x6f2   : > { %9593 = vmatpush1.bf16.msra.mxu0 %v13827_v30 }
 0x6f3   : > { %9594 = vmatprep.subr.bf16.mxu0 %v13832_v8 }
 0x6f4   : > { %9760 = vmatmul.mubr.bf16.gmra.mrb[212].mxu1 %v18049_v59 }
 0x6f5   : > { %9544 = vmatmul.mubr.bf16.gmra.mrb[180].mxu0 %v18049_v59  ;;  %9767 = vmatprep.mubr.bf16.mxu1 %v18104_v37  ;;  %v13845_v59 = vld [vmem:[%s19067_s12 + $0x66c] ss:$28 sps:$4 sm:$0xff]  }
 0x6f6   : > { %9553 = vmatprep.mubr.bf16.mxu0 %v18104_v37  ;;  %9595 = vmatpush1.bf16.msra.mxu0 %v13830_v28  ;;  %v13843_v37 = vld [vmem:[%s19067_s12 + $0x668] ss:$28 sps:$4 sm:$0xff]  }
 0x6f7   : > { %9596 = vmatprep.subr.bf16.mxu0 %v13837_v62 }
 0x6fa   : > { %9597 = vmatpush1.bf16.msra.mxu0 %v13835_v15 }
 0x6fb   : > { %9598 = vmatprep.subr.bf16.mxu0 %v13840_v55 }
 0x6fc   : > { %9768 = vmatmul.mubr.bf16.gmra.mrb[216].mxu1 %v18098_v34 }
 0x6fd   : > { %9554 = vmatmul.mubr.bf16.gmra.mrb[184].mxu0 %v18098_v34  ;;  %9775 = vmatprep.mubr.bf16.mxu1 %v18150_v48  ;;  %v13853_v34 = vld [vmem:[%s19067_s12 + $0x6dc] ss:$28 sps:$4 sm:$0xff]  }
 0x6fe   : > { %9563 = vmatprep.mubr.bf16.mxu0 %v18150_v48  ;;  %9599 = vmatpush1.bf16.msra.mxu0 %v13838_v5  ;;  %v13851_v48 = vld [vmem:[%s19067_s12 + $0x6d8] ss:$28 sps:$4 sm:$0xff]  }
 0x6ff   : > { %9600 = vmatprep.subr.bf16.mxu0 %v13845_v59 }
 0x702   : > { %9601 = vmatpush1.bf16.msra.mxu0 %v13843_v37 }
 0x703   : > { %9602 = vmatprep.subr.bf16.mxu0 %v13848_v21 }
 0x704   : > { %9776 = vmatmul.mubr.bf16.gmra.mrb[220].mxu1 %v18145_v63 }
 0x705   : > { %9564 = vmatmul.mubr.bf16.gmra.mrb[188].mxu0 %v18145_v63  ;;  %9816 = vmatprep.mubr.bf16.mxu1 %v17822_v7 }
 0x706   : > { %9603 = vmatpush1.bf16.msra.mxu0 %v13846_v1  ;;  %9606 = vmatprep.mubr.bf16.mxu0 %v17822_v7  ;;  %v19179_v7 = vld [vmem:[#allocation3_spill] sm:$0xff] }
 0x707   : > { %9604 = vmatprep.subr.bf16.mxu0 %v13853_v34 }
 0x70a   : > { %9605 = vmatpush1.bf16.msra.mxu0 %v13851_v48 }
 0x70c   : > { %9817 = vmatmul.mubr.bf16.vlgmr.msra.gmra.mrb[224].mxu1 %v17818_v61 }
 0x70d   : > { %9607 = vmatmul.mubr.bf16.vlgmr.msra.gmra.mrb[160].mxu0 %v17818_v61  ;;  %9824 = vmatprep.mubr.bf16.mxu1 %v17880_v2  ;;  %v7820_v61 = vld [vmem:[%s19068_s13] sm:$0xff] }
 0x70e   : > { %9616 = vmatprep.mubr.bf16.mxu0 %v17880_v2  ;;  %v19180_v2 = vld [vmem:[#allocation4_spill] sm:$0xff] }
 0x714   : > { %9825 = vmatmul.mubr.bf16.gmra.mrb[228].mxu1 %v17868_v19 }
 0x715   : > { %9617 = vmatmul.mubr.bf16.gmra.mrb[164].mxu0 %v17868_v19  ;;  %9832 = vmatprep.mubr.bf16.mxu1 %v17922_v23  ;;  %v18564_v19 = vrot.slane %v7820_v61, %v19179_v7 }
 0x716   : > { %9626 = vmatprep.mubr.bf16.mxu0 %v17922_v23  ;;  %v19181_v23 = vld [vmem:[#allocation5_spill] sm:$0xff] }
 0x71c   : > { %9833 = vmatmul.mubr.bf16.gmra.mrb[232].mxu1 %v17913_v20 }
 0x71d   : > { %9627 = vmatmul.mubr.bf16.gmra.mrb[168].mxu0 %v17913_v20  ;;  %9840 = vmatprep.mubr.bf16.mxu1 %v17987_v45  ;;  %v18567_v20 = vrot.slane %v7820_v61, %v19180_v2 }
 0x71e   : > { %9636 = vmatprep.mubr.bf16.mxu0 %v17987_v45 }
 0x724   : > { %9841 = vmatmul.mubr.bf16.gmra.mrb[236].mxu1 %v17963_v35 }
 0x725   : > { %9637 = vmatmul.mubr.bf16.gmra.mrb[172].mxu0 %v17963_v35  ;;  %9848 = vmatprep.mubr.bf16.mxu1 %v18031_v31  ;;  %v19182_v35 = vld [vmem:[#allocation6_spill] sm:$0xff] }
 0x726   : > { %9646 = vmatprep.mubr.bf16.mxu0 %v18031_v31  ;;  %v18573_v45 = vrot.slane %v7820_v61, %v19182_v35 }
 0x72c   : > { %9849 = vmatmul.mubr.bf16.gmra.mrb[240].mxu1 %v18011_v4 }
 0x72d   : > { %9647 = vmatmul.mubr.bf16.gmra.mrb[176].mxu0 %v18011_v4  ;;  %9856 = vmatprep.mubr.bf16.mxu1 %v18075_v3 }
 0x72e   : > { %9656 = vmatprep.mubr.bf16.mxu0 %v18075_v3 }
 0x734   : > { %9857 = vmatmul.mubr.bf16.gmra.mrb[244].mxu1 %v18054_v40 }
 0x735   : > { %9657 = vmatmul.mubr.bf16.gmra.mrb[180].mxu0 %v18054_v40  ;;  %9864 = vmatprep.mubr.bf16.mxu1 %v18112_v38 }
 0x736   : > { %9666 = vmatprep.mubr.bf16.mxu0 %v18112_v38 }
 0x73c   : > { %9865 = vmatmul.mubr.bf16.gmra.mrb[248].mxu1 %v18102_v14 }
 0x73d   : > { %9667 = vmatmul.mubr.bf16.gmra.mrb[184].mxu0 %v18102_v14  ;;  %9872 = vmatprep.mubr.bf16.mxu1 %v18155_v6  ;;  %v18570_v14 = vrot.slane %v7820_v61, %v19181_v23 }
 0x73e   : > { %9676 = vmatprep.mubr.bf16.mxu0 %v18155_v6 }
 0x744   : > { %9873 = vmatmul.mubr.bf16.gmra.mrb[252].mxu1 %v18147_v13 }
 0x745   : > { %9677 = vmatmul.mubr.bf16.gmra.mrb[188].mxu0 %v18147_v13 }
 0x75f   : > { %v9156_v4 = vpop.f32.mrb[128].mxu0  ;;  %v9382_v40 = vpop.f32.mrb[160].mxu1 }
 0x760   : > { %v12116_v31 = vadd.f32 %v9156_v4, %v18564_v19  ;;  %v9158_v3 = vpop.f32.mrb[129].mxu0  ;;  %v12148_v38 = vadd.f32 %v9382_v40, %v18567_v20  ;;  %v9384_v13 = vpop.f32.mrb[161].mxu1 }
 0x761   : > { %v12117_v63 = vadd.f32 %v9158_v3, %v18570_v14  ;;  %v9160_v6 = vpop.f32.mrb[130].mxu0  ;;  %v12149_v17 = vadd.f32 %v9384_v13, %v18573_v45  ;;  %v9386_v24 = vpop.f32.mrb[162].mxu1 }
 0x762   : > { %v11650_v56 = vmul.f32 -1.442695, %v12116_v31  ;;  %v12118_v42 = vadd.f32 %v9160_v6, %v18564_v19  ;;  %v9162_v54 = vpop.f32.mrb[131].mxu0  ;;  %v11652_v44 = vmul.f32 -1.442695, %v12148_v38  ;;  %v12150_v29 = vadd.f32 %v9386_v24, %v18567_v20  ;;  %v9388_v33 = vpop.f32.mrb[163].mxu1 }
 0x763   : > { %v11651_v0 = vmul.f32 -1.442695, %v12117_v63  ;;  %v12119_v36 = vadd.f32 %v9162_v54, %v18570_v14  ;;  %v11653_v57 = vmul.f32 -1.442695, %v12149_v17  ;;  %v12151_v49 = vadd.f32 %v9388_v33, %v18573_v45 }
 0x764   : > { %13886 = vpow2.f32 %v11650_v56  ;;  %v11657_v16 = vmul.f32 -1.442695, %v12118_v42  ;;  %v11659_v60 = vmul.f32 -1.442695, %v12150_v29 }
 0x765   : > { %13888 = vpow2.f32 %v11652_v44  ;;  %v11658_v18 = vmul.f32 -1.442695, %v12119_v36  ;;  %v11660_v53 = vmul.f32 -1.442695, %v12151_v49 }
 0x766   : > { %13890 = vpow2.f32 %v11651_v0 }
 0x767   : > { %13892 = vpow2.f32 %v11653_v57  ;;  %v9166_v9 = vpop.f32.mrb[132].mxu0  ;;  %v9392_v11 = vpop.f32.mrb[164].mxu1 }
 0x768   : > { %13894 = vpow2.f32 %v11657_v16  ;;  %v12120_v43 = vadd.f32 %v9166_v9, %v18564_v19  ;;  %v9168_v52 = vpop.f32.mrb[133].mxu0  ;;  %v12152_v27 = vadd.f32 %v9392_v11, %v18567_v20  ;;  %v9394_v46 = vpop.f32.mrb[165].mxu1 }
 0x769   : > { %13896 = vpow2.f32 %v11659_v60  ;;  %v12121_v39 = vadd.f32 %v9168_v52, %v18570_v14  ;;  %v9170_v32 = vpop.f32.mrb[134].mxu0  ;;  %v12153_v47 = vadd.f32 %v9394_v46, %v18573_v45  ;;  %v9396_v51 = vpop.f32.mrb[166].mxu1 }
 0x76a   : > { %13898 = vpow2.f32 %v11658_v18  ;;  %v11664_v50 = vmul.f32 -1.442695, %v12120_v43  ;;  %v12122_v26 = vadd.f32 %v9170_v32, %v18564_v19  ;;  %v9172_v10 = vpop.f32.mrb[135].mxu0  ;;  %v11666_v22 = vmul.f32 -1.442695, %v12152_v27  ;;  %v9398_v41 = vpop.f32.mrb[167].mxu1 }
 0x76b   : > { %13900 = vpow2.f32 %v11660_v53  ;;  %v11665_v12 = vmul.f32 -1.442695, %v12121_v39  ;;  %v11667_v25 = vmul.f32 -1.442695, %v12153_v47  ;;  %v12154_v6 = vadd.f32 %v9396_v51, %v18567_v20 }
 0x76c   : > { %13902 = vpow2.f32 %v11664_v50  ;;  %v11671_v58 = vmul.f32 -1.442695, %v12122_v26  ;;  %v12123_v42 = vadd.f32 %v9172_v10, %v18570_v14  ;;  %v12155_v0 = vadd.f32 %v9398_v41, %v18573_v45 }
 0x76d   : > { %13904 = vpow2.f32 %v11666_v22  ;;  %v11673_v9 = vmul.f32 -1.442695, %v12154_v6 }
 0x76e   : > { %v13887_v30 = vpop.eup %13886  ;;  %13906 = vpow2.f32 %v11665_v12  ;;  %v11672_v46 = vmul.f32 -1.442695, %v12123_v42  ;;  %v11674_v26 = vmul.f32 -1.442695, %v12155_v0 }
 0x76f   : > { %v13889_v8 = vpop.eup %13888  ;;  %v10217_v28 = vadd.f32 1.0, %v13887_v30  ;;  %13908 = vpow2.f32 %v11667_v25  ;;  %v9176_v62 = vpop.f32.mrb[136].mxu0 }
 0x770   : > { %v13891_v15 = vpop.eup %13890  ;;  %v10219_v55 = vadd.f32 1.0, %v13889_v8  ;;  %13910 = vpow2.f32 %v11671_v58  ;;  %v9402_v5 = vpop.f32.mrb[168].mxu1  ;;  %v12124_v16 = vadd.f32 %v9176_v62, %v18564_v19 }
 0x771   : > { %v9178_v59 = vpop.f32.mrb[137].mxu0  ;;  %v13893_v37 = vpop.eup %13892  ;;  %13912 = vrcp.f32 %v10217_v28  ;;  %v10218_v21 = vadd.f32 1.0, %v13891_v15  ;;  %v12156_v43 = vadd.f32 %v9402_v5, %v18567_v20 }
 0x772   : > { %v9404_v1 = vpop.f32.mrb[169].mxu1  ;;  %v9180_v34 = vpop.f32.mrb[138].mxu0  ;;  %13914 = vrcp.f32 %v10219_v55  ;;  %v10220_v61 = vadd.f32 1.0, %v13893_v37  ;;  %v12125_v32 = vadd.f32 %v9178_v59, %v18570_v14  ;;  %v11678_v22 = vmul.f32 -1.442695, %v12124_v16 }
 0x773   : > { %v13895_v48 = vpop.eup %13894  ;;  %v9406_v7 = vpop.f32.mrb[170].mxu1  ;;  %13916 = vrcp.f32 %v10218_v21  ;;  %v12157_v51 = vadd.f32 %v9404_v1, %v18573_v45  ;;  %v12126_v12 = vadd.f32 %v9180_v34, %v18564_v19  ;;  %v11680_v25 = vmul.f32 -1.442695, %v12156_v43 }
 0x774   : > { %v18588_v2 = vpop.f32.mrb[139].mxu0  ;;  %v13897_v23 = vpop.eup %13896  ;;  %v10224_v35 = vadd.f32 1.0, %v13895_v48  ;;  %13918 = vrcp.f32 %v10220_v61  ;;  %v12158_v58 = vadd.f32 %v9406_v7, %v18567_v20  ;;  %v11679_v8 = vmul.f32 -1.442695, %v12125_v32 }
 0x775   : > { %v18590_v4 = vpop.f32.mrb[171].mxu1  ;;  %v13899_v31 = vpop.eup %13898  ;;  %v10226_v40 = vadd.f32 1.0, %v13897_v23  ;;  %v12127_v28 = vadd.f32 %v18588_v2, %v18570_v14  ;;  %v11681_v55 = vmul.f32 -1.442695, %v12157_v51  ;;  %v11685_v1 = vmul.f32 -1.442695, %v12126_v12 }
 0x776   : > { %v13901_v3 = vpop.eup %13900  ;;  %13920 = vrcp.f32 %v10224_v35  ;;  %v10225_v38 = vadd.f32 1.0, %v13899_v31  ;;  %v12159_v5 = vadd.f32 %v18590_v4, %v18573_v45  ;;  %v11687_v2 = vmul.f32 -1.442695, %v12158_v58 }
 0x777   : > { %v13903_v63 = vpop.eup %13902  ;;  %13922 = vrcp.f32 %v10226_v40  ;;  %v10227_v13 = vadd.f32 1.0, %v13901_v3  ;;  %v9186_v24 = vpop.f32.mrb[140].mxu0  ;;  %v11686_v40 = vmul.f32 -1.442695, %v12127_v28 }
 0x778   : > { %v13905_v56 = vpop.eup %13904  ;;  %13924 = vrcp.f32 %v10225_v38  ;;  %v10231_v17 = vadd.f32 1.0, %v13903_v63  ;;  %v9412_v29 = vpop.f32.mrb[172].mxu1  ;;  %v12128_v34 = vadd.f32 %v9186_v24, %v18564_v19  ;;  %v11688_v63 = vmul.f32 -1.442695, %v12159_v5 }
 0x779   : > { %v13907_v54 = vpop.eup %13906  ;;  %13926 = vrcp.f32 %v10227_v13  ;;  %v10233_v44 = vadd.f32 1.0, %v13905_v56  ;;  %v18595_v36 = vpop.f32.mrb[141].mxu0  ;;  %v12160_v23 = vadd.f32 %v9412_v29, %v18567_v20 }
 0x77a   : > { %v13909_v33 = vpop.eup %13908  ;;  %13928 = vrcp.f32 %v10231_v17  ;;  %v10232_v57 = vadd.f32 1.0, %v13907_v54  ;;  %v18605_v49 = vpop.f32.mrb[173].mxu1  ;;  %v11692_v6 = vmul.f32 -1.442695, %v12128_v34 }
 0x77b   : > { %v18607_v60 = vpop.f32.mrb[142].mxu0  ;;  %v13911_v18 = vpop.eup %13910  ;;  %13930 = vrcp.f32 %v10233_v44  ;;  %v10234_v53 = vadd.f32 1.0, %v13909_v33  ;;  %v11694_v42 = vmul.f32 -1.442695, %v12160_v23 }
 0x77c   : > { %v18610_v11 = vpop.f32.mrb[174].mxu1  ;;  %v18612_v52 = vpop.f32.mrb[143].mxu0  ;;  %13932 = vrcp.f32 %v10232_v57  ;;  %v10238_v39 = vadd.f32 1.0, %v13911_v18 }
 0x77d   : > { %v13913_v27 = vpop.eup %13912  ;;  %v18615_v50 = vpop.f32.mrb[175].mxu1  ;;  %13934 = vrcp.f32 %v10234_v53 }
 0x77e   : > { %v13915_v47 = vpop.eup %13914  ;;  %10553 = vst [vmem:[%s18602_s27] sm:$0xff] %v13913_v27  ;;  %13936 = vrcp.f32 %v10238_v39 }
 0x77f   : > { %v13917_v10 = vpop.eup %13916  ;;  %10555 = vst [vmem:[%s18602_s27 + $0x10] sm:$0xff] %v13915_v47  ;;  %13938 = vpow2.f32 %v11673_v9  ;;  %v18626_v62 = vpop.f32.mrb[144].mxu0 }
 0x780   : > { %v13919_v41 = vpop.eup %13918  ;;  %10554 = vst [vmem:[%s18602_s27 + $0x8] sm:$0xff] %v13917_v10  ;;  %13940 = vpow2.f32 %v11672_v46  ;;  %v18631_v59 = vpop.f32.mrb[176].mxu1  ;;  %v12129_v10 = vadd.f32 %v18595_v36, %v18570_v14 }
 0x781   : > { %v13921_v30 = vpop.eup %13920  ;;  %10556 = vst [vmem:[%s18602_s27 + $0x18] sm:$0xff] %v13919_v41  ;;  %13942 = vpow2.f32 %v11674_v26  ;;  %v18633_v37 = vpop.f32.mrb[145].mxu0 }
 0x782   : > { %v13923_v15 = vpop.eup %13922  ;;  %10560 = vst [vmem:[%s18602_s27 + $0x38] sm:$0xff] %v13921_v30  ;;  %13944 = vpow2.f32 %v11678_v22  ;;  %v18637_v48 = vpop.f32.mrb[177].mxu1  ;;  %v12161_v22 = vadd.f32 %v18605_v49, %v18573_v45 }
 0x783   : > { %v13925_v21 = vpop.eup %13924  ;;  %10562 = vst [vmem:[%s18602_s27 + $0x48] sm:$0xff] %v13923_v15  ;;  %v18639_v61 = vpop.f32.mrb[146].mxu0  ;;  %13946 = vpow2.f32 %v11680_v25 }
 0x784   : > { %v13927_v7 = vpop.eup %13926  ;;  %10561 = vst [vmem:[%s18602_s27 + $0x40] sm:$0xff] %v13925_v21  ;;  %v18643_v35 = vpop.f32.mrb[178].mxu1  ;;  %13948 = vpow2.f32 %v11679_v8  ;;  %v11695_v34 = vmul.f32 -1.442695, %v12161_v22 }
 0x785   : > { %v18645_v4 = vpop.f32.mrb[147].mxu0  ;;  %v13929_v31 = vpop.eup %13928  ;;  %10563 = vst [vmem:[%s18602_s27 + $0x50] sm:$0xff] %v13927_v7  ;;  %13950 = vpow2.f32 %v11681_v55 }
 0x786   : > { %v9428_v3 = vpop.f32.mrb[179].mxu1  ;;  %v13931_v38 = vpop.eup %13930  ;;  %10567 = vst [vmem:[%s18602_s27 + $0x70] sm:$0xff] %v13929_v31  ;;  %13952 = vpow2.f32 %v11685_v1  ;;  %v11693_v1 = vmul.f32 -1.442695, %v12129_v10  ;;  %v12130_v31 = vadd.f32 %v18607_v60, %v18564_v19  ;;  %v12162_v60 = vadd.f32 %v18610_v11, %v18567_v20 }
 0x787   : > { %v13933_v13 = vpop.eup %13932  ;;  %10569 = vst [vmem:[%s18602_s27 + $0x80] sm:$0xff] %v13931_v38  ;;  %v18651_v56 = vadd.f32 %v9428_v3, %v18573_v45  ;;  %13954 = vpow2.f32 %v11687_v2  ;;  %v9206_v54 = vpop.f32.mrb[148].mxu0 }
 0x788   : > { %v13935_v17 = vpop.eup %13934  ;;  %10568 = vst [vmem:[%s18602_s27 + $0x78] sm:$0xff] %v13933_v13  ;;  %13956 = vpow2.f32 %v11686_v40  ;;  %v18657_v0 = vadd.f32 %v9206_v54, %v18564_v19  ;;  %v9432_v29 = vpop.f32.mrb[180].mxu1 }
 0x789   : > { %v13937_v24 = vpop.eup %13936  ;;  %10570 = vst [vmem:[%s18602_s27 + $0x88] sm:$0xff] %v13935_v17  ;;  %13958 = vpow2.f32 %v11688_v63  ;;  %v9208_v33 = vpop.f32.mrb[149].mxu0  ;;  %v18660_v18 = vadd.f32 %v9432_v29, %v18567_v20 }
 0x78a   : > { %v13939_v44 = vpop.eup %13938  ;;  %10574 = vst [vmem:[%s18602_s27 + $0xa8] sm:$0xff] %v13937_v24  ;;  %13960 = vpow2.f32 %v11692_v6  ;;  %v18663_v53 = vadd.f32 %v9208_v33, %v18570_v14  ;;  %v9434_v9 = vpop.f32.mrb[181].mxu1 }
 0x78b   : > { %v13941_v57 = vpop.eup %13940  ;;  %v10240_v16 = vadd.f32 1.0, %v13939_v44  ;;  %v9210_v43 = vpop.f32.mrb[150].mxu0  ;;  %13962 = vpow2.f32 %v11694_v42  ;;  %v18666_v46 = vadd.f32 %v9434_v9, %v18573_v45 }
 0x78c   : > { %v13943_v27 = vpop.eup %13942  ;;  %v10239_v39 = vadd.f32 1.0, %v13941_v57  ;;  %v9436_v32 = vpop.f32.mrb[182].mxu1  ;;  %v18673_v58 = vadd.f32 %v9210_v43, %v18564_v19  ;;  %v12131_v43 = vadd.f32 %v18612_v52, %v18570_v14 }
 0x78d   : > { %v9212_v47 = vpop.f32.mrb[151].mxu0  ;;  %v13945_v26 = vpop.eup %13944  ;;  %13964 = vrcp.f32 %v10240_v16  ;;  %v10241_v51 = vadd.f32 1.0, %v13943_v27  ;;  %v18676_v28 = vadd.f32 %v9436_v32, %v18567_v20  ;;  %v12163_v27 = vadd.f32 %v18615_v50, %v18573_v45 }
 0x78e   : > { %v9438_v12 = vpop.f32.mrb[183].mxu1  ;;  %v13947_v41 = vpop.eup %13946  ;;  %13966 = vrcp.f32 %v10239_v39  ;;  %v10245_v25 = vadd.f32 1.0, %v13945_v26  ;;  %v18679_v15 = vadd.f32 %v9212_v47, %v18570_v14  ;;  %v12132_v47 = vadd.f32 %v18626_v62, %v18564_v19 }
 0x78f   : > { %v13949_v30 = vpop.eup %13948  ;;  %13968 = vrcp.f32 %v10241_v51  ;;  %v10247_v8 = vadd.f32 1.0, %v13947_v41  ;;  %v18682_v49 = vadd.f32 %v9438_v12, %v18573_v45  ;;  %v9216_v7 = vpop.f32.mrb[152].mxu0  ;;  %v11699_v12 = vmul.f32 -1.442695, %v12130_v31 }
 0x790   : > { %v13951_v36 = vpop.eup %13950  ;;  %13970 = vrcp.f32 %v10245_v25  ;;  %v10246_v55 = vadd.f32 1.0, %v13949_v30  ;;  %v18687_v40 = vadd.f32 %v9216_v7, %v18564_v19  ;;  %v9442_v3 = vpop.f32.mrb[184].mxu1  ;;  %v11701_v41 = vmul.f32 -1.442695, %v12162_v60 }
 0x791   : > { %v13953_v5 = vpop.eup %13952  ;;  %13972 = vrcp.f32 %v10247_v8  ;;  %v10248_v21 = vadd.f32 1.0, %v13951_v36  ;;  %v9218_v38 = vpop.f32.mrb[153].mxu0  ;;  %v18690_v6 = vadd.f32 %v9442_v3, %v18567_v20  ;;  %v11700_v30 = vmul.f32 -1.442695, %v12131_v43 }
 0x792   : > { %v13955_v2 = vpop.eup %13954  ;;  %13974 = vrcp.f32 %v10246_v55  ;;  %v10252_v23 = vadd.f32 1.0, %v13953_v5  ;;  %v18693_v17 = vadd.f32 %v9218_v38, %v18570_v14  ;;  %v9444_v42 = vpop.f32.mrb[185].mxu1  ;;  %v11702_v8 = vmul.f32 -1.442695, %v12163_v27 }
 0x793   : > { %v13957_v63 = vpop.eup %13956  ;;  %13976 = vrcp.f32 %v10248_v21  ;;  %v10254_v13 = vadd.f32 1.0, %v13955_v2  ;;  %v9220_v24 = vpop.f32.mrb[154].mxu0  ;;  %v18698_v29 = vadd.f32 %v9444_v42, %v18573_v45  ;;  %v12164_v36 = vadd.f32 %v18631_v59, %v18567_v20 }
 0x794   : > { %v13959_v54 = vpop.eup %13958  ;;  %13978 = vrcp.f32 %v10252_v23  ;;  %v10253_v44 = vadd.f32 1.0, %v13957_v63  ;;  %v9446_v33 = vpop.f32.mrb[186].mxu1  ;;  %v18707_v26 = vadd.f32 %v9220_v24, %v18564_v19  ;;  %v11706_v21 = vmul.f32 -1.442695, %v12132_v47 }
 0x795   : > { %v9222_v57 = vpop.f32.mrb[155].mxu0  ;;  %v13961_v16 = vpop.eup %13960  ;;  %13980 = vrcp.f32 %v10254_v13  ;;  %v10255_v9 = vadd.f32 1.0, %v13959_v54  ;;  %v18710_v22 = vadd.f32 %v9446_v33, %v18567_v20  ;;  %v12133_v7 = vadd.f32 %v18633_v37, %v18570_v14 }
 0x796   : > { %v9448_v39 = vpop.f32.mrb[187].mxu1  ;;  %v13963_v32 = vpop.eup %13962  ;;  %13982 = vrcp.f32 %v10253_v44  ;;  %v10259_v11 = vadd.f32 1.0, %v13961_v16  ;;  %v18713_v52 = vadd.f32 %v9222_v57, %v18570_v14  ;;  %v12165_v59 = vadd.f32 %v18637_v48, %v18573_v45 }
 0x797   : > { %v13965_v51 = vpop.eup %13964  ;;  %13984 = vrcp.f32 %v10255_v9  ;;  %v10261_v10 = vadd.f32 1.0, %v13963_v32  ;;  %v18717_v62 = vadd.f32 %v9448_v39, %v18573_v45  ;;  %v9226_v55 = vpop.f32.mrb[156].mxu0  ;;  %v12134_v42 = vadd.f32 %v18639_v61, %v18564_v19 }
 0x798   : > { %v13967_v50 = vpop.eup %13966  ;;  %10576 = vst [vmem:[%s18602_s27 + $0xb8] sm:$0xff] %v13965_v51  ;;  %13986 = vrcp.f32 %v10259_v11  ;;  %v18726_v2 = vadd.f32 %v9226_v55, %v18564_v19  ;;  %v9452_v23 = vpop.f32.mrb[188].mxu1  ;;  %v11708_v60 = vmul.f32 -1.442695, %v12164_v36  ;;  %v12166_v33 = vadd.f32 %v18643_v35, %v18567_v20 }
 0x799   : > { %v13969_v25 = vpop.eup %13968  ;;  %10575 = vst [vmem:[%s18602_s27 + $0xb0] sm:$0xff] %v13967_v50  ;;  %13988 = vrcp.f32 %v10261_v10  ;;  %v9228_v31 = vpop.f32.mrb[157].mxu0  ;;  %v18732_v38 = vadd.f32 %v9452_v23, %v18567_v20  ;;  %v12135_v9 = vadd.f32 %v18645_v4, %v18570_v14  ;;  %v11709_v35 = vmul.f32 -1.442695, %v12165_v59 }
 0x79a   : > { %v13971_v5 = vpop.eup %13970  ;;  %10577 = vst [vmem:[%s18602_s27 + $0xc0] sm:$0xff] %v13969_v25  ;;  %13990 = vpow2.f32 %v11693_v1  ;;  %v18735_v1 = vadd.f32 %v9228_v31, %v18570_v14  ;;  %v9454_v63 = vpop.f32.mrb[189].mxu1  ;;  %v11713_v32 = vmul.f32 -1.442695, %v12134_v42  ;;  %v11715_v4 = vmul.f32 -1.442695, %v12166_v33 }
 0x79b   : > { %v13973_v3 = vpop.eup %13972  ;;  %10581 = vst [vmem:[%s18602_s27 + $0xe0] sm:$0xff] %v13971_v5  ;;  %13992 = vpow2.f32 %v11695_v34  ;;  %v9230_v37 = vpop.f32.mrb[158].mxu0  ;;  %v18741_v34 = vadd.f32 %v9454_v63, %v18573_v45 }
 0x79c   : > { %v13975_v13 = vpop.eup %13974  ;;  %10583 = vst [vmem:[%s18602_s27 + $0xf0] sm:$0xff] %v13973_v3  ;;  %13994 = vpow2.f32 %v11699_v12  ;;  %v18744_v48 = vadd.f32 %v9230_v37, %v18564_v19  ;;  %v9456_v24 = vpop.f32.mrb[190].mxu1  ;;  %v11707_v19 = vmul.f32 -1.442695, %v12133_v7 }
 0x79d   : > { %v9232_v54 = vpop.f32.mrb[159].mxu0  ;;  %v13977_v44 = vpop.eup %13976  ;;  %10582 = vst [vmem:[%s18602_s27 + $0xe8] sm:$0xff] %v13975_v13  ;;  %13996 = vpow2.f32 %v11701_v41  ;;  %v18750_v57 = vadd.f32 %v9456_v24, %v18567_v20 }
 0x79e   : > { %v9458_v61 = vpop.f32.mrb[191].mxu1  ;;  %v13979_v16 = vpop.eup %13978  ;;  %10584 = vst [vmem:[%s18602_s27 + $0xf8] sm:$0xff] %v13977_v44  ;;  %13998 = vpow2.f32 %v11700_v30  ;;  %v18756_v43 = vadd.f32 %v9232_v54, %v18570_v14  ;;  %v11714_v14 = vmul.f32 -1.442695, %v12135_v9 }
 0x79f   : > { %v13981_v27 = vpop.eup %13980  ;;  %10588 = vst [vmem:[%s18602_s27 + $0x118] sm:$0xff] %v13979_v16  ;;  %14000 = vpow2.f32 %v11702_v8  ;;  %v18760_v20 = vadd.f32 %v9458_v61, %v18573_v45  ;;  %v11780_v51 = vpop.f32.mrb[192].mxu1 }
 0x7a0   : > { %v13983_v39 = vpop.eup %13982  ;;  %10590 = vst [vmem:[%s18602_s27 + $0x128] sm:$0xff] %v13981_v27  ;;  %14002 = vpow2.f32 %v11706_v21  ;;  %v11781_v50 = vpop.f32.mrb[193].mxu1 }
 0x7a1   : > { %v13985_v11 = vpop.eup %13984  ;;  %10589 = vst [vmem:[%s18602_s27 + $0x120] sm:$0xff] %v13983_v39  ;;  %14004 = vpow2.f32 %v11708_v60  ;;  %v18767_v12 = vadd.f32 %v11781_v50, %v11780_v51  ;;  %v11783_v41 = vpop.f32.mrb[194].mxu1  ;;  %v11720_v50 = vmul.f32 -1.442695, %v18657_v0  ;;  %v11723_v0 = vmul.f32 -1.442695, %v18666_v46 }
 0x7a2   : > { %v13987_v47 = vpop.eup %13986  ;;  %10591 = vst [vmem:[%s18602_s27 + $0x130] sm:$0xff] %v13985_v11  ;;  %14006 = vpow2.f32 %v11707_v19  ;;  %v11784_v8 = vpop.f32.mrb[195].mxu1 }
 0x7a3   : > { %v13989_v10 = vpop.eup %13988  ;;  %10595 = vst [vmem:[%s18602_s27 + $0x150] sm:$0xff] %v13987_v47  ;;  %14008 = vpow2.f32 %v11709_v35  ;;  %v18769_v5 = vadd.f32 %v11784_v8, %v11783_v41  ;;  %v11722_v41 = vmul.f32 -1.442695, %v18660_v18  ;;  %v11721_v8 = vmul.f32 -1.442695, %v18663_v53 }
 0x7a4   : > { %v13991_v45 = vpop.eup %13990  ;;  %10597 = vst [vmem:[%s18602_s27 + $0x160] sm:$0xff] %v13989_v10  ;;  %14010 = vpow2.f32 %v11713_v32  ;;  %v11727_v18 = vmul.f32 -1.442695, %v18673_v58  ;;  %v11729_v53 = vmul.f32 -1.442695, %v18676_v28 }
 0x7a5   : > { %v13993_v25 = vpop.eup %13992  ;;  %v10260_v30 = vadd.f32 1.0, %v13991_v45  ;;  %14012 = vpow2.f32 %v11715_v4  ;;  %v11730_v58 = vmul.f32 -1.442695, %v18682_v49 }
 0x7a6   : > { %v13995_v36 = vpop.eup %13994  ;;  %v10262_v55 = vadd.f32 1.0, %v13993_v25  ;;  %14014 = vpow2.f32 %v11714_v14  ;;  %v11716_v14 = vmul.f32 -1.442695, %v18651_v56 }
 0x7a7   : > { %v13997_v21 = vpop.eup %13996  ;;  %14016 = vrcp.f32 %v10260_v30  ;;  %v10266_v7 = vadd.f32 1.0, %v13995_v36  ;;  %v11786_v13 = vpop.f32.mrb[196].mxu1 }
 0x7a8   : > { %v13999_v23 = vpop.eup %13998  ;;  %14018 = vrcp.f32 %v10262_v55  ;;  %v10268_v31 = vadd.f32 1.0, %v13997_v21  ;;  %v11787_v54 = vpop.f32.mrb[197].mxu1 }
 0x7a9   : > { %v14001_v3 = vpop.eup %14000  ;;  %14020 = vrcp.f32 %v10266_v7  ;;  %v10267_v59 = vadd.f32 1.0, %v13999_v23  ;;  %v18771_v33 = vadd.f32 %v11787_v54, %v11786_v13  ;;  %v11789_v61 = vpop.f32.mrb[198].mxu1  ;;  %v11734_v13 = vmul.f32 -1.442695, %v18687_v40 }
 0x7aa   : > { %v14003_v63 = vpop.eup %14002  ;;  %14022 = vrcp.f32 %v10268_v31  ;;  %v10269_v37 = vadd.f32 1.0, %v14001_v3  ;;  %v11790_v9 = vpop.f32.mrb[199].mxu1 }
 0x7ab   : > { %v14005_v42 = vpop.eup %14004  ;;  %14024 = vrcp.f32 %v10267_v59  ;;  %v10273_v24 = vadd.f32 1.0, %v14003_v63  ;;  %v18773_v39 = vadd.f32 %v11790_v9, %v11789_v61  ;;  %v11728_v59 = vmul.f32 -1.442695, %v18679_v15 }
 0x7ac   : > { %v14007_v44 = vpop.eup %14006  ;;  %14026 = vrcp.f32 %v10269_v37  ;;  %v10275_v60 = vadd.f32 1.0, %v14005_v42  ;;  %v11736_v42 = vmul.f32 -1.442695, %v18690_v6  ;;  %v11735_v15 = vmul.f32 -1.442695, %v18693_v17 }
 0x7ad   : > { %v14009_v16 = vpop.eup %14008  ;;  %14028 = vrcp.f32 %v10273_v24  ;;  %v10274_v19 = vadd.f32 1.0, %v14007_v44 }
 0x7ae   : > { %v14011_v27 = vpop.eup %14010  ;;  %14030 = vrcp.f32 %v10275_v60  ;;  %v10276_v35 = vadd.f32 1.0, %v14009_v16  ;;  %v11737_v60 = vmul.f32 -1.442695, %v18698_v29 }
 0x7af   : > { %v14013_v32 = vpop.eup %14012  ;;  %14032 = vrcp.f32 %v10274_v19  ;;  %v10280_v11 = vadd.f32 1.0, %v14011_v27  ;;  %v11792_v25 = vpop.f32.mrb[200].mxu1 }
 0x7b0   : > { %v14015_v4 = vpop.eup %14014  ;;  %14034 = vrcp.f32 %v10276_v35  ;;  %v10282_v47 = vadd.f32 1.0, %v14013_v32  ;;  %v11793_v56 = vpop.f32.mrb[201].mxu1 }
 0x7b1   : > { %v14017_v51 = vpop.eup %14016  ;;  %14036 = vrcp.f32 %v10280_v11  ;;  %v10281_v10 = vadd.f32 1.0, %v14015_v4  ;;  %v18783_v55 = vadd.f32 %v11793_v56, %v11792_v25  ;;  %v11795_v21 = vpop.f32.mrb[202].mxu1 }
 0x7b2   : > { %v14019_v45 = vpop.eup %14018  ;;  %10596 = vst [vmem:[%s18602_s27 + $0x158] sm:$0xff] %v14017_v51  ;;  %14038 = vrcp.f32 %v10282_v47  ;;  %v11796_v23 = vpop.f32.mrb[203].mxu1 }
 0x7b3   : > { %v14021_v30 = vpop.eup %14020  ;;  %10598 = vst [vmem:[%s18602_s27 + $0x168] sm:$0xff] %v14019_v45  ;;  %14040 = vrcp.f32 %v10281_v10  ;;  %v18789_v3 = vadd.f32 %v11796_v23, %v11795_v21 }
 0x7b4   : > { %v14023_v36 = vpop.eup %14022  ;;  %10602 = vst [vmem:[%s18602_s27 + $0x188] sm:$0xff] %v14021_v30  ;;  %14042 = vpow2.f32 %v11716_v14 }
 0x7b5   : > { %v14025_v7 = vpop.eup %14024  ;;  %10604 = vst [vmem:[%s18602_s27 + $0x198] sm:$0xff] %v14023_v36  ;;  %14044 = vpow2.f32 %v11720_v50 }
 0x7b6   : > { %v14027_v31 = vpop.eup %14026  ;;  %10603 = vst [vmem:[%s18602_s27 + $0x190] sm:$0xff] %v14025_v7  ;;  %14046 = vpow2.f32 %v11722_v41 }
 0x7b7   : > { %v14029_v46 = vpop.eup %14028  ;;  %10605 = vst [vmem:[%s18602_s27 + $0x1a0] sm:$0xff] %v14027_v31  ;;  %14048 = vpow2.f32 %v11721_v8  ;;  %v11798_v24 = vpop.f32.mrb[204].mxu1 }
 0x7b8   : > { %v14031_v63 = vpop.eup %14030  ;;  %10609 = vst [vmem:[%s18602_s27 + $0x1c0] sm:$0xff] %v14029_v46  ;;  %14050 = vpow2.f32 %v11723_v0  ;;  %v11799_v49 = vpop.f32.mrb[205].mxu1 }
 0x7b9   : > { %v14033_v37 = vpop.eup %14032  ;;  %10611 = vst [vmem:[%s18602_s27 + $0x1d0] sm:$0xff] %v14031_v63  ;;  %14052 = vpow2.f32 %v11727_v18  ;;  %v18803_v40 = vadd.f32 %v11799_v49, %v11798_v24  ;;  %v11801_v61 = vpop.f32.mrb[206].mxu1  ;;  %v11743_v24 = vmul.f32 -1.442695, %v18710_v22  ;;  %v11742_v49 = vmul.f32 -1.442695, %v18713_v52 }
 0x7ba   : > { %v14035_v28 = vpop.eup %14034  ;;  %10610 = vst [vmem:[%s18602_s27 + $0x1c8] sm:$0xff] %v14033_v37  ;;  %14054 = vpow2.f32 %v11729_v53  ;;  %v11802_v6 = vpop.f32.mrb[207].mxu1  ;;  %v11741_v37 = vmul.f32 -1.442695, %v18707_v26  ;;  %v11744_v26 = vmul.f32 -1.442695, %v18717_v62 }
 0x7bb   : > { %v14037_v54 = vpop.eup %14036  ;;  %10612 = vst [vmem:[%s18602_s27 + $0x1d8] sm:$0xff] %v14035_v28  ;;  %14056 = vpow2.f32 %v11728_v59  ;;  %v18807_v9 = vadd.f32 %v11802_v6, %v11801_v61  ;;  %v11748_v22 = vmul.f32 -1.442695, %v18726_v2  ;;  %v11749_v62 = vmul.f32 -1.442695, %v18735_v1 }
 0x7bc   : > { %v14039_v44 = vpop.eup %14038  ;;  %10616 = vst [vmem:[%s18602_s27 + $0x1f8] sm:$0xff] %v14037_v54  ;;  %14058 = vpow2.f32 %v11730_v58  ;;  %v11751_v2 = vmul.f32 -1.442695, %v18741_v34  ;;  %v11757_v1 = vmul.f32 -1.442695, %v18750_v57  ;;  %v14334_v34 = vld [vmem:[%s19068_s13] sm:$0xff] }
 0x7bd   : > { %v14041_v16 = vpop.eup %14040  ;;  %10618 = vst [vmem:[%s18602_s27 + $0x208] sm:$0xff] %v14039_v44  ;;  %14060 = vpow2.f32 %v11734_v13  ;;  %v11758_v57 = vmul.f32 -1.442695, %v18760_v20 }
 0x7be   : > { %v14043_v19 = vpop.eup %14042  ;;  %10617 = vst [vmem:[%s18602_s27 + $0x200] sm:$0xff] %v14041_v16  ;;  %14062 = vpow2.f32 %v11736_v42 }
 0x7bf   : > { %v14045_v27 = vpop.eup %14044  ;;  %v10283_v17 = vadd.f32 1.0, %v14043_v19  ;;  %14064 = vpow2.f32 %v11735_v15  ;;  %v11804_v14 = vpop.f32.mrb[208].mxu1 }
 0x7c0   : > { %v14047_v35 = vpop.eup %14046  ;;  %v10287_v32 = vadd.f32 1.0, %v14045_v27  ;;  %14066 = vpow2.f32 %v11737_v60  ;;  %v11805_v50 = vpop.f32.mrb[209].mxu1  ;;  %v11750_v27 = vmul.f32 -1.442695, %v18732_v38 }
 0x7c1   : > { %v14049_v11 = vpop.eup %14048  ;;  %14068 = vrcp.f32 %v10283_v17  ;;  %v10289_v29 = vadd.f32 1.0, %v14047_v35  ;;  %v18809_v25 = vadd.f32 %v11805_v50, %v11804_v14  ;;  %v11807_v30 = vpop.f32.mrb[210].mxu1  ;;  %v19183_v35 = vld [vmem:[#allocation2_spill] sm:$0xff] }
 0x7c2   : > { %v14051_v4 = vpop.eup %14050  ;;  %14070 = vrcp.f32 %v10287_v32  ;;  %v10288_v47 = vadd.f32 1.0, %v14049_v11  ;;  %v11808_v36 = vpop.f32.mrb[211].mxu1  ;;  %v7848_v32 = vsub.s32 6, %v19183_v35 }
 0x7c3   : > { %v14053_v51 = vpop.eup %14052  ;;  %14072 = vrcp.f32 %v10289_v29  ;;  %v10290_v10 = vadd.f32 1.0, %v14051_v4  ;;  %v18811_v7 = vadd.f32 %v11808_v36, %v11807_v30  ;;  %v11755_v4 = vmul.f32 -1.442695, %v18744_v48 }
 0x7c4   : > { %v14055_v45 = vpop.eup %14054  ;;  %14074 = vrcp.f32 %v10288_v47  ;;  %v10294_v41 = vadd.f32 1.0, %v14053_v51  ;;  %v18841_v48 = vrot.slane %v14334_v34, %v7848_v32 }
 0x7c5   : > { %v14057_v8 = vpop.eup %14056  ;;  %14076 = vrcp.f32 %v10290_v10  ;;  %v10296_v56 = vadd.f32 1.0, %v14055_v45  ;;  %v11756_v10 = vmul.f32 -1.442695, %v18756_v43 }
 0x7c6   : > { %v14059_v0 = vpop.eup %14058  ;;  %14078 = vrcp.f32 %v10294_v41  ;;  %v10295_v21 = vadd.f32 1.0, %v14057_v8 }
 0x7c7   : > { %v14061_v18 = vpop.eup %14060  ;;  %14080 = vrcp.f32 %v10296_v56  ;;  %v10297_v23 = vadd.f32 1.0, %v14059_v0  ;;  %v11810_v13 = vpop.f32.mrb[212].mxu1 }
 0x7c8   : > { %v14063_v31 = vpop.eup %14062  ;;  %14082 = vrcp.f32 %v10295_v21  ;;  %v10301_v53 = vadd.f32 1.0, %v14061_v18  ;;  %v11811_v54 = vpop.f32.mrb[213].mxu1 }
 0x7c9   : > { %v14065_v46 = vpop.eup %14064  ;;  %14084 = vrcp.f32 %v10297_v23  ;;  %v10303_v59 = vadd.f32 1.0, %v14063_v31  ;;  %v18817_v44 = vadd.f32 %v11811_v54, %v11810_v13  ;;  %v11813_v60 = vpop.f32.mrb[214].mxu1 }
 0x7ca   : > { %v14067_v63 = vpop.eup %14066  ;;  %14086 = vrcp.f32 %v10301_v53  ;;  %v10302_v58 = vadd.f32 1.0, %v14065_v46  ;;  %v11814_v16 = vpop.f32.mrb[215].mxu1 }
 0x7cb   : > { %v14069_v28 = vpop.eup %14068  ;;  %14088 = vrcp.f32 %v10303_v59  ;;  %v10304_v42 = vadd.f32 1.0, %v14067_v63  ;;  %v18823_v19 = vadd.f32 %v11814_v16, %v11813_v60 }
 0x7cc   : > { %v14071_v15 = vpop.eup %14070  ;;  %10619 = vst [vmem:[%s18602_s27 + $0x210] sm:$0xff] %v14069_v28  ;;  %14090 = vrcp.f32 %v10302_v58  ;;  %v7840_v58 = vsub.s32 4, %v19183_v35 }
 0x7cd   : > { %v14073_v61 = vpop.eup %14072  ;;  %10623 = vst [vmem:[%s18602_s27 + $0x230] sm:$0xff] %v14071_v15  ;;  %14092 = vrcp.f32 %v10304_v42 }
 0x7ce   : > { %v14075_v6 = vpop.eup %14074  ;;  %10625 = vst [vmem:[%s18602_s27 + $0x240] sm:$0xff] %v14073_v61  ;;  %14094 = vpow2.f32 %v11741_v37 }
 0x7cf   : > { %v14077_v52 = vpop.eup %14076  ;;  %10624 = vst [vmem:[%s18602_s27 + $0x238] sm:$0xff] %v14075_v6  ;;  %14096 = vpow2.f32 %v11743_v24  ;;  %v11816_v38 = vpop.f32.mrb[216].mxu1  ;;  %v7844_v24 = vsub.s32 5, %v19183_v35 }
 0x7d0   : > { %v14079_v17 = vpop.eup %14078  ;;  %10626 = vst [vmem:[%s18602_s27 + $0x248] sm:$0xff] %v14077_v52  ;;  %14098 = vpow2.f32 %v11742_v49  ;;  %v11817_v14 = vpop.f32.mrb[217].mxu1  ;;  %v18859_v52 = vrot.slane %v14334_v34, %v7840_v58 }
 0x7d1   : > { %v14081_v11 = vpop.eup %14080  ;;  %10630 = vst [vmem:[%s18602_s27 + $0x268] sm:$0xff] %v14079_v17  ;;  %14100 = vpow2.f32 %v11744_v26  ;;  %v11818_v50 = vadd.f32 %v11817_v14, %v11816_v38  ;;  %v11819_v45 = vpop.f32.mrb[218].mxu1  ;;  %v18864_v35 = vrot.slane %v14334_v34, %v7844_v24  ;;  %v9722_v14 = vadd.f32 %v18767_v12, %v18841_v48 }
 0x7d2   : > { %v14083_v29 = vpop.eup %14082  ;;  %10632 = vst [vmem:[%s18602_s27 + $0x278] sm:$0xff] %v14081_v11  ;;  %14102 = vpow2.f32 %v11748_v22  ;;  %v11820_v30 = vpop.f32.mrb[219].mxu1 }
 0x7d3   : > { %v14085_v47 = vpop.eup %14084  ;;  %10631 = vst [vmem:[%s18602_s27 + $0x270] sm:$0xff] %v14083_v29  ;;  %14104 = vpow2.f32 %v11750_v27  ;;  %v18847_v43 = vadd.f32 %v11818_v50, %v18841_v48  ;;  %v11821_v56 = vadd.f32 %v11820_v30, %v11819_v45 }
 0x7d4   : > { %v14087_v51 = vpop.eup %14086  ;;  %10633 = vst [vmem:[%s18602_s27 + $0x280] sm:$0xff] %v14085_v47  ;;  %14106 = vpow2.f32 %v11749_v62 }
 0x7d5   : > { %v14089_v41 = vpop.eup %14088  ;;  %10637 = vst [vmem:[%s18602_s27 + $0x2a0] sm:$0xff] %v14087_v51  ;;  %14108 = vpow2.f32 %v11751_v2  ;;  %v18852_v21 = vadd.f32 %v11821_v56, %v18841_v48 }
 0x7d6   : > { %v14091_v8 = vpop.eup %14090  ;;  %10639 = vst [vmem:[%s18602_s27 + $0x2b0] sm:$0xff] %v14089_v41  ;;  %14110 = vpow2.f32 %v11755_v4 }
 0x7d7   : > { %v14093_v36 = vpop.eup %14092  ;;  %10638 = vst [vmem:[%s18602_s27 + $0x2a8] sm:$0xff] %v14091_v8  ;;  %14112 = vpow2.f32 %v11757_v1  ;;  %v11822_v53 = vpop.f32.mrb[220].mxu1 }
 0x7d8   : > { %v14095_v0 = vpop.eup %14094  ;;  %10640 = vst [vmem:[%s18602_s27 + $0x2b8] sm:$0xff] %v14093_v36  ;;  %14114 = vpow2.f32 %v11756_v10  ;;  %v11823_v63 = vpop.f32.mrb[221].mxu1 }
 0x7d9   : > { %v14097_v18 = vpop.eup %14096  ;;  %v10308_v23 = vadd.f32 1.0, %v14095_v0  ;;  %14116 = vpow2.f32 %v11758_v57  ;;  %v11824_v28 = vadd.f32 %v11823_v63, %v11822_v53  ;;  %v11825_v42 = vpop.f32.mrb[222].mxu1 }
 0x7da   : > { %v14099_v20 = vpop.eup %14098  ;;  %v10310_v31 = vadd.f32 1.0, %v14097_v18  ;;  %v11826_v49 = vpop.f32.mrb[223].mxu1 }
 0x7db   : > { %v14101_v46 = vpop.eup %14100  ;;  %14118 = vrcp.f32 %v10308_v23  ;;  %v10309_v59 = vadd.f32 1.0, %v14099_v20  ;;  %v18857_v26 = vadd.f32 %v11824_v28, %v18841_v48  ;;  %v11827_v16 = vadd.f32 %v11826_v49, %v11825_v42 }
 0x7dc   : > { %v14103_v37 = vpop.eup %14102  ;;  %14120 = vrcp.f32 %v10310_v31  ;;  %v10311_v13 = vadd.f32 1.0, %v14101_v46  ;;  %v9725_v46 = vadd.f32 %v18769_v5, %v18841_v48 }
 0x7dd   : > { %v14105_v54 = vpop.eup %14104  ;;  %14122 = vrcp.f32 %v10309_v59  ;;  %v10315_v15 = vadd.f32 1.0, %v14103_v37  ;;  %v18862_v62 = vadd.f32 %v11827_v16, %v18841_v48 }
 0x7de   : > { %v14107_v60 = vpop.eup %14106  ;;  %14124 = vrcp.f32 %v10311_v13  ;;  %v10317_v61 = vadd.f32 1.0, %v14105_v54 }
 0x7df   : > { %v14109_v6 = vpop.eup %14108  ;;  %14126 = vrcp.f32 %v10315_v15  ;;  %v10316_v22 = vadd.f32 1.0, %v14107_v60  ;;  %v11844_v38 = vpop.f32.mrb[224].mxu1 }
 0x7e0   : > { %v14111_v27 = vpop.eup %14110  ;;  %14128 = vrcp.f32 %v10317_v61  ;;  %v10318_v17 = vadd.f32 1.0, %v14109_v6  ;;  %v9608_v4 = vpop.f32.mrb[160].mxu0 }
 0x7e1   : > { %v14113_v32 = vpop.eup %14112  ;;  %14130 = vrcp.f32 %v10316_v22  ;;  %v10322_v11 = vadd.f32 1.0, %v14111_v27  ;;  %v12180_v51 = vadd.f32 %v9608_v4, %v18859_v52  ;;  %v9610_v10 = vpop.f32.mrb[161].mxu0  ;;  %v9730_v22 = vadd.f32 %v18771_v33, %v18841_v48 }
 0x7e2   : > { %v14115_v2 = vpop.eup %14114  ;;  %14132 = vrcp.f32 %v10318_v17  ;;  %v10324_v29 = vadd.f32 1.0, %v14113_v32  ;;  %v11845_v34 = vpop.f32.mrb[225].mxu1  ;;  %v12181_v45 = vadd.f32 %v9610_v10, %v18864_v35 }
 0x7e3   : > { %v14117_v47 = vpop.eup %14116  ;;  %14134 = vrcp.f32 %v10322_v11  ;;  %v10323_v1 = vadd.f32 1.0, %v14115_v2  ;;  %v11846_v41 = vadd.f32 %v11845_v34, %v11844_v38  ;;  %v9612_v57 = vpop.f32.mrb[162].mxu0  ;;  %v11654_v56 = vmul.f32 -1.442695, %v12180_v51 }
 0x7e4   : > { %14136 = vrcp.f32 %v10324_v29  ;;  %v10325_v50 = vadd.f32 1.0, %v14117_v47  ;;  %v11847_v30 = vpop.f32.mrb[226].mxu1  ;;  %v12182_v36 = vadd.f32 %v9612_v57, %v18859_v52  ;;  %v9614_v12 = vpop.f32.mrb[163].mxu0  ;;  %v11655_v23 = vmul.f32 -1.442695, %v12181_v45 }
 0x7e5   : > { %v14119_v8 = vpop.eup %14118  ;;  %14138 = vrcp.f32 %v10323_v1  ;;  %v11848_v0 = vpop.f32.mrb[227].mxu1  ;;  %v9819_v20 = vadd.f32 %v11846_v41, %v9722_v14  ;;  %v12183_v31 = vadd.f32 %v9614_v12, %v18864_v35  ;;  %v9733_v29 = vadd.f32 %v18773_v39, %v18841_v48 }
 0x7e6   : > { %v14121_v18 = vpop.eup %14120  ;;  %10644 = vst [vmem:[%s18602_s27 + $0x2d8] sm:$0xff] %v14119_v8  ;;  %14140 = vrcp.f32 %v10325_v50  ;;  %v11661_v59 = vmul.f32 -1.442695, %v12182_v36  ;;  %v11849_v63 = vadd.f32 %v11848_v0, %v11847_v30 }
 0x7e7   : > { %v14123_v53 = vpop.eup %14122  ;;  %10646 = vst [vmem:[%s18602_s27 + $0x2e8] sm:$0xff] %v14121_v18  ;;  %14142 = vpow2.f32 %v11654_v56  ;;  %v11656_v37 = vmul.f32 -1.442695, %v9819_v20  ;;  %v11662_v13 = vmul.f32 -1.442695, %v12183_v31  ;;  %v11850_v15 = vpop.f32.mrb[228].mxu1 }
 0x7e8   : > { %v14125_v58 = vpop.eup %14124  ;;  %10645 = vst [vmem:[%s18602_s27 + $0x2e0] sm:$0xff] %v14123_v53  ;;  %14144 = vpow2.f32 %v11655_v23  ;;  %v9822_v42 = vadd.f32 %v11849_v63, %v9725_v46  ;;  %v9618_v54 = vpop.f32.mrb[164].mxu0 }
 0x7e9   : > { %v14127_v28 = vpop.eup %14126  ;;  %10647 = vst [vmem:[%s18602_s27 + $0x2f0] sm:$0xff] %v14125_v58  ;;  %14146 = vpow2.f32 %v11661_v59  ;;  %v12184_v60 = vadd.f32 %v9618_v54, %v18859_v52  ;;  %v9620_v61 = vpop.f32.mrb[165].mxu0  ;;  %v9738_v59 = vadd.f32 %v18783_v55, %v18841_v48 }
 0x7ea   : > { %v14129_v24 = vpop.eup %14128  ;;  %10651 = vst [vmem:[%s18602_s27 + $0x310] sm:$0xff] %v14127_v28  ;;  %14148 = vpow2.f32 %v11656_v37  ;;  %v11663_v49 = vmul.f32 -1.442695, %v9822_v42  ;;  %v11851_v16 = vpop.f32.mrb[229].mxu1  ;;  %v12185_v27 = vadd.f32 %v9620_v61, %v18864_v35  ;;  %v9741_v61 = vadd.f32 %v18789_v3, %v18841_v48 }
 0x7eb   : > { %v14131_v5 = vpop.eup %14130  ;;  %10653 = vst [vmem:[%s18602_s27 + $0x320] sm:$0xff] %v14129_v24  ;;  %14150 = vpow2.f32 %v11662_v13  ;;  %v11852_v17 = vadd.f32 %v11851_v16, %v11850_v15  ;;  %v9622_v32 = vpop.f32.mrb[166].mxu0  ;;  %v11668_v4 = vmul.f32 -1.442695, %v12184_v60 }
 0x7ec   : > { %v14133_v6 = vpop.eup %14132  ;;  %10652 = vst [vmem:[%s18602_s27 + $0x318] sm:$0xff] %v14131_v5  ;;  %v11853_v11 = vpop.f32.mrb[230].mxu1  ;;  %14152 = vpow2.f32 %v11663_v49  ;;  %v12186_v38 = vadd.f32 %v9622_v32, %v18859_v52  ;;  %v11669_v33 = vmul.f32 -1.442695, %v12185_v27 }
 0x7ed   : > { %v14135_v2 = vpop.eup %14134  ;;  %10654 = vst [vmem:[%s18602_s27 + $0x328] sm:$0xff] %v14133_v6  ;;  %v9624_v47 = vpop.f32.mrb[167].mxu0  ;;  %v9827_v51 = vadd.f32 %v11852_v17, %v9730_v22  ;;  %14154 = vpow2.f32 %v11668_v4 }
 0x7ee   : > { %v11854_v1 = vpop.f32.mrb[231].mxu1  ;;  %v14137_v14 = vpop.eup %14136  ;;  %10658 = vst [vmem:[%s18602_s27 + $0x348] sm:$0xff] %v14135_v2  ;;  %v12187_v10 = vadd.f32 %v9624_v47, %v18864_v35  ;;  %v11675_v45 = vmul.f32 -1.442695, %v12186_v38  ;;  %14156 = vpow2.f32 %v11669_v33  ;;  %v9746_v38 = vadd.f32 %v18803_v40, %v18841_v48 }
 0x7ef   : > { %v11855_v34 = vadd.f32 %v11854_v1, %v11853_v11  ;;  %v14139_v50 = vpop.eup %14138  ;;  %10660 = vst [vmem:[%s18602_s27 + $0x358] sm:$0xff] %v14137_v14  ;;  %v11670_v41 = vmul.f32 -1.442695, %v9827_v51  ;;  %v11856_v0 = vpop.f32.mrb[232].mxu1 }
 0x7f0   : > { %v14141_v39 = vpop.eup %14140  ;;  %10659 = vst [vmem:[%s18602_s27 + $0x350] sm:$0xff] %v14139_v50  ;;  %v11676_v57 = vmul.f32 -1.442695, %v12187_v10  ;;  %14158 = vpow2.f32 %v11675_v45  ;;  %v9628_v12 = vpop.f32.mrb[168].mxu0 }
 0x7f1   : > { %v9830_v30 = vadd.f32 %v11855_v34, %v9733_v29  ;;  %v14143_v8 = vpop.eup %14142  ;;  %10661 = vst [vmem:[%s18602_s27 + $0x360] sm:$0xff] %v14141_v39  ;;  %14160 = vpow2.f32 %v11670_v41  ;;  %v12188_v20 = vadd.f32 %v9628_v12, %v18859_v52  ;;  %v9630_v31 = vpop.f32.mrb[169].mxu0  ;;  %v9749_v41 = vadd.f32 %v18807_v9, %v18841_v48 }
 0x7f2   : > { %v14145_v56 = vpop.eup %14144  ;;  %v10221_v36 = vadd.f32 1.0, %v14143_v8  ;;  %14162 = vpow2.f32 %v11676_v57  ;;  %v11857_v53 = vpop.f32.mrb[233].mxu1  ;;  %v12189_v27 = vadd.f32 %v9630_v31, %v18864_v35 }
 0x7f3   : > { %v14147_v18 = vpop.eup %14146  ;;  %v10222_v23 = vadd.f32 1.0, %v14145_v56  ;;  %v11858_v58 = vadd.f32 %v11857_v53, %v11856_v0  ;;  %v9632_v37 = vpop.f32.mrb[170].mxu0  ;;  %v11677_v24 = vmul.f32 -1.442695, %v9830_v30  ;;  %v11682_v55 = vmul.f32 -1.442695, %v12188_v20 }
 0x7f4   : > { %v14149_v46 = vpop.eup %14148  ;;  %14164 = vrcp.f32 %v10221_v36  ;;  %v10228_v63 = vadd.f32 1.0, %v14147_v18  ;;  %v11859_v13 = vpop.f32.mrb[234].mxu1  ;;  %v12190_v47 = vadd.f32 %v9632_v37, %v18859_v52  ;;  %v11683_v57 = vmul.f32 -1.442695, %v12189_v27 }
 0x7f5   : > { %v14151_v28 = vpop.eup %14150  ;;  %14166 = vrcp.f32 %v10222_v23  ;;  %v10223_v42 = vadd.f32 1.0, %v14149_v46  ;;  %v9634_v54 = vpop.f32.mrb[171].mxu0  ;;  %v9835_v49 = vadd.f32 %v11858_v58, %v9738_v59 }
 0x7f6   : > { %v11860_v15 = vpop.f32.mrb[235].mxu1  ;;  %14168 = vrcp.f32 %v10228_v63  ;;  %v10229_v5 = vadd.f32 1.0, %v14151_v28  ;;  %v14153_v60 = vpop.eup %14152  ;;  %v12191_v10 = vadd.f32 %v9634_v54, %v18864_v35  ;;  %v11689_v23 = vmul.f32 -1.442695, %v12190_v47 }
 0x7f7   : > { %14170 = vrcp.f32 %v10223_v42  ;;  %v11861_v16 = vadd.f32 %v11860_v15, %v11859_v13  ;;  %v10230_v6 = vadd.f32 1.0, %v14153_v60  ;;  %v14155_v22 = vpop.eup %14154  ;;  %v11862_v29 = vpop.f32.mrb[236].mxu1  ;;  %v11684_v12 = vmul.f32 -1.442695, %v9835_v49 }
 0x7f8   : > { %14172 = vrcp.f32 %v10229_v5  ;;  %v14157_v32 = vpop.eup %14156  ;;  %v10235_v11 = vadd.f32 1.0, %v14155_v22  ;;  %v9638_v2 = vpop.f32.mrb[172].mxu0  ;;  %v11690_v53 = vmul.f32 -1.442695, %v12191_v10 }
 0x7f9   : > { %14174 = vpow2.f32 %v11677_v24  ;;  %v9838_v17 = vadd.f32 %v11861_v16, %v9741_v61  ;;  %v10236_v3 = vadd.f32 1.0, %v14157_v32  ;;  %v9640_v1 = vpop.f32.mrb[173].mxu0  ;;  %v11863_v14 = vpop.f32.mrb[237].mxu1  ;;  %v12192_v20 = vadd.f32 %v9638_v2, %v18859_v52 }
 0x7fa   : > { %14176 = vrcp.f32 %v10230_v6  ;;  %v14159_v4 = vpop.eup %14158  ;;  %v11864_v34 = vadd.f32 %v11863_v14, %v11862_v29  ;;  %v9642_v50 = vpop.f32.mrb[174].mxu0  ;;  %v12193_v63 = vadd.f32 %v9640_v1, %v18864_v35  ;;  %v9754_v24 = vadd.f32 %v18809_v25, %v18841_v48 }
 0x7fb   : > { %14178 = vpow2.f32 %v11682_v55  ;;  %v14161_v33 = vpop.eup %14160  ;;  %v10242_v51 = vadd.f32 1.0, %v14159_v4  ;;  %v11865_v45 = vpop.f32.mrb[238].mxu1  ;;  %v11691_v59 = vmul.f32 -1.442695, %v9838_v17  ;;  %v11696_v54 = vmul.f32 -1.442695, %v12192_v20 }
 0x7fc   : > { %14180 = vrcp.f32 %v10235_v11  ;;  %v14163_v39 = vpop.eup %14162  ;;  %v10237_v40 = vadd.f32 1.0, %v14161_v33  ;;  %v9644_v30 = vpop.f32.mrb[175].mxu0  ;;  %v9843_v0 = vadd.f32 %v11864_v34, %v9746_v38  ;;  %v12194_v15 = vadd.f32 %v9642_v50, %v18859_v52 }
 0x7fd   : > { %14182 = vrcp.f32 %v10236_v3  ;;  %v11866_v8 = vpop.f32.mrb[239].mxu1  ;;  %v10243_v36 = vadd.f32 1.0, %v14163_v39  ;;  %v12195_v55 = vadd.f32 %v9644_v30, %v18864_v35  ;;  %v11697_v25 = vmul.f32 -1.442695, %v12193_v63 }
 0x7fe   : > { %v14165_v56 = vpop.eup %14164  ;;  %14184 = vrcp.f32 %v10242_v51  ;;  %v11867_v9 = vadd.f32 %v11866_v8, %v11865_v45  ;;  %v11698_v29 = vmul.f32 -1.442695, %v9843_v0  ;;  %v9757_v3 = vadd.f32 %v18811_v7, %v18841_v48 }
 0x7ff   : > { %v14167_v18 = vpop.eup %14166  ;;  %10557 = vst [vmem:[%s18602_s27 + $0x20] sm:$0xff] %v14165_v56  ;;  %14186 = vrcp.f32 %v10237_v40  ;;  %v11868_v28 = vpop.f32.mrb[240].mxu1  ;;  %v11703_v47 = vmul.f32 -1.442695, %v12194_v15  ;;  %v11704_v33 = vmul.f32 -1.442695, %v12195_v55  ;;  %v9762_v8 = vadd.f32 %v18817_v44, %v18841_v48 }
 0x800   : > { %v14169_v31 = vpop.eup %14168  ;;  %10558 = vst [vmem:[%s18602_s27 + $0x28] sm:$0xff] %v14167_v18  ;;  %14188 = vrcp.f32 %v10243_v36  ;;  %v9846_v58 = vadd.f32 %v11867_v9, %v9749_v41  ;;  %v9648_v13 = vpop.f32.mrb[176].mxu0 }
 0x801   : > { %v14171_v46 = vpop.eup %14170  ;;  %10564 = vst [vmem:[%s18602_s27 + $0x58] sm:$0xff] %v14169_v31  ;;  %14190 = vpow2.f32 %v11683_v57  ;;  %v9650_v5 = vpop.f32.mrb[177].mxu0  ;;  %v12196_v41 = vadd.f32 %v9648_v13, %v18859_v52  ;;  %v9765_v13 = vadd.f32 %v18823_v19, %v18841_v48 }
 0x802   : > { %v14173_v37 = vpop.eup %14172  ;;  %10559 = vst [vmem:[%s18602_s27 + $0x30] sm:$0xff] %v14171_v46  ;;  %14192 = vpow2.f32 %v11684_v12  ;;  %v11869_v49 = vpop.f32.mrb[241].mxu1  ;;  %v11705_v10 = vmul.f32 -1.442695, %v9846_v58  ;;  %v12197_v20 = vadd.f32 %v9650_v5, %v18864_v35 }
 0x803   : > { %v14175_v42 = vpop.eup %14174  ;;  %10565 = vst [vmem:[%s18602_s27 + $0x60] sm:$0xff] %v14173_v37  ;;  %14194 = vpow2.f32 %v11689_v23  ;;  %v11870_v16 = vadd.f32 %v11869_v49, %v11868_v28  ;;  %v18917_v6 = vpop.f32.mrb[178].mxu0  ;;  %v11710_v58 = vmul.f32 -1.442695, %v12196_v41 }
 0x804   : > { %v14177_v60 = vpop.eup %14176  ;;  %v10244_v61 = vadd.f32 1.0, %v14175_v42  ;;  %14196 = vpow2.f32 %v11690_v53  ;;  %v11871_v22 = vpop.f32.mrb[242].mxu1  ;;  %v12198_v19 = vadd.f32 %v18917_v6, %v18859_v52 }
 0x805   : > { %v14179_v27 = vpop.eup %14178  ;;  %10566 = vst [vmem:[%s18602_s27 + $0x68] sm:$0xff] %v14177_v60  ;;  %14198 = vpow2.f32 %v11691_v59  ;;  %v18920_v17 = vpop.f32.mrb[179].mxu0  ;;  %v18922_v4 = vadd.f32 %v11870_v16, %v9754_v24 }
 0x806   : > { %v11872_v32 = vpop.f32.mrb[243].mxu1  ;;  %v14181_v11 = vpop.eup %14180  ;;  %14200 = vrcp.f32 %v10244_v61  ;;  %v10249_v2 = vadd.f32 1.0, %v14179_v27 }
 0x807   : > { %v14183_v38 = vpop.eup %14182  ;;  %10571 = vst [vmem:[%s18602_s27 + $0x90] sm:$0xff] %v14181_v11  ;;  %14202 = vpow2.f32 %v11696_v54  ;;  %v11873_v1 = vadd.f32 %v11872_v32, %v11871_v22  ;;  %v11874_v7 = vpop.f32.mrb[244].mxu1  ;;  %v11711_v54 = vmul.f32 -1.442695, %v12197_v20  ;;  %v12199_v32 = vadd.f32 %v18920_v17, %v18864_v35 }
 0x808   : > { %v14185_v14 = vpop.eup %14184  ;;  %10572 = vst [vmem:[%s18602_s27 + $0x98] sm:$0xff] %v14183_v38  ;;  %14204 = vrcp.f32 %v10249_v2  ;;  %v18932_v45 = vpop.f32.mrb[180].mxu0  ;;  %v11712_v6 = vmul.f32 -1.442695, %v18922_v4 }
 0x809   : > { %v14187_v51 = vpop.eup %14186  ;;  %10578 = vst [vmem:[%s18602_s27 + $0xc8] sm:$0xff] %v14185_v14  ;;  %14206 = vpow2.f32 %v11697_v25  ;;  %v18929_v34 = vadd.f32 %v11873_v1, %v9757_v3  ;;  %v18936_v40 = vpop.f32.mrb[181].mxu0  ;;  %v12200_v17 = vadd.f32 %v18932_v45, %v18859_v52 }
 0x80a   : > { %v14189_v50 = vpop.eup %14188  ;;  %10573 = vst [vmem:[%s18602_s27 + $0xa0] sm:$0xff] %v14187_v51  ;;  %14208 = vpow2.f32 %v11698_v29  ;;  %v11875_v57 = vpop.f32.mrb[245].mxu1 }
 0x80b   : > { %v14191_v39 = vpop.eup %14190  ;;  %10579 = vst [vmem:[%s18602_s27 + $0xd0] sm:$0xff] %v14189_v50  ;;  %14210 = vpow2.f32 %v11703_v47  ;;  %v11876_v36 = vadd.f32 %v11875_v57, %v11874_v7  ;;  %v18940_v12 = vpop.f32.mrb[182].mxu0 }
 0x80c   : > { %v14193_v30 = vpop.eup %14192  ;;  %v10250_v56 = vadd.f32 1.0, %v14191_v39  ;;  %14212 = vpow2.f32 %v11704_v33  ;;  %v11877_v0 = vpop.f32.mrb[246].mxu1 }
 0x80d   : > { %v14195_v18 = vpop.eup %14194  ;;  %v10251_v23 = vadd.f32 1.0, %v14193_v30  ;;  %14214 = vpow2.f32 %v11705_v10  ;;  %v18943_v9 = vpop.f32.mrb[183].mxu0  ;;  %v18945_v59 = vadd.f32 %v11876_v36, %v9762_v8  ;;  %v11717_v30 = vmul.f32 -1.442695, %v12198_v19 }
 0x80e   : > { %v11878_v31 = vpop.f32.mrb[247].mxu1  ;;  %v14197_v53 = vpop.eup %14196  ;;  %14216 = vrcp.f32 %v10250_v56  ;;  %v10256_v46 = vadd.f32 1.0, %v14195_v18  ;;  %v11718_v56 = vmul.f32 -1.442695, %v12199_v32  ;;  %v12201_v36 = vadd.f32 %v18936_v40, %v18864_v35 }
 0x80f   : > { %v14199_v44 = vpop.eup %14198  ;;  %14218 = vrcp.f32 %v10251_v23  ;;  %v10257_v63 = vadd.f32 1.0, %v14197_v53  ;;  %v11879_v42 = vadd.f32 %v11878_v31, %v11877_v0  ;;  %v11880_v61 = vpop.f32.mrb[248].mxu1  ;;  %v11724_v53 = vmul.f32 -1.442695, %v12200_v17 }
 0x810   : > { %v14201_v37 = vpop.eup %14200  ;;  %14220 = vrcp.f32 %v10256_v46  ;;  %v10258_v28 = vadd.f32 1.0, %v14199_v44  ;;  %v9668_v60 = vpop.f32.mrb[184].mxu0  ;;  %v11726_v19 = vmul.f32 -1.442695, %v18945_v59 }
 0x811   : > { %v14203_v24 = vpop.eup %14202  ;;  %10580 = vst [vmem:[%s18602_s27 + $0xd8] sm:$0xff] %v14201_v37  ;;  %14222 = vrcp.f32 %v10257_v63  ;;  %v18950_v49 = vadd.f32 %v11879_v42, %v9765_v13  ;;  %v18956_v48 = vadd.f32 %v9668_v60, %v18859_v52  ;;  %v9670_v16 = vpop.f32.mrb[185].mxu0  ;;  %v11725_v42 = vmul.f32 -1.442695, %v12201_v36 }
 0x812   : > { %v14205_v15 = vpop.eup %14204  ;;  %14224 = vrcp.f32 %v10258_v28  ;;  %v10263_v5 = vadd.f32 1.0, %v14203_v24  ;;  %v11881_v22 = vpop.f32.mrb[249].mxu1  ;;  %v18961_v11 = vadd.f32 %v9670_v16, %v18864_v35  ;;  %v12203_v24 = vadd.f32 %v18943_v9, %v18864_v35 }
 0x813   : > { %v14207_v55 = vpop.eup %14206  ;;  %10585 = vst [vmem:[%s18602_s27 + $0x100] sm:$0xff] %v14205_v15  ;;  %14226 = vpow2.f32 %v11710_v58  ;;  %v9672_v2 = vpop.f32.mrb[186].mxu0  ;;  %v11882_v47 = vadd.f32 %v11881_v22, %v11880_v61 }
 0x814   : > { %v14209_v27 = vpop.eup %14208  ;;  %14228 = vrcp.f32 %v10263_v5  ;;  %v10264_v25 = vadd.f32 1.0, %v14207_v55  ;;  %v11883_v29 = vpop.f32.mrb[250].mxu1  ;;  %v18967_v10 = vadd.f32 %v9672_v2, %v18859_v52 }
 0x815   : > { %v14211_v38 = vpop.eup %14210  ;;  %v10265_v3 = vadd.f32 1.0, %v14209_v27  ;;  %14230 = vpow2.f32 %v11711_v54  ;;  %v9674_v1 = vpop.f32.mrb[187].mxu0  ;;  %v18970_v39 = vadd.f32 %v11882_v47, %v18847_v43  ;;  %v11719_v43 = vmul.f32 -1.442695, %v18929_v34 }
 0x816   : > { %v11884_v14 = vpop.f32.mrb[251].mxu1  ;;  %v14213_v33 = vpop.eup %14212  ;;  %14232 = vrcp.f32 %v10264_v25  ;;  %v10270_v51 = vadd.f32 1.0, %v14211_v38  ;;  %v18973_v4 = vadd.f32 %v9674_v1, %v18864_v35  ;;  %v12202_v34 = vadd.f32 %v18940_v12, %v18859_v52 }
 0x817   : > { %v14215_v50 = vpop.eup %14214  ;;  %14234 = vrcp.f32 %v10265_v3  ;;  %v10271_v7 = vadd.f32 1.0, %v14213_v33  ;;  %v11885_v8 = vadd.f32 %v11884_v14, %v11883_v29  ;;  %v11886_v20 = vpop.f32.mrb[252].mxu1  ;;  %v11738_v29 = vmul.f32 -1.442695, %v18956_v48 }
 0x818   : > { %v14217_v41 = vpop.eup %14216  ;;  %14236 = vrcp.f32 %v10270_v51  ;;  %v10272_v57 = vadd.f32 1.0, %v14215_v50  ;;  %v9678_v23 = vpop.f32.mrb[188].mxu0  ;;  %v11731_v27 = vmul.f32 -1.442695, %v12202_v34  ;;  %v11739_v51 = vmul.f32 -1.442695, %v18961_v11 }
 0x819   : > { %v14219_v45 = vpop.eup %14218  ;;  %10586 = vst [vmem:[%s18602_s27 + $0x108] sm:$0xff] %v14217_v41  ;;  %14238 = vrcp.f32 %v10271_v7  ;;  %v18981_v18 = vadd.f32 %v11885_v8, %v18852_v21  ;;  %v18985_v46 = vadd.f32 %v9678_v23, %v18859_v52  ;;  %v9680_v40 = vpop.f32.mrb[189].mxu0  ;;  %v11740_v41 = vmul.f32 -1.442695, %v18970_v39 }
 0x81a   : > { %v14221_v0 = vpop.eup %14220  ;;  %10587 = vst [vmem:[%s18602_s27 + $0x110] sm:$0xff] %v14219_v45  ;;  %14240 = vrcp.f32 %v10272_v57  ;;  %v11887_v44 = vpop.f32.mrb[253].mxu1  ;;  %v18991_v21 = vadd.f32 %v9680_v40, %v18864_v35  ;;  %v11746_v40 = vmul.f32 -1.442695, %v18973_v4 }
 0x81b   : > { %v14223_v31 = vpop.eup %14222  ;;  %10592 = vst [vmem:[%s18602_s27 + $0x138] sm:$0xff] %v14221_v0  ;;  %14242 = vpow2.f32 %v11712_v6  ;;  %v11888_v58 = vadd.f32 %v11887_v44, %v11886_v20  ;;  %v9682_v37 = vpop.f32.mrb[190].mxu0  ;;  %v11745_v20 = vmul.f32 -1.442695, %v18967_v10 }
 0x81c   : > { %v14225_v63 = vpop.eup %14224  ;;  %10593 = vst [vmem:[%s18602_s27 + $0x140] sm:$0xff] %v14223_v31  ;;  %14244 = vpow2.f32 %v11717_v30  ;;  %v11889_v13 = vpop.f32.mrb[254].mxu1  ;;  %v18997_v54 = vadd.f32 %v9682_v37, %v18859_v52  ;;  %v11753_v10 = vmul.f32 -1.442695, %v18991_v21 }
 0x81d   : > { %v14227_v28 = vpop.eup %14226  ;;  %10594 = vst [vmem:[%s18602_s27 + $0x148] sm:$0xff] %v14225_v63  ;;  %14246 = vpow2.f32 %v11718_v56  ;;  %v9684_v15 = vpop.f32.mrb[191].mxu0  ;;  %v19000_v61 = vadd.f32 %v11888_v58, %v18857_v26  ;;  %v11732_v26 = vmul.f32 -1.442695, %v12203_v24  ;;  %v11747_v63 = vmul.f32 -1.442695, %v18981_v18 }
 0x81e   : > { %v11890_v5 = vpop.f32.mrb[255].mxu1  ;;  %v14229_v12 = vpop.eup %14228  ;;  %v10277_v60 = vadd.f32 1.0, %v14227_v28  ;;  %14248 = vpow2.f32 %v11719_v43  ;;  %v19005_v9 = vadd.f32 %v9684_v15, %v18864_v35  ;;  %v11733_v35 = vmul.f32 -1.442695, %v18950_v49 }
 0x81f   : > { %v14231_v55 = vpop.eup %14230  ;;  %10599 = vst [vmem:[%s18602_s27 + $0x170] sm:$0xff] %v14229_v12  ;;  %14250 = vpow2.f32 %v11724_v53  ;;  %v11891_v52 = vadd.f32 %v11890_v5, %v11889_v13  ;;  %v11752_v58 = vmul.f32 -1.442695, %v18985_v46  ;;  %v11754_v18 = vmul.f32 -1.442695, %v19000_v61 }
 0x820   : > { %v14233_v16 = vpop.eup %14232  ;;  %14252 = vrcp.f32 %v10277_v60  ;;  %v10278_v22 = vadd.f32 1.0, %v14231_v55  ;;  %v11759_v24 = vmul.f32 -1.442695, %v18997_v54  ;;  %v11760_v5 = vmul.f32 -1.442695, %v19005_v9 }
 0x821   : > { %v14235_v25 = vpop.eup %14234  ;;  %10600 = vst [vmem:[%s18602_s27 + $0x178] sm:$0xff] %v14233_v16  ;;  %14254 = vpow2.f32 %v11725_v42  ;;  %v19009_v32 = vadd.f32 %v11891_v52, %v18862_v62 }
 0x822   : > { %v14237_v2 = vpop.eup %14236  ;;  %10601 = vst [vmem:[%s18602_s27 + $0x180] sm:$0xff] %v14235_v25  ;;  %14256 = vrcp.f32 %v10278_v22 }
 0x823   : > { %v14239_v59 = vpop.eup %14238  ;;  %10606 = vst [vmem:[%s18602_s27 + $0x1a8] sm:$0xff] %v14237_v2  ;;  %14258 = vpow2.f32 %v11726_v19  ;;  %v11761_v60 = vmul.f32 -1.442695, %v19009_v32 }
 0x824   : > { %v14241_v38 = vpop.eup %14240  ;;  %10607 = vst [vmem:[%s18602_s27 + $0x1b0] sm:$0xff] %v14239_v59  ;;  %14260 = vpow2.f32 %v11731_v27 }
 0x825   : > { %v14243_v3 = vpop.eup %14242  ;;  %10608 = vst [vmem:[%s18602_s27 + $0x1b8] sm:$0xff] %v14241_v38  ;;  %14262 = vpow2.f32 %v11732_v26 }
 0x826   : > { %v14245_v6 = vpop.eup %14244  ;;  %v10279_v47 = vadd.f32 1.0, %v14243_v3  ;;  %14264 = vpow2.f32 %v11733_v35 }
 0x827   : > { %v14247_v62 = vpop.eup %14246  ;;  %v10284_v1 = vadd.f32 1.0, %v14245_v6  ;;  %14266 = vpow2.f32 %v11738_v29 }
 0x828   : > { %v14249_v14 = vpop.eup %14248  ;;  %14268 = vrcp.f32 %v10279_v47  ;;  %v10285_v49 = vadd.f32 1.0, %v14247_v62 }
 0x829   : > { %v14251_v33 = vpop.eup %14250  ;;  %14270 = vrcp.f32 %v10284_v1  ;;  %v10286_v48 = vadd.f32 1.0, %v14249_v14 }
 0x82a   : > { %v14253_v17 = vpop.eup %14252  ;;  %14272 = vrcp.f32 %v10285_v49  ;;  %v10291_v50 = vadd.f32 1.0, %v14251_v33 }
 0x82b   : > { %v14255_v7 = vpop.eup %14254  ;;  %10613 = vst [vmem:[%s18602_s27 + $0x1e0] sm:$0xff] %v14253_v17  ;;  %14274 = vrcp.f32 %v10286_v48 }
 0x82c   : > { %v14257_v57 = vpop.eup %14256  ;;  %14276 = vrcp.f32 %v10291_v50  ;;  %v10292_v30 = vadd.f32 1.0, %v14255_v7 }
 0x82d   : > { %v14259_v8 = vpop.eup %14258  ;;  %10614 = vst [vmem:[%s18602_s27 + $0x1e8] sm:$0xff] %v14257_v57  ;;  %14278 = vpow2.f32 %v11739_v51 }
 0x82e   : > { %v14261_v45 = vpop.eup %14260  ;;  %14280 = vrcp.f32 %v10292_v30  ;;  %v10293_v56 = vadd.f32 1.0, %v14259_v8 }
 0x82f   : > { %v14263_v36 = vpop.eup %14262  ;;  %v10298_v11 = vadd.f32 1.0, %v14261_v45  ;;  %14282 = vpow2.f32 %v11740_v41 }
 0x830   : > { %v14265_v0 = vpop.eup %14264  ;;  %14284 = vrcp.f32 %v10293_v56  ;;  %v10299_v43 = vadd.f32 1.0, %v14263_v36 }
 0x831   : > { %v14267_v23 = vpop.eup %14266  ;;  %14286 = vrcp.f32 %v10298_v11  ;;  %v10300_v39 = vadd.f32 1.0, %v14265_v0 }
 0x832   : > { %v14269_v31 = vpop.eup %14268  ;;  %14288 = vrcp.f32 %v10299_v43  ;;  %v10305_v53 = vadd.f32 1.0, %v14267_v23 }
 0x833   : > { %v14271_v44 = vpop.eup %14270  ;;  %10615 = vst [vmem:[%s18602_s27 + $0x1f0] sm:$0xff] %v14269_v31  ;;  %14290 = vrcp.f32 %v10300_v39 }
 0x834   : > { %v14273_v34 = vpop.eup %14272  ;;  %10620 = vst [vmem:[%s18602_s27 + $0x218] sm:$0xff] %v14271_v44  ;;  %14292 = vrcp.f32 %v10305_v53 }
 0x835   : > { %v14275_v37 = vpop.eup %14274  ;;  %10621 = vst [vmem:[%s18602_s27 + $0x220] sm:$0xff] %v14273_v34  ;;  %14294 = vpow2.f32 %v11745_v20 }
 0x836   : > { %v14277_v13 = vpop.eup %14276  ;;  %10622 = vst [vmem:[%s18602_s27 + $0x228] sm:$0xff] %v14275_v37  ;;  %14296 = vpow2.f32 %v11746_v40 }
 0x837   : > { %v14279_v4 = vpop.eup %14278  ;;  %10627 = vst [vmem:[%s18602_s27 + $0x250] sm:$0xff] %v14277_v13  ;;  %14298 = vpow2.f32 %v11747_v63 }
 0x838   : > { %v14281_v28 = vpop.eup %14280  ;;  %v10306_v42 = vadd.f32 1.0, %v14279_v4  ;;  %14300 = vpow2.f32 %v11752_v58 }
 0x839   : > { %v14283_v46 = vpop.eup %14282  ;;  %10628 = vst [vmem:[%s18602_s27 + $0x258] sm:$0xff] %v14281_v28  ;;  %14302 = vpow2.f32 %v11753_v10 }
 0x83a   : > { %v14285_v21 = vpop.eup %14284  ;;  %14304 = vrcp.f32 %v10306_v42  ;;  %v10307_v15 = vadd.f32 1.0, %v14283_v46 }
 0x83b   : > { %v14287_v12 = vpop.eup %14286  ;;  %10629 = vst [vmem:[%s18602_s27 + $0x260] sm:$0xff] %v14285_v21  ;;  %14306 = vpow2.f32 %v11754_v18 }
 0x83c   : > { %v14289_v61 = vpop.eup %14288  ;;  %10634 = vst [vmem:[%s18602_s27 + $0x288] sm:$0xff] %v14287_v12  ;;  %14308 = vrcp.f32 %v10307_v15 }
 0x83d   : > { %v14291_v55 = vpop.eup %14290  ;;  %10635 = vst [vmem:[%s18602_s27 + $0x290] sm:$0xff] %v14289_v61  ;;  %14310 = vpow2.f32 %v11759_v24 }
 0x83e   : > { %v14293_v19 = vpop.eup %14292  ;;  %10636 = vst [vmem:[%s18602_s27 + $0x298] sm:$0xff] %v14291_v55  ;;  %14312 = vpow2.f32 %v11760_v5 }
 0x83f   : > { %v14295_v54 = vpop.eup %14294  ;;  %10641 = vst [vmem:[%s18602_s27 + $0x2c0] sm:$0xff] %v14293_v19  ;;  %14314 = vpow2.f32 %v11761_v60 }
 0x840   : > { %v14297_v52 = vpop.eup %14296  ;;  %v10312_v9 = vadd.f32 1.0, %v14295_v54 }
 0x841   : > { %v14299_v16 = vpop.eup %14298  ;;  %v10313_v22 = vadd.f32 1.0, %v14297_v52 }
 0x842   : > { %v14301_v27 = vpop.eup %14300  ;;  %14316 = vrcp.f32 %v10312_v9  ;;  %v10314_v25 = vadd.f32 1.0, %v14299_v16 }
 0x843   : > { %v14303_v26 = vpop.eup %14302  ;;  %14318 = vrcp.f32 %v10313_v22  ;;  %v10319_v32 = vadd.f32 1.0, %v14301_v27 }
 0x844   : > { %v14305_v2 = vpop.eup %14304  ;;  %14320 = vrcp.f32 %v10314_v25  ;;  %v10320_v35 = vadd.f32 1.0, %v14303_v26 }
 0x845   : > { %v14307_v59 = vpop.eup %14306  ;;  %10642 = vst [vmem:[%s18602_s27 + $0x2c8] sm:$0xff] %v14305_v2  ;;  %14322 = vrcp.f32 %v10319_v32 }
 0x846   : > { %v14309_v29 = vpop.eup %14308  ;;  %14324 = vrcp.f32 %v10320_v35  ;;  %v10321_v38 = vadd.f32 1.0, %v14307_v59 }
 0x847   : > { %v14311_v3 = vpop.eup %14310  ;;  %10643 = vst [vmem:[%s18602_s27 + $0x2d0] sm:$0xff] %v14309_v29 }
 0x848   : > { %v14313_v6 = vpop.eup %14312  ;;  %14326 = vrcp.f32 %v10321_v38  ;;  %v10326_v47 = vadd.f32 1.0, %v14311_v3 }
 0x849   : > { %v14315_v62 = vpop.eup %14314  ;;  %v10327_v1 = vadd.f32 1.0, %v14313_v6 }
 0x84a   : > { %14328 = vrcp.f32 %v10326_v47  ;;  %v10328_v14 = vadd.f32 1.0, %v14315_v62 }
 0x84b   : > { %14330 = vrcp.f32 %v10327_v1 }
 0x84c   : > { %v14317_v49 = vpop.eup %14316  ;;  %14332 = vrcp.f32 %v10328_v14 }
 0x84d   : > { %v14319_v33 = vpop.eup %14318  ;;  %10648 = vst [vmem:[%s18602_s27 + $0x2f8] sm:$0xff] %v14317_v49 }
 0x84e   : > { %v14321_v48 = vpop.eup %14320  ;;  %10649 = vst [vmem:[%s18602_s27 + $0x300] sm:$0xff] %v14319_v33 }
 0x84f   : > { %v14323_v51 = vpop.eup %14322  ;;  %10650 = vst [vmem:[%s18602_s27 + $0x308] sm:$0xff] %v14321_v48 }
 0x850   : > { %v14325_v17 = vpop.eup %14324  ;;  %10655 = vst [vmem:[%s18602_s27 + $0x330] sm:$0xff] %v14323_v51 }
 0x851   : > { %10656 = vst [vmem:[%s18602_s27 + $0x338] sm:$0xff] %v14325_v17 }
 0x852   : > { %v14327_v50 = vpop.eup %14326 }
 0x853   : > { %10657 = vst [vmem:[%s18602_s27 + $0x340] sm:$0xff] %v14327_v50 }
 0x854   : > { %v14329_v7 = vpop.eup %14328 }
 0x855   : > { %v14331_v41 = vpop.eup %14330  ;;  %10662 = vst [vmem:[%s18602_s27 + $0x368] sm:$0xff] %v14329_v7 }
 0x856   : > { %v14333_v57 = vpop.eup %14332  ;;  %10663 = vst [vmem:[%s18602_s27 + $0x370] sm:$0xff] %v14331_v41 }
 0x857   : > { %10664 = vst [vmem:[%s18602_s27 + $0x378] sm:$0xff] %v14333_v57 }
 0x858 PF: > { %s27_s21 = sadd.s32 1, %s14341_s21  }
 0x859   : > { %p24_p4 = scmp.ge.s32.totalorder %s27_s21, 4  }
 0x85b   :  { %26 = sbr.rel (!%p24_p4) target bundleno = 2 (0x2), region = 133 }

</bundles_post_ra>
